<compile_context>
chip_gen: v7x
topology: tpu7x:2x2x1
jax: 0.10.0
libtpu: 0.0.40
codegen_flags: <defaults>
</compile_context>

<pallas_src>
import functools

import jax
import jax.numpy as jnp
from jax.experimental import pallas as pl
from jax.experimental.pallas import tpu as pltpu

FULL_ATOM_FEATURE_DIMS = [129, 19, 22, 22, 20, 16, 16, 12, 12]


def _round_up(x, m):
    return ((x + m - 1) // m) * m


def pack_embedding_tables(atom_tables, degree_table, graph_token):
    """One-time parameter prep (do this at load time, NOT per forward call)."""
    H = graph_token.shape[-1]
    dtype = graph_token.dtype
    offsets, rows, off = [], [], 0
    for t in atom_tables:
        offsets.append(off)
        rows.append(t)
        off += t.shape[0]
    degree_offset = off
    rows.append(degree_table)
    off += degree_table.shape[0]
    graph_row = off
    rows.append(graph_token.reshape(1, H))
    off += 1
    zero_row = off                       # guaranteed-zero row (also used for padding)
    n_rows = _round_up(off + 1, 8)       # keep sublane-aligned
    rows.append(jnp.zeros((n_rows - zero_row, H), dtype=dtype))
    table = jnp.concatenate(rows, axis=0)
    meta = dict(atom_offsets=tuple(int(o) for o in offsets),
                degree_offset=int(degree_offset),
                graph_row=int(graph_row),
                zero_row=int(zero_row))
    return table, meta


def _graphormer_embeddings_kernel(*refs, n_rows, nf, atom_scale, pos_scale, eps,
                                  has_pos, post_ln):
    it = iter(refs)
    idx_ref = next(it)                       # (tm, nf) int32 packed-table row ids
    table_ref = next(it)                     # (n_rows, H) resident packed table
    pos_ref = next(it) if has_pos else None  # (tm, H)
    gamma_ref = next(it) if post_ln else None
    beta_ref = next(it) if post_ln else None
    o_ref = next(it)                         # (tm, H)

    tm = idx_ref.shape[0]
    idx = idx_ref[...]
    col = jax.lax.broadcasted_iota(jnp.int32, (tm, n_rows), 1)

    # Multi-hot "gather matrix": 10 compares on the VPU (static unroll).
    hits = jnp.zeros((tm, n_rows), jnp.int32)
    for f in range(nf):
        hits = hits + (col == idx[:, f:f + 1]).astype(jnp.int32)
    multihot = hits.astype(jnp.float32)

    # One MXU pass == sum of the 10 embedding lookups per token.
    emb = jnp.dot(multihot, table_ref[...].astype(jnp.float32),
                  preferred_element_type=jnp.float32)

    y = emb * atom_scale
    if has_pos:
        y = y + jnp.clip(pos_ref[...].astype(jnp.float32), -1.0, 1.0) * pos_scale
    if post_ln:
        mean = jnp.mean(y, axis=-1, keepdims=True)
        cen = y - mean
        var = jnp.mean(cen * cen, axis=-1, keepdims=True)
        y = cen * jax.lax.rsqrt(var + eps)
        y = y * gamma_ref[...].astype(jnp.float32) + beta_ref[...].astype(jnp.float32)
        # TODO(synk): embedding dropout is identity in eval/deterministic mode; for
        # training-mode dropout build a keep mask with pltpu.prng_seed/prng_random_bits.
    o_ref[...] = y.astype(o_ref.dtype)


def graphormer_embeddings(x, in_degree, table, meta, *,
                          atom_embedding_scale, pos_encoding_scale=1.0,
                          pos_encoding=None, post_ln=True,
                          ln_gamma=None, ln_beta=None, layer_norm_eps=1e-5,
                          tm=256):
    """x: [B, N, 9] int; in_degree: [B, N] int; pos_encoding: [B, N+1, H] or None."""
    B, N, nf_atom = x.shape
    nf = nf_atom + 1
    n_rows, H = table.shape
    S = N + 1
    M = B * S

    # Build packed-table row indices for every output position (tiny int ops).
    atom_off = jnp.asarray(meta["atom_offsets"], jnp.int32)
    atom_idx = x.astype(jnp.int32) + atom_off[None, None, :]
    deg_idx = in_degree.astype(jnp.int32) + meta["degree_offset"]
    tok_idx = jnp.concatenate([atom_idx, deg_idx[..., None]], axis=-1)   # (B, N, 10)
    g_idx = jnp.full((B, 1, nf), meta["zero_row"], jnp.int32)
    g_idx = g_idx.at[:, :, 0].set(meta["graph_row"])                     # graph token row
    idx = jnp.concatenate([g_idx, tok_idx], axis=1).reshape(M, nf)

    # Pad rows to a multiple of the row tile (no divisibility assert).
    Mp = _round_up(M, tm)
    if Mp != M:
        idx = jnp.concatenate(
            [idx, jnp.full((Mp - M, nf), meta["zero_row"], jnp.int32)], axis=0)

    has_pos = pos_encoding is not None
    operands = [idx, table]
    in_specs = [
        pl.BlockSpec((tm, nf), lambda i: (i, 0)),        # row-tile of indices
        pl.BlockSpec((n_rows, H), lambda i: (0, 0)),     # packed table, VMEM-resident
    ]
    if has_pos:
        pos2 = pos_encoding.reshape(M, H)
        if Mp != M:
            pos2 = jnp.concatenate([pos2, jnp.zeros((Mp - M, H), pos2.dtype)], axis=0)
        operands.append(pos2)
        in_specs.append(pl.BlockSpec((tm, H), lambda i: (i, 0)))
    if post_ln:
        operands.append(ln_gamma.reshape(1, H))
        operands.append(ln_beta.reshape(1, H))
        in_specs.append(pl.BlockSpec((1, H), lambda i: (0, 0)))
        in_specs.append(pl.BlockSpec((1, H), lambda i: (0, 0)))

    kernel = functools.partial(
        _graphormer_embeddings_kernel,
        n_rows=n_rows, nf=nf,
        atom_scale=float(atom_embedding_scale),
        pos_scale=float(pos_encoding_scale),
        eps=float(layer_norm_eps),
        has_pos=has_pos, post_ln=post_ln)

    out = pl.pallas_call(
        kernel,
        out_shape=jax.ShapeDtypeStruct((Mp, H), table.dtype),
        grid_spec=pltpu.PrefetchScalarGridSpec(
            num_scalar_prefetch=0,
            grid=(Mp // tm,),
            in_specs=in_specs,
            out_specs=pl.BlockSpec((tm, H), lambda i: (i, 0)),
        ),
        compiler_params=pltpu.CompilerParams(
            dimension_semantics=("parallel",),          # shards row tiles across v7x TCs
            vmem_limit_bytes=64 * 1024 * 1024,
        ),
    )(*operands)

    return out[:M].reshape(B, S, H)


def _reference(x, in_degree, atom_tables, degree_table, graph_token,
               atom_scale, pos_scale, pos_encoding, post_ln, gamma, beta, eps):
    emb = 0.0
    for i, t in enumerate(atom_tables):
        emb = emb + t[x[:, :, i]]
    emb = emb + degree_table[in_degree]
    B = x.shape[0]
    H = graph_token.shape[-1]
    g = jnp.broadcast_to(graph_token.reshape(1, 1, H), (B, 1, H))
    emb = jnp.concatenate([g, emb], axis=1)
    emb = emb * atom_scale
    if pos_encoding is not None:
        emb = emb + jnp.clip(pos_encoding, -1.0, 1.0) * pos_scale
    if post_ln:
        mean = jnp.mean(emb, axis=-1, keepdims=True)
        var = jnp.mean((emb - mean) ** 2, axis=-1, keepdims=True)
        emb = (emb - mean) / jnp.sqrt(var + eps)
        emb = emb * gamma + beta
    return emb


if __name__ == "__main__":
    B, N, H = 2, 8, 128          # batch=2, atoms per graph=8, hidden=128 (lane-dense)
    MAX_DEGREE = 16
    ATOM_SCALE = 0.5
    POS_SCALE = 0.25
    EPS = 1e-5

    kk = jax.random.split(jax.random.PRNGKey(0), 32)

    atom_tables = [jax.random.normal(kk[i], (d, H), jnp.float32) * 0.02
                   for i, d in enumerate(FULL_ATOM_FEATURE_DIMS)]
    degree_table = (jax.random.normal(kk[9], (MAX_DEGREE, H), jnp.float32) * 0.02
                    ).at[0].set(0.0)                       # padding_idx=0
    graph_token = jax.random.normal(kk[10], (1, H), jnp.float32) * 0.02

    x = jnp.stack(
        [jax.random.randint(kk[11 + i], (B, N), 0, d)
         for i, d in enumerate(FULL_ATOM_FEATURE_DIMS)], axis=-1).astype(jnp.int32)
    in_degree = jax.random.randint(kk[20], (B, N), 0, MAX_DEGREE).astype(jnp.int32)
    pos_encoding = jax.random.normal(kk[21], (B, N + 1, H), jnp.float32) * 2.0  # exercises clamp
    gamma = 1.0 + 0.1 * jax.random.normal(kk[22], (H,), jnp.float32)
    beta = 0.1 * jax.random.normal(kk[23], (H,), jnp.float32)

    # One-time parameter packing (load-time, not per-forward).
    table, meta = pack_embedding_tables(atom_tables, degree_table, graph_token)

    out = graphormer_embeddings(
        x, in_degree, table, meta,
        atom_embedding_scale=ATOM_SCALE,
        pos_encoding_scale=POS_SCALE,
        pos_encoding=pos_encoding,
        post_ln=True, ln_gamma=gamma, ln_beta=beta,
        layer_norm_eps=EPS, tm=256)
    out = jax.block_until_ready(out)

    ref = _reference(x, in_degree, atom_tables, degree_table, graph_token,
                     ATOM_SCALE, POS_SCALE, pos_encoding, True, gamma, beta, EPS)

    assert out.shape == (B, N + 1, H)
    assert jnp.allclose(out, ref, atol=1e-4, rtol=1e-4), \
        f"mismatch vs reference, max abs err = {float(jnp.max(jnp.abs(out - ref)))}"

    print("KERNEL_OK")
</pallas_src>

<mosaic_0001>
module attributes {stable_mosaic.version = 11 : i64} {
  func.func @_graphormer_embeddings_kernel(%arg0: i32, %arg1: memref<256x10xi32, #tpu.memory_space<vmem>>, %arg2: memref<288x128xf32, #tpu.memory_space<vmem>>, %arg3: memref<256x128xf32, #tpu.memory_space<vmem>>, %arg4: memref<1x128xf32, #tpu.memory_space<vmem>>, %arg5: memref<1x128xf32, #tpu.memory_space<vmem>>, %arg6: memref<256x128xf32, #tpu.memory_space<vmem>>) attributes {dimension_semantics = [#tpu.dimension_semantics<parallel>], iteration_bounds = array<i64: 1>, scalar_prefetch = 0 : i64, scratch_operands = 0 : i64, tpu.core_type = #tpu.core_type<tc>, window_params = [{transform_indices = @transform_0, window_bounds = array<i64: 256, 10>}, {pipeline_mode = #tpu.pipeline_mode<synchronous>, transform_indices = @transform_1, window_bounds = array<i64: 288, 128>}, {transform_indices = @transform_2, window_bounds = array<i64: 256, 128>}, {pipeline_mode = #tpu.pipeline_mode<synchronous>, transform_indices = @transform_3, window_bounds = array<i64: 1, 128>}, {pipeline_mode = #tpu.pipeline_mode<synchronous>, transform_indices = @transform_4, window_bounds = array<i64: 1, 128>}, {transform_indices = @transform_5, window_bounds = array<i64: 256, 128>}]} {
    %c0 = arith.constant 0 : index
    %c0_0 = arith.constant 0 : index
    %0 = vector.load %arg1[%c0, %c0_0] : memref<256x10xi32, #tpu.memory_space<vmem>>, vector<256x10xi32>
    %1 = tpu.iota {dimensions = array<i32: 1>} : vector<256x288xi32>
    %c0_i32 = arith.constant 0 : i32
    %2 = vector.broadcast %c0_i32 : i32 to vector<256x288xi32>
    %3 = vector.extract_strided_slice %0 {offsets = [0, 0], sizes = [256, 1], strides = [1, 1]} : vector<256x10xi32> to vector<256x1xi32>
    %4 = vector.broadcast %3 : vector<256x1xi32> to vector<256x288xi32>
    %5 = arith.cmpi eq, %1, %4 : vector<256x288xi32>
    %6 = arith.extui %5 : vector<256x288xi1> to vector<256x288xi32>
    %7 = arith.addi %2, %6 : vector<256x288xi32>
    %8 = vector.extract_strided_slice %0 {offsets = [0, 1], sizes = [256, 1], strides = [1, 1]} : vector<256x10xi32> to vector<256x1xi32>
    %9 = vector.broadcast %8 : vector<256x1xi32> to vector<256x288xi32>
    %10 = arith.cmpi eq, %1, %9 : vector<256x288xi32>
    %11 = arith.extui %10 : vector<256x288xi1> to vector<256x288xi32>
    %12 = arith.addi %7, %11 : vector<256x288xi32>
    %13 = vector.extract_strided_slice %0 {offsets = [0, 2], sizes = [256, 1], strides = [1, 1]} : vector<256x10xi32> to vector<256x1xi32>
    %14 = vector.broadcast %13 : vector<256x1xi32> to vector<256x288xi32>
    %15 = arith.cmpi eq, %1, %14 : vector<256x288xi32>
    %16 = arith.extui %15 : vector<256x288xi1> to vector<256x288xi32>
    %17 = arith.addi %12, %16 : vector<256x288xi32>
    %18 = vector.extract_strided_slice %0 {offsets = [0, 3], sizes = [256, 1], strides = [1, 1]} : vector<256x10xi32> to vector<256x1xi32>
    %19 = vector.broadcast %18 : vector<256x1xi32> to vector<256x288xi32>
    %20 = arith.cmpi eq, %1, %19 : vector<256x288xi32>
    %21 = arith.extui %20 : vector<256x288xi1> to vector<256x288xi32>
    %22 = arith.addi %17, %21 : vector<256x288xi32>
    %23 = vector.extract_strided_slice %0 {offsets = [0, 4], sizes = [256, 1], strides = [1, 1]} : vector<256x10xi32> to vector<256x1xi32>
    %24 = vector.broadcast %23 : vector<256x1xi32> to vector<256x288xi32>
    %25 = arith.cmpi eq, %1, %24 : vector<256x288xi32>
    %26 = arith.extui %25 : vector<256x288xi1> to vector<256x288xi32>
    %27 = arith.addi %22, %26 : vector<256x288xi32>
    %28 = vector.extract_strided_slice %0 {offsets = [0, 5], sizes = [256, 1], strides = [1, 1]} : vector<256x10xi32> to vector<256x1xi32>
    %29 = vector.broadcast %28 : vector<256x1xi32> to vector<256x288xi32>
    %30 = arith.cmpi eq, %1, %29 : vector<256x288xi32>
    %31 = arith.extui %30 : vector<256x288xi1> to vector<256x288xi32>
    %32 = arith.addi %27, %31 : vector<256x288xi32>
    %33 = vector.extract_strided_slice %0 {offsets = [0, 6], sizes = [256, 1], strides = [1, 1]} : vector<256x10xi32> to vector<256x1xi32>
    %34 = vector.broadcast %33 : vector<256x1xi32> to vector<256x288xi32>
    %35 = arith.cmpi eq, %1, %34 : vector<256x288xi32>
    %36 = arith.extui %35 : vector<256x288xi1> to vector<256x288xi32>
    %37 = arith.addi %32, %36 : vector<256x288xi32>
    %38 = vector.extract_strided_slice %0 {offsets = [0, 7], sizes = [256, 1], strides = [1, 1]} : vector<256x10xi32> to vector<256x1xi32>
    %39 = vector.broadcast %38 : vector<256x1xi32> to vector<256x288xi32>
    %40 = arith.cmpi eq, %1, %39 : vector<256x288xi32>
    %41 = arith.extui %40 : vector<256x288xi1> to vector<256x288xi32>
    %42 = arith.addi %37, %41 : vector<256x288xi32>
    %43 = vector.extract_strided_slice %0 {offsets = [0, 8], sizes = [256, 1], strides = [1, 1]} : vector<256x10xi32> to vector<256x1xi32>
    %44 = vector.broadcast %43 : vector<256x1xi32> to vector<256x288xi32>
    %45 = arith.cmpi eq, %1, %44 : vector<256x288xi32>
    %46 = arith.extui %45 : vector<256x288xi1> to vector<256x288xi32>
    %47 = arith.addi %42, %46 : vector<256x288xi32>
    %48 = vector.extract_strided_slice %0 {offsets = [0, 9], sizes = [256, 1], strides = [1, 1]} : vector<256x10xi32> to vector<256x1xi32>
    %49 = vector.broadcast %48 : vector<256x1xi32> to vector<256x288xi32>
    %50 = arith.cmpi eq, %1, %49 : vector<256x288xi32>
    %51 = arith.extui %50 : vector<256x288xi1> to vector<256x288xi32>
    %52 = arith.addi %47, %51 : vector<256x288xi32>
    %53 = arith.sitofp %52 : vector<256x288xi32> to vector<256x288xf32>
    %c0_1 = arith.constant 0 : index
    %c0_2 = arith.constant 0 : index
    %54 = vector.load %arg2[%c0_1, %c0_2] : memref<288x128xf32, #tpu.memory_space<vmem>>, vector<288x128xf32>
    %cst = arith.constant dense<0.000000e+00> : vector<256x128xf32>
    %55 = tpu.matmul %53, %54, %cst {dimension_numbers = #tpu.dot_dimension_numbers<[1], [0], [0], [1], [0, 0, 1, 1], [], []>} : vector<256x288xf32>, vector<288x128xf32>, vector<256x128xf32> -> vector<256x128xf32>
    %cst_3 = arith.constant 5.000000e-01 : f32
    %56 = vector.broadcast %cst_3 : f32 to vector<256x128xf32>
    %57 = arith.mulf %55, %56 : vector<256x128xf32>
    %c0_4 = arith.constant 0 : index
    %c0_5 = arith.constant 0 : index
    %58 = vector.load %arg3[%c0_4, %c0_5] : memref<256x128xf32, #tpu.memory_space<vmem>>, vector<256x128xf32>
    %cst_6 = arith.constant -1.000000e+00 : f32
    %cst_7 = arith.constant 1.000000e+00 : f32
    %59 = vector.broadcast %cst_6 : f32 to vector<256x128xf32>
    %60 = arith.maximumf %59, %58 : vector<256x128xf32>
    %61 = vector.broadcast %cst_7 : f32 to vector<256x128xf32>
    %62 = arith.minimumf %61, %60 : vector<256x128xf32>
    %cst_8 = arith.constant 2.500000e-01 : f32
    %63 = vector.broadcast %cst_8 : f32 to vector<256x128xf32>
    %64 = arith.mulf %62, %63 : vector<256x128xf32>
    %65 = arith.addf %57, %64 : vector<256x128xf32>
    %cst_9 = arith.constant dense<0.000000e+00> : vector<256xf32>
    %66 = vector.multi_reduction <add>, %65, %cst_9 [1] : vector<256x128xf32> to vector<256xf32>
    %67 = vector.shape_cast %66 : vector<256xf32> to vector<256x1xf32>
    %cst_10 = arith.constant 1.280000e+02 : f32
    %68 = vector.broadcast %cst_10 : f32 to vector<256x1xf32>
    %69 = arith.divf %67, %68 : vector<256x1xf32>
    %70 = vector.broadcast %69 : vector<256x1xf32> to vector<256x128xf32>
    %71 = arith.subf %65, %70 : vector<256x128xf32>
    %72 = arith.mulf %71, %71 : vector<256x128xf32>
    %cst_11 = arith.constant dense<0.000000e+00> : vector<256xf32>
    %73 = vector.multi_reduction <add>, %72, %cst_11 [1] : vector<256x128xf32> to vector<256xf32>
    %74 = vector.shape_cast %73 : vector<256xf32> to vector<256x1xf32>
    %cst_12 = arith.constant 1.280000e+02 : f32
    %75 = vector.broadcast %cst_12 : f32 to vector<256x1xf32>
    %76 = arith.divf %74, %75 : vector<256x1xf32>
    %cst_13 = arith.constant 9.99999974E-6 : f32
    %77 = vector.broadcast %cst_13 : f32 to vector<256x1xf32>
    %78 = arith.addf %76, %77 : vector<256x1xf32>
    %79 = math.rsqrt %78 : vector<256x1xf32>
    %80 = vector.broadcast %79 : vector<256x1xf32> to vector<256x128xf32>
    %81 = arith.mulf %71, %80 : vector<256x128xf32>
    %c0_14 = arith.constant 0 : index
    %c0_15 = arith.constant 0 : index
    %82 = vector.load %arg4[%c0_14, %c0_15] : memref<1x128xf32, #tpu.memory_space<vmem>>, vector<1x128xf32>
    %83 = vector.broadcast %82 : vector<1x128xf32> to vector<256x128xf32>
    %84 = arith.mulf %81, %83 : vector<256x128xf32>
    %c0_16 = arith.constant 0 : index
    %c0_17 = arith.constant 0 : index
    %85 = vector.load %arg5[%c0_16, %c0_17] : memref<1x128xf32, #tpu.memory_space<vmem>>, vector<1x128xf32>
    %86 = vector.broadcast %85 : vector<1x128xf32> to vector<256x128xf32>
    %87 = arith.addf %84, %86 : vector<256x128xf32>
    %c0_18 = arith.constant 0 : index
    %c0_19 = arith.constant 0 : index
    %88 = vector.load %arg6[%c0_18, %c0_19] : memref<256x128xf32, #tpu.memory_space<vmem>>, vector<256x128xf32>
    tpu.vector_store %arg6[%c0_18, %c0_19], %87 {strides = array<i32>} : memref<256x128xf32, #tpu.memory_space<vmem>>, vector<256x128xf32>,
    return
  }
  func.func @transform_0(%arg0: i32) -> (i32, i32) {
    %c0_i32 = arith.constant 0 : i32
    %c0_i32_0 = arith.constant 0 : i32
    return %arg0, %c0_i32 : i32, i32
  }
  func.func @transform_1(%arg0: i32) -> (i32, i32) {
    %c0_i32 = arith.constant 0 : i32
    %c0_i32_0 = arith.constant 0 : i32
    %c0_i32_1 = arith.constant 0 : i32
    return %c0_i32, %c0_i32_0 : i32, i32
  }
  func.func @transform_2(%arg0: i32) -> (i32, i32) {
    %c0_i32 = arith.constant 0 : i32
    %c0_i32_0 = arith.constant 0 : i32
    return %arg0, %c0_i32 : i32, i32
  }
  func.func @transform_3(%arg0: i32) -> (i32, i32) {
    %c0_i32 = arith.constant 0 : i32
    %c0_i32_0 = arith.constant 0 : i32
    %c0_i32_1 = arith.constant 0 : i32
    return %c0_i32, %c0_i32_0 : i32, i32
  }
  func.func @transform_4(%arg0: i32) -> (i32, i32) {
    %c0_i32 = arith.constant 0 : i32
    %c0_i32_0 = arith.constant 0 : i32
    %c0_i32_1 = arith.constant 0 : i32
    return %c0_i32, %c0_i32_0 : i32, i32
  }
  func.func @transform_5(%arg0: i32) -> (i32, i32) {
    %c0_i32 = arith.constant 0 : i32
    %c0_i32_0 = arith.constant 0 : i32
    return %arg0, %c0_i32 : i32, i32
  }
}

</mosaic_0001>

<bundles_post_ra>
// kernel: tpu_custom_call.1
= control target key start
LH: loop header
LB: loop body
LE: loop exit
PB: predicated region body
PF: predicated region fallthrough
CT: control target
= control target key end

     0   :  { %10 = vsyncpa [#allocation3], 0  ;;  %s13339_s0 = inlined_call_operand.hbm [shape: s32[256,10], index: 0, kind: input, shape index: {}]   ;;  %s13340_s1 = inlined_call_operand.hbm [shape: f32[288,128], index: 1, kind: input, shape index: {}]   ;;  %s13341_s2 = inlined_call_operand.hbm [shape: f32[256,128], index: 2, kind: input, shape index: {}]   ;;  %s13342_s3 = inlined_call_operand.hbm [shape: f32[1,128], index: 3, kind: input, shape index: {}]   ;;  %s13343_s4 = inlined_call_operand.hbm [shape: f32[1,128], index: 4, kind: input, shape index: {}]   ;;  %s13344_s5 = inlined_call_operand.hbm [shape: f32[256,128], index: 5, kind: output, shape index: {}]  }
   0x1   :  { %11 = vsyncpa [#allocation6], 0 }
   0x2   :  { %12 = vsyncpa [#allocation9], 0 }
   0x3   :  { %13 = vsyncpa [#allocation4], 0  ;;  %s5847_s18 = smov [#allocation5]   ;;  %s5848_s20 = smov [#allocation8]  }
   0x4   :  { %s31_s19 = sshll.u32 %s5847_s18, 4  ;;  %s56_s21 = sshll.u32 %s5848_s20, 4  ;;  %s32_s19 = int_to_ptr.vmem [resolvable:$true] %s31_s19  ;;  %s5896_s21 = int_to_ptr.vmem [resolvable:$true] %s56_s21 }
   0x5   :  { %s5707_s24 = scalar_lea.hbm %s13340_s1, 4608 }
   0x6   :  { %p5708_p0 = scmp.ne.s32.totalorder %s13340_s1, %s5707_s24  ;;  %p5711_p1 = scmp.lt.u32.totalorder %s5707_s24, %s13340_s1 }
   0x8   :  { %p5713_p2 = pnand %p5711_p1, %p5708_p0 }
   0xa   :  { %5716 = shalt.err (!%p5713_p2)
}
   0xb   :  { %s5717_s29 = scalar_lea.vmem %s32_s19, 4608  ;;  %p5722_p4 = scmp.lt.s32.totalorder %s32_s19, %s32_s19 }
   0xc   :  { %p5718_p3 = scmp.ne.s32.totalorder %s32_s19, %s5717_s29  ;;  %p5723_p5 = scmp.lt.s32.totalorder %s5717_s29, %s5717_s29 }
   0xe   :  { %p5724_p6 = por %p5723_p5, %p5722_p4 }
  0x10   :  { %p5725_p7 = pnand %p5724_p6, %p5718_p3 }
  0x12   :  { %5728 = shalt.err (!%p5725_p7)
}
  0x13   :  { %s5849_s30 = smov 128   ;;  %s5850_s6 = smov 8  }
  0x14   :  { %37 = dma.hbm_to_vmem [thread:$0]  %s13340_s1, 4608, %s32_s19, [#allocation6], %s5849_s30, %s5849_s30, %s5850_s6  }
  0x15   :  { %s5729_s11 = scalar_lea.hbm %s13342_s3, 16 }
  0x16   :  { %p5730_p8 = scmp.ne.s32.totalorder %s13342_s3, %s5729_s11  ;;  %p5733_p9 = scmp.lt.u32.totalorder %s5729_s11, %s13342_s3 }
  0x18   :  { %p5735_p10 = pnand %p5733_p9, %p5730_p8 }
  0x1a   :  { %5738 = shalt.err (!%p5735_p10)
}
  0x1b   :  { %s5739_s16 = scalar_lea.vmem %s5896_s21, 16  ;;  %s5743_s1 = scalar_lea.vmem %s5896_s21, 32 }
  0x1c   :  { %p5740_p11 = scmp.ne.s32.totalorder %s5896_s21, %s5739_s16  ;;  %p5744_p12 = scmp.lt.s32.totalorder %s5896_s21, %s5896_s21 }
  0x1d   :  { %p5745_p13 = scmp.lt.s32.totalorder %s5743_s1, %s5739_s16 }
  0x1f   :  { %p5746_p0 = por %p5745_p13, %p5744_p12 }
  0x21   :  { %p5747_p1 = pnand %p5746_p0, %p5740_p11 }
  0x23   :  { %5750 = shalt.err (!%p5747_p1)
}
  0x24   :  { %59 = dma.hbm_to_vmem [thread:$0]  %s13342_s3, 16, %s5896_s21, [#allocation9]  }
  0x25   :  { %s5851_s19 = smov [#allocation2]   ;;  %s5852_s22 = smov [#allocation7]  }
  0x26   :  { %s19_s20 = sshll.u32 %s5851_s19, 4  ;;  %s43_s23 = sshll.u32 %s5852_s22, 4  ;;  %s20_s20 = int_to_ptr.vmem [resolvable:$true] %s19_s20  ;;  %s5931_s23 = int_to_ptr.vmem [resolvable:$true] %s43_s23 }
  0x27   :  { %s5751_s26 = scalar_lea.hbm %s13339_s0, 4096 }
  0x28   :  { %p5752_p2 = scmp.ne.s32.totalorder %s13339_s0, %s5751_s26  ;;  %p5755_p3 = scmp.lt.u32.totalorder %s5751_s26, %s13339_s0 }
  0x2a   :  { %p5757_p4 = pnand %p5755_p3, %p5752_p2 }
  0x2c   :  { %5760 = shalt.err (!%p5757_p4)
}
  0x2d   :  { %s5761_s3 = scalar_lea.vmem %s20_s20, 4096  ;;  %p5766_p6 = scmp.lt.s32.totalorder %s20_s20, %s20_s20 }
  0x2e   :  { %p5762_p5 = scmp.ne.s32.totalorder %s20_s20, %s5761_s3  ;;  %p5767_p7 = scmp.lt.s32.totalorder %s5761_s3, %s5761_s3 }
  0x30   :  { %p5768_p8 = por %p5767_p7, %p5766_p6 }
  0x32   :  { %p5769_p9 = pnand %p5768_p8, %p5762_p5 }
  0x34   :  { %5772 = shalt.err (!%p5769_p9)
}
  0x35   :  { %25 = dma.hbm_to_vmem [thread:$0]  %s13339_s0, 4096, %s20_s20, [#allocation3], %s5849_s30, %s5849_s30, %s5850_s6  }
  0x36   :  { %s5773_s11 = scalar_lea.hbm %s13341_s2, 4096 }
  0x37   :  { %p5774_p10 = scmp.ne.s32.totalorder %s13341_s2, %s5773_s11  ;;  %p5777_p11 = scmp.lt.u32.totalorder %s5773_s11, %s13341_s2 }
  0x39   :  { %p5779_p12 = pnand %p5777_p11, %p5774_p10 }
  0x3b   :  { %5782 = shalt.err (!%p5779_p12)
}
  0x3c   :  { %s5783_s16 = scalar_lea.vmem %s5931_s23, 4096  ;;  %p5788_p0 = scmp.lt.s32.totalorder %s5931_s23, %s5931_s23 }
  0x3d   :  { %p5784_p13 = scmp.ne.s32.totalorder %s5931_s23, %s5783_s16  ;;  %p5789_p1 = scmp.lt.s32.totalorder %s5783_s16, %s5783_s16 }
  0x3f   :  { %p5790_p2 = por %p5789_p1, %p5788_p0 }
  0x41   :  { %p5791_p3 = pnand %p5790_p2, %p5784_p13 }
  0x43   :  { %5794 = shalt.err (!%p5791_p3)
}
  0x44   :  { %49 = dma.hbm_to_vmem [thread:$0]  %s13341_s2, 4096, %s5931_s23, [#allocation6], %s5849_s30, %s5849_s30, %s5850_s6  }
  0x45   :  { %s5853_s17 = smov [#allocation10]   ;;  %s5795_s22 = scalar_lea.hbm %s13343_s4, 16 }
  0x46   :  { %s66_s18 = sshll.u32 %s5853_s17, 4  ;;  %p5796_p4 = scmp.ne.s32.totalorder %s13343_s4, %s5795_s22  ;;  %s67_s18 = int_to_ptr.vmem [resolvable:$true] %s66_s18 }
  0x47   :  { %p5799_p5 = scmp.lt.u32.totalorder %s5795_s22, %s13343_s4 }
  0x49   :  { %p5801_p6 = pnand %p5799_p5, %p5796_p4 }
  0x4b   :  { %5804 = shalt.err (!%p5801_p6)
}
  0x4c   :  { %s5805_s28 = scalar_lea.vmem %s67_s18, 16  ;;  %s5809_s2 = scalar_lea.vmem %s67_s18, 32 }
  0x4d   :  { %p5806_p7 = scmp.ne.s32.totalorder %s67_s18, %s5805_s28  ;;  %p5810_p8 = scmp.lt.s32.totalorder %s67_s18, %s67_s18 }
  0x4e   :  { %p5811_p9 = scmp.lt.s32.totalorder %s5809_s2, %s5805_s28 }
  0x50   :  { %p5812_p10 = por %p5811_p9, %p5810_p8 }
  0x52   :  { %p5813_p11 = pnand %p5812_p10, %p5806_p7 }
  0x54   :  { %5816 = shalt.err (!%p5813_p11)
}
  0x55   :  { %69 = dma.hbm_to_vmem [thread:$0]  %s13343_s4, 16, %s67_s18, [#allocation9]  }
  0x56   :  { %5839 = dma.done.wait [#allocation3], 4096  }
  0x57   :  { %5840 = vsyncadd [#allocation3], 4294963200 }
  0x58   :  { %5841 = dma.done.wait [#allocation6], 8704  }
  0x59   :  { %5842 = vsyncadd [#allocation6], 4294958592 }
  0x5a   :  { %5843 = dma.done.wait [#allocation9], 32  }
  0x5b   :  { %5844 = vsyncadd [#allocation9], 4294967264  ;;  %v13345_v0 = vmov 0   ;;  %v5982_v1 = vld [vmem:[#allocation2 + $0x10] sm:$0xff]  ;;  %v5984_v2 = vld [vmem:[#allocation2] sm:$0xff]  ;;  %v5855_v33 = vmov 1  }
  0x5c   :  { %5484 = vset.pattern.permute.xlu1 %v13345_v0  ;;  %5483 = vset.pattern.permute.xlu0 %v13345_v0  ;;  %v5988_v3 = vld [vmem:[#allocation2 + $0x18] sm:$0xff]  ;;  %v5990_v4 = vld [vmem:[#allocation2 + $0x8] sm:$0xff]  ;;  %v5996_v6 = vld [vmem:[#allocation2 + $0x20] sm:$0xff]  ;;  %v5856_v36 = vmov 2   ;;  %s5865_s4 = smov [#allocation11]  }
  0x5d   :  { %128 = vperm.xlu1 %5484, %v5982_v1   ;;  %122 = vperm.xlu0 %5483, %v5984_v2   ;;  %v5994_v5 = vld [vmem:[#allocation2 + $0x28] sm:$0xff]  ;;  %v6000_v7 = vld [vmem:[#allocation2 + $0x38] sm:$0xff]  ;;  %v6002_v8 = vld [vmem:[#allocation2 + $0x30] sm:$0xff]  ;;  %s5204_s7 = sshll.u32 %s5865_s4, 4  ;;  %s5205_s7 = int_to_ptr.vmem [resolvable:$true] %s5204_s7 }
  0x5e   :  { %13634 = vst [vmem:[#allocation16_spill] sm:$0xff] %v6000_v7  ;;  %v6006_v9 = vld [vmem:[#allocation2 + $0x48] sm:$0xff]  ;;  %v6008_v10 = vld [vmem:[#allocation2 + $0x40] sm:$0xff]  ;;  %v6012_v11 = vld [vmem:[#allocation2 + $0x58] sm:$0xff]  ;;  %s5817_s3 = scalar_lea.vmem %s5205_s7, 4096  ;;  %p5822_p13 = scmp.lt.s32.totalorder %s5205_s7, %s5205_s7 }
  0x5f   :  { %13635 = vst [vmem:[#allocation17_spill] sm:$0xff] %v6012_v11  ;;  %v6014_v12 = vld [vmem:[#allocation2 + $0x50] sm:$0xff]  ;;  %v6018_v13 = vld [vmem:[#allocation2 + $0x68] sm:$0xff]  ;;  %v6020_v14 = vld [vmem:[#allocation2 + $0x60] sm:$0xff]  ;;  %p5818_p12 = scmp.ne.s32.totalorder %s5205_s7, %s5817_s3  ;;  %p5823_p0 = scmp.lt.s32.totalorder %s5817_s3, %s5817_s3 }
  0x60   :  { %13636 = vst [vmem:[#allocation18_spill] sm:$0xff] %v6018_v13  ;;  %v6024_v15 = vld [vmem:[#allocation2 + $0x78] sm:$0xff]  ;;  %v6026_v16 = vld [vmem:[#allocation2 + $0x70] sm:$0xff]  ;;  %v6030_v17 = vld [vmem:[#allocation2 + $0x88] sm:$0xff] }
  0x61   :  { %131 = vperm.xlu1 %5484, %v5988_v3   ;;  %125 = vperm.xlu0 %5483, %v5990_v4   ;;  %v6032_v18 = vld [vmem:[#allocation2 + $0x80] sm:$0xff]  ;;  %v6036_v19 = vld [vmem:[#allocation2 + $0x98] sm:$0xff]  ;;  %v6038_v20 = vld [vmem:[#allocation2 + $0x90] sm:$0xff]  ;;  %p5824_p1 = por %p5823_p0, %p5822_p13 }
  0x62   :  { %13637 = vst [vmem:[#allocation19_spill] sm:$0xff] %v6038_v20  ;;  %v6042_v21 = vld [vmem:[#allocation2 + $0xa8] sm:$0xff]  ;;  %v6044_v22 = vld [vmem:[#allocation2 + $0xa0] sm:$0xff]  ;;  %v6048_v23 = vld [vmem:[#allocation2 + $0xb8] sm:$0xff] }
  0x63   :  { %v6050_v24 = vld [vmem:[#allocation2 + $0xb0] sm:$0xff]  ;;  %v6054_v25 = vld [vmem:[#allocation2 + $0xc8] sm:$0xff]  ;;  %v6056_v26 = vld [vmem:[#allocation2 + $0xc0] sm:$0xff]  ;;  %p5825_p2 = pnand %p5824_p1, %p5818_p12 }
  0x64   :  { %v6060_v27 = vld [vmem:[#allocation2 + $0xd8] sm:$0xff]  ;;  %v6062_v28 = vld [vmem:[#allocation2 + $0xd0] sm:$0xff]  ;;  %v6066_v29 = vld [vmem:[#allocation2 + $0xe8] sm:$0xff] }
  0x65   :  { %137 = vperm.xlu1 %5484, %v5994_v5   ;;  %134 = vperm.xlu0 %5483, %v5996_v6   ;;  %v6068_v30 = vld [vmem:[#allocation2 + $0xe0] sm:$0xff]  ;;  %v6072_v31 = vld [vmem:[#allocation2 + $0xf8] sm:$0xff]  ;;  %v6074_v32 = vld [vmem:[#allocation2 + $0xf0] sm:$0xff] }
  0x69   :  { %143 = vperm.xlu1 %5484, %v6000_v7   ;;  %140 = vperm.xlu0 %5483, %v6002_v8  }
  0x6d   :  { %149 = vperm.xlu1 %5484, %v6006_v9   ;;  %146 = vperm.xlu0 %5483, %v6008_v10  }
  0x71   :  { %155 = vperm.xlu1 %5484, %v6012_v11   ;;  %152 = vperm.xlu0 %5483, %v6014_v12  }
  0x75   :  { %161 = vperm.xlu1 %5484, %v6018_v13   ;;  %158 = vperm.xlu0 %5483, %v6020_v14  }
  0x79   :  { %167 = vperm.xlu1 %5484, %v6024_v15   ;;  %164 = vperm.xlu0 %5483, %v6026_v16  }
  0x7d   :  { %173 = vperm.xlu1 %5484, %v6030_v17   ;;  %170 = vperm.xlu0 %5483, %v6032_v18  }
  0x81   :  { %179 = vperm.xlu1 %5484, %v6036_v19   ;;  %176 = vperm.xlu0 %5483, %v6038_v20  }
  0x85   :  { %185 = vperm.xlu1 %5484, %v6042_v21   ;;  %182 = vperm.xlu0 %5483, %v6044_v22  }
  0x89   :  { %191 = vperm.xlu1 %5484, %v6048_v23   ;;  %188 = vperm.xlu0 %5483, %v6050_v24  }
  0x8d   :  { %197 = vperm.xlu1 %5484, %v6054_v25   ;;  %194 = vperm.xlu0 %5483, %v6056_v26  }
  0x91   :  { %203 = vperm.xlu1 %5484, %v6060_v27   ;;  %200 = vperm.xlu0 %5483, %v6062_v28  }
  0x95   :  { %209 = vperm.xlu1 %5484, %v6066_v29   ;;  %206 = vperm.xlu0 %5483, %v6068_v30  }
  0x99   :  { %215 = vperm.xlu1 %5484, %v6072_v31   ;;  %212 = vperm.xlu0 %5483, %v6074_v32  }
  0x9d   :  { %5486 = vset.pattern.permute.xlu1 %v5855_v33  ;;  %5485 = vset.pattern.permute.xlu0 %v5855_v33 }
  0x9e   :  { %413 = vperm.xlu1 %5486, %v5990_v4   ;;  %410 = vperm.xlu0 %5485, %v5984_v2  }
  0xa2   :  { %416 = vperm.xlu1 %5486, %v5982_v1   ;;  %419 = vperm.xlu0 %5485, %v5988_v3  }
  0xa6   :  { %422 = vperm.xlu1 %5486, %v5996_v6   ;;  %425 = vperm.xlu0 %5485, %v5994_v5  }
  0xaa   :  { %428 = vperm.xlu1 %5486, %v6002_v8   ;;  %431 = vperm.xlu0 %5485, %v6000_v7  }
  0xae   :  { %434 = vperm.xlu1 %5486, %v6008_v10   ;;  %437 = vperm.xlu0 %5485, %v6006_v9  }
  0xb2   :  { %440 = vperm.xlu1 %5486, %v6014_v12   ;;  %443 = vperm.xlu0 %5485, %v6012_v11  }
  0xb6   :  { %446 = vperm.xlu1 %5486, %v6020_v14   ;;  %449 = vperm.xlu0 %5485, %v6018_v13  }
  0xba   :  { %452 = vperm.xlu1 %5486, %v6026_v16   ;;  %455 = vperm.xlu0 %5485, %v6024_v15  }
  0xbe   :  { %458 = vperm.xlu1 %5486, %v6032_v18   ;;  %461 = vperm.xlu0 %5485, %v6030_v17  }
  0xc2   :  { %464 = vperm.xlu1 %5486, %v6038_v20   ;;  %467 = vperm.xlu0 %5485, %v6036_v19  }
  0xc6   :  { %470 = vperm.xlu1 %5486, %v6044_v22   ;;  %473 = vperm.xlu0 %5485, %v6042_v21  }
  0xca   :  { %476 = vperm.xlu1 %5486, %v6050_v24   ;;  %479 = vperm.xlu0 %5485, %v6048_v23  }
  0xce   :  { %482 = vperm.xlu1 %5486, %v6056_v26   ;;  %485 = vperm.xlu0 %5485, %v6054_v25  }
  0xd2   :  { %488 = vperm.xlu1 %5486, %v6062_v28   ;;  %491 = vperm.xlu0 %5485, %v6060_v27  }
  0xd6   :  { %494 = vperm.xlu1 %5486, %v6068_v30   ;;  %497 = vperm.xlu0 %5485, %v6066_v29  }
  0xda   :  { %500 = vperm.xlu1 %5486, %v6074_v32   ;;  %503 = vperm.xlu0 %5485, %v6072_v31  }
  0xdc   :  { %v6110_v34 = vpop.permute.xlu1 %128  ;;  %v6112_v35 = vpop.permute.xlu0 %122 }
  0xde   :  { %5487 = vset.pattern.permute.xlu1 %v5856_v36  ;;  %5488 = vset.pattern.permute.xlu0 %v5856_v36 }
  0xdf   :  { %794 = vperm.xlu1 %5487, %v5984_v2   ;;  %797 = vperm.xlu0 %5488, %v5990_v4  }
  0xe0   :  { %v6116_v37 = vpop.permute.xlu1 %131  ;;  %v6118_v38 = vpop.permute.xlu0 %125 }
  0xe3   :  { %800 = vperm.xlu1 %5487, %v5982_v1   ;;  %806 = vperm.xlu0 %5488, %v5996_v6  }
  0xe4   :  { %v6122_v39 = vpop.permute.xlu1 %137  ;;  %v6124_v40 = vpop.permute.xlu0 %134 }
  0xe7   :  { %803 = vperm.xlu1 %5487, %v5988_v3   ;;  %812 = vperm.xlu0 %5488, %v6002_v8  }
  0xe8   :  { %v6128_v41 = vpop.permute.xlu1 %143  ;;  %v6130_v42 = vpop.permute.xlu0 %140 }
  0xeb   :  { %809 = vperm.xlu1 %5487, %v5994_v5   ;;  %818 = vperm.xlu0 %5488, %v6008_v10  }
  0xec   :  { %v6134_v43 = vpop.permute.xlu1 %149  ;;  %v6136_v44 = vpop.permute.xlu0 %146 }
  0xef   :  { %815 = vperm.xlu1 %5487, %v6000_v7   ;;  %824 = vperm.xlu0 %5488, %v6014_v12  }
  0xf0   :  { %v6140_v45 = vpop.permute.xlu1 %155  ;;  %v6142_v46 = vpop.permute.xlu0 %152 }
  0xf3   :  { %821 = vperm.xlu1 %5487, %v6006_v9   ;;  %830 = vperm.xlu0 %5488, %v6020_v14  }
  0xf4   :  { %v6146_v47 = vpop.permute.xlu1 %161  ;;  %v6148_v48 = vpop.permute.xlu0 %158 }
  0xf7   :  { %827 = vperm.xlu1 %5487, %v6012_v11   ;;  %836 = vperm.xlu0 %5488, %v6026_v16  }
  0xf8   :  { %v6152_v49 = vpop.permute.xlu1 %167  ;;  %v6154_v50 = vpop.permute.xlu0 %164 }
  0xfb   :  { %833 = vperm.xlu1 %5487, %v6018_v13   ;;  %842 = vperm.xlu0 %5488, %v6032_v18  }
  0xfc   :  { %v6158_v51 = vpop.permute.xlu1 %173  ;;  %v6160_v52 = vpop.permute.xlu0 %170 }
  0xff   :  { %839 = vperm.xlu1 %5487, %v6024_v15   ;;  %848 = vperm.xlu0 %5488, %v6038_v20  }
 0x100   :  { %v6164_v53 = vpop.permute.xlu1 %179  ;;  %v6166_v54 = vpop.permute.xlu0 %176 }
 0x103   :  { %845 = vperm.xlu1 %5487, %v6030_v17   ;;  %854 = vperm.xlu0 %5488, %v6044_v22  }
 0x104   :  { %v6170_v55 = vpop.permute.xlu1 %185  ;;  %v6172_v56 = vpop.permute.xlu0 %182 }
 0x107   :  { %851 = vperm.xlu1 %5487, %v6036_v19   ;;  %860 = vperm.xlu0 %5488, %v6050_v24  }
 0x108   :  { %v6176_v57 = vpop.permute.xlu1 %191  ;;  %v6178_v58 = vpop.permute.xlu0 %188 }
 0x10b   :  { %857 = vperm.xlu1 %5487, %v6042_v21   ;;  %866 = vperm.xlu0 %5488, %v6056_v26  }
 0x10c   :  { %v6182_v59 = vpop.permute.xlu1 %197  ;;  %v6184_v60 = vpop.permute.xlu0 %194 }
 0x10d   :  { %13638 = vst [vmem:[#allocation20_spill] sm:$0xff] %v6184_v60 }
 0x10f   :  { %863 = vperm.xlu1 %5487, %v6048_v23   ;;  %872 = vperm.xlu0 %5488, %v6062_v28  }
 0x110   :  { %v6188_v61 = vpop.permute.xlu1 %203  ;;  %v6190_v62 = vpop.permute.xlu0 %200 }
 0x111   :  { %13639 = vst [vmem:[#allocation21_spill] sm:$0xff] %v6188_v61  ;;  %13640 = vst [vmem:[#allocation22_spill] sm:$0xff] %v6190_v62  ;;  %v5857_v61 = vmov 3  }
 0x113   :  { %869 = vperm.xlu1 %5487, %v6054_v25   ;;  %878 = vperm.xlu0 %5488, %v6068_v30  }
 0x114   :  { %v6194_v63 = vpop.permute.xlu1 %209  ;;  %v6196_v33 = vpop.permute.xlu0 %206 }
 0x115   :  { %13641 = vst [vmem:[#allocation23_spill] sm:$0xff] %v6194_v63  ;;  %13642 = vst [vmem:[#allocation24_spill] sm:$0xff] %v6196_v33 }
 0x117   :  { %875 = vperm.xlu1 %5487, %v6060_v27   ;;  %884 = vperm.xlu0 %5488, %v6074_v32  }
 0x118   :  { %v6200_v36 = vpop.permute.xlu1 %215  ;;  %v6202_v0 = vpop.permute.xlu0 %212 }
 0x119   :  { %13643 = vst [vmem:[#allocation25_spill] sm:$0xff] %v6200_v36  ;;  %13644 = vst [vmem:[#allocation26_spill] sm:$0xff] %v6202_v0 }
 0x11b   :  { %881 = vperm.xlu1 %5487, %v6066_v29   ;;  %5489 = vset.pattern.permute.xlu0 %v5857_v61 }
 0x11c   :  { %1178 = vperm.xlu0 %5489, %v5984_v2  }
 0x11d   :  { %v6206_v62 = vpop.permute.xlu1 %413  ;;  %v6208_v60 = vpop.permute.xlu0 %410 }
 0x11e   :  { %13645 = vst [vmem:[#allocation27_spill] sm:$0xff] %v6206_v62  ;;  %13646 = vst [vmem:[#allocation28_spill] sm:$0xff] %v6208_v60 }
 0x11f   :  { %887 = vperm.xlu1 %5487, %v6072_v31  }
 0x120   :  { %1187 = vperm.xlu0 %5489, %v5988_v3  }
 0x121   :  { %v6212_v33 = vpop.permute.xlu1 %416  ;;  %v6214_v63 = vpop.permute.xlu0 %419 }
 0x122   :  { %13647 = vst [vmem:[#allocation29_spill] sm:$0xff] %v6214_v63 }
 0x123   :  { %5490 = vset.pattern.permute.xlu1 %v5857_v61 }
 0x124   :  { %1181 = vperm.xlu1 %5490, %v5990_v4   ;;  %1193 = vperm.xlu0 %5489, %v5994_v5  }
 0x125   :  { %v6218_v0 = vpop.permute.xlu1 %422  ;;  %v6220_v36 = vpop.permute.xlu0 %425 }
 0x126   :  { %13648 = vst [vmem:[#allocation30_spill] sm:$0xff] %v6218_v0  ;;  %13649 = vst [vmem:[#allocation31_spill] sm:$0xff] %v6220_v36 }
 0x128   :  { %1184 = vperm.xlu1 %5490, %v5982_v1   ;;  %1199 = vperm.xlu0 %5489, %v6000_v7   ;;  %v117_v7 = vlaneseq }
 0x129   :  { %v6224_v60 = vpop.permute.xlu1 %428  ;;  %v6226_v62 = vpop.permute.xlu0 %431 }
 0x12a   :  { %13650 = vst [vmem:[#allocation32_spill] sm:$0xff] %v6224_v60  ;;  %13651 = vst [vmem:[#allocation33_spill] sm:$0xff] %v6226_v62 }
 0x12c   :  { %1190 = vperm.xlu1 %5490, %v5996_v6   ;;  %1205 = vperm.xlu0 %5489, %v6006_v9  }
 0x12d   :  { %v6230_v61 = vpop.permute.xlu1 %434  ;;  %v6232_v63 = vpop.permute.xlu0 %437 }
 0x12e   :  { %13652 = vst [vmem:[#allocation34_spill] sm:$0xff] %v6230_v61  ;;  %13653 = vst [vmem:[#allocation35_spill] sm:$0xff] %v6232_v63  ;;  %v6246_v61 = vand.u32 127, %v117_v7 }
 0x130   :  { %1196 = vperm.xlu1 %5490, %v6002_v8   ;;  %1211 = vperm.xlu0 %5489, %v6012_v11   ;;  %vm223_vm0 = vcmp.eq.s32.totalorder %v6246_v61, %v6110_v34  ;;  %vm217_vm3 = vcmp.eq.s32.totalorder %v6246_v61, %v6112_v35  ;;  %vm226_vm6 = vcmp.eq.s32.totalorder %v6246_v61, %v6116_v37 }
 0x131   :  { %v6236_v36 = vpop.permute.xlu1 %440  ;;  %v6238_v0 = vpop.permute.xlu0 %443  ;;  %vm220_vm9 = vcmp.eq.s32.totalorder %v6246_v61, %v6118_v38  ;;  %vm232_vm12 = vcmp.eq.s32.totalorder %v6246_v61, %v6122_v39  ;;  %vm229_vm15 = vcmp.eq.s32.totalorder %v6246_v61, %v6124_v40 }
 0x132   :  { %13654 = vst [vmem:[#allocation36_spill] sm:$0xff] %v6236_v36  ;;  %13655 = vst [vmem:[#allocation37_spill] sm:$0xff] %v6238_v0  ;;  %v6255_v0 = vadd.s32 128, %v6246_v61 }
 0x134   :  { %1202 = vperm.xlu1 %5490, %v6008_v10   ;;  %1217 = vperm.xlu0 %5489, %v6018_v13   ;;  %v6259_v13 = vadd.s32 256, %v6246_v61  ;;  %vm224_vm1 = vcmp.eq.s32.totalorder %v6255_v0, %v6110_v34  ;;  %vm218_vm4 = vcmp.eq.s32.totalorder %v6255_v0, %v6112_v35  ;;  %vm227_vm7 = vcmp.eq.s32.totalorder %v6255_v0, %v6116_v37 }
 0x135   :  { %v6242_v62 = vpop.permute.xlu1 %446  ;;  %v6244_v60 = vpop.permute.xlu0 %449  ;;  %vm221_vm10 = vcmp.eq.s32.totalorder %v6255_v0, %v6118_v38  ;;  %vm233_vm13 = vcmp.eq.s32.totalorder %v6255_v0, %v6122_v39 }
 0x136   :  { %13656 = vst [vmem:[#allocation38_spill] sm:$0xff] %v6242_v62  ;;  %13657 = vst [vmem:[#allocation39_spill] sm:$0xff] %v6244_v60  ;;  %vm225_vm2 = vcmp.eq.s32.totalorder %v6259_v13, %v6110_v34  ;;  %vm219_vm5 = vcmp.eq.s32.totalorder %v6259_v13, %v6112_v35  ;;  %vm228_vm8 = vcmp.eq.s32.totalorder %v6259_v13, %v6116_v37 }
 0x137   :  { %vm222_vm11 = vcmp.eq.s32.totalorder %v6259_v13, %v6118_v38  ;;  %vm234_vm14 = vcmp.eq.s32.totalorder %v6259_v13, %v6122_v39 }
 0x138   :  { %1208 = vperm.xlu1 %5490, %v6014_v12   ;;  %1223 = vperm.xlu0 %5489, %v6024_v15  }
 0x139   :  { %v6250_v63 = vpop.permute.xlu1 %452  ;;  %v6252_v36 = vpop.permute.xlu0 %455 }
 0x13a   :  { %13658 = vst [vmem:[#allocation40_spill] sm:$0xff] %v6250_v63  ;;  %13659 = vst [vmem:[#allocation41_spill] sm:$0xff] %v6252_v36 }
 0x13c   :  { %1214 = vperm.xlu1 %5490, %v6020_v14   ;;  %1229 = vperm.xlu0 %5489, %v6030_v17  }
 0x13d   :  { %v6262_v7 = vpop.permute.xlu1 %458  ;;  %v6264_v60 = vpop.permute.xlu0 %461 }
 0x13e   :  { %13660 = vst [vmem:[#allocation42_spill] sm:$0xff] %v6262_v7  ;;  %13661 = vst [vmem:[#allocation43_spill] sm:$0xff] %v6264_v60  ;;  %v13664_v60 = vmov 0  }
 0x13f   :  { %v6283_v7 = vsel %vm223_vm0, 1, %v13664_v60  ;;  %v6288_v34 = vsel %vm224_vm1, 1, %v13664_v60  ;;  %v6303_v35 = vsel %vm218_vm4, 1, %v13664_v60  ;;  %v6323_v63 = vsel %vm226_vm6, 1, %v13664_v60 }
 0x140   :  { %1220 = vperm.xlu1 %5490, %v6026_v16   ;;  %1235 = vperm.xlu0 %5489, %v6036_v19   ;;  %v6297_v19 = vsel %vm225_vm2, 1, %v13664_v60  ;;  %v6326_v62 = vsel %vm227_vm7, 1, %v13664_v60  ;;  %v6329_v11 = vsel %vm228_vm8, 1, %v13664_v60  ;;  %v6334_v38 = vsel %vm220_vm9, 1, %v13664_v60 }
 0x141   :  { %v6278_v15 = vpop.permute.xlu1 %464  ;;  %v6280_v17 = vpop.permute.xlu0 %467  ;;  %13667 = vst [vmem:[#allocation48_spill] sm:$0xff] %v6329_v11  ;;  %vm230_vm0 = vcmp.eq.s32.totalorder %v6255_v0, %v6124_v40  ;;  %vm231_vm1 = vcmp.eq.s32.totalorder %v6259_v13, %v6124_v40  ;;  %v6355_v39 = vsel %vm233_vm13, 1, %v13664_v60  ;;  %vm238_vm2 = vcmp.eq.s32.totalorder %v6246_v61, %v6128_v41 }
 0x142   :  { %13662 = vst [vmem:[#allocation44_spill] sm:$0xff] %v6278_v15  ;;  %13663 = vst [vmem:[#allocation45_spill] sm:$0xff] %v6280_v17  ;;  %v6300_v17 = vsel %vm217_vm3, 1, %v13664_v60  ;;  %v6309_v15 = vsel %vm219_vm5, 1, %v13664_v60  ;;  %vm239_vm3 = vcmp.eq.s32.totalorder %v6255_v0, %v6128_v41  ;;  %vm240_vm4 = vcmp.eq.s32.totalorder %v6259_v13, %v6128_v41 }
 0x143   :  { %13669 = vst [vmem:[#allocation50_spill] sm:$0xff] %v6355_v39  ;;  %v6369_v40 = vsel %vm234_vm14, 1, %v13664_v60  ;;  %v6372_v39 = vsel %vm229_vm15, 1, %v13664_v60  ;;  %vm235_vm5 = vcmp.eq.s32.totalorder %v6246_v61, %v6130_v42  ;;  %v6380_v41 = vsel %vm231_vm1, 1, %v13664_v60 }
 0x144   :  { %1226 = vperm.xlu1 %5490, %v6032_v18   ;;  %1241 = vperm.xlu0 %5489, %v6042_v21   ;;  %v6343_v21 = vsel %vm221_vm10, 1, %v13664_v60  ;;  %13672 = vst [vmem:[#allocation53_spill] sm:$0xff] %v6369_v40  ;;  %vm236_vm6 = vcmp.eq.s32.totalorder %v6255_v0, %v6130_v42  ;;  %vm237_vm7 = vcmp.eq.s32.totalorder %v6259_v13, %v6130_v42  ;;  %v6399_v40 = vsel %vm235_vm5, 1, %v13664_v60 }
 0x145   :  { %v6318_v37 = vpop.permute.xlu1 %470  ;;  %v6320_v36 = vpop.permute.xlu0 %473  ;;  %vm244_vm8 = vcmp.eq.s32.totalorder %v6246_v61, %v6134_v43  ;;  %vm245_vm9 = vcmp.eq.s32.totalorder %v6255_v0, %v6134_v43  ;;  %vm246_vm10 = vcmp.eq.s32.totalorder %v6259_v13, %v6134_v43  ;;  %vm243_vm13 = vcmp.eq.s32.totalorder %v6259_v13, %v6136_v44 }
 0x146   :  { %13665 = vst [vmem:[#allocation46_spill] sm:$0xff] %v6318_v37  ;;  %13666 = vst [vmem:[#allocation47_spill] sm:$0xff] %v6320_v36  ;;  %v6346_v36 = vsel %vm222_vm11, 1, %v13664_v60  ;;  %v6349_v37 = vsel %vm232_vm12, 1, %v13664_v60  ;;  %vm241_vm11 = vcmp.eq.s32.totalorder %v6246_v61, %v6136_v44  ;;  %vm242_vm12 = vcmp.eq.s32.totalorder %v6255_v0, %v6136_v44 }
 0x147   :  { %13668 = vst [vmem:[#allocation49_spill] sm:$0xff] %v6349_v37  ;;  %v6423_v43 = vsel %vm244_vm8, 1, %v13664_v60  ;;  %vm250_vm14 = vcmp.eq.s32.totalorder %v6246_v61, %v6140_v45  ;;  %vm251_vm15 = vcmp.eq.s32.totalorder %v6255_v0, %v6140_v45  ;;  %v6438_v44 = vsel %vm241_vm11, 1, %v13664_v60 }
 0x148   :  { %1232 = vperm.xlu1 %5490, %v6038_v20   ;;  %1247 = vperm.xlu0 %5489, %v6048_v23   ;;  %v6375_v20 = vsel %vm230_vm0, 1, %v13664_v60  ;;  %v6387_v23 = vsel %vm238_vm2, 1, %v13664_v60  ;;  %13678 = vst [vmem:[#allocation59_spill] sm:$0xff] %v6423_v43  ;;  %vm252_vm0 = vcmp.eq.s32.totalorder %v6259_v13, %v6140_v45  ;;  %vm247_vm1 = vcmp.eq.s32.totalorder %v6246_v61, %v6142_v46 }
 0x149   :  { %v6364_v37 = vpop.permute.xlu1 %476  ;;  %v6366_v11 = vpop.permute.xlu0 %479  ;;  %13673 = vst [vmem:[#allocation54_spill] sm:$0xff] %v6387_v23  ;;  %v6416_v23 = vsel %vm237_vm7, 1, %v13664_v60  ;;  %v6447_v43 = vsel %vm243_vm13, 1, %v13664_v60  ;;  %vm248_vm2 = vcmp.eq.s32.totalorder %v6255_v0, %v6142_v46  ;;  %vm257_vm5 = vcmp.eq.s32.totalorder %v6255_v0, %v6146_v47 }
 0x14a   :  { %13670 = vst [vmem:[#allocation51_spill] sm:$0xff] %v6364_v37  ;;  %13671 = vst [vmem:[#allocation52_spill] sm:$0xff] %v6366_v11  ;;  %v6390_v11 = vsel %vm239_vm3, 1, %v13664_v60  ;;  %v6393_v37 = vsel %vm240_vm4, 1, %v13664_v60  ;;  %vm249_vm3 = vcmp.eq.s32.totalorder %v6259_v13, %v6142_v46  ;;  %vm256_vm4 = vcmp.eq.s32.totalorder %v6246_v61, %v6146_v47 }
 0x14b   :  { %13674 = vst [vmem:[#allocation55_spill] sm:$0xff] %v6390_v11  ;;  %13675 = vst [vmem:[#allocation56_spill] sm:$0xff] %v6393_v37  ;;  %v6413_v37 = vsel %vm236_vm6, 1, %v13664_v60  ;;  %v6470_v46 = vsel %vm247_vm1, 1, %v13664_v60  ;;  %vm258_vm6 = vcmp.eq.s32.totalorder %v6259_v13, %v6146_v47  ;;  %vm253_vm7 = vcmp.eq.s32.totalorder %v6246_v61, %v6148_v48 }
 0x14c   :  { %1238 = vperm.xlu1 %5490, %v6044_v22   ;;  %1253 = vperm.xlu0 %5489, %v6054_v25   ;;  %v6432_v25 = vsel %vm245_vm9, 1, %v13664_v60  ;;  %vm254_vm8 = vcmp.eq.s32.totalorder %v6255_v0, %v6148_v48  ;;  %vm255_vm9 = vcmp.eq.s32.totalorder %v6259_v13, %v6148_v48  ;;  %vm263_vm11 = vcmp.eq.s32.totalorder %v6255_v0, %v6152_v49 }
 0x14d   :  { %v6408_v42 = vpop.permute.xlu1 %482  ;;  %v6410_v11 = vpop.permute.xlu0 %485  ;;  %13679 = vst [vmem:[#allocation60_spill] sm:$0xff] %v6432_v25  ;;  %v6462_v25 = vsel %vm251_vm15, 1, %v13664_v60  ;;  %v6507_v48 = vsel %vm258_vm6, 1, %v13664_v60  ;;  %vm259_vm13 = vcmp.eq.s32.totalorder %v6246_v61, %v6154_v50  ;;  %vm261_vm15 = vcmp.eq.s32.totalorder %v6259_v13, %v6154_v50 }
 0x14e   :  { %13676 = vst [vmem:[#allocation57_spill] sm:$0xff] %v6408_v42  ;;  %13677 = vst [vmem:[#allocation58_spill] sm:$0xff] %v6410_v11  ;;  %v6435_v11 = vsel %vm246_vm10, 1, %v13664_v60  ;;  %v6444_v42 = vsel %vm242_vm12, 1, %v13664_v60  ;;  %vm262_vm10 = vcmp.eq.s32.totalorder %v6246_v61, %v6152_v49  ;;  %vm264_vm12 = vcmp.eq.s32.totalorder %v6259_v13, %v6152_v49 }
 0x14f   :  { %13680 = vst [vmem:[#allocation61_spill] sm:$0xff] %v6435_v11  ;;  %13681 = vst [vmem:[#allocation62_spill] sm:$0xff] %v6444_v42  ;;  %v6465_v42 = vsel %vm252_vm0, 1, %v13664_v60  ;;  %v6515_v49 = vsel %vm254_vm8, 1, %v13664_v60  ;;  %vm268_vm0 = vcmp.eq.s32.totalorder %v6246_v61, %v6158_v51  ;;  %vm269_vm1 = vcmp.eq.s32.totalorder %v6255_v0, %v6158_v51 }
 0x150   :  { %1244 = vperm.xlu1 %5490, %v6050_v24   ;;  %1259 = vperm.xlu0 %5489, %v6060_v27   ;;  %v6459_v24 = vsel %vm250_vm14, 1, %v13664_v60  ;;  %13684 = vst [vmem:[#allocation65_spill] sm:$0xff] %v6462_v25  ;;  %v6479_v27 = vsel %vm248_vm2, 1, %v13664_v60  ;;  %13689 = vst [vmem:[#allocation70_spill] sm:$0xff] %v6507_v48  ;;  %vm260_vm14 = vcmp.eq.s32.totalorder %v6255_v0, %v6154_v50  ;;  %v6531_v48 = vsel %vm264_vm12, 1, %v13664_v60 }
 0x151   :  { %v6454_v45 = vpop.permute.xlu1 %488  ;;  %v6456_v11 = vpop.permute.xlu0 %491  ;;  %13691 = vst [vmem:[#allocation72_spill] sm:$0xff] %v6531_v48  ;;  %vm270_vm2 = vcmp.eq.s32.totalorder %v6259_v13, %v6158_v51  ;;  %v6561_v51 = vsel %vm268_vm0, 1, %v13664_v60  ;;  %vm274_vm6 = vcmp.eq.s32.totalorder %v6246_v61, %v6164_v53  ;;  %vm276_vm8 = vcmp.eq.s32.totalorder %v6259_v13, %v6164_v53 }
 0x152   :  { %13682 = vst [vmem:[#allocation63_spill] sm:$0xff] %v6454_v45  ;;  %13683 = vst [vmem:[#allocation64_spill] sm:$0xff] %v6456_v11  ;;  %v6482_v11 = vsel %vm249_vm3, 1, %v13664_v60  ;;  %v6490_v45 = vsel %vm256_vm4, 1, %v13664_v60  ;;  %vm265_vm3 = vcmp.eq.s32.totalorder %v6246_v61, %v6160_v52  ;;  %vm266_vm4 = vcmp.eq.s32.totalorder %v6255_v0, %v6160_v52 }
 0x153   :  { %13685 = vst [vmem:[#allocation66_spill] sm:$0xff] %v6490_v45  ;;  %v6510_v45 = vsel %vm253_vm7, 1, %v13664_v60  ;;  %13694 = vst [vmem:[#allocation75_spill] sm:$0xff] %v6561_v51  ;;  %vm275_vm7 = vcmp.eq.s32.totalorder %v6255_v0, %v6164_v53  ;;  %v5858_v53 = vmov 4   ;;  %vm280_vm12 = vcmp.eq.s32.totalorder %v6246_v61, %v6170_v55 }
 0x154   :  { %1250 = vperm.xlu1 %5490, %v6056_v26   ;;  %1265 = vperm.xlu0 %5489, %v6066_v29   ;;  %v6504_v26 = vsel %vm257_vm5, 1, %v13664_v60  ;;  %v6518_v29 = vsel %vm255_vm9, 1, %v13664_v60  ;;  %vm267_vm5 = vcmp.eq.s32.totalorder %v6259_v13, %v6160_v52  ;;  %v6576_v52 = vsel %vm265_vm3, 1, %v13664_v60 }
 0x155   :  { %v6499_v47 = vpop.permute.xlu1 %494  ;;  %v6501_v25 = vpop.permute.xlu0 %497  ;;  %13688 = vst [vmem:[#allocation69_spill] sm:$0xff] %v6504_v26  ;;  %v6537_v26 = vsel %vm259_vm13, 1, %v13664_v60  ;;  %vm271_vm9 = vcmp.eq.s32.totalorder %v6246_v61, %v6166_v54  ;;  %v6585_v51 = vsel %vm267_vm5, 1, %v13664_v60  ;;  %vm281_vm13 = vcmp.eq.s32.totalorder %v6255_v0, %v6170_v55 }
 0x156   :  { %13686 = vst [vmem:[#allocation67_spill] sm:$0xff] %v6499_v47  ;;  %13687 = vst [vmem:[#allocation68_spill] sm:$0xff] %v6501_v25  ;;  %v6525_v25 = vsel %vm262_vm10, 1, %v13664_v60  ;;  %v6528_v47 = vsel %vm263_vm11, 1, %v13664_v60  ;;  %vm272_vm10 = vcmp.eq.s32.totalorder %v6255_v0, %v6166_v54  ;;  %vm273_vm11 = vcmp.eq.s32.totalorder %v6259_v13, %v6166_v54 }
 0x157   :  { %13690 = vst [vmem:[#allocation71_spill] sm:$0xff] %v6528_v47  ;;  %v6554_v47 = vsel %vm261_vm15, 1, %v13664_v60  ;;  %13698 = vst [vmem:[#allocation79_spill] sm:$0xff] %v6585_v51  ;;  %v6608_v54 = vsel %vm271_vm9, 1, %v13664_v60  ;;  %vm277_vm15 = vcmp.eq.s32.totalorder %v6246_v61, %v6172_v56  ;;  %vm278_vm0 = vcmp.eq.s32.totalorder %v6255_v0, %v6172_v56 }
 0x158   :  { %1256 = vperm.xlu1 %5490, %v6062_v28   ;;  %1271 = vperm.xlu0 %5489, %v6072_v31   ;;  %v6551_v28 = vsel %vm260_vm14, 1, %v13664_v60  ;;  %v6570_v31 = vsel %vm269_vm1, 1, %v13664_v60  ;;  %vm282_vm14 = vcmp.eq.s32.totalorder %v6259_v13, %v6170_v55  ;;  %vm279_vm1 = vcmp.eq.s32.totalorder %v6259_v13, %v6172_v56 }
 0x159   :  { %v6546_v50 = vpop.permute.xlu1 %500  ;;  %v6548_v48 = vpop.permute.xlu0 %503  ;;  %13695 = vst [vmem:[#allocation76_spill] sm:$0xff] %v6570_v31  ;;  %v6595_v31 = vsel %vm275_vm7, 1, %v13664_v60  ;;  %vm287_vm3 = vcmp.eq.s32.totalorder %v6255_v0, %v6176_v57  ;;  %v6637_v55 = vsel %vm281_vm13, 1, %v13664_v60  ;;  %vm283_vm5 = vcmp.eq.s32.totalorder %v6246_v61, %v6178_v58 }
 0x15a   :  { %13692 = vst [vmem:[#allocation73_spill] sm:$0xff] %v6546_v50  ;;  %13693 = vst [vmem:[#allocation74_spill] sm:$0xff] %v6548_v48  ;;  %v6573_v48 = vsel %vm270_vm2, 1, %v13664_v60  ;;  %v6582_v50 = vsel %vm266_vm4, 1, %v13664_v60  ;;  %vm286_vm2 = vcmp.eq.s32.totalorder %v6246_v61, %v6176_v57  ;;  %vm288_vm4 = vcmp.eq.s32.totalorder %v6259_v13, %v6176_v57 }
 0x15b   :  { %13696 = vst [vmem:[#allocation77_spill] sm:$0xff] %v6573_v48  ;;  %13697 = vst [vmem:[#allocation78_spill] sm:$0xff] %v6582_v50  ;;  %v6592_v48 = vsel %vm274_vm6, 1, %v13664_v60  ;;  %v6653_v57 = vsel %vm278_vm0, 1, %v13664_v60  ;;  %vm284_vm6 = vcmp.eq.s32.totalorder %v6255_v0, %v6178_v58  ;;  %vm285_vm7 = vcmp.eq.s32.totalorder %v6259_v13, %v6178_v58  ;;  %v13710_v58 = vld [vmem:[#allocation20_spill] sm:$0xff] }
 0x15c   :  { %1262 = vperm.xlu1 %5490, %v6068_v30   ;;  %5492 = vset.pattern.permute.xlu0 %v5858_v53  ;;  %v6598_v30 = vsel %vm276_vm8, 1, %v13664_v60  ;;  %13703 = vst [vmem:[#allocation84_spill] sm:$0xff] %v6637_v55  ;;  %v6656_v55 = vsel %vm279_vm1, 1, %v13664_v60  ;;  %vm292_vm8 = vcmp.eq.s32.totalorder %v6246_v61, %v6182_v59  ;;  %vm293_vm9 = vcmp.eq.s32.totalorder %v6255_v0, %v6182_v59 }
 0x15d   :  { %13699 = vst [vmem:[#allocation80_spill] sm:$0xff] %v6598_v30  ;;  %1565 = vperm.xlu0 %5492, %v5990_v4   ;;  %v6617_v30 = vsel %vm272_vm10, 1, %v13664_v60  ;;  %v6620_v4 = vsel %vm273_vm11, 1, %v13664_v60  ;;  %vm294_vm10 = vcmp.eq.s32.totalorder %v6259_v13, %v6182_v59  ;;  %vm289_vm11 = vcmp.eq.s32.totalorder %v6246_v61, %v13710_v58 }
 0x15e   :  { %v6603_v51 = vpop.permute.xlu1 %794  ;;  %v6605_v50 = vpop.permute.xlu0 %797  ;;  %vm291_vm13 = vcmp.eq.s32.totalorder %v6259_v13, %v13710_v58 }
 0x15f   :  { %13700 = vst [vmem:[#allocation81_spill] sm:$0xff] %v6603_v51  ;;  %13701 = vst [vmem:[#allocation82_spill] sm:$0xff] %v6605_v50  ;;  %v6628_v50 = vsel %vm280_vm12, 1, %v13664_v60  ;;  %v6640_v51 = vsel %vm282_vm14, 1, %v13664_v60  ;;  %vm290_vm12 = vcmp.eq.s32.totalorder %v6255_v0, %v13710_v58  ;;  %v6708_v58 = vsel %vm293_vm9, 1, %v13664_v60 }
 0x160   :  { %1268 = vperm.xlu1 %5490, %v6074_v32   ;;  %13702 = vst [vmem:[#allocation83_spill] sm:$0xff] %v6628_v50  ;;  %13704 = vst [vmem:[#allocation85_spill] sm:$0xff] %v6640_v51  ;;  %v6643_v32 = vsel %vm277_vm15, 1, %v13664_v60  ;;  %v6663_v51 = vsel %vm286_vm2, 1, %v13664_v60 }
 0x161   :  { %1574 = vperm.xlu0 %5492, %v5996_v6   ;;  %13707 = vst [vmem:[#allocation88_spill] sm:$0xff] %v6663_v51  ;;  %v6666_v6 = vsel %vm287_vm3, 1, %v13664_v60  ;;  %v13715_v51 = vld [vmem:[#allocation21_spill] sm:$0xff] }
 0x162   :  { %v6648_v56 = vpop.permute.xlu1 %800  ;;  %v6650_v50 = vpop.permute.xlu0 %806  ;;  %13708 = vst [vmem:[#allocation89_spill] sm:$0xff] %v6666_v6  ;;  %v6687_v6 = vsel %vm285_vm7, 1, %v13664_v60  ;;  %vm298_vm14 = vcmp.eq.s32.totalorder %v6246_v61, %v13715_v51  ;;  %vm299_vm15 = vcmp.eq.s32.totalorder %v6255_v0, %v13715_v51  ;;  %vm300_vm0 = vcmp.eq.s32.totalorder %v6259_v13, %v13715_v51  ;;  %13716 = vst [vmem:[#allocation21_spill] sm:$0xff] %v6708_v58 }
 0x163   :  { %13705 = vst [vmem:[#allocation86_spill] sm:$0xff] %v6648_v56  ;;  %13706 = vst [vmem:[#allocation87_spill] sm:$0xff] %v6650_v50  ;;  %v6669_v50 = vsel %vm288_vm4, 1, %v13664_v60  ;;  %v6674_v56 = vsel %vm283_vm5, 1, %v13664_v60  ;;  %v6730_v51 = vsel %vm298_vm14, 1, %v13664_v60  ;;  %v6736_v58 = vsel %vm300_vm0, 1, %v13664_v60 }
 0x164   :  { %13709 = vst [vmem:[#allocation90_spill] sm:$0xff] %v6669_v50  ;;  %5491 = vset.pattern.permute.xlu1 %v5858_v53  ;;  %v6684_v50 = vsel %vm284_vm6, 1, %v13664_v60  ;;  %13711 = vst [vmem:[#allocation20_spill] sm:$0xff] %v6687_v6  ;;  %v6722_v6 = vsel %vm291_vm13, 1, %v13664_v60 }
 0x165   :  { %1562 = vperm.xlu1 %5491, %v5984_v2   ;;  %1580 = vperm.xlu0 %5492, %v6002_v8   ;;  %v6699_v2 = vsel %vm292_vm8, 1, %v13664_v60  ;;  %v6711_v8 = vsel %vm294_vm10, 1, %v13664_v60  ;;  %13721 = vst [vmem:[#allocation96_spill] sm:$0xff] %v6722_v6  ;;  %13722 = vst [vmem:[#allocation97_spill] sm:$0xff] %v6730_v51 }
 0x166   :  { %v6694_v59 = vpop.permute.xlu1 %803  ;;  %v6696_v53 = vpop.permute.xlu0 %812  ;;  %13714 = vst [vmem:[#allocation93_spill] sm:$0xff] %v6699_v2  ;;  %13717 = vst [vmem:[#allocation94_spill] sm:$0xff] %v6711_v8  ;;  %v6719_v2 = vsel %vm290_vm12, 1, %v13664_v60  ;;  %v6733_v8 = vsel %vm299_vm15, 1, %v13664_v60 }
 0x167   :  { %13712 = vst [vmem:[#allocation91_spill] sm:$0xff] %v6694_v59  ;;  %13713 = vst [vmem:[#allocation92_spill] sm:$0xff] %v6696_v53  ;;  %v6714_v53 = vsel %vm289_vm11, 1, %v13664_v60  ;;  %v13719_v59 = vld [vmem:[#allocation22_spill] sm:$0xff] }
 0x168   :  { %13718 = vst [vmem:[#allocation95_spill] sm:$0xff] %v6714_v53  ;;  %vm295_vm1 = vcmp.eq.s32.totalorder %v6246_v61, %v13719_v59  ;;  %13720 = vst [vmem:[#allocation22_spill] sm:$0xff] %v6719_v2  ;;  %vm296_vm2 = vcmp.eq.s32.totalorder %v6255_v0, %v13719_v59  ;;  %vm297_vm3 = vcmp.eq.s32.totalorder %v6259_v13, %v13719_v59  ;;  %v13725_v2 = vld [vmem:[#allocation23_spill] sm:$0xff]  ;;  %v13728_v59 = vld [vmem:[#allocation24_spill] sm:$0xff] }
 0x169   :  { %1568 = vperm.xlu1 %5491, %v5982_v1   ;;  %13723 = vst [vmem:[#allocation98_spill] sm:$0xff] %v6733_v8  ;;  %13724 = vst [vmem:[#allocation99_spill] sm:$0xff] %v6736_v58  ;;  %vm304_vm4 = vcmp.eq.s32.totalorder %v6246_v61, %v13725_v2  ;;  %1586 = vperm.xlu0 %5492, %v6008_v10   ;;  %v6746_v1 = vsel %vm295_vm1, 1, %v13664_v60  ;;  %vm305_vm5 = vcmp.eq.s32.totalorder %v6255_v0, %v13725_v2 }
 0x16a   :  { %v6741_v6 = vpop.permute.xlu1 %809  ;;  %v6743_v53 = vpop.permute.xlu0 %818  ;;  %vm306_vm6 = vcmp.eq.s32.totalorder %v6259_v13, %v13725_v2  ;;  %vm301_vm7 = vcmp.eq.s32.totalorder %v6246_v61, %v13728_v59  ;;  %v6755_v58 = vsel %vm296_vm2, 1, %v13664_v60  ;;  %v6758_v10 = vsel %vm297_vm3, 1, %v13664_v60 }
 0x16b   :  { %13726 = vst [vmem:[#allocation23_spill] sm:$0xff] %v6741_v6  ;;  %13727 = vst [vmem:[#allocation100_spill] sm:$0xff] %v6743_v53  ;;  %vm302_vm8 = vcmp.eq.s32.totalorder %v6255_v0, %v13728_v59  ;;  %vm303_vm9 = vcmp.eq.s32.totalorder %v6259_v13, %v13728_v59  ;;  %v6765_v53 = vsel %vm304_vm4, 1, %v13664_v60  ;;  %v13732_v6 = vld [vmem:[#allocation25_spill] sm:$0xff]  ;;  %v6775_v2 = vsel %vm305_vm5, 1, %v13664_v60 }
 0x16c   :  { %13729 = vst [vmem:[#allocation24_spill] sm:$0xff] %v6755_v58  ;;  %13730 = vst [vmem:[#allocation101_spill] sm:$0xff] %v6758_v10  ;;  %vm310_vm10 = vcmp.eq.s32.totalorder %v6246_v61, %v13732_v6  ;;  %vm311_vm11 = vcmp.eq.s32.totalorder %v6255_v0, %v13732_v6  ;;  %vm312_vm12 = vcmp.eq.s32.totalorder %v6259_v13, %v13732_v6  ;;  %v6778_v8 = vsel %vm306_vm6, 1, %v13664_v60 }
 0x16d   :  { %13731 = vst [vmem:[#allocation102_spill] sm:$0xff] %v6765_v53  ;;  %1571 = vperm.xlu1 %5491, %v5988_v3   ;;  %13733 = vst [vmem:[#allocation25_spill] sm:$0xff] %v6775_v2  ;;  %v6781_v59 = vsel %vm301_vm7, 1, %v13664_v60  ;;  %v13736_v53 = vld [vmem:[#allocation26_spill] sm:$0xff]  ;;  %1592 = vperm.xlu0 %5492, %v6014_v12   ;;  %v6791_v3 = vsel %vm302_vm8, 1, %v13664_v60  ;;  %v6794_v6 = vsel %vm303_vm9, 1, %v13664_v60  ;;  %vm511_vm6 = vcmp.eq.s32.totalorder %v6246_v61, %v6212_v33 }
 0x16e   :  { %13734 = vst [vmem:[#allocation103_spill] sm:$0xff] %v6778_v8  ;;  %13735 = vst [vmem:[#allocation104_spill] sm:$0xff] %v6781_v59  ;;  %vm307_vm13 = vcmp.eq.s32.totalorder %v6246_v61, %v13736_v53  ;;  %v6786_v51 = vpop.permute.xlu1 %815  ;;  %v6788_v10 = vpop.permute.xlu0 %824  ;;  %vm308_vm14 = vcmp.eq.s32.totalorder %v6255_v0, %v13736_v53  ;;  %v13741_v8 = vld [vmem:[#allocation27_spill] sm:$0xff]  ;;  %v6801_v2 = vsel %vm310_vm10, 1, %v13664_v60  ;;  %v6804_v12 = vsel %vm311_vm11, 1, %v13664_v60 }
 0x16f   :  { %13737 = vst [vmem:[#allocation26_spill] sm:$0xff] %v6786_v51  ;;  %13738 = vst [vmem:[#allocation105_spill] sm:$0xff] %v6788_v10  ;;  %vm508_vm15 = vcmp.eq.s32.totalorder %v6246_v61, %v13741_v8  ;;  %v6807_v10 = vsel %vm312_vm12, 1, %v13664_v60  ;;  %vm509_vm0 = vcmp.eq.s32.totalorder %v6255_v0, %v13741_v8  ;;  %vm309_vm1 = vcmp.eq.s32.totalorder %v6259_v13, %v13736_v53  ;;  %v13753_v53 = vld [vmem:[#allocation16_spill] sm:$0xff] }
 0x170   :  { %13739 = vst [vmem:[#allocation106_spill] sm:$0xff] %v6791_v3  ;;  %13740 = vst [vmem:[#allocation107_spill] sm:$0xff] %v6794_v6  ;;  %v6814_v51 = vsel %vm307_vm13, 1, %v13664_v60  ;;  %vm510_vm2 = vcmp.eq.s32.totalorder %v6259_v13, %v13741_v8  ;;  %v13746_v3 = vld [vmem:[#allocation28_spill] sm:$0xff]  ;;  %vm512_vm7 = vcmp.eq.s32.totalorder %v6255_v0, %v6212_v33  ;;  %vm513_vm8 = vcmp.eq.s32.totalorder %v6259_v13, %v6212_v33 }
 0x171   :  { %13742 = vst [vmem:[#allocation27_spill] sm:$0xff] %v6801_v2  ;;  %13743 = vst [vmem:[#allocation108_spill] sm:$0xff] %v6804_v12  ;;  %vm505_vm3 = vcmp.eq.s32.totalorder %v6246_v61, %v13746_v3  ;;  %1577 = vperm.xlu1 %5491, %v5994_v5   ;;  %v6822_v12 = vsel %vm308_vm14, 1, %v13664_v60  ;;  %vm506_vm4 = vcmp.eq.s32.totalorder %v6255_v0, %v13746_v3  ;;  %1598 = vperm.xlu0 %5492, %v6020_v14  }
 0x172   :  { %13744 = vst [vmem:[#allocation109_spill] sm:$0xff] %v6807_v10  ;;  %13745 = vst [vmem:[#allocation110_spill] sm:$0xff] %v6814_v51  ;;  %v604_v10 = vsel %vm508_vm15, 1, %v13664_v60  ;;  %vm507_vm5 = vcmp.eq.s32.totalorder %v6259_v13, %v13746_v3  ;;  %v6830_v2 = vpop.permute.xlu1 %821  ;;  %v6832_v8 = vpop.permute.xlu0 %830  ;;  %v605_v51 = vsel %vm509_vm0, 1, %v13664_v60  ;;  %v6845_v5 = vsel %vm309_vm1, 1, %v13664_v60 }
 0x173   :  { %13747 = vst [vmem:[#allocation28_spill] sm:$0xff] %v6822_v12  ;;  %13748 = vst [vmem:[#allocation111_spill] sm:$0xff] %v6830_v2  ;;  %v606_v14 = vsel %vm510_vm2, 1, %v13664_v60  ;;  %v601_v3 = vsel %vm505_vm3, 1, %v13664_v60  ;;  %v6852_v2 = vadd.s32 %v604_v10, %v6334_v38  ;;  %v602_v12 = vsel %vm506_vm4, 1, %v13664_v60 }
 0x174   :  { %13749 = vst [vmem:[#allocation112_spill] sm:$0xff] %v6832_v8  ;;  %13750 = vst [vmem:[#allocation113_spill] sm:$0xff] %v6845_v5  ;;  %v13751_v8 = vld [vmem:[#allocation29_spill] sm:$0xff]  ;;  %v603_v33 = vsel %vm507_vm5, 1, %v13664_v60  ;;  %v6860_v5 = vadd.s32 %v605_v51, %v6343_v21  ;;  %v607_v59 = vsel %vm511_vm6, 1, %v13664_v60  ;;  %v608_v6 = vsel %vm512_vm7, 1, %v13664_v60 }
 0x175   :  { %vm514_vm9 = vcmp.eq.s32.totalorder %v6246_v61, %v13751_v8  ;;  %13752 = vst [vmem:[#allocation29_spill] sm:$0xff] %v6852_v2  ;;  %vm515_vm10 = vcmp.eq.s32.totalorder %v6255_v0, %v13751_v8  ;;  %1583 = vperm.xlu1 %5491, %v13753_v53   ;;  %v609_v58 = vsel %vm513_vm8, 1, %v13664_v60  ;;  %1604 = vperm.xlu0 %5492, %v6026_v16  }
 0x176   :  { %v6866_v38 = vpop.permute.xlu1 %827  ;;  %v6868_v10 = vpop.permute.xlu0 %836  ;;  %v6871_v2 = vadd.s32 %v606_v14, %v6346_v36  ;;  %v6874_v53 = vadd.s32 %v601_v3, %v6300_v17  ;;  %vm516_vm11 = vcmp.eq.s32.totalorder %v6259_v13, %v13751_v8  ;;  %v610_v21 = vsel %vm514_vm9, 1, %v13664_v60  ;;  %v13756_v14 = vld [vmem:[#allocation30_spill] sm:$0xff] }
 0x177   :  { %13754 = vst [vmem:[#allocation16_spill] sm:$0xff] %v6866_v38  ;;  %13755 = vst [vmem:[#allocation114_spill] sm:$0xff] %v6868_v10  ;;  %v6883_v16 = vadd.s32 %v603_v33, %v6309_v15  ;;  %v6886_v51 = vadd.s32 %v602_v12, %v6303_v35  ;;  %v611_v36 = vsel %vm515_vm10, 1, %v13664_v60  ;;  %vm517_vm12 = vcmp.eq.s32.totalorder %v6246_v61, %v13756_v14  ;;  %v13762_v33 = vld [vmem:[#allocation33_spill] sm:$0xff]  ;;  %v13771_v38 = vld [vmem:[#allocation50_spill] sm:$0xff] }
 0x178   :  { %v6892_v17 = vadd.s32 %v607_v59, %v6283_v7  ;;  %v6895_v3 = vadd.s32 %v608_v6, %v6288_v34  ;;  %v6898_v8 = vadd.s32 %v609_v58, %v6297_v19  ;;  %vm518_vm13 = vcmp.eq.s32.totalorder %v6255_v0, %v13756_v14  ;;  %v13757_v7 = vld [vmem:[#allocation31_spill] sm:$0xff]  ;;  %v13760_v59 = vld [vmem:[#allocation32_spill] sm:$0xff] }
 0x179   :  { %1589 = vperm.xlu1 %5491, %v6006_v9   ;;  %v6904_v15 = vadd.s32 %v610_v21, %v6323_v63  ;;  %v612_v35 = vsel %vm516_vm11, 1, %v13664_v60  ;;  %vm519_vm14 = vcmp.eq.s32.totalorder %v6259_v13, %v13756_v14  ;;  %vm520_vm15 = vcmp.eq.s32.totalorder %v6246_v61, %v13757_v7  ;;  %1610 = vperm.xlu0 %5492, %v6032_v18   ;;  %v13761_v18 = vld [vmem:[#allocation48_spill] sm:$0xff]  ;;  %v13763_v21 = vld [vmem:[#allocation17_spill] sm:$0xff] }
 0x17a   :  { %v6912_v34 = vpop.permute.xlu1 %833  ;;  %v6914_v19 = vpop.permute.xlu0 %842  ;;  %v6917_v58 = vadd.s32 %v611_v36, %v6326_v62  ;;  %v613_v9 = vsel %vm517_vm12, 1, %v13664_v60  ;;  %vm521_vm0 = vcmp.eq.s32.totalorder %v6255_v0, %v13757_v7  ;;  %vm522_vm1 = vcmp.eq.s32.totalorder %v6259_v13, %v13757_v7 }
 0x17b   :  { %13758 = vst [vmem:[#allocation30_spill] sm:$0xff] %v6912_v34  ;;  %13759 = vst [vmem:[#allocation31_spill] sm:$0xff] %v6914_v19  ;;  %v614_v63 = vsel %vm518_vm13, 1, %v13664_v60  ;;  %vm523_vm2 = vcmp.eq.s32.totalorder %v6246_v61, %v13760_v59  ;;  %vm524_vm3 = vcmp.eq.s32.totalorder %v6255_v0, %v13760_v59  ;;  %vm525_vm4 = vcmp.eq.s32.totalorder %v6259_v13, %v13760_v59 }
 0x17c   :  { %v6932_v62 = vadd.s32 %v612_v35, %v13761_v18  ;;  %v615_v6 = vsel %vm519_vm14, 1, %v13664_v60  ;;  %v616_v12 = vsel %vm520_vm15, 1, %v13664_v60  ;;  %vm526_vm5 = vcmp.eq.s32.totalorder %v6246_v61, %v13762_v33  ;;  %v13764_v35 = vld [vmem:[#allocation19_spill] sm:$0xff] }
 0x17d   :  { %1595 = vperm.xlu1 %5491, %v13763_v21   ;;  %v6940_v36 = vadd.s32 %v613_v9, %v6372_v39  ;;  %v617_v14 = vsel %vm521_vm0, 1, %v13664_v60  ;;  %v618_v7 = vsel %vm522_vm1, 1, %v13664_v60  ;;  %vm528_vm6 = vcmp.eq.s32.totalorder %v6259_v13, %v13762_v33  ;;  %1616 = vperm.xlu0 %5492, %v13764_v35  }
 0x17e   :  { %v6947_v18 = vpop.permute.xlu1 %839  ;;  %v6949_v19 = vpop.permute.xlu0 %848  ;;  %v6952_v34 = vadd.s32 %v614_v63, %v6375_v20  ;;  %v619_v39 = vsel %vm523_vm2, 1, %v13664_v60  ;;  %v620_v9 = vsel %vm524_vm3, 1, %v13664_v60  ;;  %v621_v21 = vsel %vm525_vm4, 1, %v13664_v60  ;;  %v13767_v20 = vld [vmem:[#allocation49_spill] sm:$0xff] }
 0x17f   :  { %13765 = vst [vmem:[#allocation32_spill] sm:$0xff] %v6947_v18  ;;  %13766 = vst [vmem:[#allocation48_spill] sm:$0xff] %v6949_v19  ;;  %v6967_v35 = vadd.s32 %v615_v6, %v6380_v41  ;;  %v6970_v63 = vadd.s32 %v616_v12, %v13767_v20  ;;  %vm527_vm7 = vcmp.eq.s32.totalorder %v6255_v0, %v13762_v33  ;;  %v622_v19 = vsel %vm526_vm5, 1, %v13664_v60  ;;  %v13769_v18 = vld [vmem:[#allocation53_spill] sm:$0xff]  ;;  %v13772_v6 = vld [vmem:[#allocation34_spill] sm:$0xff] }
 0x180   :  { %v6979_v10 = vadd.s32 %v618_v7, %v13769_v18  ;;  %v6982_v59 = vadd.s32 %v617_v14, %v13771_v38  ;;  %v624_v41 = vsel %vm528_vm6, 1, %v13664_v60  ;;  %vm531_vm8 = vcmp.eq.s32.totalorder %v6259_v13, %v13772_v6  ;;  %v13773_v12 = vld [vmem:[#allocation18_spill] sm:$0xff] }
 0x181   :  { %13768 = vst [vmem:[#allocation33_spill] sm:$0xff] %v6970_v63  ;;  %1601 = vperm.xlu1 %5491, %v13773_v12   ;;  %v6989_v20 = vadd.s32 %v619_v39, %v6399_v40  ;;  %v6992_v63 = vadd.s32 %v620_v9, %v6413_v37  ;;  %v6995_v33 = vadd.s32 %v621_v21, %v6416_v23  ;;  %v623_v7 = vsel %vm527_vm7, 1, %v13664_v60  ;;  %v13776_v18 = vld [vmem:[#allocation54_spill] sm:$0xff]  ;;  %v13778_v37 = vld [vmem:[#allocation35_spill] sm:$0xff]  ;;  %v13779_v23 = vld [vmem:[#allocation56_spill] sm:$0xff] }
 0x182   :  { %13770 = vst [vmem:[#allocation17_spill] sm:$0xff] %v6979_v10  ;;  %vm529_vm9 = vcmp.eq.s32.totalorder %v6246_v61, %v13772_v6  ;;  %1622 = vperm.xlu0 %5492, %v6044_v22   ;;  %v7000_v38 = vpop.permute.xlu1 %845  ;;  %v7002_v14 = vpop.permute.xlu0 %854  ;;  %v7006_v40 = vadd.s32 %v622_v19, %v13776_v18  ;;  %vm530_vm10 = vcmp.eq.s32.totalorder %v6255_v0, %v13772_v6  ;;  %v627_v22 = vsel %vm531_vm8, 1, %v13664_v60  ;;  %v13781_v9 = vld [vmem:[#allocation36_spill] sm:$0xff]  ;;  %v7027_v21 = vld [vmem:[#allocation2 + $0x78] sm:$0xff] }
 0x183   :  { %13774 = vst [vmem:[#allocation19_spill] sm:$0xff] %v7000_v38  ;;  %13775 = vst [vmem:[#allocation49_spill] sm:$0xff] %v7002_v14  ;;  %vm532_vm11 = vcmp.eq.s32.totalorder %v6246_v61, %v13778_v37  ;;  %v7013_v39 = vadd.s32 %v624_v41, %v13779_v23  ;;  %vm533_vm12 = vcmp.eq.s32.totalorder %v6255_v0, %v13778_v37  ;;  %v625_v19 = vsel %vm529_vm9, 1, %v13664_v60  ;;  %v13782_v41 = vld [vmem:[#allocation55_spill] sm:$0xff]  ;;  %v13784_v23 = vld [vmem:[#allocation37_spill] sm:$0xff] }
 0x184   :  { %13777 = vst [vmem:[#allocation53_spill] sm:$0xff] %v7006_v40  ;;  %vm534_vm13 = vcmp.eq.s32.totalorder %v6259_v13, %v13778_v37  ;;  %vm535_vm14 = vcmp.eq.s32.totalorder %v6246_v61, %v13781_v9  ;;  %vm536_vm15 = vcmp.eq.s32.totalorder %v6255_v0, %v13781_v9  ;;  %vm537_vm0 = vcmp.eq.s32.totalorder %v6259_v13, %v13781_v9  ;;  %v7037_v14 = vld [vmem:[#allocation2 + $0xb0] sm:$0xff]  ;;  %v13795_v9 = vld [vmem:[#allocation60_spill] sm:$0xff] }
 0x185   :  { %13780 = vst [vmem:[#allocation50_spill] sm:$0xff] %v7013_v39  ;;  %1607 = vperm.xlu1 %5491, %v7027_v21   ;;  %v7031_v6 = vadd.s32 %v623_v7, %v13782_v41  ;;  %v626_v12 = vsel %vm530_vm10, 1, %v13664_v60  ;;  %v628_v18 = vsel %vm532_vm11, 1, %v13664_v60  ;;  %vm538_vm1 = vcmp.eq.s32.totalorder %v6246_v61, %v13784_v23  ;;  %13785 = vst [vmem:[#allocation18_spill] sm:$0xff] %v7037_v14 }
 0x186   :  { %1628 = vperm.xlu0 %5492, %v7037_v14   ;;  %v7040_v38 = vpop.permute.xlu1 %851  ;;  %v7042_v40 = vpop.permute.xlu0 %860  ;;  %v7045_v39 = vadd.s32 %v627_v22, %v6447_v43  ;;  %v629_v7 = vsel %vm533_vm12, 1, %v13664_v60  ;;  %v630_v41 = vsel %vm534_vm13, 1, %v13664_v60  ;;  %vm540_vm2 = vcmp.eq.s32.totalorder %v6259_v13, %v13784_v23 }
 0x187   :  { %13783 = vst [vmem:[#allocation34_spill] sm:$0xff] %v7031_v6  ;;  %13786 = vst [vmem:[#allocation54_spill] sm:$0xff] %v7040_v38  ;;  %v7058_v38 = vadd.s32 %v625_v19, %v6438_v44  ;;  %v631_v43 = vsel %vm535_vm14, 1, %v13664_v60  ;;  %v632_v22 = vsel %vm536_vm15, 1, %v13664_v60  ;;  %v633_v37 = vsel %vm537_vm0, 1, %v13664_v60  ;;  %v13792_v44 = vld [vmem:[#allocation59_spill] sm:$0xff] }
 0x188   :  { %13787 = vst [vmem:[#allocation35_spill] sm:$0xff] %v7042_v40  ;;  %13788 = vst [vmem:[#allocation56_spill] sm:$0xff] %v7045_v39  ;;  %v13790_v40 = vld [vmem:[#allocation62_spill] sm:$0xff]  ;;  %v7076_v19 = vadd.s32 %v628_v18, %v13792_v44  ;;  %vm539_vm3 = vcmp.eq.s32.totalorder %v6255_v0, %v13784_v23  ;;  %v634_v6 = vsel %vm538_vm1, 1, %v13664_v60  ;;  %v7088_v39 = vadd.s32 %v629_v7, %v13795_v9 }
 0x189   :  { %13789 = vst [vmem:[#allocation36_spill] sm:$0xff] %v7058_v38  ;;  %v7073_v14 = vadd.s32 %v626_v12, %v13790_v40  ;;  %v7084_v38 = vld [vmem:[#allocation2 + $0x88] sm:$0xff]  ;;  %v636_v18 = vsel %vm540_vm2, 1, %v13664_v60  ;;  %v13797_v44 = vld [vmem:[#allocation38_spill] sm:$0xff]  ;;  %v7107_v7 = vadd.s32 %v632_v22, %v6479_v27  ;;  %v635_v9 = vsel %vm539_vm3, 1, %v13664_v60 }
 0x18a   :  { %13793 = vst [vmem:[#allocation37_spill] sm:$0xff] %v7076_v19  ;;  %13794 = vst [vmem:[#allocation62_spill] sm:$0xff] %v7084_v38  ;;  %1613 = vperm.xlu1 %5491, %v7084_v38   ;;  %v13796_v40 = vld [vmem:[#allocation61_spill] sm:$0xff]  ;;  %vm541_vm4 = vcmp.eq.s32.totalorder %v6246_v61, %v13797_v44  ;;  %v7096_v19 = vld [vmem:[#allocation2 + $0xc0] sm:$0xff]  ;;  %v7101_v10 = vpop.permute.xlu0 %866  ;;  %v7104_v38 = vadd.s32 %v631_v43, %v6470_v46  ;;  %vm542_vm5 = vcmp.eq.s32.totalorder %v6255_v0, %v13797_v44 }
 0x18b   :  { %13791 = vst [vmem:[#allocation55_spill] sm:$0xff] %v7073_v14  ;;  %v7091_v12 = vadd.s32 %v630_v41, %v13796_v40  ;;  %13798 = vst [vmem:[#allocation59_spill] sm:$0xff] %v7096_v19  ;;  %1634 = vperm.xlu0 %5492, %v7096_v19   ;;  %v7099_v14 = vpop.permute.xlu1 %857  ;;  %v7110_v41 = vadd.s32 %v633_v37, %v6482_v11  ;;  %v7119_v40 = vadd.s32 %v634_v6, %v6459_v24  ;;  %v13802_v46 = vld [vmem:[#allocation39_spill] sm:$0xff]  ;;  %v13804_v6 = vld [vmem:[#allocation40_spill] sm:$0xff] }
 0x18c   :  { %13799 = vst [vmem:[#allocation60_spill] sm:$0xff] %v7099_v14  ;;  %13800 = vst [vmem:[#allocation61_spill] sm:$0xff] %v7101_v10  ;;  %vm543_vm6 = vcmp.eq.s32.totalorder %v6259_v13, %v13797_v44  ;;  %vm544_vm7 = vcmp.eq.s32.totalorder %v6246_v61, %v13802_v46  ;;  %v7126_v11 = vadd.s32 %v636_v18, %v6465_v42  ;;  %v637_v27 = vsel %vm541_vm4, 1, %v13664_v60  ;;  %v7133_v23 = vld [vmem:[#allocation2 + $0x98] sm:$0xff]  ;;  %v7143_v42 = vld [vmem:[#allocation2 + $0xd0] sm:$0xff] }
 0x18d   :  { %13801 = vst [vmem:[#allocation38_spill] sm:$0xff] %v7119_v40  ;;  %vm545_vm8 = vcmp.eq.s32.totalorder %v6255_v0, %v13802_v46  ;;  %vm546_vm9 = vcmp.eq.s32.totalorder %v6259_v13, %v13802_v46  ;;  %v638_v24 = vsel %vm542_vm5, 1, %v13664_v60  ;;  %vm547_vm10 = vcmp.eq.s32.totalorder %v6246_v61, %v13804_v6  ;;  %13805 = vst [vmem:[#allocation40_spill] sm:$0xff] %v7143_v42  ;;  %v13808_v37 = vld [vmem:[#allocation65_spill] sm:$0xff]  ;;  %v7203_v40 = vld [vmem:[#allocation2 + $0xe0] sm:$0xff] }
 0x18e   :  { %13803 = vst [vmem:[#allocation39_spill] sm:$0xff] %v7126_v11  ;;  %1619 = vperm.xlu1 %5491, %v7133_v23   ;;  %vm548_vm11 = vcmp.eq.s32.totalorder %v6255_v0, %v13804_v6  ;;  %vm549_vm12 = vcmp.eq.s32.totalorder %v6259_v13, %v13804_v6  ;;  %v7148_v22 = vpop.permute.xlu0 %872  ;;  %v7151_v18 = vadd.s32 %v635_v9, %v13808_v37  ;;  %v639_v10 = vsel %vm543_vm6, 1, %v13664_v60  ;;  %v13810_v19 = vld [vmem:[#allocation41_spill] sm:$0xff] }
 0x18f   :  { %1640 = vperm.xlu0 %5492, %v7143_v42   ;;  %v7146_v43 = vpop.permute.xlu1 %863  ;;  %13807 = vst [vmem:[#allocation116_spill] sm:$0xff] %v7148_v22  ;;  %v640_v14 = vsel %vm544_vm7, 1, %v13664_v60  ;;  %vm550_vm13 = vcmp.eq.s32.totalorder %v6246_v61, %v13810_v19  ;;  %v641_v9 = vsel %vm545_vm8, 1, %v13664_v60  ;;  %v642_v44 = vsel %vm546_vm9, 1, %v13664_v60  ;;  %v7191_v22 = vld [vmem:[#allocation2 + $0xa8] sm:$0xff]  ;;  %13815 = vst [vmem:[#allocation118_spill] sm:$0xff] %v7203_v40 }
 0x190   :  { %13806 = vst [vmem:[#allocation115_spill] sm:$0xff] %v7146_v43  ;;  %13809 = vst [vmem:[#allocation65_spill] sm:$0xff] %v7151_v18  ;;  %v7164_v43 = vadd.s32 %v637_v27, %v6510_v45  ;;  %vm551_vm14 = vcmp.eq.s32.totalorder %v6255_v0, %v13810_v19  ;;  %v7177_v37 = vadd.s32 %v638_v24, %v6515_v49  ;;  %v643_v45 = vsel %vm547_vm10, 1, %v13664_v60  ;;  %v13813_v24 = vld [vmem:[#allocation66_spill] sm:$0xff] }
 0x191   :  { %v644_v27 = vsel %vm548_vm11, 1, %v13664_v60  ;;  %v645_v46 = vsel %vm549_vm12, 1, %v13664_v60  ;;  %v7195_v49 = vadd.s32 %v639_v10, %v6518_v29  ;;  %v7198_v42 = vadd.s32 %v640_v14, %v13813_v24  ;;  %v13820_v29 = vld [vmem:[#allocation70_spill] sm:$0xff] }
 0x192   :  { %13811 = vst [vmem:[#allocation41_spill] sm:$0xff] %v7164_v43  ;;  %13812 = vst [vmem:[#allocation117_spill] sm:$0xff] %v7177_v37  ;;  %1625 = vperm.xlu1 %5491, %v7191_v22   ;;  %vm552_vm15 = vcmp.eq.s32.totalorder %v6259_v13, %v13810_v19  ;;  %v646_v18 = vsel %vm550_vm13, 1, %v13664_v60  ;;  %v7208_v11 = vpop.permute.xlu0 %878  ;;  %v13818_v37 = vld [vmem:[#allocation69_spill] sm:$0xff]  ;;  %v7214_v10 = vadd.s32 %v642_v44, %v13820_v29  ;;  %v647_v14 = vsel %vm551_vm14, 1, %v13664_v60  ;;  %v13822_v24 = vld [vmem:[#allocation42_spill] sm:$0xff] }
 0x193   :  { %13814 = vst [vmem:[#allocation66_spill] sm:$0xff] %v7198_v42  ;;  %1646 = vperm.xlu0 %5492, %v7203_v40   ;;  %v7206_v6 = vpop.permute.xlu1 %869  ;;  %13817 = vst [vmem:[#allocation120_spill] sm:$0xff] %v7208_v11  ;;  %v7211_v43 = vadd.s32 %v641_v9, %v13818_v37  ;;  %vm553_vm0 = vcmp.eq.s32.totalorder %v6246_v61, %v13822_v24  ;;  %v7223_v40 = vadd.s32 %v643_v45, %v6537_v26  ;;  %v13826_v37 = vld [vmem:[#allocation43_spill] sm:$0xff]  ;;  %v13832_v29 = vld [vmem:[#allocation44_spill] sm:$0xff] }
 0x194   :  { %13816 = vst [vmem:[#allocation119_spill] sm:$0xff] %v7206_v6  ;;  %13821 = vst [vmem:[#allocation70_spill] sm:$0xff] %v7214_v10  ;;  %v7226_v6 = vadd.s32 %v644_v27, %v6551_v28  ;;  %v7229_v9 = vadd.s32 %v645_v46, %v6554_v47  ;;  %vm554_vm1 = vcmp.eq.s32.totalorder %v6255_v0, %v13822_v24  ;;  %v648_v44 = vsel %vm552_vm15, 1, %v13664_v60  ;;  %v7241_v26 = vld [vmem:[#allocation2 + $0xb8] sm:$0xff]  ;;  %v13835_v11 = vld [vmem:[#allocation45_spill] sm:$0xff] }
 0x195   :  { %13819 = vst [vmem:[#allocation69_spill] sm:$0xff] %v7211_v43  ;;  %v7235_v19 = vadd.s32 %v646_v18, %v6525_v25  ;;  %vm555_vm2 = vcmp.eq.s32.totalorder %v6259_v13, %v13822_v24  ;;  %vm556_vm3 = vcmp.eq.s32.totalorder %v6246_v61, %v13826_v37  ;;  %v13827_v47 = vld [vmem:[#allocation71_spill] sm:$0xff]  ;;  %v649_v45 = vsel %vm553_vm0, 1, %v13664_v60  ;;  %v7252_v25 = vld [vmem:[#allocation2 + $0xf0] sm:$0xff]  ;;  %v7286_v24 = vld [vmem:[#allocation2 + $0xc8] sm:$0xff] }
 0x196   :  { %13823 = vst [vmem:[#allocation42_spill] sm:$0xff] %v7226_v6  ;;  %13824 = vst [vmem:[#allocation121_spill] sm:$0xff] %v7229_v9  ;;  %1631 = vperm.xlu1 %5491, %v7241_v26   ;;  %v7245_v28 = vadd.s32 %v647_v14, %v13827_v47  ;;  %vm557_vm4 = vcmp.eq.s32.totalorder %v6255_v0, %v13826_v37  ;;  %vm558_vm5 = vcmp.eq.s32.totalorder %v6259_v13, %v13826_v37  ;;  %v7257_v27 = vpop.permute.xlu0 %884  ;;  %v13833_v14 = vld [vmem:[#allocation72_spill] sm:$0xff]  ;;  %v13841_v10 = vld [vmem:[#allocation75_spill] sm:$0xff] }
 0x197   :  { %13825 = vst [vmem:[#allocation122_spill] sm:$0xff] %v7235_v19  ;;  %13829 = vst [vmem:[#allocation71_spill] sm:$0xff] %v7252_v25  ;;  %1652 = vperm.xlu0 %5492, %v7252_v25   ;;  %v7255_v18 = vpop.permute.xlu1 %875  ;;  %v650_v46 = vsel %vm554_vm1, 1, %v13664_v60  ;;  %vm559_vm6 = vcmp.eq.s32.totalorder %v6246_v61, %v13832_v29  ;;  %vm560_vm7 = vcmp.eq.s32.totalorder %v6255_v0, %v13832_v29  ;;  %v13840_v19 = vld [vmem:[#allocation79_spill] sm:$0xff]  ;;  %v13844_v9 = vld [vmem:[#allocation77_spill] sm:$0xff] }
 0x198   :  { %13828 = vst [vmem:[#allocation43_spill] sm:$0xff] %v7245_v28  ;;  %13830 = vst [vmem:[#allocation123_spill] sm:$0xff] %v7255_v18  ;;  %vm561_vm8 = vcmp.eq.s32.totalorder %v6259_v13, %v13832_v29  ;;  %v7267_v47 = vadd.s32 %v648_v44, %v13833_v14  ;;  %v651_v18 = vsel %vm555_vm2, 1, %v13664_v60  ;;  %vm562_vm9 = vcmp.eq.s32.totalorder %v6246_v61, %v13835_v11  ;;  %v13837_v14 = vld [vmem:[#allocation78_spill] sm:$0xff] }
 0x199   :  { %13831 = vst [vmem:[#allocation124_spill] sm:$0xff] %v7257_v27  ;;  %v652_v27 = vsel %vm556_vm3, 1, %v13664_v60  ;;  %v7280_v25 = vadd.s32 %v649_v45, %v6576_v52  ;;  %v653_v29 = vsel %vm557_vm4, 1, %v13664_v60  ;;  %v654_v44 = vsel %vm558_vm5, 1, %v13664_v60 }
 0x19a   :  { %13834 = vst [vmem:[#allocation44_spill] sm:$0xff] %v7267_v47  ;;  %vm563_vm10 = vcmp.eq.s32.totalorder %v6255_v0, %v13835_v11  ;;  %1637 = vperm.xlu1 %5491, %v7286_v24   ;;  %v7290_v37 = vadd.s32 %v650_v46, %v13837_v14  ;;  %v655_v47 = vsel %vm559_vm6, 1, %v13664_v60  ;;  %v656_v28 = vsel %vm560_vm7, 1, %v13664_v60 }
 0x19b   :  { %13836 = vst [vmem:[#allocation72_spill] sm:$0xff] %v7280_v25  ;;  %v657_v52 = vsel %vm561_vm8, 1, %v13664_v60  ;;  %v7295_v45 = vpop.permute.xlu1 %881  ;;  %v7298_v25 = vadd.s32 %v651_v18, %v13840_v19  ;;  %v7301_v43 = vadd.s32 %v652_v27, %v13841_v10  ;;  %vm564_vm11 = vcmp.eq.s32.totalorder %v6259_v13, %v13835_v11  ;;  %v7306_v14 = vpop.permute.xlu0 %1178  ;;  %v13845_v19 = vld [vmem:[#allocation46_spill] sm:$0xff] }
 0x19c   :  { %13838 = vst [vmem:[#allocation45_spill] sm:$0xff] %v7290_v37  ;;  %13839 = vst [vmem:[#allocation78_spill] sm:$0xff] %v7295_v45  ;;  %v658_v46 = vsel %vm562_vm9, 1, %v13664_v60  ;;  %v13843_v37 = vld [vmem:[#allocation76_spill] sm:$0xff]  ;;  %v7312_v6 = vadd.s32 %v654_v44, %v13844_v9  ;;  %v659_v45 = vsel %vm563_vm10, 1, %v13664_v60  ;;  %vm565_vm12 = vcmp.eq.s32.totalorder %v6246_v61, %v13845_v19  ;;  %v7328_v27 = vld [vmem:[#allocation2 + $0xd8] sm:$0xff] }
 0x19d   :  { %13842 = vst [vmem:[#allocation79_spill] sm:$0xff] %v7306_v14  ;;  %v7309_v42 = vadd.s32 %v653_v29, %v13843_v37  ;;  %v7318_v10 = vadd.s32 %v655_v47, %v6608_v54  ;;  %v7321_v11 = vadd.s32 %v656_v28, %v6617_v30  ;;  %v7324_v18 = vadd.s32 %v657_v52, %v6620_v4  ;;  %v13847_v30 = vld [vmem:[#allocation47_spill] sm:$0xff] }
 0x19e   :  { %vm566_vm13 = vcmp.eq.s32.totalorder %v6255_v0, %v13845_v19  ;;  %1643 = vperm.xlu1 %5491, %v7328_v27   ;;  %v660_v9 = vsel %vm564_vm11, 1, %v13664_v60  ;;  %v7333_v29 = vadd.s32 %v658_v46, %v6592_v48  ;;  %vm567_vm14 = vcmp.eq.s32.totalorder %v6259_v13, %v13845_v19  ;;  %v13851_v44 = vld [vmem:[#allocation51_spill] sm:$0xff]  ;;  %v13854_v46 = vld [vmem:[#allocation52_spill] sm:$0xff] }
 0x19f   :  { %vm568_vm15 = vcmp.eq.s32.totalorder %v6246_v61, %v13847_v30  ;;  %v7339_v54 = vpop.permute.xlu1 %887  ;;  %v7342_v4 = vadd.s32 %v659_v45, %v6595_v31  ;;  %v661_v28 = vsel %vm565_vm12, 1, %v13664_v60  ;;  %vm569_vm0 = vcmp.eq.s32.totalorder %v6255_v0, %v13847_v30  ;;  %v7349_v48 = vpop.permute.xlu0 %1187  ;;  %v13852_v31 = vld [vmem:[#allocation80_spill] sm:$0xff] }
 0x1a0   :  { %13846 = vst [vmem:[#allocation75_spill] sm:$0xff] %v7333_v29  ;;  %13848 = vst [vmem:[#allocation76_spill] sm:$0xff] %v7339_v54  ;;  %vm570_vm1 = vcmp.eq.s32.totalorder %v6259_v13, %v13847_v30  ;;  %v662_v47 = vsel %vm566_vm13, 1, %v13664_v60  ;;  %vm571_vm2 = vcmp.eq.s32.totalorder %v6246_v61, %v13851_v44  ;;  %vm572_vm3 = vcmp.eq.s32.totalorder %v6255_v0, %v13851_v44  ;;  %v7365_v19 = vld [vmem:[#allocation2 + $0xe8] sm:$0xff] }
 0x1a1   :  { %13849 = vst [vmem:[#allocation77_spill] sm:$0xff] %v7342_v4  ;;  %13850 = vst [vmem:[#allocation46_spill] sm:$0xff] %v7349_v48  ;;  %vm573_vm4 = vcmp.eq.s32.totalorder %v6259_v13, %v13851_v44  ;;  %v7359_v37 = vadd.s32 %v660_v9, %v13852_v31  ;;  %v663_v52 = vsel %vm567_vm14, 1, %v13664_v60  ;;  %v664_v45 = vsel %vm568_vm15, 1, %v13664_v60  ;;  %v13859_v4 = vld [vmem:[#allocation83_spill] sm:$0xff] }
 0x1a2   :  { %vm574_vm5 = vcmp.eq.s32.totalorder %v6246_v61, %v13854_v46  ;;  %1649 = vperm.xlu1 %5491, %v7365_v19   ;;  %v7369_v30 = vadd.s32 %v661_v28, %v6643_v32  ;;  %v665_v48 = vsel %vm569_vm0, 1, %v13664_v60  ;;  %v666_v44 = vsel %vm570_vm1, 1, %v13664_v60 }
 0x1a3   :  { %13853 = vst [vmem:[#allocation47_spill] sm:$0xff] %v7359_v37  ;;  %vm575_vm6 = vcmp.eq.s32.totalorder %v6255_v0, %v13854_v46  ;;  %v7376_v9 = vadd.s32 %v662_v47, %v6653_v57  ;;  %v667_v31 = vsel %vm571_vm2, 1, %v13664_v60  ;;  %v668_v54 = vsel %vm572_vm3, 1, %v13664_v60  ;;  %v7381_v37 = vpop.permute.xlu1 %1181  ;;  %v7383_v32 = vpop.permute.xlu0 %1193  ;;  %v13861_v47 = vld [vmem:[#allocation84_spill] sm:$0xff] }
 0x1a4   :  { %13855 = vst [vmem:[#allocation51_spill] sm:$0xff] %v7369_v30  ;;  %v669_v14 = vsel %vm573_vm4, 1, %v13664_v60  ;;  %13857 = vst [vmem:[#allocation52_spill] sm:$0xff] %v7381_v37  ;;  %v7386_v28 = vadd.s32 %v663_v52, %v6656_v55  ;;  %v7389_v29 = vadd.s32 %v664_v45, %v13859_v4  ;;  %vm576_vm7 = vcmp.eq.s32.totalorder %v6259_v13, %v13854_v46  ;;  %v13863_v37 = vld [vmem:[#allocation85_spill] sm:$0xff]  ;;  %v7406_v4 = vld [vmem:[#allocation2 + $0xf8] sm:$0xff] }
 0x1a5   :  { %13856 = vst [vmem:[#allocation80_spill] sm:$0xff] %v7376_v9  ;;  %13858 = vst [vmem:[#allocation125_spill] sm:$0xff] %v7383_v32  ;;  %v670_v57 = vsel %vm574_vm5, 1, %v13664_v60  ;;  %v7398_v9 = vadd.s32 %v665_v48, %v13861_v47  ;;  %v7401_v30 = vadd.s32 %v666_v44, %v13863_v37  ;;  %v671_v55 = vsel %vm575_vm6, 1, %v13664_v60  ;;  %v13865_v52 = vld [vmem:[#allocation57_spill] sm:$0xff]  ;;  %v13868_v48 = vld [vmem:[#allocation20_spill] sm:$0xff] }
 0x1a6   :  { %13860 = vst [vmem:[#allocation83_spill] sm:$0xff] %v7389_v29  ;;  %vm577_vm8 = vcmp.eq.s32.totalorder %v6246_v61, %v13865_v52  ;;  %1655 = vperm.xlu1 %5491, %v7406_v4   ;;  %v7410_v45 = vadd.s32 %v667_v31, %v6674_v56  ;;  %v7413_v46 = vadd.s32 %v668_v54, %v6684_v50  ;;  %v672_v37 = vsel %vm576_vm7, 1, %v13664_v60  ;;  %v13870_v44 = vld [vmem:[#allocation88_spill] sm:$0xff] }
 0x1a7   :  { %13862 = vst [vmem:[#allocation84_spill] sm:$0xff] %v7398_v9  ;;  %13864 = vst [vmem:[#allocation85_spill] sm:$0xff] %v7401_v30  ;;  %v7416_v47 = vadd.s32 %v669_v14, %v13868_v48  ;;  %vm578_vm9 = vcmp.eq.s32.totalorder %v6255_v0, %v13865_v52  ;;  %v7422_v32 = vadd.s32 %v670_v57, %v13870_v44  ;;  %v13872_v30 = vld [vmem:[#allocation58_spill] sm:$0xff]  ;;  %v7428_v56 = vpop.permute.xlu1 %1184  ;;  %v7430_v50 = vpop.permute.xlu0 %1199  ;;  %v13875_v14 = vld [vmem:[#allocation89_spill] sm:$0xff]  ;;  %v673_v31 = vsel %vm577_vm8, 1, %v13664_v60 }
 0x1a8   :  { %13866 = vst [vmem:[#allocation57_spill] sm:$0xff] %v7410_v45  ;;  %13867 = vst [vmem:[#allocation126_spill] sm:$0xff] %v7413_v46  ;;  %vm579_vm10 = vcmp.eq.s32.totalorder %v6259_v13, %v13865_v52  ;;  %vm580_vm11 = vcmp.eq.s32.totalorder %v6246_v61, %v13872_v30  ;;  %v7433_v54 = vadd.s32 %v671_v55, %v13875_v14  ;;  %v674_v57 = vsel %vm578_vm9, 1, %v13664_v60  ;;  %v13877_v52 = vld [vmem:[#allocation63_spill] sm:$0xff]  ;;  %v13878_v55 = vld [vmem:[#allocation90_spill] sm:$0xff] }
 0x1a9   :  { %13869 = vst [vmem:[#allocation20_spill] sm:$0xff] %v7416_v47  ;;  %13871 = vst [vmem:[#allocation88_spill] sm:$0xff] %v7422_v32  ;;  %vm581_vm12 = vcmp.eq.s32.totalorder %v6255_v0, %v13872_v30  ;;  %vm582_vm13 = vcmp.eq.s32.totalorder %v6259_v13, %v13872_v30  ;;  %vm583_vm14 = vcmp.eq.s32.totalorder %v6246_v61, %v13877_v52  ;;  %v5859_v48 = vmov 5   ;;  %v13882_v32 = vld [vmem:[#allocation95_spill] sm:$0xff]  ;;  %v13887_v9 = vld [vmem:[#allocation22_spill] sm:$0xff] }
 0x1aa   :  { %13873 = vst [vmem:[#allocation58_spill] sm:$0xff] %v7428_v56  ;;  %13874 = vst [vmem:[#allocation127_spill] sm:$0xff] %v7430_v50  ;;  %vm584_vm15 = vcmp.eq.s32.totalorder %v6255_v0, %v13877_v52  ;;  %5493 = vset.pattern.permute.xlu0 %v5859_v48  ;;  %5494 = vset.pattern.permute.xlu1 %v5859_v48  ;;  %v7446_v44 = vadd.s32 %v672_v37, %v13878_v55  ;;  %v675_v14 = vsel %vm579_vm10, 1, %v13664_v60  ;;  %v7452_v56 = vld [vmem:[#allocation2] sm:$0xff] }
 0x1ab   :  { %13876 = vst [vmem:[#allocation89_spill] sm:$0xff] %v7433_v54  ;;  %v676_v50 = vsel %vm580_vm11, 1, %v13664_v60  ;;  %vm585_vm0 = vcmp.eq.s32.totalorder %v6259_v13, %v13877_v52  ;;  %13880 = vst [vmem:[#allocation90_spill] sm:$0xff] %v7452_v56  ;;  %1946 = vperm.xlu0 %5493, %v7452_v56   ;;  %v7455_v54 = vld [vmem:[#allocation2 + $0x8] sm:$0xff]  ;;  %v7459_v48 = vadd.s32 %v673_v31, %v13882_v32  ;;  %v677_v37 = vsel %vm581_vm12, 1, %v13664_v60  ;;  %v7471_v56 = vpop.permute.xlu0 %1205 }
 0x1ac   :  { %13879 = vst [vmem:[#allocation63_spill] sm:$0xff] %v7446_v44  ;;  %13881 = vst [vmem:[#allocation128_spill] sm:$0xff] %v7455_v54  ;;  %1949 = vperm.xlu1 %5494, %v7455_v54   ;;  %v13884_v55 = vld [vmem:[#allocation64_spill] sm:$0xff]  ;;  %v7469_v44 = vpop.permute.xlu1 %1190  ;;  %v7474_v54 = vadd.s32 %v674_v57, %v13887_v9  ;;  %v678_v32 = vsel %vm582_vm13, 1, %v13664_v60  ;;  %v679_v31 = vsel %vm583_vm14, 1, %v13664_v60  ;;  %v13891_v9 = vld [vmem:[#allocation93_spill] sm:$0xff] }
 0x1ad   :  { %13883 = vst [vmem:[#allocation95_spill] sm:$0xff] %v7459_v48  ;;  %vm586_vm1 = vcmp.eq.s32.totalorder %v6246_v61, %v13884_v55  ;;  %vm587_vm2 = vcmp.eq.s32.totalorder %v6255_v0, %v13884_v55  ;;  %13885 = vst [vmem:[#allocation64_spill] sm:$0xff] %v7469_v44  ;;  %v680_v44 = vsel %vm584_vm15, 1, %v13664_v60  ;;  %v13889_v48 = vld [vmem:[#allocation96_spill] sm:$0xff]  ;;  %v7492_v57 = vadd.s32 %v676_v50, %v13891_v9  ;;  %v7507_v50 = vld [vmem:[#allocation2 + $0x18] sm:$0xff] }
 0x1ae   :  { %13886 = vst [vmem:[#allocation129_spill] sm:$0xff] %v7471_v56  ;;  %13888 = vst [vmem:[#allocation22_spill] sm:$0xff] %v7474_v54  ;;  %v7489_v56 = vadd.s32 %v675_v14, %v13889_v48  ;;  %v681_v30 = vsel %vm585_vm0, 1, %v13664_v60  ;;  %vm588_vm3 = vcmp.eq.s32.totalorder %v6259_v13, %v13884_v55  ;;  %v13893_v54 = vld [vmem:[#allocation21_spill] sm:$0xff]  ;;  %v682_v47 = vsel %vm586_vm1, 1, %v13664_v60  ;;  %v13895_v14 = vld [vmem:[#allocation67_spill] sm:$0xff] }
 0x1af   :  { %13892 = vst [vmem:[#allocation93_spill] sm:$0xff] %v7492_v57  ;;  %v7501_v29 = vadd.s32 %v677_v37, %v13893_v54  ;;  %v683_v46 = vsel %vm587_vm2, 1, %v13664_v60  ;;  %vm591_vm4 = vcmp.eq.s32.totalorder %v6259_v13, %v13895_v14  ;;  %13896 = vst [vmem:[#allocation67_spill] sm:$0xff] %v7507_v50  ;;  %1955 = vperm.xlu0 %5493, %v7507_v50   ;;  %v13897_v48 = vld [vmem:[#allocation94_spill] sm:$0xff]  ;;  %v13900_v55 = vld [vmem:[#allocation24_spill] sm:$0xff] }
 0x1b0   :  { %13890 = vst [vmem:[#allocation96_spill] sm:$0xff] %v7489_v56  ;;  %v7511_v52 = vadd.s32 %v678_v32, %v13897_v48  ;;  %v7514_v9 = vadd.s32 %v679_v31, %v6746_v1  ;;  %v7517_v54 = vadd.s32 %v680_v44, %v13900_v55  ;;  %vm589_vm5 = vcmp.eq.s32.totalorder %v6246_v61, %v13895_v14  ;;  %v7521_v37 = vld [vmem:[#allocation2 + $0x10] sm:$0xff]  ;;  %v13906_v1 = vld [vmem:[#allocation68_spill] sm:$0xff]  ;;  %v7534_v44 = vpop.permute.xlu0 %1211 }
 0x1b1   :  { %13894 = vst [vmem:[#allocation21_spill] sm:$0xff] %v7501_v29  ;;  %13902 = vst [vmem:[#allocation131_spill] sm:$0xff] %v7521_v37  ;;  %1952 = vperm.xlu1 %5494, %v7521_v37   ;;  %v7524_v29 = vpop.permute.xlu1 %1196  ;;  %v13904_v57 = vld [vmem:[#allocation101_spill] sm:$0xff]  ;;  %v684_v32 = vsel %vm588_vm3, 1, %v13664_v60  ;;  %vm590_vm6 = vcmp.eq.s32.totalorder %v6255_v0, %v13895_v14  ;;  %vm592_vm7 = vcmp.eq.s32.totalorder %v6246_v61, %v13906_v1  ;;  %v13910_v55 = vld [vmem:[#allocation98_spill] sm:$0xff] }
 0x1b2   :  { %13898 = vst [vmem:[#allocation94_spill] sm:$0xff] %v7511_v52  ;;  %13899 = vst [vmem:[#allocation130_spill] sm:$0xff] %v7514_v9  ;;  %v7527_v50 = vadd.s32 %v681_v30, %v13904_v57  ;;  %v13908_v31 = vld [vmem:[#allocation97_spill] sm:$0xff]  ;;  %v7540_v37 = vadd.s32 %v683_v46, %v13910_v55  ;;  %v687_v57 = vsel %vm591_vm4, 1, %v13664_v60  ;;  %vm593_vm8 = vcmp.eq.s32.totalorder %v6255_v0, %v13906_v1 }
 0x1b3   :  { %13901 = vst [vmem:[#allocation24_spill] sm:$0xff] %v7517_v54  ;;  %13903 = vst [vmem:[#allocation132_spill] sm:$0xff] %v7524_v29  ;;  %v7537_v48 = vadd.s32 %v682_v47, %v13908_v31  ;;  %v685_v30 = vsel %vm589_vm5, 1, %v13664_v60  ;;  %vm594_vm9 = vcmp.eq.s32.totalorder %v6259_v13, %v13906_v1  ;;  %v7555_v46 = vld [vmem:[#allocation2 + $0x28] sm:$0xff]  ;;  %v13914_v47 = vld [vmem:[#allocation99_spill] sm:$0xff]  ;;  %v686_v31 = vsel %vm590_vm6, 1, %v13664_v60 }
 0x1b4   :  { %13905 = vst [vmem:[#allocation101_spill] sm:$0xff] %v7527_v50  ;;  %13907 = vst [vmem:[#allocation68_spill] sm:$0xff] %v7534_v44  ;;  %v13912_v44 = vld [vmem:[#allocation73_spill] sm:$0xff]  ;;  %1961 = vperm.xlu0 %5493, %v7555_v46   ;;  %v7559_v14 = vadd.s32 %v684_v32, %v13914_v47  ;;  %v688_v55 = vsel %vm592_vm7, 1, %v13664_v60  ;;  %v7565_v29 = vld [vmem:[#allocation2 + $0x20] sm:$0xff]  ;;  %v7578_v47 = vpop.permute.xlu0 %1217 }
 0x1b5   :  { %13909 = vst [vmem:[#allocation97_spill] sm:$0xff] %v7537_v48  ;;  %13911 = vst [vmem:[#allocation98_spill] sm:$0xff] %v7540_v37  ;;  %vm595_vm10 = vcmp.eq.s32.totalorder %v6246_v61, %v13912_v44  ;;  %vm596_vm11 = vcmp.eq.s32.totalorder %v6255_v0, %v13912_v44  ;;  %vm597_vm12 = vcmp.eq.s32.totalorder %v6259_v13, %v13912_v44  ;;  %1958 = vperm.xlu1 %5494, %v7565_v29   ;;  %v7568_v37 = vpop.permute.xlu1 %1202  ;;  %v13918_v48 = vld [vmem:[#allocation107_spill] sm:$0xff]  ;;  %v13920_v32 = vld [vmem:[#allocation74_spill] sm:$0xff] }
 0x1b6   :  { %13913 = vst [vmem:[#allocation73_spill] sm:$0xff] %v7555_v46  ;;  %13915 = vst [vmem:[#allocation99_spill] sm:$0xff] %v7559_v14  ;;  %v7571_v52 = vadd.s32 %v687_v57, %v13918_v48  ;;  %v689_v46 = vsel %vm593_vm8, 1, %v13664_v60  ;;  %vm598_vm13 = vcmp.eq.s32.totalorder %v6246_v61, %v13920_v32  ;;  %vm599_vm14 = vcmp.eq.s32.totalorder %v6255_v0, %v13920_v32  ;;  %v13922_v14 = vld [vmem:[#allocation104_spill] sm:$0xff]  ;;  %v7604_v1 = vld [vmem:[#allocation2 + $0x38] sm:$0xff] }
 0x1b7   :  { %13916 = vst [vmem:[#allocation133_spill] sm:$0xff] %v7565_v29  ;;  %13917 = vst [vmem:[#allocation134_spill] sm:$0xff] %v7568_v37  ;;  %v7581_v50 = vadd.s32 %v685_v30, %v13922_v14  ;;  %v690_v37 = vsel %vm594_vm9, 1, %v13664_v60  ;;  %v691_v48 = vsel %vm595_vm10, 1, %v13664_v60  ;;  %v692_v57 = vsel %vm596_vm11, 1, %v13664_v60  ;;  %v13924_v29 = vld [vmem:[#allocation106_spill] sm:$0xff] }
 0x1b8   :  { %13919 = vst [vmem:[#allocation107_spill] sm:$0xff] %v7571_v52  ;;  %13921 = vst [vmem:[#allocation74_spill] sm:$0xff] %v7578_v47  ;;  %v7596_v47 = vadd.s32 %v686_v31, %v13924_v29  ;;  %v13926_v30 = vld [vmem:[#allocation102_spill] sm:$0xff]  ;;  %vm600_vm15 = vcmp.eq.s32.totalorder %v6259_v13, %v13920_v32  ;;  %1967 = vperm.xlu0 %5493, %v7604_v1   ;;  %v13929_v52 = vld [vmem:[#allocation25_spill] sm:$0xff]  ;;  %v694_v44 = vsel %vm598_vm13, 1, %v13664_v60  ;;  %v695_v29 = vsel %vm599_vm14, 1, %v13664_v60 }
 0x1b9   :  { %13923 = vst [vmem:[#allocation104_spill] sm:$0xff] %v7581_v50  ;;  %v7599_v14 = vadd.s32 %v688_v55, %v13926_v30  ;;  %v693_v50 = vsel %vm597_vm12, 1, %v13664_v60  ;;  %13928 = vst [vmem:[#allocation135_spill] sm:$0xff] %v7604_v1  ;;  %v7608_v54 = vadd.s32 %v689_v46, %v13929_v52  ;;  %v13931_v31 = vld [vmem:[#allocation81_spill] sm:$0xff]  ;;  %v7617_v30 = vpop.permute.xlu1 %1208  ;;  %v13935_v1 = vld [vmem:[#allocation110_spill] sm:$0xff] }
 0x1ba   :  { %13925 = vst [vmem:[#allocation106_spill] sm:$0xff] %v7596_v47  ;;  %vm889_vm0 = vcmp.eq.s32.totalorder %v6246_v61, %v13931_v31  ;;  %v7614_v55 = vld [vmem:[#allocation2 + $0x30] sm:$0xff]  ;;  %13933 = vst [vmem:[#allocation136_spill] sm:$0xff] %v7617_v30  ;;  %v7623_v9 = vadd.s32 %v691_v48, %v13935_v1  ;;  %v13936_v52 = vld [vmem:[#allocation28_spill] sm:$0xff]  ;;  %vm891_vm1 = vcmp.eq.s32.totalorder %v6259_v13, %v13931_v31 }
 0x1bb   :  { %13927 = vst [vmem:[#allocation102_spill] sm:$0xff] %v7599_v14  ;;  %13930 = vst [vmem:[#allocation25_spill] sm:$0xff] %v7608_v54  ;;  %1964 = vperm.xlu1 %5494, %v7614_v55   ;;  %v13934_v14 = vld [vmem:[#allocation103_spill] sm:$0xff]  ;;  %v7626_v46 = vadd.s32 %v692_v57, %v13936_v52  ;;  %v7630_v54 = vpop.permute.xlu0 %1223  ;;  %v13938_v56 = vld [vmem:[#allocation113_spill] sm:$0xff]  ;;  %vm890_vm2 = vcmp.eq.s32.totalorder %v6255_v0, %v13931_v31  ;;  %v987_v32 = vsel %vm891_vm1, 1, %v13664_v60 }
 0x1bc   :  { %13932 = vst [vmem:[#allocation81_spill] sm:$0xff] %v7614_v55  ;;  %v7620_v47 = vadd.s32 %v690_v37, %v13934_v14  ;;  %13937 = vst [vmem:[#allocation103_spill] sm:$0xff] %v7630_v54  ;;  %v7633_v45 = vadd.s32 %v693_v50, %v13938_v56  ;;  %v696_v37 = vsel %vm600_vm15, 1, %v13664_v60  ;;  %v13939_v48 = vld [vmem:[#allocation82_spill] sm:$0xff]  ;;  %v13940_v57 = vld [vmem:[#allocation27_spill] sm:$0xff]  ;;  %v985_v56 = vsel %vm889_vm0, 1, %v13664_v60 }
 0x1bd   :  { %vm892_vm3 = vcmp.eq.s32.totalorder %v6246_v61, %v13939_v48  ;;  %v7644_v14 = vadd.s32 %v694_v44, %v13940_v57  ;;  %v13942_v1 = vld [vmem:[#allocation108_spill] sm:$0xff]  ;;  %vm893_vm4 = vcmp.eq.s32.totalorder %v6255_v0, %v13939_v48  ;;  %vm894_vm5 = vcmp.eq.s32.totalorder %v6259_v13, %v13939_v48  ;;  %v13945_v54 = vld [vmem:[#allocation86_spill] sm:$0xff]  ;;  %v13948_v57 = vld [vmem:[#allocation109_spill] sm:$0xff] }
 0x1be   :  { %v7647_v52 = vadd.s32 %v695_v29, %v13942_v1  ;;  %v7652_v50 = vld [vmem:[#allocation2 + $0x48] sm:$0xff]  ;;  %vm895_vm6 = vcmp.eq.s32.totalorder %v6246_v61, %v13945_v54  ;;  %vm896_vm7 = vcmp.eq.s32.totalorder %v6255_v0, %v13945_v54  ;;  %v7662_v44 = vld [vmem:[#allocation2 + $0x40] sm:$0xff]  ;;  %v7665_v29 = vpop.permute.xlu1 %1214  ;;  %v7668_v1 = vadd.s32 %v696_v37, %v13948_v57 }
 0x1bf   :  { %13941 = vst [vmem:[#allocation110_spill] sm:$0xff] %v7644_v14  ;;  %13944 = vst [vmem:[#allocation113_spill] sm:$0xff] %v7652_v50  ;;  %1973 = vperm.xlu0 %5493, %v7652_v50   ;;  %1970 = vperm.xlu1 %5494, %v7662_v44   ;;  %v986_v30 = vsel %vm890_vm2, 1, %v13664_v60  ;;  %v988_v50 = vsel %vm892_vm3, 1, %v13664_v60  ;;  %vm897_vm8 = vcmp.eq.s32.totalorder %v6259_v13, %v13945_v54  ;;  %v7680_v55 = vpop.permute.xlu0 %1229  ;;  %v989_v37 = vsel %vm893_vm4, 1, %v13664_v60  ;;  %v13951_v31 = vld [vmem:[#allocation87_spill] sm:$0xff] }
 0x1c0   :  { %13943 = vst [vmem:[#allocation28_spill] sm:$0xff] %v7647_v52  ;;  %13946 = vst [vmem:[#allocation82_spill] sm:$0xff] %v7662_v44  ;;  %vm901_vm9 = vcmp.eq.s32.totalorder %v6246_v61, %v13951_v31  ;;  %vm902_vm10 = vcmp.eq.s32.totalorder %v6255_v0, %v13951_v31  ;;  %v7694_v57 = vadd.s32 %v987_v32, %v6883_v16  ;;  %v7708_v44 = vld [vmem:[#allocation2 + $0x58] sm:$0xff]  ;;  %v13953_v32 = vld [vmem:[#allocation29_spill] sm:$0xff] }
 0x1c1   :  { %13947 = vst [vmem:[#allocation27_spill] sm:$0xff] %v7665_v29  ;;  %13949 = vst [vmem:[#allocation108_spill] sm:$0xff] %v7668_v1  ;;  %v7683_v29 = vadd.s32 %v985_v56, %v6874_v53  ;;  %v990_v53 = vsel %vm894_vm5, 1, %v13664_v60  ;;  %v991_v56 = vsel %vm895_vm6, 1, %v13664_v60  ;;  %v7712_v16 = vadd.s32 %v986_v30, %v6886_v51  ;;  %v7720_v52 = vld [vmem:[#allocation2 + $0x50] sm:$0xff] }
 0x1c2   :  { %13950 = vst [vmem:[#allocation86_spill] sm:$0xff] %v7680_v55  ;;  %v992_v55 = vsel %vm896_vm7, 1, %v13664_v60  ;;  %13952 = vst [vmem:[#allocation109_spill] sm:$0xff] %v7708_v44  ;;  %v7715_v48 = vadd.s32 %v988_v50, %v13953_v32  ;;  %v993_v1 = vsel %vm897_vm8, 1, %v13664_v60  ;;  %vm903_vm11 = vcmp.eq.s32.totalorder %v6259_v13, %v13951_v31  ;;  %v7723_v54 = vpop.permute.xlu1 %1220  ;;  %v13956_v50 = vld [vmem:[#allocation91_spill] sm:$0xff] }
 0x1c3   :  { %1979 = vperm.xlu0 %5493, %v7708_v44   ;;  %13954 = vst [vmem:[#allocation87_spill] sm:$0xff] %v7720_v52  ;;  %1976 = vperm.xlu1 %5494, %v7720_v52   ;;  %13955 = vst [vmem:[#allocation29_spill] sm:$0xff] %v7723_v54  ;;  %v7726_v14 = vadd.s32 %v989_v37, %v6860_v5  ;;  %v997_v51 = vsel %vm901_vm9, 1, %v13664_v60  ;;  %v998_v30 = vsel %vm902_vm10, 1, %v13664_v60  ;;  %v7738_v32 = vpop.permute.xlu0 %1235  ;;  %v999_v44 = vsel %vm903_vm11, 1, %v13664_v60 }
 0x1c4   :  { %vm898_vm12 = vcmp.eq.s32.totalorder %v6246_v61, %v13956_v50  ;;  %13957 = vst [vmem:[#allocation91_spill] sm:$0xff] %v7738_v32  ;;  %v7741_v54 = vadd.s32 %v990_v53, %v6871_v2  ;;  %v7744_v5 = vadd.s32 %v991_v56, %v6892_v17  ;;  %v7747_v37 = vadd.s32 %v992_v55, %v6895_v3  ;;  %v13958_v32 = vld [vmem:[#allocation92_spill] sm:$0xff] }
 0x1c5   :  { %vm899_vm13 = vcmp.eq.s32.totalorder %v6255_v0, %v13956_v50  ;;  %v7752_v31 = vadd.s32 %v993_v1, %v6898_v8  ;;  %vm900_vm14 = vcmp.eq.s32.totalorder %v6259_v13, %v13956_v50  ;;  %vm907_vm15 = vcmp.eq.s32.totalorder %v6246_v61, %v13958_v32  ;;  %v7759_v2 = vld [vmem:[#allocation2 + $0x68] sm:$0xff]  ;;  %v7771_v55 = vld [vmem:[#allocation2 + $0x60] sm:$0xff] }
 0x1c6   :  { %13959 = vst [vmem:[#allocation92_spill] sm:$0xff] %v7759_v2  ;;  %v7763_v17 = vadd.s32 %v997_v51, %v6940_v36  ;;  %v7766_v3 = vadd.s32 %v998_v30, %v6952_v34  ;;  %v994_v8 = vsel %vm898_vm12, 1, %v13664_v60  ;;  %vm908_vm0 = vcmp.eq.s32.totalorder %v6255_v0, %v13958_v32  ;;  %13960 = vst [vmem:[#allocation137_spill] sm:$0xff] %v7771_v55  ;;  %v7774_v1 = vpop.permute.xlu1 %1226  ;;  %v13962_v36 = vld [vmem:[#allocation23_spill] sm:$0xff] }
 0x1c7   :  { %1985 = vperm.xlu0 %5493, %v7759_v2   ;;  %1982 = vperm.xlu1 %5494, %v7771_v55   ;;  %13961 = vst [vmem:[#allocation138_spill] sm:$0xff] %v7774_v1  ;;  %v995_v53 = vsel %vm899_vm13, 1, %v13664_v60  ;;  %vm909_vm1 = vcmp.eq.s32.totalorder %v6259_v13, %v13958_v32  ;;  %vm904_vm2 = vcmp.eq.s32.totalorder %v6246_v61, %v13962_v36  ;;  %v7783_v34 = vpop.permute.xlu0 %1241  ;;  %v996_v51 = vsel %vm900_vm14, 1, %v13664_v60 }
 0x1c8   :  { %vm905_vm3 = vcmp.eq.s32.totalorder %v6255_v0, %v13962_v36  ;;  %13963 = vst [vmem:[#allocation23_spill] sm:$0xff] %v7783_v34  ;;  %v7786_v56 = vadd.s32 %v999_v44, %v6967_v35  ;;  %v1003_v30 = vsel %vm907_vm15, 1, %v13664_v60  ;;  %vm906_vm4 = vcmp.eq.s32.totalorder %v6259_v13, %v13962_v36  ;;  %v13964_v35 = vld [vmem:[#allocation100_spill] sm:$0xff] }
 0x1c9   :  { %v7799_v1 = vadd.s32 %v994_v8, %v6904_v15  ;;  %v1004_v34 = vsel %vm908_vm0, 1, %v13664_v60  ;;  %vm913_vm5 = vcmp.eq.s32.totalorder %v6246_v61, %v13964_v35  ;;  %vm915_vm6 = vcmp.eq.s32.totalorder %v6259_v13, %v13964_v35  ;;  %v7813_v8 = vld [vmem:[#allocation2 + $0x70] sm:$0xff] }
 0x1ca   :  { %v7808_v44 = vadd.s32 %v995_v53, %v6917_v58  ;;  %v1005_v50 = vsel %vm909_vm1, 1, %v13664_v60  ;;  %v1000_v32 = vsel %vm904_vm2, 1, %v13664_v60  ;;  %v1001_v15 = vsel %vm905_vm3, 1, %v13664_v60  ;;  %13965 = vst [vmem:[#allocation100_spill] sm:$0xff] %v7813_v8  ;;  %v7816_v36 = vpop.permute.xlu1 %1232 }
 0x1cb   :  { %1991 = vperm.xlu0 %5493, %v7027_v21   ;;  %1988 = vperm.xlu1 %5494, %v7813_v8   ;;  %13966 = vst [vmem:[#allocation139_spill] sm:$0xff] %v7816_v36  ;;  %v7819_v2 = vadd.s32 %v996_v51, %v6932_v62  ;;  %v7822_v21 = vadd.s32 %v1003_v30, %v6989_v20  ;;  %v1002_v58 = vsel %vm906_vm4, 1, %v13664_v60  ;;  %v7827_v53 = vpop.permute.xlu0 %1247  ;;  %v1009_v36 = vsel %vm913_vm5, 1, %v13664_v60  ;;  %v13970_v20 = vld [vmem:[#allocation26_spill] sm:$0xff]  ;;  %v13972_v30 = vld [vmem:[#allocation33_spill] sm:$0xff] }
 0x1cc   :  { %vm914_vm7 = vcmp.eq.s32.totalorder %v6255_v0, %v13964_v35  ;;  %13968 = vst [vmem:[#allocation141_spill] sm:$0xff] %v7827_v53  ;;  %v7830_v55 = vadd.s32 %v1004_v34, %v6992_v63  ;;  %v1011_v62 = vsel %vm915_vm6, 1, %v13664_v60  ;;  %vm912_vm8 = vcmp.eq.s32.totalorder %v6259_v13, %v13970_v20  ;;  %v13973_v34 = vld [vmem:[#allocation62_spill] sm:$0xff]  ;;  %v13974_v8 = vld [vmem:[#allocation17_spill] sm:$0xff] }
 0x1cd   :  { %13967 = vst [vmem:[#allocation140_spill] sm:$0xff] %v7822_v21  ;;  %v7843_v51 = vadd.s32 %v1005_v50, %v6995_v33  ;;  %v7846_v53 = vadd.s32 %v1000_v32, %v13972_v30  ;;  %v7849_v63 = vadd.s32 %v1001_v15, %v6982_v59  ;;  %vm910_vm9 = vcmp.eq.s32.totalorder %v6246_v61, %v13970_v20  ;;  %v13975_v33 = vld [vmem:[#allocation105_spill] sm:$0xff]  ;;  %v7862_v50 = vld [vmem:[#allocation2 + $0x80] sm:$0xff] }
 0x1ce   :  { %13969 = vst [vmem:[#allocation142_spill] sm:$0xff] %v7830_v55  ;;  %v7855_v35 = vadd.s32 %v1002_v58, %v13974_v8  ;;  %v1010_v55 = vsel %vm914_vm7, 1, %v13664_v60  ;;  %vm911_vm10 = vcmp.eq.s32.totalorder %v6255_v0, %v13970_v20  ;;  %vm919_vm11 = vcmp.eq.s32.totalorder %v6246_v61, %v13975_v33  ;;  %13976 = vst [vmem:[#allocation33_spill] sm:$0xff] %v7862_v50  ;;  %v7865_v59 = vpop.permute.xlu1 %1238  ;;  %v13978_v32 = vld [vmem:[#allocation56_spill] sm:$0xff] }
 0x1cf   :  { %13971 = vst [vmem:[#allocation26_spill] sm:$0xff] %v7843_v51  ;;  %1997 = vperm.xlu0 %5493, %v13973_v34   ;;  %1994 = vperm.xlu1 %5494, %v7862_v50   ;;  %13977 = vst [vmem:[#allocation62_spill] sm:$0xff] %v7865_v59  ;;  %v7868_v15 = vadd.s32 %v1011_v62, %v13978_v32  ;;  %v13980_v30 = vld [vmem:[#allocation36_spill] sm:$0xff]  ;;  %v1008_v58 = vsel %vm912_vm8, 1, %v13664_v60  ;;  %vm920_vm12 = vcmp.eq.s32.totalorder %v6255_v0, %v13975_v33  ;;  %v7876_v20 = vpop.permute.xlu0 %1253  ;;  %v13983_v50 = vld [vmem:[#allocation111_spill] sm:$0xff] }
 0x1d0   :  { %v7871_v8 = vadd.s32 %v1009_v36, %v13980_v30  ;;  %13982 = vst [vmem:[#allocation56_spill] sm:$0xff] %v7876_v20  ;;  %v1006_v34 = vsel %vm910_vm9, 1, %v13664_v60  ;;  %vm921_vm13 = vcmp.eq.s32.totalorder %v6259_v13, %v13975_v33  ;;  %vm916_vm14 = vcmp.eq.s32.totalorder %v6246_v61, %v13983_v50  ;;  %v13984_v36 = vld [vmem:[#allocation55_spill] sm:$0xff]  ;;  %v13986_v20 = vld [vmem:[#allocation50_spill] sm:$0xff] }
 0x1d1   :  { %13979 = vst [vmem:[#allocation17_spill] sm:$0xff] %v7868_v15  ;;  %vm917_vm15 = vcmp.eq.s32.totalorder %v6255_v0, %v13983_v50  ;;  %v7886_v62 = vadd.s32 %v1010_v55, %v13984_v36  ;;  %v1007_v32 = vsel %vm911_vm10, 1, %v13664_v60  ;;  %v1015_v30 = vsel %vm919_vm11, 1, %v13664_v60  ;;  %v7901_v55 = vld [vmem:[#allocation2 + $0x90] sm:$0xff] }
 0x1d2   :  { %13981 = vst [vmem:[#allocation105_spill] sm:$0xff] %v7871_v8  ;;  %vm918_vm0 = vcmp.eq.s32.totalorder %v6259_v13, %v13983_v50  ;;  %v7894_v59 = vadd.s32 %v1008_v58, %v13986_v20  ;;  %v1016_v15 = vsel %vm920_vm12, 1, %v13664_v60  ;;  %v13987_v8 = vld [vmem:[#allocation112_spill] sm:$0xff]  ;;  %13988 = vst [vmem:[#allocation111_spill] sm:$0xff] %v7901_v55  ;;  %v7904_v36 = vpop.permute.xlu1 %1244  ;;  %v1012_v58 = vsel %vm916_vm14, 1, %v13664_v60  ;;  %v13997_v50 = vld [vmem:[#allocation37_spill] sm:$0xff] }
 0x1d3   :  { %13985 = vst [vmem:[#allocation36_spill] sm:$0xff] %v7886_v62  ;;  %2003 = vperm.xlu0 %5493, %v7133_v23   ;;  %vm925_vm1 = vcmp.eq.s32.totalorder %v6246_v61, %v13987_v8  ;;  %vm926_vm2 = vcmp.eq.s32.totalorder %v6255_v0, %v13987_v8  ;;  %2000 = vperm.xlu1 %5494, %v7901_v55   ;;  %13989 = vst [vmem:[#allocation55_spill] sm:$0xff] %v7904_v36  ;;  %v13990_v62 = vld [vmem:[#allocation53_spill] sm:$0xff]  ;;  %v1017_v23 = vsel %vm921_vm13, 1, %v13664_v60  ;;  %v7921_v55 = vpop.permute.xlu0 %1259  ;;  %v13992_v36 = vld [vmem:[#allocation34_spill] sm:$0xff] }
 0x1d4   :  { %v7907_v51 = vadd.s32 %v1006_v34, %v13990_v62  ;;  %v1013_v20 = vsel %vm917_vm15, 1, %v13664_v60  ;;  %13991 = vst [vmem:[#allocation50_spill] sm:$0xff] %v7921_v55  ;;  %v7924_v34 = vadd.s32 %v1007_v32, %v13992_v36  ;;  %v7927_v62 = vadd.s32 %v1015_v30, %v7104_v38  ;;  %v13995_v32 = vld [vmem:[#allocation16_spill] sm:$0xff]  ;;  %v14000_v36 = vld [vmem:[#allocation114_spill] sm:$0xff] }
 0x1d5   :  { %v1014_v33 = vsel %vm918_vm0, 1, %v13664_v60  ;;  %vm927_vm3 = vcmp.eq.s32.totalorder %v6259_v13, %v13987_v8  ;;  %v7936_v21 = vadd.s32 %v1016_v15, %v7107_v7  ;;  %v1021_v52 = vsel %vm925_vm1, 1, %v13664_v60  ;;  %v7954_v7 = vld [vmem:[#allocation2 + $0xa0] sm:$0xff] }
 0x1d6   :  { %13993 = vst [vmem:[#allocation112_spill] sm:$0xff] %v7927_v62  ;;  %v1022_v55 = vsel %vm926_vm2, 1, %v13664_v60  ;;  %vm924_vm4 = vcmp.eq.s32.totalorder %v6259_v13, %v13995_v32  ;;  %v7944_v38 = vadd.s32 %v1017_v23, %v7110_v41  ;;  %v7947_v30 = vadd.s32 %v1012_v58, %v13997_v50  ;;  %13998 = vst [vmem:[#allocation16_spill] sm:$0xff] %v7954_v7  ;;  %v7957_v15 = vpop.permute.xlu1 %1250  ;;  %v14002_v23 = vld [vmem:[#allocation41_spill] sm:$0xff] }
 0x1d7   :  { %13994 = vst [vmem:[#allocation53_spill] sm:$0xff] %v7936_v21  ;;  %2009 = vperm.xlu0 %5493, %v7191_v22   ;;  %v7950_v8 = vadd.s32 %v1013_v20, %v7088_v39  ;;  %vm922_vm5 = vcmp.eq.s32.totalorder %v6246_v61, %v13995_v32  ;;  %2006 = vperm.xlu1 %5494, %v7954_v7   ;;  %13999 = vst [vmem:[#allocation37_spill] sm:$0xff] %v7957_v15  ;;  %v1023_v41 = vsel %vm927_vm3, 1, %v13664_v60  ;;  %v7967_v39 = vpop.permute.xlu0 %1265  ;;  %v14004_v20 = vld [vmem:[#allocation117_spill] sm:$0xff]  ;;  %v14010_v15 = vld [vmem:[#allocation39_spill] sm:$0xff] }
 0x1d8   :  { %13996 = vst [vmem:[#allocation34_spill] sm:$0xff] %v7944_v38  ;;  %v7960_v22 = vadd.s32 %v1014_v33, %v7091_v12  ;;  %vm923_vm6 = vcmp.eq.s32.totalorder %v6255_v0, %v13995_v32  ;;  %vm931_vm7 = vcmp.eq.s32.totalorder %v6246_v61, %v14000_v36  ;;  %14001 = vst [vmem:[#allocation114_spill] sm:$0xff] %v7967_v39  ;;  %v1020_v12 = vsel %vm924_vm4, 1, %v13664_v60  ;;  %v14006_v39 = vld [vmem:[#allocation30_spill] sm:$0xff]  ;;  %v14018_v21 = vld [vmem:[#allocation32_spill] sm:$0xff] }
 0x1d9   :  { %v7970_v58 = vadd.s32 %v1021_v52, %v14002_v23  ;;  %v7973_v50 = vadd.s32 %v1022_v55, %v14004_v20  ;;  %vm932_vm8 = vcmp.eq.s32.totalorder %v6255_v0, %v14000_v36  ;;  %v1018_v33 = vsel %vm922_vm5, 1, %v13664_v60  ;;  %v14008_v23 = vld [vmem:[#allocation18_spill] sm:$0xff] }
 0x1da   :  { %vm933_vm9 = vcmp.eq.s32.totalorder %v6259_v13, %v14000_v36  ;;  %vm928_vm10 = vcmp.eq.s32.totalorder %v6246_v61, %v14006_v39  ;;  %vm929_vm11 = vcmp.eq.s32.totalorder %v6255_v0, %v14006_v39  ;;  %v7990_v52 = vadd.s32 %v1023_v41, %v7195_v49  ;;  %v7997_v20 = vpop.permute.xlu1 %1256  ;;  %v14013_v41 = vld [vmem:[#allocation38_spill] sm:$0xff] }
 0x1db   :  { %14003 = vst [vmem:[#allocation41_spill] sm:$0xff] %v7970_v58  ;;  %14005 = vst [vmem:[#allocation117_spill] sm:$0xff] %v7973_v50  ;;  %2015 = vperm.xlu0 %5493, %v7241_v26   ;;  %v1019_v55 = vsel %vm923_vm6, 1, %v13664_v60  ;;  %v1027_v32 = vsel %vm931_vm7, 1, %v13664_v60  ;;  %vm930_vm12 = vcmp.eq.s32.totalorder %v6259_v13, %v14006_v39  ;;  %2012 = vperm.xlu1 %5494, %v14008_v23   ;;  %v1028_v50 = vsel %vm932_vm8, 1, %v13664_v60  ;;  %v14011_v26 = vld [vmem:[#allocation31_spill] sm:$0xff]  ;;  %v8007_v49 = vpop.permute.xlu0 %1271 }
 0x1dc   :  { %14007 = vst [vmem:[#allocation30_spill] sm:$0xff] %v7990_v52  ;;  %14009 = vst [vmem:[#allocation18_spill] sm:$0xff] %v7997_v20  ;;  %v8000_v7 = vadd.s32 %v1020_v12, %v14010_v15  ;;  %vm937_vm13 = vcmp.eq.s32.totalorder %v6246_v61, %v14011_v26  ;;  %vm938_vm14 = vcmp.eq.s32.totalorder %v6255_v0, %v14011_v26  ;;  %v1029_v23 = vsel %vm933_vm9, 1, %v13664_v60  ;;  %v14014_v20 = vld [vmem:[#allocation65_spill] sm:$0xff]  ;;  %v14016_v36 = vld [vmem:[#allocation42_spill] sm:$0xff] }
 0x1dd   :  { %14012 = vst [vmem:[#allocation39_spill] sm:$0xff] %v8007_v49  ;;  %v8010_v52 = vadd.s32 %v1018_v33, %v14013_v41  ;;  %v1024_v15 = vsel %vm928_vm10, 1, %v13664_v60  ;;  %v1025_v12 = vsel %vm929_vm11, 1, %v13664_v60  ;;  %v8025_v49 = vadd.s32 %v1019_v55, %v14014_v20  ;;  %v14019_v55 = vld [vmem:[#allocation59_spill] sm:$0xff] }
 0x1de   :  { %v8028_v33 = vadd.s32 %v1027_v32, %v7223_v40  ;;  %v1026_v41 = vsel %vm930_vm12, 1, %v13664_v60  ;;  %vm939_vm15 = vcmp.eq.s32.totalorder %v6259_v13, %v14011_v26  ;;  %v8035_v58 = vadd.s32 %v1028_v50, %v14016_v36  ;;  %v8042_v40 = vpop.permute.xlu1 %1262  ;;  %v14021_v32 = vld [vmem:[#allocation121_spill] sm:$0xff]  ;;  %v14023_v26 = vld [vmem:[#allocation66_spill] sm:$0xff] }
 0x1df   :  { %2021 = vperm.xlu0 %5493, %v7286_v24   ;;  %v1033_v38 = vsel %vm937_vm13, 1, %v13664_v60  ;;  %v1034_v39 = vsel %vm938_vm14, 1, %v13664_v60  ;;  %vm934_vm0 = vcmp.eq.s32.totalorder %v6246_v61, %v14018_v21  ;;  %2018 = vperm.xlu1 %5494, %v14019_v55   ;;  %14020 = vst [vmem:[#allocation65_spill] sm:$0xff] %v8042_v40  ;;  %v8045_v20 = vadd.s32 %v1029_v23, %v14021_v32  ;;  %v14024_v24 = vld [vmem:[#allocation69_spill] sm:$0xff]  ;;  %v14025_v36 = vld [vmem:[#allocation70_spill] sm:$0xff]  ;;  %v14026_v55 = vld [vmem:[#allocation48_spill] sm:$0xff]  ;;  %v8063_v23 = vpop.permute.xlu0 %1565 }
 0x1e0   :  { %14015 = vst [vmem:[#allocation31_spill] sm:$0xff] %v8028_v33  ;;  %14017 = vst [vmem:[#allocation38_spill] sm:$0xff] %v8035_v58  ;;  %v8048_v33 = vadd.s32 %v1024_v15, %v14023_v26  ;;  %v8051_v50 = vadd.s32 %v1025_v12, %v14024_v24  ;;  %vm935_vm1 = vcmp.eq.s32.totalorder %v6255_v0, %v14018_v21  ;;  %v1035_v62 = vsel %vm939_vm15, 1, %v13664_v60  ;;  %v14028_v15 = vld [vmem:[#allocation72_spill] sm:$0xff]  ;;  %v14030_v12 = vld [vmem:[#allocation45_spill] sm:$0xff] }
 0x1e1   :  { %14022 = vst [vmem:[#allocation42_spill] sm:$0xff] %v8045_v20  ;;  %v8056_v58 = vadd.s32 %v1026_v41, %v14025_v36  ;;  %vm936_vm2 = vcmp.eq.s32.totalorder %v6259_v13, %v14018_v21  ;;  %vm943_vm3 = vcmp.eq.s32.totalorder %v6246_v61, %v14026_v55  ;;  %14027 = vst [vmem:[#allocation32_spill] sm:$0xff] %v8063_v23  ;;  %v1030_v24 = vsel %vm934_vm0, 1, %v13664_v60  ;;  %v14032_v41 = vld [vmem:[#allocation19_spill] sm:$0xff] }
 0x1e2   :  { %v8066_v32 = vadd.s32 %v1033_v38, %v14028_v15  ;;  %v8069_v26 = vadd.s32 %v1034_v39, %v14030_v12  ;;  %vm944_vm4 = vcmp.eq.s32.totalorder %v6255_v0, %v14026_v55  ;;  %v1031_v21 = vsel %vm935_vm1, 1, %v13664_v60  ;;  %v14033_v38 = vld [vmem:[#allocation40_spill] sm:$0xff]  ;;  %v8083_v39 = vpop.permute.xlu1 %1268 }
 0x1e3   :  { %2027 = vperm.xlu0 %5493, %v7328_v27   ;;  %vm945_vm5 = vcmp.eq.s32.totalorder %v6259_v13, %v14026_v55  ;;  %vm940_vm6 = vcmp.eq.s32.totalorder %v6246_v61, %v14032_v41  ;;  %vm941_vm7 = vcmp.eq.s32.totalorder %v6255_v0, %v14032_v41  ;;  %2024 = vperm.xlu1 %5494, %v14033_v38   ;;  %v1032_v15 = vsel %vm936_vm2, 1, %v13664_v60  ;;  %v14036_v55 = vld [vmem:[#allocation122_spill] sm:$0xff] }
 0x1e4   :  { %14029 = vst [vmem:[#allocation59_spill] sm:$0xff] %v8066_v32  ;;  %14031 = vst [vmem:[#allocation121_spill] sm:$0xff] %v8069_v26  ;;  %v8086_v36 = vadd.s32 %v1035_v62, %v7298_v25  ;;  %v1039_v12 = vsel %vm943_vm3, 1, %v13664_v60  ;;  %vm942_vm8 = vcmp.eq.s32.totalorder %v6259_v13, %v14032_v41  ;;  %v8093_v23 = vadd.s32 %v1030_v24, %v14036_v55  ;;  %v14037_v26 = vld [vmem:[#allocation49_spill] sm:$0xff]  ;;  %v8100_v25 = vpop.permute.xlu0 %1574  ;;  %v14039_v62 = vld [vmem:[#allocation43_spill] sm:$0xff] }
 0x1e5   :  { %14034 = vst [vmem:[#allocation66_spill] sm:$0xff] %v8083_v39  ;;  %v1040_v40 = vsel %vm944_vm4, 1, %v13664_v60  ;;  %vm949_vm9 = vcmp.eq.s32.totalorder %v6246_v61, %v14037_v26  ;;  %vm950_vm10 = vcmp.eq.s32.totalorder %v6255_v0, %v14037_v26  ;;  %14038 = vst [vmem:[#allocation70_spill] sm:$0xff] %v8100_v25  ;;  %v8103_v38 = vadd.s32 %v1031_v21, %v14039_v62  ;;  %v14041_v55 = vld [vmem:[#allocation44_spill] sm:$0xff]  ;;  %v14043_v21 = vld [vmem:[#allocation118_spill] sm:$0xff] }
 0x1e6   :  { %14035 = vst [vmem:[#allocation69_spill] sm:$0xff] %v8086_v36  ;;  %v1041_v39 = vsel %vm945_vm5, 1, %v13664_v60  ;;  %v1036_v41 = vsel %vm940_vm6, 1, %v13664_v60  ;;  %v1037_v24 = vsel %vm941_vm7, 1, %v13664_v60  ;;  %v8110_v36 = vadd.s32 %v1032_v15, %v14041_v55  ;;  %v8126_v15 = vpop.permute.xlu1 %1562 }
 0x1e7   :  { %14040 = vst [vmem:[#allocation48_spill] sm:$0xff] %v8103_v38  ;;  %2033 = vperm.xlu0 %5493, %v7365_v19   ;;  %v8113_v32 = vadd.s32 %v1039_v12, %v7318_v10  ;;  %v1038_v20 = vsel %vm942_vm8, 1, %v13664_v60  ;;  %vm951_vm11 = vcmp.eq.s32.totalorder %v6259_v13, %v14037_v26  ;;  %2030 = vperm.xlu1 %5494, %v14043_v21   ;;  %v1045_v25 = vsel %vm949_vm9, 1, %v13664_v60  ;;  %v14045_v38 = vld [vmem:[#allocation54_spill] sm:$0xff] }
 0x1e8   :  { %v8120_v62 = vadd.s32 %v1040_v40, %v7321_v11  ;;  %v1046_v19 = vsel %vm950_vm10, 1, %v13664_v60  ;;  %vm946_vm12 = vcmp.eq.s32.totalorder %v6246_v61, %v14045_v38  ;;  %14046 = vst [vmem:[#allocation19_spill] sm:$0xff] %v8126_v15  ;;  %v8129_v10 = vadd.s32 %v1041_v39, %v7324_v18  ;;  %v8139_v11 = vpop.permute.xlu0 %1580  ;;  %v14049_v18 = vld [vmem:[#allocation35_spill] sm:$0xff]  ;;  %v14052_v39 = vld [vmem:[#allocation80_spill] sm:$0xff] }
 0x1e9   :  { %14042 = vst [vmem:[#allocation72_spill] sm:$0xff] %v8113_v32  ;;  %v8132_v12 = vadd.s32 %v1036_v41, %v7301_v43  ;;  %v8135_v26 = vadd.s32 %v1037_v24, %v7309_v42  ;;  %vm947_vm13 = vcmp.eq.s32.totalorder %v6255_v0, %v14045_v38  ;;  %14048 = vst [vmem:[#allocation122_spill] sm:$0xff] %v8139_v11  ;;  %v1047_v55 = vsel %vm951_vm11, 1, %v13664_v60  ;;  %v14050_v42 = vld [vmem:[#allocation51_spill] sm:$0xff]  ;;  %v14060_v11 = vld [vmem:[#allocation61_spill] sm:$0xff] }
 0x1ea   :  { %14044 = vst [vmem:[#allocation45_spill] sm:$0xff] %v8120_v62  ;;  %14047 = vst [vmem:[#allocation40_spill] sm:$0xff] %v8129_v10  ;;  %v8142_v40 = vadd.s32 %v1038_v20, %v7312_v6  ;;  %vm948_vm14 = vcmp.eq.s32.totalorder %v6259_v13, %v14045_v38  ;;  %vm955_vm15 = vcmp.eq.s32.totalorder %v6246_v61, %v14049_v18  ;;  %v1042_v24 = vsel %vm946_vm12, 1, %v13664_v60  ;;  %v14054_v6 = vld [vmem:[#allocation71_spill] sm:$0xff]  ;;  %v14055_v38 = vld [vmem:[#allocation60_spill] sm:$0xff] }
 0x1eb   :  { %2039 = vperm.xlu0 %5493, %v7406_v4   ;;  %v8151_v43 = vadd.s32 %v1045_v25, %v14050_v42  ;;  %v8154_v41 = vadd.s32 %v1046_v19, %v14052_v39  ;;  %vm956_vm0 = vcmp.eq.s32.totalorder %v6255_v0, %v14049_v18  ;;  %2036 = vperm.xlu1 %5494, %v14054_v6   ;;  %v1043_v20 = vsel %vm947_vm13, 1, %v13664_v60  ;;  %v8167_v4 = vpop.permute.xlu1 %1568  ;;  %v14062_v15 = vld [vmem:[#allocation47_spill] sm:$0xff] }
 0x1ec   :  { %vm957_vm1 = vcmp.eq.s32.totalorder %v6259_v13, %v14049_v18  ;;  %vm952_vm2 = vcmp.eq.s32.totalorder %v6246_v61, %v14055_v38  ;;  %vm953_vm3 = vcmp.eq.s32.totalorder %v6255_v0, %v14055_v38  ;;  %14056 = vst [vmem:[#allocation44_spill] sm:$0xff] %v8167_v4  ;;  %v8170_v25 = vadd.s32 %v1047_v55, %v7386_v28  ;;  %v8176_v42 = vpop.permute.xlu0 %1586  ;;  %v14059_v18 = vld [vmem:[#allocation75_spill] sm:$0xff]  ;;  %v14061_v28 = vld [vmem:[#allocation77_spill] sm:$0xff] }
 0x1ed   :  { %14051 = vst [vmem:[#allocation49_spill] sm:$0xff] %v8151_v43  ;;  %14053 = vst [vmem:[#allocation43_spill] sm:$0xff] %v8154_v41  ;;  %v1044_v21 = vsel %vm948_vm14, 1, %v13664_v60  ;;  %v1051_v19 = vsel %vm955_vm15, 1, %v13664_v60  ;;  %vm954_vm4 = vcmp.eq.s32.totalorder %v6259_v13, %v14055_v38  ;;  %v8179_v39 = vadd.s32 %v1042_v24, %v14059_v18  ;;  %v14064_v18 = vld [vmem:[#allocation57_spill] sm:$0xff]  ;;  %v14069_v32 = vld [vmem:[#allocation115_spill] sm:$0xff] }
 0x1ee   :  { %14057 = vst [vmem:[#allocation118_spill] sm:$0xff] %v8170_v25  ;;  %14058 = vst [vmem:[#allocation54_spill] sm:$0xff] %v8176_v42  ;;  %v1052_v6 = vsel %vm956_vm0, 1, %v13664_v60  ;;  %vm961_vm5 = vcmp.eq.s32.totalorder %v6246_v61, %v14060_v11  ;;  %vm962_vm6 = vcmp.eq.s32.totalorder %v6255_v0, %v14060_v11  ;;  %v8187_v55 = vadd.s32 %v1043_v20, %v14061_v28  ;;  %v14067_v20 = vld [vmem:[#allocation126_spill] sm:$0xff] }
 0x1ef   :  { %v1053_v4 = vsel %vm957_vm1, 1, %v13664_v60  ;;  %v1048_v38 = vsel %vm952_vm2, 1, %v13664_v60  ;;  %v1049_v42 = vsel %vm953_vm3, 1, %v13664_v60  ;;  %v8193_v24 = vadd.s32 %v1044_v21, %v14062_v15  ;;  %v8201_v43 = vpop.permute.xlu1 %1571  ;;  %v14071_v21 = vld [vmem:[#allocation20_spill] sm:$0xff] }
 0x1f0   :  { %v8196_v25 = vadd.s32 %v1051_v19, %v14064_v18  ;;  %v1050_v41 = vsel %vm954_vm4, 1, %v13664_v60  ;;  %vm963_vm7 = vcmp.eq.s32.totalorder %v6259_v13, %v14060_v11  ;;  %14066 = vst [vmem:[#allocation80_spill] sm:$0xff] %v8201_v43  ;;  %v8204_v28 = vadd.s32 %v1052_v6, %v14067_v20  ;;  %v8210_v15 = vpop.permute.xlu0 %1592  ;;  %v14073_v18 = vld [vmem:[#allocation83_spill] sm:$0xff]  ;;  %v14075_v11 = vld [vmem:[#allocation84_spill] sm:$0xff]  ;;  %v14077_v6 = vld [vmem:[#allocation85_spill] sm:$0xff] }
 0x1f1   :  { %14063 = vst [vmem:[#allocation35_spill] sm:$0xff] %v8193_v24  ;;  %v1057_v10 = vsel %vm961_vm5, 1, %v13664_v60  ;;  %v1058_v62 = vsel %vm962_vm6, 1, %v13664_v60  ;;  %vm958_vm8 = vcmp.eq.s32.totalorder %v6246_v61, %v14069_v32  ;;  %14070 = vst [vmem:[#allocation60_spill] sm:$0xff] %v8210_v15  ;;  %v8213_v19 = vadd.s32 %v1053_v4, %v14071_v21  ;;  %v14079_v15 = vld [vmem:[#allocation116_spill] sm:$0xff]  ;;  %v14080_v4 = vld [vmem:[#allocation95_spill] sm:$0xff] }
 0x1f2   :  { %14065 = vst [vmem:[#allocation51_spill] sm:$0xff] %v8196_v25  ;;  %14068 = vst [vmem:[#allocation71_spill] sm:$0xff] %v8204_v28  ;;  %v8216_v25 = vadd.s32 %v1048_v38, %v14073_v18  ;;  %v8219_v43 = vadd.s32 %v1049_v42, %v14075_v11  ;;  %vm959_vm9 = vcmp.eq.s32.totalorder %v6255_v0, %v14069_v32  ;;  %v1059_v28 = vsel %vm963_vm7, 1, %v13664_v60  ;;  %v14082_v21 = vld [vmem:[#allocation22_spill] sm:$0xff] }
 0x1f3   :  { %14072 = vst [vmem:[#allocation75_spill] sm:$0xff] %v8213_v19  ;;  %v8224_v20 = vadd.s32 %v1050_v41, %v14077_v6  ;;  %vm960_vm10 = vcmp.eq.s32.totalorder %v6259_v13, %v14069_v32  ;;  %vm967_vm11 = vcmp.eq.s32.totalorder %v6246_v61, %v14079_v15  ;;  %v8232_v38 = vadd.s32 %v1057_v10, %v14080_v4  ;;  %v8240_v41 = vpop.permute.xlu1 %1577  ;;  %v14085_v32 = vld [vmem:[#allocation119_spill] sm:$0xff]  ;;  %v14087_v6 = vld [vmem:[#allocation96_spill] sm:$0xff] }
 0x1f4   :  { %14074 = vst [vmem:[#allocation61_spill] sm:$0xff] %v8216_v25  ;;  %14076 = vst [vmem:[#allocation77_spill] sm:$0xff] %v8219_v43  ;;  %v8235_v42 = vadd.s32 %v1058_v62, %v14082_v21  ;;  %v1054_v18 = vsel %vm958_vm8, 1, %v13664_v60  ;;  %vm968_vm12 = vcmp.eq.s32.totalorder %v6255_v0, %v14079_v15  ;;  %v1055_v11 = vsel %vm959_vm9, 1, %v13664_v60  ;;  %v8247_v10 = vpop.permute.xlu0 %1598  ;;  %v14096_v25 = vld [vmem:[#allocation63_spill] sm:$0xff] }
 0x1f5   :  { %14078 = vst [vmem:[#allocation47_spill] sm:$0xff] %v8224_v20  ;;  %14081 = vst [vmem:[#allocation57_spill] sm:$0xff] %v8232_v38  ;;  %vm969_vm13 = vcmp.eq.s32.totalorder %v6259_v13, %v14079_v15  ;;  %vm964_vm14 = vcmp.eq.s32.totalorder %v6246_v61, %v14085_v32  ;;  %v8250_v62 = vadd.s32 %v1059_v28, %v14087_v6  ;;  %v1056_v4 = vsel %vm960_vm10, 1, %v13664_v60  ;;  %v14089_v38 = vld [vmem:[#allocation120_spill] sm:$0xff]  ;;  %v14090_v28 = vld [vmem:[#allocation90_spill] sm:$0xff] }
 0x1f6   :  { %14083 = vst [vmem:[#allocation126_spill] sm:$0xff] %v8235_v42  ;;  %14084 = vst [vmem:[#allocation115_spill] sm:$0xff] %v8240_v41  ;;  %v1063_v21 = vsel %vm967_vm11, 1, %v13664_v60  ;;  %vm965_vm15 = vcmp.eq.s32.totalorder %v6255_v0, %v14085_v32  ;;  %v13490_v41 = vmov 7   ;;  %v1064_v42 = vsel %vm968_vm12, 1, %v13664_v60  ;;  %v14091_v6 = vld [vmem:[#allocation88_spill] sm:$0xff] }
 0x1f7   :  { %14086 = vst [vmem:[#allocation20_spill] sm:$0xff] %v8247_v10  ;;  %14088 = vst [vmem:[#allocation83_spill] sm:$0xff] %v8250_v62  ;;  %5497 = vset.pattern.permute.xlu0 %v13490_v41  ;;  %vm966_vm0 = vcmp.eq.s32.totalorder %v6259_v13, %v14085_v32  ;;  %vm973_vm1 = vcmp.eq.s32.totalorder %v6246_v61, %v14089_v38  ;;  %vm975_vm2 = vcmp.eq.s32.totalorder %v6259_v13, %v14089_v38  ;;  %v14093_v62 = vld [vmem:[#allocation89_spill] sm:$0xff]  ;;  %v8279_v43 = vpop.permute.xlu1 %1583 }
 0x1f8   :  { %2714 = vperm.xlu0 %5497, %v14090_v28   ;;  %v8266_v10 = vadd.s32 %v1054_v18, %v14091_v6  ;;  %v8269_v19 = vadd.s32 %v1055_v11, %v14093_v62  ;;  %v1065_v41 = vsel %vm969_vm13, 1, %v13664_v60  ;;  %v1060_v20 = vsel %vm964_vm14, 1, %v13664_v60  ;;  %14095 = vst [vmem:[#allocation116_spill] sm:$0xff] %v8279_v43  ;;  %v14098_v18 = vld [vmem:[#allocation130_spill] sm:$0xff]  ;;  %v8290_v15 = vpop.permute.xlu0 %1604  ;;  %v14101_v62 = vld [vmem:[#allocation24_spill] sm:$0xff] }
 0x1f9   :  { %v8282_v24 = vadd.s32 %v1056_v4, %v14096_v25  ;;  %v8285_v6 = vadd.s32 %v1063_v21, %v14098_v18  ;;  %v1061_v11 = vsel %vm965_vm15, 1, %v13664_v60  ;;  %vm974_vm3 = vcmp.eq.s32.totalorder %v6255_v0, %v14089_v38  ;;  %14100 = vst [vmem:[#allocation119_spill] sm:$0xff] %v8290_v15  ;;  %v14103_v4 = vld [vmem:[#allocation101_spill] sm:$0xff]  ;;  %v14108_v38 = vld [vmem:[#allocation128_spill] sm:$0xff] }
 0x1fa   :  { %14092 = vst [vmem:[#allocation84_spill] sm:$0xff] %v8266_v10  ;;  %14094 = vst [vmem:[#allocation85_spill] sm:$0xff] %v8269_v19  ;;  %v8293_v19 = vadd.s32 %v1064_v42, %v14101_v62  ;;  %v1062_v32 = vsel %vm966_vm0, 1, %v13664_v60  ;;  %v1069_v43 = vsel %vm973_vm1, 1, %v13664_v60  ;;  %v1071_v25 = vsel %vm975_vm2, 1, %v13664_v60  ;;  %v14105_v21 = vld [vmem:[#allocation93_spill] sm:$0xff] }
 0x1fb   :  { %14097 = vst [vmem:[#allocation95_spill] sm:$0xff] %v8282_v24  ;;  %14099 = vst [vmem:[#allocation22_spill] sm:$0xff] %v8285_v6  ;;  %v8299_v24 = vadd.s32 %v1065_v41, %v14103_v4  ;;  %v8302_v18 = vadd.s32 %v1060_v20, %v14105_v21  ;;  %v14107_v6 = vld [vmem:[#allocation123_spill] sm:$0xff]  ;;  %v14109_v42 = vld [vmem:[#allocation21_spill] sm:$0xff]  ;;  %v1070_v15 = vsel %vm974_vm3, 1, %v13664_v60  ;;  %v8317_v20 = vpop.permute.xlu1 %1589 }
 0x1fc   :  { %14102 = vst [vmem:[#allocation96_spill] sm:$0xff] %v8293_v19  ;;  %vm970_vm4 = vcmp.eq.s32.totalorder %v6246_v61, %v14107_v6  ;;  %vm971_vm5 = vcmp.eq.s32.totalorder %v6255_v0, %v14107_v6  ;;  %2717 = vperm.xlu0 %5497, %v14108_v38   ;;  %v8310_v62 = vadd.s32 %v1061_v11, %v14109_v42  ;;  %v14111_v41 = vld [vmem:[#allocation124_spill] sm:$0xff]  ;;  %14112 = vst [vmem:[#allocation89_spill] sm:$0xff] %v8317_v20  ;;  %v14113_v4 = vld [vmem:[#allocation94_spill] sm:$0xff]  ;;  %v8330_v11 = vpop.permute.xlu0 %1610 }
 0x1fd   :  { %14104 = vst [vmem:[#allocation120_spill] sm:$0xff] %v8299_v24  ;;  %14106 = vst [vmem:[#allocation90_spill] sm:$0xff] %v8302_v18  ;;  %vm972_vm6 = vcmp.eq.s32.totalorder %v6259_v13, %v14107_v6  ;;  %vm979_vm7 = vcmp.eq.s32.totalorder %v6246_v61, %v14111_v41  ;;  %v8320_v21 = vadd.s32 %v1062_v32, %v14113_v4  ;;  %v14115_v24 = vld [vmem:[#allocation107_spill] sm:$0xff]  ;;  %v14117_v18 = vld [vmem:[#allocation104_spill] sm:$0xff]  ;;  %v1066_v6 = vsel %vm970_vm4, 1, %v13664_v60 }
 0x1fe   :  { %14110 = vst [vmem:[#allocation88_spill] sm:$0xff] %v8310_v62  ;;  %v8323_v19 = vadd.s32 %v1071_v25, %v14115_v24  ;;  %v8326_v10 = vadd.s32 %v1069_v43, %v14117_v18  ;;  %vm980_vm8 = vcmp.eq.s32.totalorder %v6255_v0, %v14111_v41  ;;  %14119 = vst [vmem:[#allocation101_spill] sm:$0xff] %v8330_v11  ;;  %v1067_v42 = vsel %vm971_vm5, 1, %v13664_v60  ;;  %v14120_v32 = vld [vmem:[#allocation78_spill] sm:$0xff] }
 0x1ff   :  { %14114 = vst [vmem:[#allocation63_spill] sm:$0xff] %v8320_v21  ;;  %vm981_vm9 = vcmp.eq.s32.totalorder %v6259_v13, %v14111_v41  ;;  %vm976_vm10 = vcmp.eq.s32.totalorder %v6246_v61, %v14120_v32  ;;  %v14121_v24 = vld [vmem:[#allocation106_spill] sm:$0xff]  ;;  %v1068_v43 = vsel %vm972_vm6, 1, %v13664_v60  ;;  %v1075_v18 = vsel %vm979_vm7, 1, %v13664_v60  ;;  %v14123_v41 = vld [vmem:[#allocation79_spill] sm:$0xff] }
 0x200   :  { %14116 = vst [vmem:[#allocation130_spill] sm:$0xff] %v8323_v19  ;;  %14118 = vst [vmem:[#allocation24_spill] sm:$0xff] %v8326_v10  ;;  %v8339_v25 = vadd.s32 %v1070_v15, %v14121_v24  ;;  %vm977_vm11 = vcmp.eq.s32.totalorder %v6255_v0, %v14120_v32  ;;  %2795 = vperm.xlu0 %5497, %v7328_v27   ;;  %v1076_v4 = vsel %vm980_vm8, 1, %v13664_v60  ;;  %v8353_v15 = vpop.permute.xlu1 %1595  ;;  %v14125_v24 = vld [vmem:[#allocation97_spill] sm:$0xff]  ;;  %v14126_v20 = vld [vmem:[#allocation98_spill] sm:$0xff]  ;;  %v1077_v27 = vsel %vm981_vm9, 1, %v13664_v60 }
 0x201   :  { %vm978_vm12 = vcmp.eq.s32.totalorder %v6259_v13, %v14120_v32  ;;  %vm1273_vm13 = vcmp.eq.s32.totalorder %v6246_v61, %v14123_v41  ;;  %vm1275_vm14 = vcmp.eq.s32.totalorder %v6259_v13, %v14123_v41  ;;  %14124 = vst [vmem:[#allocation123_spill] sm:$0xff] %v8353_v15  ;;  %v8356_v11 = vadd.s32 %v1066_v6, %v14125_v24  ;;  %v14127_v19 = vld [vmem:[#allocation99_spill] sm:$0xff]  ;;  %v14130_v15 = vld [vmem:[#allocation133_spill] sm:$0xff] }
 0x202   :  { %14122 = vst [vmem:[#allocation93_spill] sm:$0xff] %v8339_v25  ;;  %v8359_v25 = vadd.s32 %v1067_v42, %v14126_v20  ;;  %v1072_v10 = vsel %vm976_vm10, 1, %v13664_v60  ;;  %v8364_v32 = vadd.s32 %v1068_v43, %v14127_v19  ;;  %v8367_v21 = vadd.s32 %v1075_v18, %v7623_v9  ;;  %v8379_v19 = vpop.permute.xlu0 %1616  ;;  %v14132_v43 = vld [vmem:[#allocation102_spill] sm:$0xff] }
 0x203   :  { %v1073_v62 = vsel %vm977_vm11, 1, %v13664_v60  ;;  %vm1274_vm15 = vcmp.eq.s32.totalorder %v6255_v0, %v14123_v41  ;;  %v8373_v6 = vadd.s32 %v1076_v4, %v7626_v46  ;;  %v1074_v20 = vsel %vm978_vm12, 1, %v13664_v60  ;;  %14131 = vst [vmem:[#allocation124_spill] sm:$0xff] %v8379_v19  ;;  %v14133_v41 = vld [vmem:[#allocation76_spill] sm:$0xff]  ;;  %v14135_v4 = vld [vmem:[#allocation25_spill] sm:$0xff] }
 0x204   :  { %14128 = vst [vmem:[#allocation128_spill] sm:$0xff] %v8367_v21  ;;  %v1369_v42 = vsel %vm1273_vm13, 1, %v13664_v60  ;;  %v1371_v24 = vsel %vm1275_vm14, 1, %v13664_v60  ;;  %2726 = vperm.xlu0 %5497, %v14130_v15   ;;  %v8382_v9 = vadd.s32 %v1077_v27, %v7633_v45  ;;  %v8385_v18 = vadd.s32 %v1072_v10, %v14132_v43  ;;  %v8391_v46 = vpop.permute.xlu1 %1601  ;;  %v14136_v45 = vld [vmem:[#allocation46_spill] sm:$0xff] }
 0x205   :  { %14129 = vst [vmem:[#allocation21_spill] sm:$0xff] %v8373_v6  ;;  %vm982_vm0 = vcmp.eq.s32.totalorder %v6246_v61, %v14133_v41  ;;  %vm983_vm1 = vcmp.eq.s32.totalorder %v6255_v0, %v14133_v41  ;;  %14134 = vst [vmem:[#allocation94_spill] sm:$0xff] %v8391_v46  ;;  %v8394_v6 = vadd.s32 %v1073_v62, %v14135_v4  ;;  %v1370_v21 = vsel %vm1274_vm15, 1, %v13664_v60 }
 0x206   :  { %vm984_vm2 = vcmp.eq.s32.totalorder %v6259_v13, %v14133_v41  ;;  %vm1282_vm3 = vcmp.eq.s32.totalorder %v6246_v61, %v14136_v45  ;;  %v8402_v10 = vadd.s32 %v1074_v20, %v7620_v47  ;;  %v8405_v27 = vadd.s32 %v1369_v42, %v7683_v29  ;;  %v14139_v20 = vld [vmem:[#allocation52_spill] sm:$0xff] }
 0x207   :  { %v8408_v43 = vadd.s32 %v1371_v24, %v7694_v57  ;;  %vm1283_vm4 = vcmp.eq.s32.totalorder %v6255_v0, %v14136_v45  ;;  %v1078_v62 = vsel %vm982_vm0, 1, %v13664_v60  ;;  %v1079_v4 = vsel %vm983_vm1, 1, %v13664_v60 }
 0x208   :  { %vm1284_vm5 = vcmp.eq.s32.totalorder %v6259_v13, %v14136_v45  ;;  %v8417_v41 = vadd.s32 %v1370_v21, %v7712_v16  ;;  %v1080_v47 = vsel %vm984_vm2, 1, %v13664_v60  ;;  %v1378_v29 = vsel %vm1282_vm3, 1, %v13664_v60  ;;  %v8425_v42 = vpop.permute.xlu1 %1607  ;;  %v14141_v16 = vld [vmem:[#allocation125_spill] sm:$0xff]  ;;  %v8436_v21 = vpop.permute.xlu0 %1622 }
 0x209   :  { %14137 = vst [vmem:[#allocation107_spill] sm:$0xff] %v8408_v43  ;;  %vm1276_vm6 = vcmp.eq.s32.totalorder %v6246_v61, %v14139_v20  ;;  %v13497_v57 = vmov 6   ;;  %14140 = vst [vmem:[#allocation78_spill] sm:$0xff] %v8425_v42  ;;  %v1379_v24 = vsel %vm1283_vm4, 1, %v13664_v60  ;;  %vm1277_vm7 = vcmp.eq.s32.totalorder %v6255_v0, %v14139_v20  ;;  %v14144_v42 = vld [vmem:[#allocation28_spill] sm:$0xff] }
 0x20a   :  { %14138 = vst [vmem:[#allocation104_spill] sm:$0xff] %v8417_v41  ;;  %5495 = vset.pattern.permute.xlu1 %v13497_v57  ;;  %5513 = vset.pattern.permute.xlu0 %v13497_v57  ;;  %vm1278_vm8 = vcmp.eq.s32.totalorder %v6259_v13, %v14139_v20  ;;  %vm1290_vm9 = vcmp.eq.s32.totalorder %v6259_v13, %v14141_v16  ;;  %14142 = vst [vmem:[#allocation106_spill] sm:$0xff] %v8436_v21  ;;  %v14143_v57 = vld [vmem:[#allocation110_spill] sm:$0xff]  ;;  %v1380_v41 = vsel %vm1284_vm5, 1, %v13664_v60  ;;  %v14145_v43 = vld [vmem:[#allocation108_spill] sm:$0xff] }
 0x20b   :  { %2330 = vperm.xlu1 %5495, %v14090_v28   ;;  %2333 = vperm.xlu0 %5513, %v14108_v38   ;;  %v8439_v46 = vadd.s32 %v1078_v62, %v14143_v57  ;;  %v8442_v19 = vadd.s32 %v1079_v4, %v14144_v42  ;;  %vm1288_vm10 = vcmp.eq.s32.totalorder %v6246_v61, %v14141_v16  ;;  %v1372_v62 = vsel %vm1276_vm6, 1, %v13664_v60  ;;  %v14147_v20 = vld [vmem:[#allocation58_spill] sm:$0xff] }
 0x20c   :  { %v8451_v28 = vadd.s32 %v1080_v47, %v14145_v43  ;;  %v8454_v38 = vadd.s32 %v1378_v29, %v7799_v1  ;;  %vm1289_vm11 = vcmp.eq.s32.totalorder %v6255_v0, %v14141_v16  ;;  %v8463_v45 = vadd.s32 %v1379_v24, %v7808_v44  ;;  %v8468_v47 = vpop.permute.xlu1 %1613  ;;  %v14148_v44 = vld [vmem:[#allocation131_spill] sm:$0xff]  ;;  %v14175_v21 = vld [vmem:[#allocation26_spill] sm:$0xff] }
 0x20d   :  { %v1373_v4 = vsel %vm1277_vm7, 1, %v13664_v60  ;;  %v1374_v57 = vsel %vm1278_vm8, 1, %v13664_v60  ;;  %v1386_v43 = vsel %vm1290_vm9, 1, %v13664_v60  ;;  %14146 = vst [vmem:[#allocation79_spill] sm:$0xff] %v8468_v47  ;;  %v8471_v1 = vadd.s32 %v1380_v41, %v7819_v2  ;;  %v14149_v2 = vld [vmem:[#allocation127_spill] sm:$0xff] }
 0x20e   :  { %v1384_v29 = vsel %vm1288_vm10, 1, %v13664_v60  ;;  %vm1279_vm12 = vcmp.eq.s32.totalorder %v6246_v61, %v14147_v20  ;;  %vm1280_vm13 = vcmp.eq.s32.totalorder %v6255_v0, %v14147_v20  ;;  %v8480_v42 = vadd.s32 %v1372_v62, %v7715_v48  ;;  %v8499_v48 = vpop.permute.xlu0 %1628 }
 0x20f   :  { %2336 = vperm.xlu1 %5495, %v14148_v44   ;;  %v1385_v24 = vsel %vm1289_vm11, 1, %v13664_v60  ;;  %vm1281_vm14 = vcmp.eq.s32.totalorder %v6259_v13, %v14147_v20  ;;  %vm1294_vm15 = vcmp.eq.s32.totalorder %v6246_v61, %v14149_v2  ;;  %2342 = vperm.xlu0 %5513, %v14130_v15   ;;  %v8489_v41 = vadd.s32 %v1373_v4, %v7726_v14 }
 0x210   :  { %v8492_v16 = vadd.s32 %v1374_v57, %v7741_v54  ;;  %v8495_v44 = vadd.s32 %v1386_v43, %v7855_v35  ;;  %vm1295_vm0 = vcmp.eq.s32.totalorder %v6255_v0, %v14149_v2  ;;  %14150 = vst [vmem:[#allocation97_spill] sm:$0xff] %v8499_v48  ;;  %v8502_v62 = vadd.s32 %v1384_v29, %v7846_v53  ;;  %v8508_v14 = vpop.permute.xlu1 %1619  ;;  %v14152_v57 = vld [vmem:[#allocation64_spill] sm:$0xff]  ;;  %v14153_v53 = vld [vmem:[#allocation67_spill] sm:$0xff]  ;;  %v14154_v29 = vld [vmem:[#allocation129_spill] sm:$0xff] }
 0x211   :  { %v1375_v20 = vsel %vm1279_vm12, 1, %v13664_v60  ;;  %v1376_v15 = vsel %vm1280_vm13, 1, %v13664_v60  ;;  %vm1296_vm1 = vcmp.eq.s32.totalorder %v6259_v13, %v14149_v2  ;;  %14151 = vst [vmem:[#allocation98_spill] sm:$0xff] %v8508_v14  ;;  %v8511_v54 = vadd.s32 %v1385_v24, %v7849_v63  ;;  %v14155_v63 = vld [vmem:[#allocation81_spill] sm:$0xff] }
 0x212   :  { %v1377_v35 = vsel %vm1281_vm14, 1, %v13664_v60  ;;  %v1390_v4 = vsel %vm1294_vm15, 1, %v13664_v60  ;;  %vm1285_vm2 = vcmp.eq.s32.totalorder %v6246_v61, %v14152_v57  ;;  %v1391_v43 = vsel %vm1295_vm0, 1, %v13664_v60 }
 0x213   :  { %2339 = vperm.xlu1 %5495, %v14153_v53   ;;  %vm1286_vm3 = vcmp.eq.s32.totalorder %v6255_v0, %v14152_v57  ;;  %vm1287_vm4 = vcmp.eq.s32.totalorder %v6259_v13, %v14152_v57  ;;  %vm1300_vm5 = vcmp.eq.s32.totalorder %v6246_v61, %v14154_v29  ;;  %2348 = vperm.xlu0 %5513, %v14155_v63   ;;  %v1392_v53 = vsel %vm1296_vm1, 1, %v13664_v60  ;;  %v14160_v63 = vld [vmem:[#allocation132_spill] sm:$0xff] }
 0x214   :  { %v8527_v24 = vadd.s32 %v1375_v20, %v7744_v5  ;;  %v8530_v2 = vadd.s32 %v1376_v15, %v7747_v37  ;;  %vm1301_vm6 = vcmp.eq.s32.totalorder %v6255_v0, %v14154_v29  ;;  %v8536_v14 = vadd.s32 %v1377_v35, %v7752_v31  ;;  %v8544_v5 = vpop.permute.xlu1 %1625  ;;  %v14157_v35 = vld [vmem:[#allocation73_spill] sm:$0xff] }
 0x215   :  { %v8539_v57 = vadd.s32 %v1390_v4, %v7907_v51  ;;  %v1381_v47 = vsel %vm1285_vm2, 1, %v13664_v60  ;;  %vm1302_vm7 = vcmp.eq.s32.totalorder %v6259_v13, %v14154_v29  ;;  %14156 = vst [vmem:[#allocation99_spill] sm:$0xff] %v8544_v5  ;;  %v8547_v37 = vadd.s32 %v1391_v43, %v7924_v34  ;;  %v8553_v51 = vpop.permute.xlu0 %1634  ;;  %v14161_v34 = vld [vmem:[#allocation82_spill] sm:$0xff] }
 0x216   :  { %v1382_v20 = vsel %vm1286_vm3, 1, %v13664_v60  ;;  %v1383_v15 = vsel %vm1287_vm4, 1, %v13664_v60  ;;  %v1396_v31 = vsel %vm1300_vm5, 1, %v13664_v60  ;;  %14158 = vst [vmem:[#allocation133_spill] sm:$0xff] %v8553_v51  ;;  %v8556_v4 = vadd.s32 %v1392_v53, %v7894_v59  ;;  %v14162_v59 = vld [vmem:[#allocation68_spill] sm:$0xff] }
 0x217   :  { %2345 = vperm.xlu1 %5495, %v14157_v35   ;;  %v1397_v29 = vsel %vm1301_vm6, 1, %v13664_v60  ;;  %vm1291_vm8 = vcmp.eq.s32.totalorder %v6246_v61, %v14160_v63  ;;  %vm1292_vm9 = vcmp.eq.s32.totalorder %v6255_v0, %v14160_v63  ;;  %2354 = vperm.xlu0 %5513, %v14161_v34   ;;  %v8565_v43 = vadd.s32 %v1381_v47, %v7763_v17 }
 0x218   :  { %14159 = vst [vmem:[#allocation102_spill] sm:$0xff] %v8556_v4  ;;  %v1398_v35 = vsel %vm1302_vm7, 1, %v13664_v60  ;;  %vm1293_vm10 = vcmp.eq.s32.totalorder %v6259_v13, %v14160_v63  ;;  %vm1306_vm11 = vcmp.eq.s32.totalorder %v6246_v61, %v14162_v59  ;;  %v8573_v53 = vadd.s32 %v1382_v20, %v7766_v3  ;;  %v8583_v17 = vpop.permute.xlu1 %1631  ;;  %v14166_v3 = vld [vmem:[#allocation135_spill] sm:$0xff] }
 0x219   :  { %v8576_v5 = vadd.s32 %v1383_v15, %v7786_v56  ;;  %v8579_v51 = vadd.s32 %v1396_v31, %v7947_v30  ;;  %vm1307_vm12 = vcmp.eq.s32.totalorder %v6255_v0, %v14162_v59  ;;  %14164 = vst [vmem:[#allocation25_spill] sm:$0xff] %v8583_v17  ;;  %v8586_v47 = vadd.s32 %v1397_v29, %v7950_v8  ;;  %v14168_v15 = vld [vmem:[#allocation134_spill] sm:$0xff]  ;;  %v14169_v8 = vld [vmem:[#allocation87_spill] sm:$0xff] }
 0x21a   :  { %v1387_v63 = vsel %vm1291_vm8, 1, %v13664_v60  ;;  %v1388_v34 = vsel %vm1292_vm9, 1, %v13664_v60  ;;  %vm1308_vm13 = vcmp.eq.s32.totalorder %v6259_v13, %v14162_v59  ;;  %v8594_v56 = vadd.s32 %v1398_v35, %v7960_v22  ;;  %v14170_v29 = vld [vmem:[#allocation74_spill] sm:$0xff]  ;;  %v8608_v22 = vpop.permute.xlu0 %1640  ;;  %v14172_v35 = vld [vmem:[#allocation140_spill] sm:$0xff] }
 0x21b   :  { %14163 = vst [vmem:[#allocation76_spill] sm:$0xff] %v8579_v51  ;;  %14165 = vst [vmem:[#allocation46_spill] sm:$0xff] %v8586_v47  ;;  %2351 = vperm.xlu1 %5495, %v14166_v3   ;;  %v1389_v30 = vsel %vm1293_vm10, 1, %v13664_v60  ;;  %v1402_v20 = vsel %vm1306_vm11, 1, %v13664_v60  ;;  %vm1297_vm14 = vcmp.eq.s32.totalorder %v6246_v61, %v14168_v15  ;;  %2360 = vperm.xlu0 %5513, %v14169_v8   ;;  %v1403_v31 = vsel %vm1307_vm12, 1, %v13664_v60  ;;  %v14173_v3 = vld [vmem:[#allocation142_spill] sm:$0xff] }
 0x21c   :  { %14167 = vst [vmem:[#allocation52_spill] sm:$0xff] %v8594_v56  ;;  %vm1298_vm15 = vcmp.eq.s32.totalorder %v6255_v0, %v14168_v15  ;;  %vm1299_vm0 = vcmp.eq.s32.totalorder %v6259_v13, %v14168_v15  ;;  %vm1312_vm1 = vcmp.eq.s32.totalorder %v6246_v61, %v14170_v29  ;;  %14171 = vst [vmem:[#allocation125_spill] sm:$0xff] %v8608_v22  ;;  %v1404_v8 = vsel %vm1308_vm13, 1, %v13664_v60  ;;  %v8619_v48 = vpop.permute.xlu1 %1637  ;;  %v14224_v51 = vld [vmem:[#allocation42_spill] sm:$0xff] }
 0x21d   :  { %v8611_v59 = vadd.s32 %v1387_v63, %v14172_v35  ;;  %v8614_v17 = vadd.s32 %v1388_v34, %v14173_v3  ;;  %vm1313_vm2 = vcmp.eq.s32.totalorder %v6255_v0, %v14170_v29  ;;  %14174 = vst [vmem:[#allocation110_spill] sm:$0xff] %v8619_v48  ;;  %v8622_v15 = vadd.s32 %v1389_v30, %v14175_v21  ;;  %v14177_v63 = vld [vmem:[#allocation113_spill] sm:$0xff]  ;;  %v14181_v48 = vld [vmem:[#allocation136_spill] sm:$0xff] }
 0x21e   :  { %v8625_v56 = vadd.s32 %v1402_v20, %v8010_v52  ;;  %v1393_v22 = vsel %vm1297_vm14, 1, %v13664_v60  ;;  %vm1314_vm3 = vcmp.eq.s32.totalorder %v6259_v13, %v14170_v29  ;;  %v8632_v34 = vadd.s32 %v1403_v31, %v8025_v49  ;;  %v14179_v30 = vld [vmem:[#allocation137_spill] sm:$0xff] }
 0x21f   :  { %2357 = vperm.xlu1 %5495, %v14177_v63   ;;  %v1394_v35 = vsel %vm1298_vm15, 1, %v13664_v60  ;;  %v1395_v3 = vsel %vm1299_vm0, 1, %v13664_v60  ;;  %v1408_v21 = vsel %vm1312_vm1, 1, %v13664_v60  ;;  %2366 = vperm.xlu0 %5513, %v14179_v30   ;;  %v8639_v52 = vadd.s32 %v1404_v8, %v8000_v7  ;;  %v14182_v49 = vld [vmem:[#allocation105_spill] sm:$0xff]  ;;  %v14183_v63 = vld [vmem:[#allocation103_spill] sm:$0xff] }
 0x220   :  { %14176 = vst [vmem:[#allocation28_spill] sm:$0xff] %v8625_v56  ;;  %14178 = vst [vmem:[#allocation108_spill] sm:$0xff] %v8632_v34  ;;  %v1409_v20 = vsel %vm1313_vm2, 1, %v13664_v60  ;;  %vm1303_vm4 = vcmp.eq.s32.totalorder %v6246_v61, %v14181_v48  ;;  %vm1304_vm5 = vcmp.eq.s32.totalorder %v6255_v0, %v14181_v48  ;;  %v8647_v31 = vadd.s32 %v1393_v22, %v14182_v49  ;;  %v8654_v7 = vpop.permute.xlu1 %1643  ;;  %v14185_v8 = vld [vmem:[#allocation17_spill] sm:$0xff] }
 0x221   :  { %14180 = vst [vmem:[#allocation58_spill] sm:$0xff] %v8639_v52  ;;  %v1410_v29 = vsel %vm1314_vm3, 1, %v13664_v60  ;;  %vm1305_vm6 = vcmp.eq.s32.totalorder %v6259_v13, %v14181_v48  ;;  %vm1318_vm7 = vcmp.eq.s32.totalorder %v6246_v61, %v14183_v63  ;;  %14184 = vst [vmem:[#allocation131_spill] sm:$0xff] %v8654_v7  ;;  %v8657_v30 = vadd.s32 %v1395_v3, %v14185_v8  ;;  %v14186_v52 = vld [vmem:[#allocation36_spill] sm:$0xff]  ;;  %v14188_v22 = vld [vmem:[#allocation109_spill] sm:$0xff]  ;;  %v8668_v48 = vpop.permute.xlu0 %1646 }
 0x222   :  { %v8660_v34 = vadd.s32 %v1394_v35, %v14186_v52  ;;  %v8663_v56 = vadd.s32 %v1408_v21, %v8048_v33  ;;  %vm1319_vm8 = vcmp.eq.s32.totalorder %v6255_v0, %v14183_v63  ;;  %14189 = vst [vmem:[#allocation64_spill] sm:$0xff] %v8668_v48  ;;  %v8671_v49 = vadd.s32 %v1409_v20, %v8051_v50  ;;  %v14191_v35 = vld [vmem:[#allocation100_spill] sm:$0xff]  ;;  %v14193_v8 = vld [vmem:[#allocation27_spill] sm:$0xff]  ;;  %v14194_v20 = vld [vmem:[#allocation86_spill] sm:$0xff] }
 0x223   :  { %2363 = vperm.xlu1 %5495, %v14188_v22   ;;  %v1399_v7 = vsel %vm1303_vm4, 1, %v13664_v60  ;;  %v1400_v3 = vsel %vm1304_vm5, 1, %v13664_v60  ;;  %vm1320_vm9 = vcmp.eq.s32.totalorder %v6259_v13, %v14183_v63  ;;  %2372 = vperm.xlu0 %5513, %v14191_v35   ;;  %v8679_v33 = vadd.s32 %v1410_v29, %v8056_v58  ;;  %v14196_v29 = vld [vmem:[#allocation112_spill] sm:$0xff]  ;;  %v14197_v22 = vld [vmem:[#allocation53_spill] sm:$0xff] }
 0x224   :  { %14187 = vst [vmem:[#allocation127_spill] sm:$0xff] %v8663_v56  ;;  %14190 = vst [vmem:[#allocation67_spill] sm:$0xff] %v8671_v49  ;;  %v1401_v21 = vsel %vm1305_vm6, 1, %v13664_v60  ;;  %v1414_v52 = vsel %vm1318_vm7, 1, %v13664_v60  ;;  %vm1309_vm10 = vcmp.eq.s32.totalorder %v6246_v61, %v14193_v8  ;;  %v1415_v50 = vsel %vm1319_vm8, 1, %v13664_v60  ;;  %v8692_v58 = vpop.permute.xlu1 %1649  ;;  %v14199_v49 = vld [vmem:[#allocation34_spill] sm:$0xff] }
 0x225   :  { %14192 = vst [vmem:[#allocation129_spill] sm:$0xff] %v8679_v33  ;;  %vm1310_vm11 = vcmp.eq.s32.totalorder %v6255_v0, %v14193_v8  ;;  %vm1311_vm12 = vcmp.eq.s32.totalorder %v6259_v13, %v14193_v8  ;;  %vm1324_vm13 = vcmp.eq.s32.totalorder %v6246_v61, %v14194_v20  ;;  %14195 = vst [vmem:[#allocation81_spill] sm:$0xff] %v8692_v58  ;;  %v1416_v48 = vsel %vm1320_vm9, 1, %v13664_v60  ;;  %v14198_v33 = vld [vmem:[#allocation92_spill] sm:$0xff] }
 0x226   :  { %v8695_v63 = vadd.s32 %v1399_v7, %v14196_v29  ;;  %v8698_v35 = vadd.s32 %v1400_v3, %v14197_v22  ;;  %vm1325_vm14 = vcmp.eq.s32.totalorder %v6255_v0, %v14194_v20  ;;  %v8705_v8 = vadd.s32 %v1401_v21, %v14199_v49  ;;  %v14201_v7 = vld [vmem:[#allocation33_spill] sm:$0xff]  ;;  %v14202_v3 = vld [vmem:[#allocation48_spill] sm:$0xff]  ;;  %v8720_v21 = vpop.permute.xlu0 %1652 }
 0x227   :  { %2369 = vperm.xlu1 %5495, %v14198_v33   ;;  %v8708_v56 = vadd.s32 %v1414_v52, %v8093_v23  ;;  %v1405_v58 = vsel %vm1309_vm10, 1, %v13664_v60  ;;  %vm1326_vm15 = vcmp.eq.s32.totalorder %v6259_v13, %v14194_v20  ;;  %2378 = vperm.xlu0 %5513, %v14201_v7   ;;  %v8715_v29 = vadd.s32 %v1415_v50, %v14202_v3  ;;  %v14208_v20 = vld [vmem:[#allocation41_spill] sm:$0xff] }
 0x228   :  { %v1406_v22 = vsel %vm1310_vm11, 1, %v13664_v60  ;;  %v1407_v33 = vsel %vm1311_vm12, 1, %v13664_v60  ;;  %v1420_v49 = vsel %vm1324_vm13, 1, %v13664_v60  ;;  %14204 = vst [vmem:[#allocation82_spill] sm:$0xff] %v8720_v21  ;;  %v8723_v23 = vadd.s32 %v1416_v48, %v8110_v36  ;;  %v8730_v50 = vpop.permute.xlu1 %1655  ;;  %v14209_v36 = vld [vmem:[#allocation91_spill] sm:$0xff]  ;;  %v14210_v21 = vld [vmem:[#allocation117_spill] sm:$0xff] }
 0x229   :  { %14200 = vst [vmem:[#allocation73_spill] sm:$0xff] %v8708_v56  ;;  %14203 = vst [vmem:[#allocation132_spill] sm:$0xff] %v8715_v29  ;;  %v1421_v52 = vsel %vm1325_vm14, 1, %v13664_v60  ;;  %v14206_v56 = vld [vmem:[#allocation29_spill] sm:$0xff]  ;;  %v8733_v7 = vadd.s32 %v1405_v58, %v14208_v20  ;;  %v1422_v3 = vsel %vm1326_vm15, 1, %v13664_v60  ;;  %vm1330_vm3 = vcmp.eq.s32.totalorder %v6246_v61, %v14209_v36  ;;  %v5654_v48 = vld [vmem:[#allocation2 + $0x78] sm:$0xff] }
 0x22a   :  { %14205 = vst [vmem:[#allocation68_spill] sm:$0xff] %v8723_v23  ;;  %vm1315_vm0 = vcmp.eq.s32.totalorder %v6246_v61, %v14206_v56  ;;  %vm1316_vm1 = vcmp.eq.s32.totalorder %v6255_v0, %v14206_v56  ;;  %14207 = vst [vmem:[#allocation135_spill] sm:$0xff] %v8730_v50  ;;  %vm1317_vm2 = vcmp.eq.s32.totalorder %v6259_v13, %v14206_v56  ;;  %v14211_v29 = vld [vmem:[#allocation30_spill] sm:$0xff]  ;;  %v14213_v58 = vld [vmem:[#allocation111_spill] sm:$0xff] }
 0x22b   :  { %2375 = vperm.xlu1 %5495, %v5654_v48   ;;  %v8741_v23 = vadd.s32 %v1406_v22, %v14210_v21  ;;  %v8744_v47 = vadd.s32 %v1407_v33, %v14211_v29  ;;  %v8747_v50 = vadd.s32 %v1420_v49, %v8132_v12  ;;  %vm1331_vm4 = vcmp.eq.s32.totalorder %v6255_v0, %v14209_v36  ;;  %v14216_v33 = vld [vmem:[#allocation138_spill] sm:$0xff]  ;;  %v14217_v49 = vld [vmem:[#allocation23_spill] sm:$0xff]  ;;  %v8773_v21 = vpop.permute.xlu0 %1946 }
 0x22c   :  { %2384 = vperm.xlu0 %5513, %v14213_v58   ;;  %v8753_v56 = vadd.s32 %v1421_v52, %v8135_v26  ;;  %v1411_v20 = vsel %vm1315_vm0, 1, %v13664_v60  ;;  %v1412_v48 = vsel %vm1316_vm1, 1, %v13664_v60  ;;  %vm1332_vm5 = vcmp.eq.s32.totalorder %v6259_v13, %v14209_v36  ;;  %14218 = vst [vmem:[#allocation140_spill] sm:$0xff] %v8773_v21  ;;  %v8775_v52 = vpop.permute.xlu1 %1949  ;;  %v14221_v58 = vld [vmem:[#allocation38_spill] sm:$0xff] }
 0x22d   :  { %14212 = vst [vmem:[#allocation134_spill] sm:$0xff] %v8747_v50  ;;  %v8760_v29 = vadd.s32 %v1422_v3, %v8142_v40  ;;  %v1413_v12 = vsel %vm1317_vm2, 1, %v13664_v60  ;;  %v1426_v22 = vsel %vm1330_vm3, 1, %v13664_v60  ;;  %vm1321_vm6 = vcmp.eq.s32.totalorder %v6246_v61, %v14216_v33  ;;  %v5655_v40 = vld [vmem:[#allocation2 + $0x88] sm:$0xff]  ;;  %14219 = vst [vmem:[#allocation142_spill] sm:$0xff] %v8775_v52  ;;  %v14220_v3 = vld [vmem:[#allocation31_spill] sm:$0xff] }
 0x22e   :  { %14214 = vst [vmem:[#allocation87_spill] sm:$0xff] %v8753_v56  ;;  %v1427_v26 = vsel %vm1331_vm4, 1, %v13664_v60  ;;  %vm1322_vm7 = vcmp.eq.s32.totalorder %v6255_v0, %v14216_v33  ;;  %vm1323_vm8 = vcmp.eq.s32.totalorder %v6259_v13, %v14216_v33  ;;  %vm1336_vm9 = vcmp.eq.s32.totalorder %v6246_v61, %v14217_v49  ;;  %v14223_v50 = vld [vmem:[#allocation16_spill] sm:$0xff] }
 0x22f   :  { %14215 = vst [vmem:[#allocation74_spill] sm:$0xff] %v8760_v29  ;;  %2381 = vperm.xlu1 %5495, %v5655_v40   ;;  %v8778_v36 = vadd.s32 %v1411_v20, %v14220_v3  ;;  %v8781_v29 = vadd.s32 %v1412_v48, %v14221_v58  ;;  %v1428_v56 = vsel %vm1332_vm5, 1, %v13664_v60  ;;  %vm1337_vm10 = vcmp.eq.s32.totalorder %v6255_v0, %v14217_v49  ;;  %v5656_v3 = vld [vmem:[#allocation2 + $0x98] sm:$0xff]  ;;  %v8822_v33 = vpop.permute.xlu0 %1955 }
 0x230   :  { %2390 = vperm.xlu0 %5513, %v14223_v50   ;;  %v8788_v4 = vadd.s32 %v1413_v12, %v14224_v51  ;;  %v8791_v40 = vadd.s32 %v1426_v22, %v8179_v39  ;;  %v1417_v20 = vsel %vm1321_vm6, 1, %v13664_v60  ;;  %vm1338_vm11 = vcmp.eq.s32.totalorder %v6259_v13, %v14217_v49  ;;  %v14228_v12 = vld [vmem:[#allocation35_spill] sm:$0xff]  ;;  %14231 = vst [vmem:[#allocation103_spill] sm:$0xff] %v8822_v33  ;;  %v8832_v21 = vpop.permute.xlu1 %1952 }
 0x231   :  { %14222 = vst [vmem:[#allocation26_spill] sm:$0xff] %v8781_v29  ;;  %v8800_v48 = vadd.s32 %v1427_v26, %v8187_v55  ;;  %v1418_v51 = vsel %vm1322_vm7, 1, %v13664_v60  ;;  %v1419_v39 = vsel %vm1323_vm8, 1, %v13664_v60  ;;  %v1432_v50 = vsel %vm1336_vm9, 1, %v13664_v60  ;;  %v14230_v26 = vld [vmem:[#allocation139_spill] sm:$0xff]  ;;  %14235 = vst [vmem:[#allocation36_spill] sm:$0xff] %v8832_v21 }
 0x232   :  { %14225 = vst [vmem:[#allocation113_spill] sm:$0xff] %v8788_v4  ;;  %14226 = vst [vmem:[#allocation137_spill] sm:$0xff] %v8791_v40  ;;  %v8815_v22 = vadd.s32 %v1428_v56, %v14228_v12  ;;  %v1433_v55 = vsel %vm1337_vm10, 1, %v13664_v60  ;;  %vm1327_vm12 = vcmp.eq.s32.totalorder %v6246_v61, %v14230_v26  ;;  %vm1328_vm13 = vcmp.eq.s32.totalorder %v6255_v0, %v14230_v26  ;;  %v14232_v58 = vld [vmem:[#allocation59_spill] sm:$0xff]  ;;  %v14234_v56 = vld [vmem:[#allocation141_spill] sm:$0xff] }
 0x233   :  { %14227 = vst [vmem:[#allocation136_spill] sm:$0xff] %v8800_v48  ;;  %2387 = vperm.xlu1 %5495, %v5656_v3   ;;  %v8825_v52 = vadd.s32 %v1417_v20, %v14232_v58  ;;  %v1434_v49 = vsel %vm1338_vm11, 1, %v13664_v60  ;;  %vm1329_vm14 = vcmp.eq.s32.totalorder %v6259_v13, %v14230_v26  ;;  %vm1342_vm15 = vcmp.eq.s32.totalorder %v6246_v61, %v14234_v56  ;;  %v5657_v12 = vld [vmem:[#allocation2 + $0xb0] sm:$0xff]  ;;  %v14255_v4 = vld [vmem:[#allocation84_spill] sm:$0xff] }
 0x234   :  { %14229 = vst [vmem:[#allocation105_spill] sm:$0xff] %v8815_v22  ;;  %2396 = vperm.xlu0 %5513, %v5657_v12   ;;  %v14236_v22 = vld [vmem:[#allocation121_spill] sm:$0xff]  ;;  %vm1343_vm0 = vcmp.eq.s32.totalorder %v6255_v0, %v14234_v56  ;;  %v1423_v12 = vsel %vm1327_vm12, 1, %v13664_v60  ;;  %vm1344_vm1 = vcmp.eq.s32.totalorder %v6259_v13, %v14234_v56  ;;  %v8877_v21 = vpop.permute.xlu1 %1958 }
 0x235   :  { %14233 = vst [vmem:[#allocation17_spill] sm:$0xff] %v8825_v52  ;;  %v8835_v48 = vadd.s32 %v1418_v51, %v14236_v22  ;;  %v14238_v3 = vld [vmem:[#allocation69_spill] sm:$0xff]  ;;  %v1424_v51 = vsel %vm1328_vm13, 1, %v13664_v60  ;;  %v1425_v22 = vsel %vm1329_vm14, 1, %v13664_v60  ;;  %v1439_v26 = vsel %vm1343_vm0, 1, %v13664_v60  ;;  %14249 = vst [vmem:[#allocation92_spill] sm:$0xff] %v8877_v21 }
 0x236   :  { %v8838_v33 = vadd.s32 %v1419_v39, %v14238_v3  ;;  %v14240_v20 = vld [vmem:[#allocation61_spill] sm:$0xff]  ;;  %v14244_v39 = vld [vmem:[#allocation47_spill] sm:$0xff] }
 0x237   :  { %14237 = vst [vmem:[#allocation109_spill] sm:$0xff] %v8835_v48  ;;  %v8841_v58 = vadd.s32 %v1432_v50, %v14240_v20  ;;  %v14242_v40 = vld [vmem:[#allocation77_spill] sm:$0xff]  ;;  %v8859_v50 = vadd.s32 %v1434_v49, %v14244_v39  ;;  %v8865_v20 = vpop.permute.xlu0 %1961  ;;  %v14248_v49 = vld [vmem:[#allocation56_spill] sm:$0xff] }
 0x238   :  { %14239 = vst [vmem:[#allocation100_spill] sm:$0xff] %v8838_v33  ;;  %v8846_v52 = vadd.s32 %v1433_v55, %v14242_v40  ;;  %v1438_v40 = vsel %vm1342_vm15, 1, %v13664_v60  ;;  %v14246_v55 = vld [vmem:[#allocation62_spill] sm:$0xff]  ;;  %v5658_v3 = vld [vmem:[#allocation2 + $0xa8] sm:$0xff]  ;;  %14247 = vst [vmem:[#allocation53_spill] sm:$0xff] %v8865_v20  ;;  %vm1348_vm5 = vcmp.eq.s32.totalorder %v6246_v61, %v14248_v49  ;;  %vm1349_vm6 = vcmp.eq.s32.totalorder %v6255_v0, %v14248_v49 }
 0x239   :  { %14241 = vst [vmem:[#allocation27_spill] sm:$0xff] %v8841_v58  ;;  %14245 = vst [vmem:[#allocation112_spill] sm:$0xff] %v8859_v50  ;;  %vm1333_vm2 = vcmp.eq.s32.totalorder %v6246_v61, %v14246_v55  ;;  %2393 = vperm.xlu1 %5495, %v5658_v3   ;;  %vm1334_vm3 = vcmp.eq.s32.totalorder %v6255_v0, %v14246_v55  ;;  %vm1335_vm4 = vcmp.eq.s32.totalorder %v6259_v13, %v14246_v55  ;;  %v8874_v39 = vld [vmem:[#allocation2 + $0xc0] sm:$0xff]  ;;  %v14251_v20 = vld [vmem:[#allocation45_spill] sm:$0xff] }
 0x23a   :  { %14243 = vst [vmem:[#allocation86_spill] sm:$0xff] %v8846_v52  ;;  %2402 = vperm.xlu0 %5513, %v8874_v39   ;;  %v14250_v3 = vld [vmem:[#allocation72_spill] sm:$0xff]  ;;  %v8883_v52 = vadd.s32 %v1424_v51, %v14251_v20  ;;  %v1440_v58 = vsel %vm1344_vm1, 1, %v13664_v60  ;;  %v8895_v29 = vadd.s32 %v1438_v40, %v14255_v4  ;;  %vm1350_vm7 = vcmp.eq.s32.totalorder %v6259_v13, %v14248_v49  ;;  %v14257_v51 = vld [vmem:[#allocation85_spill] sm:$0xff]  ;;  %v14260_v40 = vld [vmem:[#allocation95_spill] sm:$0xff] }
 0x23b   :  { %v8880_v50 = vadd.s32 %v1423_v12, %v14250_v3  ;;  %v14253_v33 = vld [vmem:[#allocation40_spill] sm:$0xff]  ;;  %v1429_v12 = vsel %vm1333_vm2, 1, %v13664_v60  ;;  %v8904_v56 = vadd.s32 %v1439_v26, %v14257_v51  ;;  %v1430_v20 = vsel %vm1334_vm3, 1, %v13664_v60  ;;  %v8909_v4 = vpop.permute.xlu0 %1967  ;;  %v8919_v26 = vld [vmem:[#allocation2 + $0xd8] sm:$0xff]  ;;  %v8922_v51 = vpop.permute.xlu1 %1964 }
 0x23c   :  { %14252 = vst [vmem:[#allocation34_spill] sm:$0xff] %v8883_v52  ;;  %v8892_v48 = vadd.s32 %v1425_v22, %v14253_v33  ;;  %14256 = vst [vmem:[#allocation48_spill] sm:$0xff] %v8895_v29  ;;  %v1431_v3 = vsel %vm1335_vm4, 1, %v13664_v60  ;;  %v1444_v33 = vsel %vm1348_vm5, 1, %v13664_v60  ;;  %v5660_v22 = vld [vmem:[#allocation2 + $0xb8] sm:$0xff]  ;;  %v8912_v21 = vadd.s32 %v1440_v58, %v14260_v40  ;;  %v14274_v49 = vld [vmem:[#allocation88_spill] sm:$0xff] }
 0x23d   :  { %14258 = vst [vmem:[#allocation29_spill] sm:$0xff] %v8904_v56  ;;  %2399 = vperm.xlu1 %5495, %v5660_v22   ;;  %14259 = vst [vmem:[#allocation41_spill] sm:$0xff] %v8909_v4  ;;  %v1445_v55 = vsel %vm1349_vm6, 1, %v13664_v60  ;;  %v14262_v29 = vld [vmem:[#allocation55_spill] sm:$0xff]  ;;  %v14265_v22 = vld [vmem:[#allocation49_spill] sm:$0xff]  ;;  %v1446_v58 = vsel %vm1350_vm7, 1, %v13664_v60 }
 0x23e   :  { %14254 = vst [vmem:[#allocation33_spill] sm:$0xff] %v8892_v48  ;;  %14261 = vst [vmem:[#allocation91_spill] sm:$0xff] %v8912_v21  ;;  %vm1339_vm8 = vcmp.eq.s32.totalorder %v6246_v61, %v14262_v29  ;;  %vm1340_vm9 = vcmp.eq.s32.totalorder %v6255_v0, %v14262_v29  ;;  %2411 = vperm.xlu0 %5513, %v8919_v26   ;;  %v8925_v56 = vadd.s32 %v1429_v12, %v14265_v22  ;;  %v14267_v40 = vld [vmem:[#allocation50_spill] sm:$0xff]  ;;  %v14268_v4 = vld [vmem:[#allocation43_spill] sm:$0xff] }
 0x23f   :  { %14263 = vst [vmem:[#allocation117_spill] sm:$0xff] %v8919_v26  ;;  %14264 = vst [vmem:[#allocation30_spill] sm:$0xff] %v8922_v51  ;;  %vm1341_vm10 = vcmp.eq.s32.totalorder %v6259_v13, %v14262_v29  ;;  %vm1354_vm11 = vcmp.eq.s32.totalorder %v6246_v61, %v14267_v40  ;;  %v8936_v21 = vadd.s32 %v1430_v20, %v14268_v4  ;;  %v14270_v26 = vld [vmem:[#allocation118_spill] sm:$0xff]  ;;  %v1435_v29 = vsel %vm1339_vm8, 1, %v13664_v60  ;;  %v14278_v4 = vld [vmem:[#allocation63_spill] sm:$0xff] }
 0x240   :  { %14266 = vst [vmem:[#allocation111_spill] sm:$0xff] %v8925_v56  ;;  %v8939_v48 = vadd.s32 %v1431_v3, %v14270_v26  ;;  %v14272_v51 = vld [vmem:[#allocation90_spill] sm:$0xff]  ;;  %vm1355_vm12 = vcmp.eq.s32.totalorder %v6255_v0, %v14267_v40  ;;  %v8947_v22 = vadd.s32 %v1445_v55, %v14274_v49  ;;  %v1436_v56 = vsel %vm1340_vm9, 1, %v13664_v60  ;;  %v8954_v3 = vpop.permute.xlu0 %1973  ;;  %v14280_v55 = vld [vmem:[#allocation37_spill] sm:$0xff] }
 0x241   :  { %14269 = vst [vmem:[#allocation138_spill] sm:$0xff] %v8936_v21  ;;  %v8942_v12 = vadd.s32 %v1444_v33, %v14272_v51  ;;  %vm1356_vm13 = vcmp.eq.s32.totalorder %v6259_v13, %v14267_v40  ;;  %v14276_v20 = vmov 7   ;;  %14277 = vst [vmem:[#allocation16_spill] sm:$0xff] %v8954_v3  ;;  %v8957_v33 = vadd.s32 %v1446_v58, %v14278_v4  ;;  %v8964_v49 = vld [vmem:[#allocation2 + $0xf0] sm:$0xff]  ;;  %v14282_v58 = vld [vmem:[#allocation51_spill] sm:$0xff] }
 0x242   :  { %14271 = vst [vmem:[#allocation23_spill] sm:$0xff] %v8939_v48  ;;  %14275 = vst [vmem:[#allocation38_spill] sm:$0xff] %v8947_v22  ;;  %5496 = vset.pattern.permute.xlu1 %v14276_v20  ;;  %v1437_v26 = vsel %vm1341_vm10, 1, %v13664_v60  ;;  %v1450_v51 = vsel %vm1354_vm11, 1, %v13664_v60  ;;  %vm1345_vm14 = vcmp.eq.s32.totalorder %v6246_v61, %v14280_v55  ;;  %2420 = vperm.xlu0 %5513, %v8964_v49   ;;  %v1451_v40 = vsel %vm1355_vm12, 1, %v13664_v60  ;;  %v14283_v3 = vld [vmem:[#allocation71_spill] sm:$0xff] }
 0x243   :  { %14273 = vst [vmem:[#allocation31_spill] sm:$0xff] %v8942_v12  ;;  %14279 = vst [vmem:[#allocation42_spill] sm:$0xff] %v8957_v33  ;;  %2786 = vperm.xlu1 %5496, %v8874_v39   ;;  %vm1346_vm15 = vcmp.eq.s32.totalorder %v6255_v0, %v14280_v55  ;;  %vm1347_vm0 = vcmp.eq.s32.totalorder %v6259_v13, %v14280_v55  ;;  %v8973_v4 = vadd.s32 %v1435_v29, %v14282_v58  ;;  %v14284_v12 = vld [vmem:[#allocation114_spill] sm:$0xff]  ;;  %v14286_v48 = vld [vmem:[#allocation75_spill] sm:$0xff] }
 0x244   :  { %14281 = vst [vmem:[#allocation35_spill] sm:$0xff] %v8964_v49  ;;  %v8976_v33 = vadd.s32 %v1436_v56, %v14283_v3  ;;  %v1452_v22 = vsel %vm1356_vm13, 1, %v13664_v60  ;;  %vm1360_vm1 = vcmp.eq.s32.totalorder %v6246_v61, %v14284_v12  ;;  %v8981_v49 = vpop.permute.xlu1 %1970  ;;  %v8984_v21 = vadd.s32 %v1437_v26, %v14286_v48  ;;  %v8992_v56 = vpop.permute.xlu0 %1979 }
 0x245   :  { %14285 = vst [vmem:[#allocation139_spill] sm:$0xff] %v8981_v49  ;;  %v8987_v52 = vadd.s32 %v1450_v51, %v8356_v11  ;;  %v1441_v55 = vsel %vm1345_vm14, 1, %v13664_v60  ;;  %vm1361_vm2 = vcmp.eq.s32.totalorder %v6255_v0, %v14284_v12  ;;  %14289 = vst [vmem:[#allocation121_spill] sm:$0xff] %v8992_v56  ;;  %v8995_v29 = vadd.s32 %v1451_v40, %v8359_v25  ;;  %v14293_v49 = vld [vmem:[#allocation18_spill] sm:$0xff]  ;;  %v9011_v25 = vld [vmem:[#allocation2 + $0xc8] sm:$0xff] }
 0x246   :  { %14287 = vst [vmem:[#allocation59_spill] sm:$0xff] %v8984_v21  ;;  %v1442_v3 = vsel %vm1346_vm15, 1, %v13664_v60  ;;  %v1443_v58 = vsel %vm1347_vm0, 1, %v13664_v60  ;;  %vm1362_vm3 = vcmp.eq.s32.totalorder %v6259_v13, %v14284_v12  ;;  %v14291_v48 = vmov 6   ;;  %v14294_v40 = vld [vmem:[#allocation57_spill] sm:$0xff] }
 0x247   :  { %14288 = vst [vmem:[#allocation141_spill] sm:$0xff] %v8987_v52  ;;  %14290 = vst [vmem:[#allocation69_spill] sm:$0xff] %v8995_v29  ;;  %5498 = vset.pattern.permute.xlu1 %v14291_v48  ;;  %v13530_v11 = vmov 8   ;;  %v9004_v26 = vadd.s32 %v1452_v22, %v8364_v32  ;;  %v1456_v51 = vsel %vm1360_vm1, 1, %v13664_v60  ;;  %vm1351_vm4 = vcmp.eq.s32.totalorder %v6246_v61, %v14293_v49  ;;  %v14296_v22 = vld [vmem:[#allocation39_spill] sm:$0xff] }
 0x248   :  { %5518 = vset.pattern.permute.xlu0 %v13530_v11  ;;  %vm1352_vm5 = vcmp.eq.s32.totalorder %v6255_v0, %v14293_v49  ;;  %2405 = vperm.xlu1 %5498, %v9011_v25   ;;  %v9015_v56 = vadd.s32 %v1441_v55, %v14294_v40  ;;  %v1457_v32 = vsel %vm1361_vm2, 1, %v13664_v60  ;;  %vm1353_vm6 = vcmp.eq.s32.totalorder %v6259_v13, %v14293_v49  ;;  %v9025_v11 = vld [vmem:[#allocation2] sm:$0xff]  ;;  %v9055_v12 = vpop.permute.xlu1 %1976 }
 0x249   :  { %14292 = vst [vmem:[#allocation61_spill] sm:$0xff] %v9004_v26  ;;  %vm1366_vm7 = vcmp.eq.s32.totalorder %v6246_v61, %v14296_v22  ;;  %3098 = vperm.xlu0 %5518, %v9025_v11   ;;  %v14297_v26 = vld [vmem:[#allocation126_spill] sm:$0xff]  ;;  %v14299_v55 = vld [vmem:[#allocation83_spill] sm:$0xff]  ;;  %v1458_v52 = vsel %vm1362_vm3, 1, %v13664_v60  ;;  %vm1367_vm8 = vcmp.eq.s32.totalorder %v6255_v0, %v14296_v22  ;;  %v9043_v21 = vadd.s32 %v1456_v51, %v8385_v18 }
 0x24a   :  { %14295 = vst [vmem:[#allocation77_spill] sm:$0xff] %v9015_v56  ;;  %v9029_v29 = vadd.s32 %v1442_v3, %v14297_v26  ;;  %v9032_v40 = vadd.s32 %v1443_v58, %v14299_v55  ;;  %v9040_v56 = vpop.permute.xlu0 %1985  ;;  %v1447_v3 = vsel %vm1351_vm4, 1, %v13664_v60  ;;  %v1448_v58 = vsel %vm1352_vm5, 1, %v13664_v60  ;;  %14303 = vst [vmem:[#allocation45_spill] sm:$0xff] %v9055_v12  ;;  %v14305_v55 = vld [vmem:[#allocation65_spill] sm:$0xff] }
 0x24b   :  { %14301 = vst [vmem:[#allocation56_spill] sm:$0xff] %v9040_v56  ;;  %14302 = vst [vmem:[#allocation72_spill] sm:$0xff] %v9043_v21  ;;  %vm1368_vm9 = vcmp.eq.s32.totalorder %v6259_v13, %v14296_v22  ;;  %v9058_v26 = vadd.s32 %v1457_v32, %v8394_v6  ;;  %v1449_v18 = vsel %vm1353_vm6, 1, %v13664_v60  ;;  %v1462_v51 = vsel %vm1366_vm7, 1, %v13664_v60  ;;  %v14308_v6 = vld [vmem:[#allocation22_spill] sm:$0xff]  ;;  %v14309_v22 = vld [vmem:[#allocation96_spill] sm:$0xff] }
 0x24c   :  { %14298 = vst [vmem:[#allocation47_spill] sm:$0xff] %v9029_v29  ;;  %14300 = vst [vmem:[#allocation62_spill] sm:$0xff] %v9032_v40  ;;  %vm1359_vm10 = vcmp.eq.s32.totalorder %v6259_v13, %v14305_v55  ;;  %v14306_v56 = vmov 8   ;;  %v9066_v49 = vadd.s32 %v1458_v52, %v8402_v10  ;;  %v1463_v21 = vsel %vm1367_vm8, 1, %v13664_v60  ;;  %v14310_v52 = vld [vmem:[#allocation32_spill] sm:$0xff] }
 0x24d   :  { %14304 = vst [vmem:[#allocation40_spill] sm:$0xff] %v9058_v26  ;;  %5499 = vset.pattern.permute.xlu1 %v14306_v56  ;;  %vm1357_vm11 = vcmp.eq.s32.totalorder %v6246_v61, %v14305_v55  ;;  %vm1358_vm12 = vcmp.eq.s32.totalorder %v6255_v0, %v14305_v55  ;;  %3173 = vperm.xlu0 %5518, %v9011_v25   ;;  %v1464_v10 = vsel %vm1368_vm9, 1, %v13664_v60  ;;  %v14312_v26 = vld [vmem:[#allocation120_spill] sm:$0xff]  ;;  %v1455_v29 = vsel %vm1359_vm10, 1, %v13664_v60 }
 0x24e   :  { %14307 = vst [vmem:[#allocation84_spill] sm:$0xff] %v9066_v49  ;;  %3170 = vperm.xlu1 %5499, %v8874_v39   ;;  %v9076_v32 = vadd.s32 %v1447_v3, %v14308_v6  ;;  %v9079_v12 = vadd.s32 %v1448_v58, %v14309_v22  ;;  %vm1660_vm13 = vcmp.eq.s32.totalorder %v6246_v61, %v14310_v52  ;;  %v9084_v49 = vpop.permute.xlu0 %1991  ;;  %v1453_v58 = vsel %vm1357_vm11, 1, %v13664_v60 }
 0x24f   :  { %14311 = vst [vmem:[#allocation85_spill] sm:$0xff] %v9084_v49  ;;  %v9087_v40 = vadd.s32 %v1449_v18, %v14312_v26  ;;  %v9090_v55 = vadd.s32 %v1462_v51, %v8439_v46  ;;  %vm1661_vm14 = vcmp.eq.s32.totalorder %v6255_v0, %v14310_v52  ;;  %v9096_v3 = vadd.s32 %v1463_v21, %v8442_v19  ;;  %v14316_v18 = vld [vmem:[#allocation66_spill] sm:$0xff]  ;;  %v9113_v21 = vpop.permute.xlu1 %1982 }
 0x250   :  { %v1454_v6 = vsel %vm1358_vm12, 1, %v13664_v60  ;;  %vm1662_vm15 = vcmp.eq.s32.totalorder %v6259_v13, %v14310_v52  ;;  %v9103_v26 = vadd.s32 %v1464_v10, %v8451_v28  ;;  %v1756_v46 = vsel %vm1660_vm13, 1, %v13664_v60  ;;  %v9110_v19 = vld [vmem:[#allocation2 + $0x18] sm:$0xff]  ;;  %14317 = vst [vmem:[#allocation50_spill] sm:$0xff] %v9113_v21 }
 0x251   :  { %14313 = vst [vmem:[#allocation95_spill] sm:$0xff] %v9090_v55  ;;  %14314 = vst [vmem:[#allocation55_spill] sm:$0xff] %v9096_v3  ;;  %vm1363_vm0 = vcmp.eq.s32.totalorder %v6246_v61, %v14316_v18  ;;  %vm1364_vm1 = vcmp.eq.s32.totalorder %v6255_v0, %v14316_v18  ;;  %3107 = vperm.xlu0 %5518, %v9110_v19   ;;  %v14318_v51 = vld [vmem:[#allocation130_spill] sm:$0xff]  ;;  %v1757_v28 = vsel %vm1661_vm14, 1, %v13664_v60  ;;  %v14323_v55 = vld [vmem:[#allocation93_spill] sm:$0xff] }
 0x252   :  { %14315 = vst [vmem:[#allocation49_spill] sm:$0xff] %v9103_v26  ;;  %v9116_v22 = vadd.s32 %v1455_v29, %v14318_v51  ;;  %vm1365_vm2 = vcmp.eq.s32.totalorder %v6259_v13, %v14316_v18  ;;  %v14320_v10 = vld [vmem:[#allocation70_spill] sm:$0xff]  ;;  %5500 = vset.pattern.permute.xlu1 %v14276_v20  ;;  %v9124_v49 = vpop.permute.xlu0 %1997  ;;  %v14322_v26 = vld [vmem:[#allocation24_spill] sm:$0xff]  ;;  %v9130_v21 = vadd.s32 %v1454_v6, %v14323_v55  ;;  %v1758_v29 = vsel %vm1662_vm15, 1, %v13664_v60 }
 0x253   :  { %vm1669_vm3 = vcmp.eq.s32.totalorder %v6246_v61, %v14320_v10  ;;  %14321 = vst [vmem:[#allocation118_spill] sm:$0xff] %v9124_v49  ;;  %v9127_v3 = vadd.s32 %v1453_v58, %v14322_v26  ;;  %vm1670_vm4 = vcmp.eq.s32.totalorder %v6255_v0, %v14320_v10  ;;  %2789 = vperm.xlu1 %5500, %v9011_v25   ;;  %v1459_v58 = vsel %vm1363_vm0, 1, %v13664_v60  ;;  %v14326_v26 = vld [vmem:[#allocation19_spill] sm:$0xff] }
 0x254   :  { %14319 = vst [vmem:[#allocation43_spill] sm:$0xff] %v9116_v22  ;;  %v9140_v51 = vadd.s32 %v1756_v46, %v8480_v42  ;;  %v1460_v55 = vsel %vm1364_vm1, 1, %v13664_v60  ;;  %vm1671_vm5 = vcmp.eq.s32.totalorder %v6259_v13, %v14320_v10  ;;  %v9153_v52 = vadd.s32 %v1757_v28, %v8489_v41  ;;  %v9159_v46 = vld [vmem:[#allocation2 + $0xe0] sm:$0xff] }
 0x255   :  { %v1461_v6 = vsel %vm1365_vm2, 1, %v13664_v60  ;;  %v1765_v42 = vsel %vm1669_vm3, 1, %v13664_v60  ;;  %vm1657_vm6 = vcmp.eq.s32.totalorder %v6246_v61, %v14326_v26  ;;  %3182 = vperm.xlu0 %5518, %v9159_v46   ;;  %v9163_v18 = vadd.s32 %v1758_v29, %v8492_v16  ;;  %v14329_v28 = vld [vmem:[#allocation128_spill] sm:$0xff]  ;;  %v14331_v16 = vld [vmem:[#allocation122_spill] sm:$0xff]  ;;  %v9181_v29 = vpop.permute.xlu1 %1988 }
 0x256   :  { %14324 = vst [vmem:[#allocation90_spill] sm:$0xff] %v9140_v51  ;;  %14325 = vst [vmem:[#allocation88_spill] sm:$0xff] %v9153_v52  ;;  %v1766_v49 = vsel %vm1670_vm4, 1, %v13664_v60  ;;  %vm1658_vm7 = vcmp.eq.s32.totalorder %v6255_v0, %v14326_v26  ;;  %vm1659_vm8 = vcmp.eq.s32.totalorder %v6259_v13, %v14326_v26  ;;  %v9170_v41 = vpop.permute.xlu0 %2003  ;;  %v9173_v10 = vadd.s32 %v1459_v58, %v14329_v28  ;;  %v14330_v52 = vld [vmem:[#allocation21_spill] sm:$0xff] }
 0x257   :  { %14327 = vst [vmem:[#allocation63_spill] sm:$0xff] %v9163_v18  ;;  %14328 = vst [vmem:[#allocation37_spill] sm:$0xff] %v9170_v41  ;;  %v9176_v51 = vadd.s32 %v1460_v55, %v14330_v52  ;;  %v1767_v22 = vsel %vm1671_vm5, 1, %v13664_v60  ;;  %vm1675_vm9 = vcmp.eq.s32.totalorder %v6246_v61, %v14331_v16  ;;  %v9184_v18 = vadd.s32 %v1461_v6, %v8382_v9  ;;  %v5667_v9 = vld [vmem:[#allocation2 + $0x30] sm:$0xff] }
 0x258   :  { %14332 = vst [vmem:[#allocation51_spill] sm:$0xff] %v9181_v29  ;;  %v9187_v26 = vadd.s32 %v1765_v42, %v8565_v43  ;;  %v1753_v41 = vsel %vm1657_vm6, 1, %v13664_v60  ;;  %vm1676_vm10 = vcmp.eq.s32.totalorder %v6255_v0, %v14331_v16  ;;  %v9193_v58 = vadd.s32 %v1766_v49, %v8573_v53  ;;  %v14336_v42 = vld [vmem:[#allocation44_spill] sm:$0xff] }
 0x259   :  { %v1754_v55 = vsel %vm1658_vm7, 1, %v13664_v60  ;;  %v1755_v52 = vsel %vm1659_vm8, 1, %v13664_v60  ;;  %vm1677_vm11 = vcmp.eq.s32.totalorder %v6259_v13, %v14331_v16  ;;  %3116 = vperm.xlu0 %5518, %v5667_v9   ;;  %v9200_v43 = vadd.s32 %v1767_v22, %v8576_v5  ;;  %v14338_v5 = vld [vmem:[#allocation54_spill] sm:$0xff]  ;;  %v14339_v22 = vld [vmem:[#allocation107_spill] sm:$0xff]  ;;  %v14340_v9 = vld [vmem:[#allocation104_spill] sm:$0xff] }
 0x25a   :  { %14333 = vst [vmem:[#allocation71_spill] sm:$0xff] %v9187_v26  ;;  %14334 = vst [vmem:[#allocation114_spill] sm:$0xff] %v9193_v58  ;;  %v1771_v6 = vsel %vm1675_vm9, 1, %v13664_v60  ;;  %vm1663_vm12 = vcmp.eq.s32.totalorder %v6246_v61, %v14336_v42  ;;  %vm1664_vm13 = vcmp.eq.s32.totalorder %v6255_v0, %v14336_v42  ;;  %v9207_v53 = vpop.permute.xlu0 %2009  ;;  %v9210_v49 = vadd.s32 %v1753_v41, %v8405_v27  ;;  %v14346_v58 = vld [vmem:[#allocation80_spill] sm:$0xff]  ;;  %v14406_v26 = vld [vmem:[#allocation129_spill] sm:$0xff] }
 0x25b   :  { %14335 = vst [vmem:[#allocation75_spill] sm:$0xff] %v9200_v43  ;;  %14337 = vst [vmem:[#allocation18_spill] sm:$0xff] %v9207_v53  ;;  %v1772_v28 = vsel %vm1676_vm10, 1, %v13664_v60  ;;  %vm1665_vm14 = vcmp.eq.s32.totalorder %v6259_v13, %v14336_v42  ;;  %vm1681_vm15 = vcmp.eq.s32.totalorder %v6246_v61, %v14338_v5  ;;  %v9218_v16 = vadd.s32 %v1755_v52, %v14339_v22  ;;  %v9231_v53 = vld [vmem:[#allocation2 + $0x38] sm:$0xff]  ;;  %v9234_v52 = vpop.permute.xlu1 %1994 }
 0x25c   :  { %v9221_v29 = vadd.s32 %v1754_v55, %v14340_v9  ;;  %v1773_v43 = vsel %vm1677_vm11, 1, %v13664_v60  ;;  %vm1683_vm0 = vcmp.eq.s32.totalorder %v6259_v13, %v14338_v5  ;;  %v9227_v27 = vadd.s32 %v1771_v6, %v8611_v59  ;;  %14342 = vst [vmem:[#allocation39_spill] sm:$0xff] %v9234_v52 }
 0x25d   :  { %v1759_v41 = vsel %vm1663_vm12, 1, %v13664_v60  ;;  %v1760_v42 = vsel %vm1664_vm13, 1, %v13664_v60  ;;  %3119 = vperm.xlu0 %5518, %v9231_v53   ;;  %v9237_v55 = vadd.s32 %v1772_v28, %v8614_v17  ;;  %v1761_v22 = vsel %vm1665_vm14, 1, %v13664_v60 }
 0x25e   :  { %14341 = vst [vmem:[#allocation57_spill] sm:$0xff] %v9227_v27  ;;  %vm1682_vm1 = vcmp.eq.s32.totalorder %v6255_v0, %v14338_v5  ;;  %v1777_v59 = vsel %vm1681_vm15, 1, %v13664_v60  ;;  %v13541_v6 = vmov 9   ;;  %v9244_v9 = vpop.permute.xlu0 %2015  ;;  %v9247_v27 = vadd.s32 %v1773_v43, %v8622_v15  ;;  %v14347_v15 = vld [vmem:[#allocation60_spill] sm:$0xff] }
 0x25f   :  { %14343 = vst [vmem:[#allocation126_spill] sm:$0xff] %v9237_v55  ;;  %5501 = vset.pattern.permute.xlu1 %v13541_v6  ;;  %14344 = vst [vmem:[#allocation83_spill] sm:$0xff] %v9244_v9  ;;  %v1779_v52 = vsel %vm1683_vm0, 1, %v13664_v60  ;;  %vm1666_vm2 = vcmp.eq.s32.totalorder %v6246_v61, %v14346_v58  ;;  %vm1667_vm3 = vcmp.eq.s32.totalorder %v6255_v0, %v14346_v58  ;;  %v1778_v5 = vsel %vm1682_vm1, 1, %v13664_v60 }
 0x260   :  { %14345 = vst [vmem:[#allocation65_spill] sm:$0xff] %v9247_v27  ;;  %3554 = vperm.xlu1 %5501, %v8874_v39   ;;  %v9256_v17 = vadd.s32 %v1759_v41, %v8527_v24  ;;  %v9259_v28 = vadd.s32 %v1760_v42, %v8530_v2  ;;  %vm1668_vm4 = vcmp.eq.s32.totalorder %v6259_v13, %v14346_v58  ;;  %v9274_v24 = vld [vmem:[#allocation2 + $0x58] sm:$0xff]  ;;  %v1762_v39 = vsel %vm1666_vm2, 1, %v13664_v60  ;;  %v9293_v42 = vpop.permute.xlu1 %2000 }
 0x261   :  { %vm1687_vm5 = vcmp.eq.s32.totalorder %v6246_v61, %v14347_v15  ;;  %v9266_v43 = vadd.s32 %v1761_v22, %v8536_v14  ;;  %v9270_v6 = vadd.s32 %v1777_v59, %v8647_v31  ;;  %vm1688_vm6 = vcmp.eq.s32.totalorder %v6255_v0, %v14347_v15  ;;  %3131 = vperm.xlu0 %5518, %v9274_v24   ;;  %v14350_v41 = vld [vmem:[#allocation115_spill] sm:$0xff]  ;;  %v14354_v59 = vld [vmem:[#allocation20_spill] sm:$0xff]  ;;  %v14399_v27 = vld [vmem:[#allocation78_spill] sm:$0xff] }
 0x262   :  { %v9278_v2 = vadd.s32 %v1779_v52, %v8657_v30  ;;  %v1763_v14 = vsel %vm1667_vm3, 1, %v13664_v60  ;;  %vm1689_vm7 = vcmp.eq.s32.totalorder %v6259_v13, %v14347_v15  ;;  %v1764_v31 = vsel %vm1668_vm4, 1, %v13664_v60  ;;  %v9291_v30 = vpop.permute.xlu0 %2021  ;;  %14352 = vst [vmem:[#allocation120_spill] sm:$0xff] %v9293_v42 }
 0x263   :  { %14348 = vst [vmem:[#allocation22_spill] sm:$0xff] %v9270_v6  ;;  %v1783_v58 = vsel %vm1687_vm5, 1, %v13664_v60  ;;  %vm1672_vm8 = vcmp.eq.s32.totalorder %v6246_v61, %v14350_v41  ;;  %vm1674_vm9 = vcmp.eq.s32.totalorder %v6259_v13, %v14350_v41  ;;  %14351 = vst [vmem:[#allocation32_spill] sm:$0xff] %v9291_v30  ;;  %v9296_v52 = vadd.s32 %v1778_v5, %v8660_v34  ;;  %v9312_v34 = vld [vmem:[#allocation2 + $0x60] sm:$0xff] }
 0x264   :  { %14349 = vst [vmem:[#allocation96_spill] sm:$0xff] %v9278_v2  ;;  %3482 = vperm.xlu1 %5501, %v9025_v11   ;;  %v1784_v22 = vsel %vm1688_vm6, 1, %v13664_v60  ;;  %vm1673_vm10 = vcmp.eq.s32.totalorder %v6255_v0, %v14350_v41  ;;  %vm1693_vm11 = vcmp.eq.s32.totalorder %v6246_v61, %v14354_v59  ;;  %v9304_v15 = vadd.s32 %v1762_v39, %v8454_v38 }
 0x265   :  { %14353 = vst [vmem:[#allocation66_spill] sm:$0xff] %v9296_v52  ;;  %v9307_v11 = vadd.s32 %v1763_v14, %v8463_v45  ;;  %v1785_v30 = vsel %vm1689_vm7, 1, %v13664_v60  ;;  %vm1694_vm12 = vcmp.eq.s32.totalorder %v6255_v0, %v14354_v59  ;;  %3134 = vperm.xlu0 %5518, %v9312_v34   ;;  %v9316_v5 = vadd.s32 %v1764_v31, %v8471_v1 }
 0x266   :  { %v9319_v42 = vadd.s32 %v1783_v58, %v8695_v63  ;;  %v1768_v38 = vsel %vm1672_vm8, 1, %v13664_v60  ;;  %v1770_v45 = vsel %vm1674_vm9, 1, %v13664_v60  ;;  %v9330_v39 = vadd.s32 %v1784_v22, %v8698_v35  ;;  %v14358_v58 = vld [vmem:[#allocation116_spill] sm:$0xff]  ;;  %v9345_v35 = vld [vmem:[#allocation2 + $0xd0] sm:$0xff]  ;;  %v9359_v9 = vpop.permute.xlu0 %2027 }
 0x267   :  { %v1769_v14 = vsel %vm1673_vm10, 1, %v13664_v60  ;;  %vm1695_vm13 = vcmp.eq.s32.totalorder %v6259_v13, %v14354_v59  ;;  %v1789_v1 = vsel %vm1693_vm11, 1, %v13664_v60  ;;  %v9338_v63 = vadd.s32 %v1785_v30, %v8705_v8  ;;  %v14359_v8 = vld [vmem:[#allocation119_spill] sm:$0xff]  ;;  %14361 = vst [vmem:[#allocation93_spill] sm:$0xff] %v9359_v9 }
 0x268   :  { %14355 = vst [vmem:[#allocation130_spill] sm:$0xff] %v9319_v42  ;;  %14356 = vst [vmem:[#allocation70_spill] sm:$0xff] %v9330_v39  ;;  %5502 = vset.pattern.permute.xlu1 %v14291_v48  ;;  %v1790_v31 = vsel %vm1694_vm12, 1, %v13664_v60  ;;  %vm1678_vm14 = vcmp.eq.s32.totalorder %v6246_v61, %v14358_v58  ;;  %vm1679_vm15 = vcmp.eq.s32.totalorder %v6255_v0, %v14358_v58  ;;  %v14360_v30 = vmov 9   ;;  %v9505_v42 = vld [vmem:[#allocation2 + $0x28] sm:$0xff] }
 0x269   :  { %14357 = vst [vmem:[#allocation24_spill] sm:$0xff] %v9338_v63  ;;  %2408 = vperm.xlu1 %5502, %v9345_v35   ;;  %v9349_v41 = vadd.s32 %v1770_v45, %v8495_v44  ;;  %v9352_v22 = vadd.s32 %v1768_v38, %v8502_v62  ;;  %vm1680_vm0 = vcmp.eq.s32.totalorder %v6259_v13, %v14358_v58  ;;  %v9361_v63 = vpop.permute.xlu1 %2006  ;;  %v1791_v62 = vsel %vm1695_vm13, 1, %v13664_v60  ;;  %v14365_v45 = vld [vmem:[#allocation89_spill] sm:$0xff] }
 0x26a   :  { %vm1699_vm1 = vcmp.eq.s32.totalorder %v6246_v61, %v14359_v8  ;;  %5537 = vset.pattern.permute.xlu0 %v14360_v30  ;;  %14362 = vst [vmem:[#allocation19_spill] sm:$0xff] %v9361_v63  ;;  %v9364_v39 = vadd.s32 %v1769_v14, %v8511_v54  ;;  %v9367_v44 = vadd.s32 %v1789_v1, %v8733_v7  ;;  %v1774_v54 = vsel %vm1678_vm14, 1, %v13664_v60  ;;  %v14367_v1 = vld [vmem:[#allocation101_spill] sm:$0xff]  ;;  %v14368_v63 = vld [vmem:[#allocation102_spill] sm:$0xff] }
 0x26b   :  { %vm1700_vm2 = vcmp.eq.s32.totalorder %v6255_v0, %v14359_v8  ;;  %3557 = vperm.xlu0 %5537, %v9011_v25   ;;  %v9377_v38 = vadd.s32 %v1790_v31, %v8741_v23  ;;  %v1775_v7 = vsel %vm1679_vm15, 1, %v13664_v60  ;;  %vm1701_vm3 = vcmp.eq.s32.totalorder %v6259_v13, %v14359_v8  ;;  %v9404_v31 = vld [vmem:[#allocation2 + $0x8] sm:$0xff]  ;;  %14391 = vst [vmem:[#allocation89_spill] sm:$0xff] %v9505_v42 }
 0x26c   :  { %14363 = vst [vmem:[#allocation128_spill] sm:$0xff] %v9367_v44  ;;  %v1776_v59 = vsel %vm1680_vm0, 1, %v13664_v60  ;;  %v1795_v25 = vsel %vm1699_vm1, 1, %v13664_v60  ;;  %vm1684_vm4 = vcmp.eq.s32.totalorder %v6246_v61, %v14365_v45  ;;  %vm1685_vm5 = vcmp.eq.s32.totalorder %v6255_v0, %v14365_v45 }
 0x26d   :  { %14364 = vst [vmem:[#allocation21_spill] sm:$0xff] %v9377_v38  ;;  %5503 = vset.pattern.permute.xlu1 %v14306_v56  ;;  %v9397_v23 = vadd.s32 %v1791_v62, %v8744_v47  ;;  %v1796_v14 = vsel %vm1700_vm2, 1, %v13664_v60  ;;  %vm1686_vm6 = vcmp.eq.s32.totalorder %v6259_v13, %v14365_v45  ;;  %vm1705_vm7 = vcmp.eq.s32.totalorder %v6246_v61, %v14367_v1  ;;  %v9416_v62 = vld [vmem:[#allocation2 + $0x10] sm:$0xff]  ;;  %v14377_v45 = vld [vmem:[#allocation76_spill] sm:$0xff] }
 0x26e   :  { %3101 = vperm.xlu1 %5503, %v9404_v31   ;;  %v9408_v58 = vadd.s32 %v1774_v54, %v8539_v57  ;;  %v9411_v8 = vadd.s32 %v1775_v7, %v8547_v37  ;;  %v1797_v47 = vsel %vm1701_vm3, 1, %v13664_v60  ;;  %vm1706_vm8 = vcmp.eq.s32.totalorder %v6255_v0, %v14367_v1  ;;  %v9433_v54 = vpop.permute.xlu0 %2033  ;;  %v9435_v7 = vpop.permute.xlu1 %2012  ;;  %v14372_v38 = vld [vmem:[#allocation26_spill] sm:$0xff] }
 0x26f   :  { %14366 = vst [vmem:[#allocation122_spill] sm:$0xff] %v9397_v23  ;;  %3488 = vperm.xlu0 %5537, %v9416_v62   ;;  %v9420_v9 = vadd.s32 %v1776_v59, %v14368_v63  ;;  %v9423_v23 = vadd.s32 %v1795_v25, %v8778_v36  ;;  %v1780_v57 = vsel %vm1684_vm4, 1, %v13664_v60  ;;  %v1781_v37 = vsel %vm1685_vm5, 1, %v13664_v60  ;;  %14370 = vst [vmem:[#allocation54_spill] sm:$0xff] %v9433_v54  ;;  %v14374_v25 = vld [vmem:[#allocation113_spill] sm:$0xff] }
 0x270   :  { %14371 = vst [vmem:[#allocation107_spill] sm:$0xff] %v9435_v7  ;;  %v9438_v63 = vadd.s32 %v1796_v14, %v14372_v38  ;;  %v1782_v36 = vsel %vm1686_vm6, 1, %v13664_v60  ;;  %vm1707_vm9 = vcmp.eq.s32.totalorder %v6259_v13, %v14367_v1  ;;  %v1801_v59 = vsel %vm1705_vm7, 1, %v13664_v60  ;;  %v14376_v38 = vld [vmem:[#allocation123_spill] sm:$0xff]  ;;  %v14379_v1 = vld [vmem:[#allocation52_spill] sm:$0xff] }
 0x271   :  { %14369 = vst [vmem:[#allocation44_spill] sm:$0xff] %v9423_v23  ;;  %v9451_v54 = vadd.s32 %v1797_v47, %v14374_v25  ;;  %v1802_v7 = vsel %vm1706_vm8, 1, %v13664_v60  ;;  %vm1690_vm10 = vcmp.eq.s32.totalorder %v6246_v61, %v14376_v38  ;;  %vm1691_vm11 = vcmp.eq.s32.totalorder %v6255_v0, %v14376_v38 }
 0x272   :  { %14373 = vst [vmem:[#allocation104_spill] sm:$0xff] %v9438_v63  ;;  %5504 = vset.pattern.permute.xlu1 %v14276_v20  ;;  %v9460_v14 = vadd.s32 %v1780_v57, %v14377_v45  ;;  %v14378_v63 = vld [vmem:[#allocation46_spill] sm:$0xff]  ;;  %vm1692_vm12 = vcmp.eq.s32.totalorder %v6259_v13, %v14376_v38  ;;  %v9470_v47 = vadd.s32 %v1782_v36, %v14379_v1  ;;  %v1803_v25 = vsel %vm1707_vm9, 1, %v13664_v60  ;;  %v14382_v57 = vld [vmem:[#allocation124_spill] sm:$0xff] }
 0x273   :  { %14375 = vst [vmem:[#allocation80_spill] sm:$0xff] %v9451_v54  ;;  %v9463_v23 = vadd.s32 %v1781_v37, %v14378_v63  ;;  %2792 = vperm.xlu1 %5504, %v9345_v35   ;;  %3566 = vperm.xlu0 %5537, %v9159_v46   ;;  %v14380_v54 = vld [vmem:[#allocation17_spill] sm:$0xff]  ;;  %vm1711_vm13 = vcmp.eq.s32.totalorder %v6246_v61, %v14382_v57  ;;  %v1786_v38 = vsel %vm1690_vm10, 1, %v13664_v60  ;;  %v1787_v45 = vsel %vm1691_vm11, 1, %v13664_v60  ;;  %v14388_v1 = vld [vmem:[#allocation100_spill] sm:$0xff] }
 0x274   :  { %v9474_v44 = vadd.s32 %v1801_v59, %v14380_v54  ;;  %v14383_v37 = vld [vmem:[#allocation109_spill] sm:$0xff]  ;;  %vm1712_vm14 = vcmp.eq.s32.totalorder %v6255_v0, %v14382_v57  ;;  %v1788_v36 = vsel %vm1692_vm12, 1, %v13664_v60  ;;  %vm1713_vm15 = vcmp.eq.s32.totalorder %v6259_v13, %v14382_v57  ;;  %v14385_v54 = vld [vmem:[#allocation94_spill] sm:$0xff]  ;;  %v9494_v59 = vpop.permute.xlu1 %2018 }
 0x275   :  { %v9479_v63 = vadd.s32 %v1802_v7, %v14383_v37  ;;  %vm1696_vm0 = vcmp.eq.s32.totalorder %v6246_v61, %v14385_v54  ;;  %vm1697_vm1 = vcmp.eq.s32.totalorder %v6255_v0, %v14385_v54  ;;  %v9492_v7 = vpop.permute.xlu0 %2039  ;;  %14387 = vst [vmem:[#allocation116_spill] sm:$0xff] %v9494_v59  ;;  %v9497_v37 = vadd.s32 %v1803_v25, %v14388_v1  ;;  %v14393_v59 = vld [vmem:[#allocation108_spill] sm:$0xff] }
 0x276   :  { %14381 = vst [vmem:[#allocation60_spill] sm:$0xff] %v9474_v44  ;;  %14386 = vst [vmem:[#allocation20_spill] sm:$0xff] %v9492_v7  ;;  %vm1698_vm2 = vcmp.eq.s32.totalorder %v6259_v13, %v14385_v54  ;;  %v14390_v44 = vld [vmem:[#allocation106_spill] sm:$0xff]  ;;  %v14392_v7 = vld [vmem:[#allocation28_spill] sm:$0xff]  ;;  %v9512_v25 = vadd.s32 %v1787_v45, %v14393_v59  ;;  %v1808_v1 = vsel %vm1712_vm14, 1, %v13664_v60  ;;  %v1792_v45 = vsel %vm1696_vm0, 1, %v13664_v60 }
 0x277   :  { %14384 = vst [vmem:[#allocation115_spill] sm:$0xff] %v9479_v63  ;;  %14389 = vst [vmem:[#allocation119_spill] sm:$0xff] %v9497_v37  ;;  %v1807_v63 = vsel %vm1711_vm13, 1, %v13664_v60  ;;  %vm1717_vm3 = vcmp.eq.s32.totalorder %v6246_v61, %v14390_v44  ;;  %2720 = vperm.xlu1 %5504, %v9416_v62   ;;  %3497 = vperm.xlu0 %5537, %v9505_v42   ;;  %v9509_v52 = vadd.s32 %v1786_v38, %v14392_v7  ;;  %v14395_v37 = vld [vmem:[#allocation58_spill] sm:$0xff]  ;;  %v14402_v54 = vld [vmem:[#allocation127_spill] sm:$0xff] }
 0x278   :  { %14394 = vst [vmem:[#allocation101_spill] sm:$0xff] %v9512_v25  ;;  %vm1718_vm4 = vcmp.eq.s32.totalorder %v6255_v0, %v14390_v44  ;;  %v9521_v2 = vadd.s32 %v1788_v36, %v14395_v37  ;;  %v1809_v38 = vsel %vm1713_vm15, 1, %v13664_v60  ;;  %v1793_v7 = vsel %vm1697_vm1, 1, %v13664_v60  ;;  %v14397_v37 = vld [vmem:[#allocation34_spill] sm:$0xff]  ;;  %v9566_v55 = vpop.permute.xlu1 %2024 }
 0x279   :  { %v9536_v59 = vadd.s32 %v1807_v63, %v8880_v50  ;;  %v1794_v36 = vsel %vm1698_vm2, 1, %v13664_v60  ;;  %vm1719_vm5 = vcmp.eq.s32.totalorder %v6259_v13, %v14390_v44  ;;  %v1813_v57 = vsel %vm1717_vm3, 1, %v13664_v60  ;;  %v14400_v50 = vld [vmem:[#allocation33_spill] sm:$0xff]  ;;  %14405 = vst [vmem:[#allocation76_spill] sm:$0xff] %v9566_v55 }
 0x27a   :  { %v9543_v6 = vadd.s32 %v1808_v1, %v14397_v37  ;;  %v1814_v42 = vsel %vm1718_vm4, 1, %v13664_v60  ;;  %vm1702_vm6 = vcmp.eq.s32.totalorder %v6246_v61, %v14399_v27  ;;  %vm1703_vm7 = vcmp.eq.s32.totalorder %v6255_v0, %v14399_v27  ;;  %v14403_v1 = vld [vmem:[#allocation67_spill] sm:$0xff] }
 0x27b   :  { %14396 = vst [vmem:[#allocation102_spill] sm:$0xff] %v9536_v59  ;;  %5505 = vset.pattern.permute.xlu1 %v14360_v30  ;;  %3503 = vperm.xlu0 %5537, %v9231_v53   ;;  %v9553_v63 = vadd.s32 %v1809_v38, %v14400_v50  ;;  %v9556_v59 = vadd.s32 %v1792_v45, %v14402_v54  ;;  %v1815_v38 = vsel %vm1719_vm5, 1, %v13664_v60  ;;  %v14407_v45 = vld [vmem:[#allocation111_spill] sm:$0xff]  ;;  %v14409_v50 = vld [vmem:[#allocation97_spill] sm:$0xff]  ;;  %v14410_v54 = vld [vmem:[#allocation138_spill] sm:$0xff]  ;;  %v1799_v44 = vsel %vm1703_vm7, 1, %v13664_v60 }
 0x27c   :  { %14398 = vst [vmem:[#allocation26_spill] sm:$0xff] %v9543_v6  ;;  %v9559_v37 = vadd.s32 %v1793_v7, %v14403_v1  ;;  %vm1704_vm8 = vcmp.eq.s32.totalorder %v6259_v13, %v14399_v27  ;;  %3485 = vperm.xlu1 %5505, %v9404_v31   ;;  %v9564_v6 = vpop.permute.xlu0 %2714  ;;  %v9569_v25 = vadd.s32 %v1794_v36, %v14406_v26  ;;  %v1798_v26 = vsel %vm1702_vm6, 1, %v13664_v60  ;;  %v14413_v1 = vld [vmem:[#allocation23_spill] sm:$0xff] }
 0x27d   :  { %14401 = vst [vmem:[#allocation113_spill] sm:$0xff] %v9553_v63  ;;  %14404 = vst [vmem:[#allocation123_spill] sm:$0xff] %v9564_v6  ;;  %v9576_v7 = vadd.s32 %v1813_v57, %v14407_v45  ;;  %vm1723_vm9 = vcmp.eq.s32.totalorder %v6246_v61, %v14409_v50  ;;  %v9581_v31 = vadd.s32 %v1814_v42, %v14410_v54  ;;  %v1800_v36 = vsel %vm1704_vm8, 1, %v13664_v60  ;;  %v14412_v42 = vld [vmem:[#allocation79_spill] sm:$0xff]  ;;  %v14415_v54 = vld [vmem:[#allocation133_spill] sm:$0xff] }
 0x27e   :  { %vm1724_vm10 = vcmp.eq.s32.totalorder %v6255_v0, %v14409_v50  ;;  %vm1725_vm11 = vcmp.eq.s32.totalorder %v6259_v13, %v14409_v50  ;;  %vm1708_vm12 = vcmp.eq.s32.totalorder %v6246_v61, %v14412_v42  ;;  %vm1709_vm13 = vcmp.eq.s32.totalorder %v6255_v0, %v14412_v42  ;;  %v5675_v57 = vld [vmem:[#allocation2 + $0x40] sm:$0xff]  ;;  %v14417_v6 = vld [vmem:[#allocation73_spill] sm:$0xff] }
 0x27f   :  { %14408 = vst [vmem:[#allocation46_spill] sm:$0xff] %v9576_v7  ;;  %14411 = vst [vmem:[#allocation52_spill] sm:$0xff] %v9581_v31  ;;  %3506 = vperm.xlu0 %5537, %v5675_v57   ;;  %v9601_v45 = vadd.s32 %v1815_v38, %v14413_v1  ;;  %v1819_v27 = vsel %vm1723_vm9, 1, %v13664_v60  ;;  %vm1710_vm14 = vcmp.eq.s32.totalorder %v6259_v13, %v14412_v42  ;;  %v14418_v7 = vld [vmem:[#allocation132_spill] sm:$0xff]  ;;  %v1820_v38 = vsel %vm1724_vm10, 1, %v13664_v60 }
 0x280   :  { %vm1729_vm15 = vcmp.eq.s32.totalorder %v6246_v61, %v14415_v54  ;;  %5506 = vset.pattern.permute.xlu1 %v14306_v56  ;;  %v9609_v55 = vpop.permute.xlu0 %2717  ;;  %v9612_v31 = vadd.s32 %v1798_v26, %v14417_v6  ;;  %v9615_v57 = vadd.s32 %v1799_v44, %v14418_v7  ;;  %vm1730_vm0 = vcmp.eq.s32.totalorder %v6255_v0, %v14415_v54  ;;  %v14420_v1 = vld [vmem:[#allocation68_spill] sm:$0xff]  ;;  %v9636_v26 = vpop.permute.xlu1 %2030 }
 0x281   :  { %14414 = vst [vmem:[#allocation17_spill] sm:$0xff] %v9601_v45  ;;  %14416 = vst [vmem:[#allocation124_spill] sm:$0xff] %v9609_v55  ;;  %3176 = vperm.xlu1 %5506, %v9345_v35   ;;  %v9622_v45 = vadd.s32 %v1800_v36, %v14420_v1  ;;  %v1821_v55 = vsel %vm1725_vm11, 1, %v13664_v60  ;;  %v1804_v6 = vsel %vm1708_vm12, 1, %v13664_v60  ;;  %v1805_v7 = vsel %vm1709_vm13, 1, %v13664_v60 }
 0x282   :  { %14419 = vst [vmem:[#allocation109_spill] sm:$0xff] %v9615_v57  ;;  %14422 = vst [vmem:[#allocation100_spill] sm:$0xff] %v9636_v26  ;;  %v9639_v44 = vadd.s32 %v1819_v27, %v8973_v4  ;;  %v1806_v36 = vsel %vm1710_vm14, 1, %v13664_v60  ;;  %vm1731_vm1 = vcmp.eq.s32.totalorder %v6259_v13, %v14415_v54  ;;  %v1825_v50 = vsel %vm1729_vm15, 1, %v13664_v60  ;;  %v14425_v26 = vld [vmem:[#allocation98_spill] sm:$0xff]  ;;  %v14427_v27 = vld [vmem:[#allocation59_spill] sm:$0xff] }
 0x283   :  { %14421 = vst [vmem:[#allocation94_spill] sm:$0xff] %v9622_v45  ;;  %3518 = vperm.xlu0 %5537, %v9312_v34   ;;  %v9650_v42 = vadd.s32 %v1820_v38, %v8976_v33  ;;  %v1826_v1 = vsel %vm1730_vm0, 1, %v13664_v60  ;;  %vm1714_vm2 = vcmp.eq.s32.totalorder %v6246_v61, %v14425_v26  ;;  %vm1715_vm3 = vcmp.eq.s32.totalorder %v6255_v0, %v14425_v26  ;;  %v14429_v54 = vld [vmem:[#allocation134_spill] sm:$0xff]  ;;  %v14430_v34 = vld [vmem:[#allocation87_spill] sm:$0xff] }
 0x284   :  { %14423 = vst [vmem:[#allocation106_spill] sm:$0xff] %v9639_v44  ;;  %v9657_v4 = vpop.permute.xlu0 %2795  ;;  %v9660_v44 = vadd.s32 %v1821_v55, %v14427_v27  ;;  %v9663_v63 = vadd.s32 %v1804_v6, %v14429_v54  ;;  %v9666_v45 = vadd.s32 %v1805_v7, %v14430_v34  ;;  %vm1716_vm4 = vcmp.eq.s32.totalorder %v6259_v13, %v14425_v26  ;;  %v14431_v33 = vld [vmem:[#allocation74_spill] sm:$0xff]  ;;  %v14434_v55 = vld [vmem:[#allocation125_spill] sm:$0xff]  ;;  %v14435_v6 = vld [vmem:[#allocation47_spill] sm:$0xff] }
 0x285   :  { %14424 = vst [vmem:[#allocation28_spill] sm:$0xff] %v9650_v42  ;;  %14426 = vst [vmem:[#allocation108_spill] sm:$0xff] %v9657_v4  ;;  %3104 = vperm.xlu1 %5506, %v9416_v62   ;;  %v9672_v38 = vadd.s32 %v1806_v36, %v14431_v33  ;;  %v1827_v42 = vsel %vm1731_vm1, 1, %v13664_v60  ;;  %v14432_v4 = vld [vmem:[#allocation77_spill] sm:$0xff]  ;;  %vm1735_vm5 = vcmp.eq.s32.totalorder %v6246_v61, %v14434_v55  ;;  %v1810_v7 = vsel %vm1714_vm2, 1, %v13664_v60  ;;  %v14440_v54 = vld [vmem:[#allocation62_spill] sm:$0xff] }
 0x286   :  { %14428 = vst [vmem:[#allocation58_spill] sm:$0xff] %v9660_v44  ;;  %v9676_v57 = vadd.s32 %v1825_v50, %v14432_v4  ;;  %v9681_v27 = vadd.s32 %v1826_v1, %v14435_v6  ;;  %v1811_v26 = vsel %vm1715_vm3, 1, %v13664_v60  ;;  %vm1736_vm6 = vcmp.eq.s32.totalorder %v6255_v0, %v14434_v55  ;;  %v5676_v62 = vld [vmem:[#allocation2 + $0x68] sm:$0xff]  ;;  %v14437_v50 = vld [vmem:[#allocation99_spill] sm:$0xff]  ;;  %v9694_v1 = vpop.permute.xlu1 %2036 }
 0x287   :  { %3521 = vperm.xlu0 %5537, %v5676_v62   ;;  %v1812_v36 = vsel %vm1716_vm4, 1, %v13664_v60  ;;  %vm1737_vm7 = vcmp.eq.s32.totalorder %v6259_v13, %v14434_v55  ;;  %vm1720_vm8 = vcmp.eq.s32.totalorder %v6246_v61, %v14437_v50  ;;  %vm1721_vm9 = vcmp.eq.s32.totalorder %v6255_v0, %v14437_v50  ;;  %14438 = vst [vmem:[#allocation33_spill] sm:$0xff] %v9694_v1  ;;  %v14442_v6 = vld [vmem:[#allocation64_spill] sm:$0xff]  ;;  %v14443_v62 = vld [vmem:[#allocation137_spill] sm:$0xff] }
 0x288   :  { %14433 = vst [vmem:[#allocation34_spill] sm:$0xff] %v9676_v57  ;;  %14436 = vst [vmem:[#allocation78_spill] sm:$0xff] %v9681_v27  ;;  %v9696_v4 = vpop.permute.xlu0 %2726  ;;  %v9699_v34 = vadd.s32 %v1827_v42, %v14440_v54  ;;  %v1831_v33 = vsel %vm1735_vm5, 1, %v13664_v60  ;;  %vm1722_vm10 = vcmp.eq.s32.totalorder %v6259_v13, %v14437_v50  ;;  %vm1741_vm11 = vcmp.eq.s32.totalorder %v6246_v61, %v14442_v6  ;;  %v14444_v27 = vld [vmem:[#allocation136_spill] sm:$0xff]  ;;  %v14445_v54 = vld [vmem:[#allocation105_spill] sm:$0xff] }
 0x289   :  { %14439 = vst [vmem:[#allocation127_spill] sm:$0xff] %v9696_v4  ;;  %5507 = vset.pattern.permute.xlu1 %v14360_v30  ;;  %v9708_v44 = vadd.s32 %v1810_v7, %v14443_v62  ;;  %v9711_v1 = vadd.s32 %v1811_v26, %v14444_v27  ;;  %v1832_v42 = vsel %vm1736_vm6, 1, %v13664_v60  ;;  %vm1742_vm12 = vcmp.eq.s32.totalorder %v6255_v0, %v14442_v6  ;;  %v14447_v62 = vld [vmem:[#allocation35_spill] sm:$0xff] }
 0x28a   :  { %14441 = vst [vmem:[#allocation67_spill] sm:$0xff] %v9699_v34  ;;  %3560 = vperm.xlu1 %5507, %v9345_v35   ;;  %v9721_v4 = vadd.s32 %v1812_v36, %v14445_v54  ;;  %v1833_v7 = vsel %vm1737_vm7, 1, %v13664_v60  ;;  %v1816_v27 = vsel %vm1720_vm8, 1, %v13664_v60  ;;  %v1817_v26 = vsel %vm1721_vm9, 1, %v13664_v60  ;;  %v14449_v34 = vld [vmem:[#allocation25_spill] sm:$0xff] }
 0x28b   :  { %5541 = vset.pattern.permute.xlu0 %v14276_v20  ;;  %v9737_v35 = vadd.s32 %v1831_v33, %v9076_v32  ;;  %v1818_v36 = vsel %vm1722_vm10, 1, %v13664_v60  ;;  %vm1743_vm13 = vcmp.eq.s32.totalorder %v6259_v13, %v14442_v6  ;;  %v1837_v55 = vsel %vm1741_vm11, 1, %v13664_v60  ;;  %v14451_v33 = vld [vmem:[#allocation27_spill] sm:$0xff] }
 0x28c   :  { %2804 = vperm.xlu0 %5541, %v14447_v62   ;;  %v9745_v54 = vadd.s32 %v1832_v42, %v9079_v12  ;;  %v1838_v50 = vsel %vm1742_vm12, 1, %v13664_v60  ;;  %vm1726_vm14 = vcmp.eq.s32.totalorder %v6246_v61, %v14449_v34  ;;  %vm1727_vm15 = vcmp.eq.s32.totalorder %v6255_v0, %v14449_v34  ;;  %v9764_v12 = vpop.permute.xlu1 %2330  ;;  %v9766_v42 = vpop.permute.xlu0 %2333  ;;  %v14455_v62 = vld [vmem:[#allocation112_spill] sm:$0xff] }
 0x28d   :  { %14446 = vst [vmem:[#allocation129_spill] sm:$0xff] %v9737_v35  ;;  %v9753_v32 = vadd.s32 %v1833_v7, %v9087_v40  ;;  %v9756_v6 = vadd.s32 %v1816_v27, %v14451_v33  ;;  %v14452_v35 = vld [vmem:[#allocation86_spill] sm:$0xff]  ;;  %vm1728_vm0 = vcmp.eq.s32.totalorder %v6259_v13, %v14449_v34  ;;  %14453 = vst [vmem:[#allocation138_spill] sm:$0xff] %v9764_v12  ;;  %v1839_v40 = vsel %vm1743_vm13, 1, %v13664_v60 }
 0x28e   :  { %14448 = vst [vmem:[#allocation111_spill] sm:$0xff] %v9745_v54  ;;  %v9759_v57 = vadd.s32 %v1817_v26, %v14452_v35  ;;  %5508 = vset.pattern.permute.xlu1 %v14276_v20  ;;  %14454 = vst [vmem:[#allocation79_spill] sm:$0xff] %v9766_v42  ;;  %v9769_v54 = vadd.s32 %v1818_v36, %v14455_v62  ;;  %v9773_v7 = vadd.s32 %v1837_v55, %v9127_v3  ;;  %v14457_v27 = vld [vmem:[#allocation82_spill] sm:$0xff]  ;;  %v14464_v62 = vld [vmem:[#allocation48_spill] sm:$0xff] }
 0x28f   :  { %14450 = vst [vmem:[#allocation97_spill] sm:$0xff] %v9753_v32  ;;  %vm1747_vm1 = vcmp.eq.s32.totalorder %v6246_v61, %v14457_v27  ;;  %2723 = vperm.xlu1 %5508, %v9110_v19   ;;  %v9779_v34 = vadd.s32 %v1838_v50, %v9130_v21  ;;  %v1822_v26 = vsel %vm1726_vm14, 1, %v13664_v60  ;;  %v1823_v35 = vsel %vm1727_vm15, 1, %v13664_v60  ;;  %v14459_v36 = vld [vmem:[#allocation110_spill] sm:$0xff]  ;;  %v14460_v21 = vld [vmem:[#allocation43_spill] sm:$0xff] }
 0x290   :  { %14456 = vst [vmem:[#allocation23_spill] sm:$0xff] %v9773_v7  ;;  %vm1748_vm2 = vcmp.eq.s32.totalorder %v6255_v0, %v14457_v27  ;;  %2735 = vperm.xlu0 %5541, %v9231_v53   ;;  %v1824_v3 = vsel %vm1728_vm0, 1, %v13664_v60  ;;  %vm1749_vm3 = vcmp.eq.s32.totalorder %v6259_v13, %v14457_v27  ;;  %vm1732_vm4 = vcmp.eq.s32.totalorder %v6246_v61, %v14459_v36  ;;  %v14462_v53 = vld [vmem:[#allocation140_spill] sm:$0xff]  ;;  %v9801_v33 = vpop.permute.xlu1 %2336 }
 0x291   :  { %14458 = vst [vmem:[#allocation133_spill] sm:$0xff] %v9779_v34  ;;  %vm1733_vm5 = vcmp.eq.s32.totalorder %v6255_v0, %v14459_v36  ;;  %v9794_v55 = vadd.s32 %v1839_v40, %v14460_v21  ;;  %v1843_v50 = vsel %vm1747_vm1, 1, %v13664_v60  ;;  %vm1734_vm6 = vcmp.eq.s32.totalorder %v6259_v13, %v14459_v36  ;;  %14463 = vst [vmem:[#allocation132_spill] sm:$0xff] %v9801_v33  ;;  %v14465_v34 = vld [vmem:[#allocation29_spill] sm:$0xff]  ;;  %v9813_v40 = vpop.permute.xlu0 %2342  ;;  %v14467_v21 = vld [vmem:[#allocation91_spill] sm:$0xff] }
 0x292   :  { %vm2041_vm7 = vcmp.eq.s32.totalorder %v6246_v61, %v14462_v53  ;;  %v9804_v27 = vadd.s32 %v1822_v26, %v14464_v62  ;;  %v9807_v7 = vadd.s32 %v1823_v35, %v14465_v34  ;;  %v1844_v42 = vsel %vm1748_vm2, 1, %v13664_v60  ;;  %14466 = vst [vmem:[#allocation68_spill] sm:$0xff] %v9813_v40  ;;  %v5677_v34 = vld [vmem:[#allocation2 + $0x50] sm:$0xff] }
 0x293   :  { %14461 = vst [vmem:[#allocation73_spill] sm:$0xff] %v9794_v55  ;;  %vm2042_vm8 = vcmp.eq.s32.totalorder %v6255_v0, %v14462_v53  ;;  %5509 = vset.pattern.permute.xlu1 %v14291_v48  ;;  %v9816_v55 = vadd.s32 %v1824_v3, %v14467_v21  ;;  %v1845_v33 = vsel %vm1749_vm3, 1, %v13664_v60  ;;  %v1828_v26 = vsel %vm1732_vm4, 1, %v13664_v60 }
 0x294   :  { %v1829_v62 = vsel %vm1733_vm5, 1, %v13664_v60  ;;  %2414 = vperm.xlu1 %5509, %v9159_v46   ;;  %2744 = vperm.xlu0 %5541, %v5677_v34   ;;  %v9823_v35 = vadd.s32 %v1843_v50, %v9173_v10  ;;  %v1830_v40 = vsel %vm1734_vm6, 1, %v13664_v60  ;;  %vm2043_vm9 = vcmp.eq.s32.totalorder %v6259_v13, %v14462_v53  ;;  %v14471_v10 = vld [vmem:[#allocation131_spill] sm:$0xff]  ;;  %v9843_v36 = vpop.permute.xlu1 %2339  ;;  %v14475_v53 = vld [vmem:[#allocation38_spill] sm:$0xff] }
 0x295   :  { %14468 = vst [vmem:[#allocation98_spill] sm:$0xff] %v9816_v55  ;;  %v2137_v3 = vsel %vm2041_vm7, 1, %v13664_v60  ;;  %v9836_v21 = vadd.s32 %v1844_v42, %v9176_v51  ;;  %v2138_v34 = vsel %vm2042_vm8, 1, %v13664_v60  ;;  %vm1738_vm10 = vcmp.eq.s32.totalorder %v6246_v61, %v14471_v10  ;;  %14472 = vst [vmem:[#allocation87_spill] sm:$0xff] %v9843_v36  ;;  %v9856_v51 = vpop.permute.xlu0 %2348  ;;  %v14477_v42 = vld [vmem:[#allocation42_spill] sm:$0xff]  ;;  %v14488_v36 = vld [vmem:[#allocation69_spill] sm:$0xff] }
 0x296   :  { %14469 = vst [vmem:[#allocation59_spill] sm:$0xff] %v9823_v35  ;;  %vm1739_vm11 = vcmp.eq.s32.totalorder %v6255_v0, %v14471_v10  ;;  %v9846_v50 = vadd.s32 %v1845_v33, %v9184_v18  ;;  %v14474_v35 = vld [vmem:[#allocation31_spill] sm:$0xff]  ;;  %v9852_v12 = vadd.s32 %v1829_v62, %v14475_v53  ;;  %vm1740_vm12 = vcmp.eq.s32.totalorder %v6259_v13, %v14471_v10  ;;  %v14485_v10 = vld [vmem:[#allocation53_spill] sm:$0xff] }
 0x297   :  { %14470 = vst [vmem:[#allocation134_spill] sm:$0xff] %v9836_v21  ;;  %v9849_v32 = vadd.s32 %v1828_v26, %v14474_v35  ;;  %14476 = vst [vmem:[#allocation77_spill] sm:$0xff] %v9856_v51  ;;  %v9859_v21 = vadd.s32 %v1830_v40, %v14477_v42  ;;  %v9862_v55 = vadd.s32 %v2137_v3, %v9210_v49  ;;  %v2139_v18 = vsel %vm2043_vm9, 1, %v13664_v60  ;;  %v14479_v33 = vld [vmem:[#allocation103_spill] sm:$0xff]  ;;  %v14481_v49 = vld [vmem:[#allocation117_spill] sm:$0xff] }
 0x298   :  { %14473 = vst [vmem:[#allocation74_spill] sm:$0xff] %v9846_v50  ;;  %vm2050_vm13 = vcmp.eq.s32.totalorder %v6246_v61, %v14479_v33  ;;  %5510 = vset.pattern.permute.xlu1 %v14306_v56  ;;  %2747 = vperm.xlu0 %5541, %v9274_v24   ;;  %v9870_v26 = vadd.s32 %v2138_v34, %v9221_v29  ;;  %v1834_v62 = vsel %vm1738_vm10, 1, %v13664_v60  ;;  %v1835_v40 = vsel %vm1739_vm11, 1, %v13664_v60  ;;  %v14482_v3 = vld [vmem:[#allocation81_spill] sm:$0xff]  ;;  %v9884_v29 = vpop.permute.xlu1 %2345 }
 0x299   :  { %14478 = vst [vmem:[#allocation125_spill] sm:$0xff] %v9862_v55  ;;  %vm2051_vm14 = vcmp.eq.s32.totalorder %v6255_v0, %v14479_v33  ;;  %3179 = vperm.xlu1 %5510, %v14481_v49   ;;  %v1836_v35 = vsel %vm1740_vm12, 1, %v13664_v60  ;;  %vm2052_vm15 = vcmp.eq.s32.totalorder %v6259_v13, %v14479_v33  ;;  %vm1744_vm0 = vcmp.eq.s32.totalorder %v6246_v61, %v14482_v3  ;;  %v9894_v53 = vpop.permute.xlu0 %2354  ;;  %v14487_v42 = vld [vmem:[#allocation141_spill] sm:$0xff] }
 0x29a   :  { %14480 = vst [vmem:[#allocation47_spill] sm:$0xff] %v9870_v26  ;;  %vm1745_vm1 = vcmp.eq.s32.totalorder %v6255_v0, %v14482_v3  ;;  %14483 = vst [vmem:[#allocation99_spill] sm:$0xff] %v9884_v29  ;;  %v9887_v24 = vadd.s32 %v2139_v18, %v9218_v16  ;;  %v2146_v34 = vsel %vm2050_vm13, 1, %v13664_v60  ;;  %vm1746_vm2 = vcmp.eq.s32.totalorder %v6259_v13, %v14482_v3  ;;  %v9905_v16 = vld [vmem:[#allocation2 + $0x78] sm:$0xff]  ;;  %v14489_v18 = vld [vmem:[#allocation61_spill] sm:$0xff] }
 0x29b   :  { %vm2056_vm3 = vcmp.eq.s32.totalorder %v6246_v61, %v14485_v10  ;;  %14486 = vst [vmem:[#allocation64_spill] sm:$0xff] %v9894_v53  ;;  %v9897_v51 = vadd.s32 %v1834_v62, %v14487_v42  ;;  %v9900_v50 = vadd.s32 %v1835_v40, %v14488_v36  ;;  %v2147_v29 = vsel %vm2051_vm14, 1, %v13664_v60  ;;  %v14496_v26 = vld [vmem:[#allocation72_spill] sm:$0xff] }
 0x29c   :  { %14484 = vst [vmem:[#allocation62_spill] sm:$0xff] %v9887_v24  ;;  %vm2057_vm4 = vcmp.eq.s32.totalorder %v6255_v0, %v14485_v10  ;;  %2759 = vperm.xlu0 %5541, %v9905_v16   ;;  %v9909_v24 = vadd.s32 %v1836_v35, %v14489_v18  ;;  %v2148_v62 = vsel %vm2052_vm15, 1, %v13664_v60  ;;  %v1840_v36 = vsel %vm1744_vm0, 1, %v13664_v60  ;;  %v9935_v18 = vpop.permute.xlu1 %2351 }
 0x29d   :  { %v1841_v40 = vsel %vm1745_vm1, 1, %v13664_v60  ;;  %5511 = vset.pattern.permute.xlu1 %v14276_v20  ;;  %v9925_v35 = vadd.s32 %v2146_v34, %v9304_v15  ;;  %v1842_v42 = vsel %vm1746_vm2, 1, %v13664_v60  ;;  %vm2058_vm5 = vcmp.eq.s32.totalorder %v6259_v13, %v14485_v10  ;;  %14491 = vst [vmem:[#allocation136_spill] sm:$0xff] %v9935_v18  ;;  %v14493_v34 = vld [vmem:[#allocation135_spill] sm:$0xff]  ;;  %v14497_v18 = vld [vmem:[#allocation40_spill] sm:$0xff] }
 0x29e   :  { %v2152_v33 = vsel %vm2056_vm3, 1, %v13664_v60  ;;  %2798 = vperm.xlu1 %5511, %v9159_v46   ;;  %v9938_v3 = vadd.s32 %v2147_v29, %v9307_v11  ;;  %v2153_v15 = vsel %vm2057_vm4, 1, %v13664_v60  ;;  %vm1750_vm6 = vcmp.eq.s32.totalorder %v6246_v61, %v14493_v34  ;;  %v5679_v11 = vld [vmem:[#allocation2 + $0x80] sm:$0xff] }
 0x29f   :  { %14490 = vst [vmem:[#allocation137_spill] sm:$0xff] %v9925_v35  ;;  %vm1751_vm7 = vcmp.eq.s32.totalorder %v6255_v0, %v14493_v34  ;;  %v9945_v35 = vpop.permute.xlu0 %2360  ;;  %v9948_v53 = vadd.s32 %v2148_v62, %v9316_v5  ;;  %v9951_v46 = vadd.s32 %v1840_v36, %v14496_v26  ;;  %v9954_v55 = vadd.s32 %v1841_v40, %v14497_v18  ;;  %v14498_v29 = vld [vmem:[#allocation84_spill] sm:$0xff]  ;;  %v14500_v26 = vld [vmem:[#allocation41_spill] sm:$0xff] }
 0x2a0   :  { %14492 = vst [vmem:[#allocation105_spill] sm:$0xff] %v9938_v3  ;;  %14494 = vst [vmem:[#allocation35_spill] sm:$0xff] %v9945_v35  ;;  %vm1752_vm8 = vcmp.eq.s32.totalorder %v6259_v13, %v14493_v34  ;;  %2762 = vperm.xlu0 %5541, %v5679_v11   ;;  %v9959_v3 = vadd.s32 %v1842_v42, %v14498_v29  ;;  %v2154_v5 = vsel %vm2058_vm5, 1, %v13664_v60  ;;  %v1846_v40 = vsel %vm1750_vm6, 1, %v13664_v60  ;;  %v9978_v10 = vpop.permute.xlu1 %2357  ;;  %v14503_v42 = vld [vmem:[#allocation142_spill] sm:$0xff]  ;;  %v14506_v34 = vld [vmem:[#allocation16_spill] sm:$0xff] }
 0x2a1   :  { %14495 = vst [vmem:[#allocation25_spill] sm:$0xff] %v9948_v53  ;;  %v9966_v62 = vadd.s32 %v2152_v33, %v9352_v22  ;;  %vm2062_vm9 = vcmp.eq.s32.totalorder %v6246_v61, %v14500_v26  ;;  %v9971_v36 = vadd.s32 %v2153_v15, %v9364_v39  ;;  %v1847_v18 = vsel %vm1751_vm7, 1, %v13664_v60  ;;  %14502 = vst [vmem:[#allocation112_spill] sm:$0xff] %v9978_v10  ;;  %v5680_v11 = vld [vmem:[#allocation2 + $0x90] sm:$0xff]  ;;  %v14507_v29 = vld [vmem:[#allocation95_spill] sm:$0xff] }
 0x2a2   :  { %vm2064_vm10 = vcmp.eq.s32.totalorder %v6259_v13, %v14500_v26  ;;  %5512 = vset.pattern.permute.xlu1 %v14360_v30  ;;  %v1848_v22 = vsel %vm1752_vm8, 1, %v13664_v60  ;;  %vm2063_vm11 = vcmp.eq.s32.totalorder %v6255_v0, %v14500_v26  ;;  %vm2044_vm12 = vcmp.eq.s32.totalorder %v6246_v61, %v14503_v42  ;;  %v14508_v10 = vld [vmem:[#allocation55_spill] sm:$0xff] }
 0x2a3   :  { %14499 = vst [vmem:[#allocation27_spill] sm:$0xff] %v9966_v62  ;;  %14501 = vst [vmem:[#allocation86_spill] sm:$0xff] %v9971_v36  ;;  %vm2045_vm13 = vcmp.eq.s32.totalorder %v6255_v0, %v14503_v42  ;;  %3563 = vperm.xlu1 %5512, %v14481_v49   ;;  %v9988_v39 = vpop.permute.xlu0 %2366  ;;  %v9991_v33 = vadd.s32 %v2154_v5, %v9349_v41  ;;  %v2158_v15 = vsel %vm2062_vm9, 1, %v13664_v60  ;;  %v2160_v41 = vsel %vm2064_vm10, 1, %v13664_v60  ;;  %v14509_v5 = vld [vmem:[#allocation49_spill] sm:$0xff] }
 0x2a4   :  { %14504 = vst [vmem:[#allocation82_spill] sm:$0xff] %v9988_v39  ;;  %vm2046_vm14 = vcmp.eq.s32.totalorder %v6259_v13, %v14503_v42  ;;  %vm2068_vm15 = vcmp.eq.s32.totalorder %v6246_v61, %v14506_v34  ;;  %2768 = vperm.xlu0 %5541, %v5680_v11   ;;  %v9999_v35 = vadd.s32 %v1846_v40, %v14507_v29  ;;  %v2159_v40 = vsel %vm2063_vm11, 1, %v13664_v60  ;;  %v10025_v11 = vpop.permute.xlu1 %2363 }
 0x2a5   :  { %14505 = vst [vmem:[#allocation110_spill] sm:$0xff] %v9991_v33  ;;  %v10002_v49 = vadd.s32 %v1847_v18, %v14508_v10  ;;  %vm2069_vm0 = vcmp.eq.s32.totalorder %v6255_v0, %v14506_v34  ;;  %v10011_v39 = vadd.s32 %v1848_v22, %v14509_v5  ;;  %v2140_v18 = vsel %vm2044_vm12, 1, %v13664_v60  ;;  %14510 = vst [vmem:[#allocation43_spill] sm:$0xff] %v10025_v11  ;;  %v14514_v11 = vld [vmem:[#allocation36_spill] sm:$0xff] }
 0x2a6   :  { %v2141_v10 = vsel %vm2045_vm13, 1, %v13664_v60  ;;  %v10028_v22 = vadd.s32 %v2158_v15, %v9408_v58  ;;  %v2142_v29 = vsel %vm2046_vm14, 1, %v13664_v60  ;;  %vm2070_vm1 = vcmp.eq.s32.totalorder %v6259_v13, %v14506_v34  ;;  %v5681_v58 = vld [vmem:[#allocation2 + $0xa0] sm:$0xff]  ;;  %v14516_v34 = vld [vmem:[#allocation90_spill] sm:$0xff] }
 0x2a7   :  { %v2164_v26 = vsel %vm2068_vm15, 1, %v13664_v60  ;;  %3491 = vperm.xlu1 %5512, %v9110_v19   ;;  %v10035_v5 = vpop.permute.xlu0 %2372  ;;  %v10038_v33 = vadd.s32 %v2160_v41, %v9420_v9  ;;  %v2165_v42 = vsel %vm2069_vm0, 1, %v13664_v60  ;;  %vm2047_vm2 = vcmp.eq.s32.totalorder %v6246_v61, %v14514_v11  ;;  %v14518_v9 = vld [vmem:[#allocation63_spill] sm:$0xff] }
 0x2a8   :  { %14511 = vst [vmem:[#allocation140_spill] sm:$0xff] %v10028_v22  ;;  %14512 = vst [vmem:[#allocation48_spill] sm:$0xff] %v10035_v5  ;;  %vm2048_vm3 = vcmp.eq.s32.totalorder %v6255_v0, %v14514_v11  ;;  %2774 = vperm.xlu0 %5541, %v5681_v58   ;;  %v10046_v15 = vadd.s32 %v2159_v40, %v9411_v8  ;;  %v10049_v19 = vadd.s32 %v2140_v18, %v14516_v34  ;;  %v14517_v22 = vld [vmem:[#allocation88_spill] sm:$0xff]  ;;  %v14520_v58 = vld [vmem:[#allocation121_spill] sm:$0xff]  ;;  %v10065_v18 = vpop.permute.xlu1 %2369 }
 0x2a9   :  { %14513 = vst [vmem:[#allocation29_spill] sm:$0xff] %v10038_v33  ;;  %v10052_v5 = vadd.s32 %v2141_v10, %v14517_v22  ;;  %vm2049_vm4 = vcmp.eq.s32.totalorder %v6259_v13, %v14514_v11  ;;  %v10057_v41 = vadd.s32 %v2142_v29, %v14518_v9  ;;  %v2166_v33 = vsel %vm2070_vm1, 1, %v13664_v60  ;;  %v3961_v8 = vld [vmem:[#allocation5] sm:$0xff]  ;;  %v3962_v40 = vld [vmem:[#allocation5 + $0x8] sm:$0xff]  ;;  %14521 = vst [vmem:[#allocation31_spill] sm:$0xff] %v10065_v18 }
 0x2aa   :  { %14515 = vst [vmem:[#allocation91_spill] sm:$0xff] %v10046_v15  ;;  %v10061_v36 = vadd.s32 %v2164_v26, %v9460_v14  ;;  %vm2074_vm5 = vcmp.eq.s32.totalorder %v6246_v61, %v14520_v58  ;;  %v10068_v10 = vadd.s32 %v2165_v42, %v9463_v23  ;;  %v2143_v22 = vsel %vm2047_vm2, 1, %v13664_v60  ;;  %v14524_v23 = vld [vmem:[#allocation92_spill] sm:$0xff]  ;;  %v10101_v15 = vld [vmem:[#allocation2 + $0xb0] sm:$0xff] }
 0x2ab   :  { %v2144_v14 = vsel %vm2048_vm3, 1, %v13664_v60  ;;  %5514 = vset.pattern.permute.xlu1 %v14291_v48  ;;  %v10079_v29 = vpop.permute.xlu0 %2378  ;;  %v2145_v26 = vsel %vm2049_vm4, 1, %v13664_v60  ;;  %vm2075_vm6 = vcmp.eq.s32.totalorder %v6255_v0, %v14520_v58  ;;  %vm2076_vm7 = vcmp.eq.s32.totalorder %v6259_v13, %v14520_v58  ;;  %v10098_v9 = vld [vmem:[#allocation2 + $0xe8] sm:$0xff] }
 0x2ac   :  { %14519 = vst [vmem:[#allocation131_spill] sm:$0xff] %v10061_v36  ;;  %14522 = vst [vmem:[#allocation38_spill] sm:$0xff] %v10068_v10  ;;  %vm2053_vm8 = vcmp.eq.s32.totalorder %v6246_v61, %v14524_v23  ;;  %v13575_v42 = vmov 0.0|0.0   ;;  %v2170_v11 = vsel %vm2074_vm5, 1, %v13664_v60  ;;  %vm2054_vm9 = vcmp.eq.s32.totalorder %v6255_v0, %v14524_v23  ;;  %2417 = vperm.xlu1 %5514, %v10098_v9   ;;  %2780 = vperm.xlu0 %5541, %v10101_v15   ;;  %v14526_v10 = vld [vmem:[#allocation56_spill] sm:$0xff]  ;;  %v10115_v36 = vpop.permute.xlu1 %2375 }
 0x2ad   :  { %14523 = vst [vmem:[#allocation42_spill] sm:$0xff] %v10079_v29  ;;  %5432 = vmatprep.subr.bf16.mxu1 %v13575_v42  ;;  %5376 = vmatprep.subr.bf16.mxu0 %v13575_v42  ;;  %vm2055_vm10 = vcmp.eq.s32.totalorder %v6259_v13, %v14524_v23  ;;  %v5377_v34 = vpack.c.bf16 %v3962_v40, %v3961_v8  ;;  %v3963_v8 = vld [vmem:[#allocation5 + $0x10] sm:$0xff]  ;;  %v3964_v40 = vld [vmem:[#allocation5 + $0x18] sm:$0xff]  ;;  %14527 = vst [vmem:[#allocation117_spill] sm:$0xff] %v10115_v36  ;;  %v2150_v58 = vsel %vm2054_vm9, 1, %v13664_v60 }
 0x2ae   :  { %v10105_v42 = vadd.s32 %v2166_v33, %v9470_v47  ;;  %v10108_v29 = vadd.s32 %v2143_v22, %v9256_v17  ;;  %v10111_v18 = vadd.s32 %v2144_v14, %v9259_v28  ;;  %vm2080_vm11 = vcmp.eq.s32.totalorder %v6246_v61, %v14526_v10  ;;  %v10171_v36 = vld [vmem:[#allocation2 + $0x20] sm:$0xff] }
 0x2af   :  { %v10118_v62 = vadd.s32 %v2145_v26, %v9266_v43  ;;  %v2171_v47 = vsel %vm2075_vm6, 1, %v13664_v60  ;;  %v2172_v17 = vsel %vm2076_vm7, 1, %v13664_v60  ;;  %vm2081_vm12 = vcmp.eq.s32.totalorder %v6255_v0, %v14526_v10  ;;  %5448 = vmatpush1.bf16.msra.mxu1 %v5377_v34  ;;  %5378 = vmatpush1.bf16.msra.mxu0 %v5377_v34  ;;  %v10130_v28 = vpop.permute.xlu0 %2384  ;;  %v14531_v26 = vld [vmem:[#allocation30_spill] sm:$0xff]  ;;  %v14533_v34 = vld [vmem:[#allocation101_spill] sm:$0xff] }
 0x2b0   :  { %14525 = vst [vmem:[#allocation103_spill] sm:$0xff] %v10105_v42  ;;  %14528 = vst [vmem:[#allocation81_spill] sm:$0xff] %v10130_v28  ;;  %v10133_v43 = vadd.s32 %v2170_v11, %v9509_v52  ;;  %v2149_v33 = vsel %vm2053_vm8, 1, %v13664_v60  ;;  %v2151_v22 = vsel %vm2055_vm10, 1, %v13664_v60  ;;  %v14530_v14 = vmov 0.0|0.0   ;;  %5515 = vset.pattern.permute.xlu1 %v14306_v56  ;;  %5553 = vset.pattern.permute.xlu0 %v14360_v30  ;;  %v14539_v42 = vld [vmem:[#allocation75_spill] sm:$0xff] }
 0x2b1   :  { %5433 = vmatprep.subr.bf16.mxu1 %v14530_v14  ;;  %5379 = vmatprep.subr.bf16.mxu0 %v14530_v14  ;;  %vm2082_vm13 = vcmp.eq.s32.totalorder %v6259_v13, %v14526_v10  ;;  %v2176_v52 = vsel %vm2080_vm11, 1, %v13664_v60  ;;  %vm2059_vm14 = vcmp.eq.s32.totalorder %v6246_v61, %v14531_v26  ;;  %v5380_v11 = vpack.c.bf16 %v3964_v40, %v3963_v8  ;;  %v10174_v8 = vpop.permute.xlu1 %2381  ;;  %v14536_v40 = vld [vmem:[#allocation71_spill] sm:$0xff] }
 0x2b2   :  { %14529 = vst [vmem:[#allocation53_spill] sm:$0xff] %v10133_v43  ;;  %v10160_v23 = vadd.s32 %v2172_v17, %v9521_v2  ;;  %v10163_v43 = vadd.s32 %v2171_v47, %v14533_v34  ;;  %v2177_v28 = vsel %vm2081_vm12, 1, %v13664_v60  ;;  %vm2060_vm15 = vcmp.eq.s32.totalorder %v6255_v0, %v14531_v26  ;;  %3110 = vperm.xlu1 %5515, %v10171_v36   ;;  %v14537_v17 = vld [vmem:[#allocation114_spill] sm:$0xff]  ;;  %v3965_v34 = vld [vmem:[#allocation5 + $0x20] sm:$0xff] }
 0x2b3   :  { %14535 = vst [vmem:[#allocation61_spill] sm:$0xff] %v10174_v8  ;;  %v10177_v2 = vadd.s32 %v2149_v33, %v14536_v40  ;;  %v10180_v47 = vadd.s32 %v2150_v58, %v14537_v17  ;;  %vm2061_vm0 = vcmp.eq.s32.totalorder %v6259_v13, %v14531_v26  ;;  %5449 = vmatpush1.bf16.msra.mxu1 %v5380_v11  ;;  %v2178_v33 = vsel %vm2082_vm13, 1, %v13664_v60  ;;  %v3967_v26 = vld [vmem:[#allocation5 + $0x30] sm:$0xff]  ;;  %v3968_v17 = vld [vmem:[#allocation5 + $0x38] sm:$0xff] }
 0x2b4   :  { %14532 = vst [vmem:[#allocation141_spill] sm:$0xff] %v10160_v23  ;;  %14534 = vst [vmem:[#allocation69_spill] sm:$0xff] %v10163_v43  ;;  %5381 = vmatpush1.bf16.msra.mxu0 %v5380_v11  ;;  %v3966_v43 = vld [vmem:[#allocation5 + $0x28] sm:$0xff]  ;;  %v10184_v23 = vpop.permute.xlu0 %2390  ;;  %v10187_v53 = vadd.s32 %v2151_v22, %v14539_v42  ;;  %v10190_v8 = vadd.s32 %v2176_v52, %v9556_v59  ;;  %v2155_v58 = vsel %vm2059_vm14, 1, %v13664_v60  ;;  %5434 = vmatprep.subr.bf16.mxu1 %v14530_v14 }
 0x2b5   :  { %14538 = vst [vmem:[#allocation135_spill] sm:$0xff] %v10184_v23  ;;  %5382 = vmatprep.subr.bf16.mxu0 %v14530_v14  ;;  %v10203_v42 = vadd.s32 %v2177_v28, %v9559_v37  ;;  %v2156_v59 = vsel %vm2060_vm15, 1, %v13664_v60  ;;  %v14543_v22 = vld [vmem:[#allocation85_spill] sm:$0xff]  ;;  %3527 = vperm.xlu0 %5553, %v9905_v16   ;;  %v2157_v10 = vsel %vm2061_vm0, 1, %v13664_v60  ;;  %v14544_v37 = vld [vmem:[#allocation139_spill] sm:$0xff]  ;;  %v5383_v28 = vpack.c.bf16 %v3966_v43, %v3965_v34  ;;  %v10223_v52 = vpop.permute.xlu1 %2387  ;;  %v14550_v34 = vld [vmem:[#allocation126_spill] sm:$0xff] }
 0x2b6   :  { %14540 = vst [vmem:[#allocation72_spill] sm:$0xff] %v10187_v53  ;;  %14541 = vst [vmem:[#allocation40_spill] sm:$0xff] %v10190_v8  ;;  %vm2086_vm1 = vcmp.eq.s32.totalorder %v6246_v61, %v14543_v22  ;;  %vm2087_vm2 = vcmp.eq.s32.totalorder %v6255_v0, %v14543_v22  ;;  %vm2088_vm3 = vcmp.eq.s32.totalorder %v6259_v13, %v14543_v22  ;;  %5516 = vset.pattern.permute.xlu1 %v14276_v20  ;;  %v14547_v16 = vld [vmem:[#allocation57_spill] sm:$0xff] }
 0x2b7   :  { %14542 = vst [vmem:[#allocation84_spill] sm:$0xff] %v10203_v42  ;;  %vm2065_vm4 = vcmp.eq.s32.totalorder %v6246_v61, %v14544_v37  ;;  %14545 = vst [vmem:[#allocation41_spill] sm:$0xff] %v10223_v52  ;;  %v10226_v11 = vadd.s32 %v2178_v33, %v9569_v25  ;;  %v10229_v40 = vadd.s32 %v2155_v58, %v14547_v16  ;;  %2801 = vperm.xlu1 %5516, %v10098_v9   ;;  %v14552_v58 = vld [vmem:[#allocation118_spill] sm:$0xff]  ;;  %v14553_v16 = vld [vmem:[#allocation65_spill] sm:$0xff] }
 0x2b8   :  { %vm2066_vm5 = vcmp.eq.s32.totalorder %v6255_v0, %v14544_v37  ;;  %vm2067_vm6 = vcmp.eq.s32.totalorder %v6259_v13, %v14544_v37  ;;  %v10236_v43 = vpop.permute.xlu0 %2396  ;;  %v10239_v52 = vadd.s32 %v2156_v59, %v14550_v34  ;;  %v2182_v25 = vsel %vm2086_vm1, 1, %v13664_v60  ;;  %5450 = vmatpush1.bf16.msra.mxu1 %v5383_v28  ;;  %5384 = vmatpush1.bf16.msra.mxu0 %v5383_v28  ;;  %v3970_v23 = vld [vmem:[#allocation5 + $0x48] sm:$0xff] }
 0x2b9   :  { %14546 = vst [vmem:[#allocation142_spill] sm:$0xff] %v10226_v11  ;;  %14548 = vst [vmem:[#allocation16_spill] sm:$0xff] %v10229_v40  ;;  %v2183_v33 = vsel %vm2087_vm2, 1, %v13664_v60  ;;  %vm2092_vm7 = vcmp.eq.s32.totalorder %v6246_v61, %v14552_v58  ;;  %v2184_v59 = vsel %vm2088_vm3, 1, %v13664_v60  ;;  %v2161_v34 = vsel %vm2065_vm4, 1, %v13664_v60  ;;  %5435 = vmatprep.subr.bf16.mxu1 %v14530_v14  ;;  %5385 = vmatprep.subr.bf16.mxu0 %v14530_v14  ;;  %v5685_v11 = vld [vmem:[#allocation2 + $0x88] sm:$0xff] }
 0x2ba   :  { %14549 = vst [vmem:[#allocation95_spill] sm:$0xff] %v10236_v43  ;;  %14551 = vst [vmem:[#allocation55_spill] sm:$0xff] %v10239_v52  ;;  %v10252_v43 = vadd.s32 %v2157_v10, %v14553_v16  ;;  %vm2093_vm8 = vcmp.eq.s32.totalorder %v6255_v0, %v14552_v58  ;;  %v2162_v10 = vsel %vm2066_vm5, 1, %v13664_v60  ;;  %v2163_v22 = vsel %vm2067_vm6, 1, %v13664_v60  ;;  %v3969_v16 = vld [vmem:[#allocation5 + $0x40] sm:$0xff]  ;;  %3533 = vperm.xlu0 %5553, %v5685_v11   ;;  %v14556_v8 = vld [vmem:[#allocation109_spill] sm:$0xff] }
 0x2bb   :  { %vm2094_vm9 = vcmp.eq.s32.totalorder %v6259_v13, %v14552_v58  ;;  %v5386_v28 = vpack.c.bf16 %v3968_v17, %v3967_v26  ;;  %v10277_v42 = vadd.s32 %v2182_v25, %v9612_v31  ;;  %v2188_v37 = vsel %vm2092_vm7, 1, %v13664_v60  ;;  %v14558_v52 = vld [vmem:[#allocation45_spill] sm:$0xff]  ;;  %v10289_v26 = vpop.permute.xlu1 %2393  ;;  %v14562_v11 = vld [vmem:[#allocation94_spill] sm:$0xff] }
 0x2bc   :  { %14554 = vst [vmem:[#allocation49_spill] sm:$0xff] %v10252_v43  ;;  %v10280_v43 = vadd.s32 %v2183_v33, %v14556_v8  ;;  %vm2071_vm10 = vcmp.eq.s32.totalorder %v6246_v61, %v14558_v52  ;;  %v14559_v40 = vld [vmem:[#allocation89_spill] sm:$0xff]  ;;  %14560 = vst [vmem:[#allocation88_spill] sm:$0xff] %v10289_v26  ;;  %v10291_v17 = vpop.permute.xlu0 %2402  ;;  %v10294_v31 = vadd.s32 %v2184_v59, %v14562_v11  ;;  %v14564_v25 = vld [vmem:[#allocation22_spill] sm:$0xff]  ;;  %v2189_v33 = vsel %vm2093_vm8, 1, %v13664_v60 }
 0x2bd   :  { %14555 = vst [vmem:[#allocation36_spill] sm:$0xff] %v10277_v42  ;;  %2729 = vperm.xlu1 %5516, %v14559_v40   ;;  %14561 = vst [vmem:[#allocation63_spill] sm:$0xff] %v10291_v17  ;;  %v10297_v8 = vadd.s32 %v2161_v34, %v14564_v25  ;;  %vm2072_vm11 = vcmp.eq.s32.totalorder %v6255_v0, %v14558_v52  ;;  %5451 = vmatpush1.bf16.msra.mxu1 %v5386_v28  ;;  %v14566_v26 = vld [vmem:[#allocation66_spill] sm:$0xff]  ;;  %v2190_v59 = vsel %vm2094_vm9, 1, %v13664_v60  ;;  %v14568_v58 = vld [vmem:[#allocation37_spill] sm:$0xff] }
 0x2be   :  { %14557 = vst [vmem:[#allocation90_spill] sm:$0xff] %v10280_v43  ;;  %14563 = vst [vmem:[#allocation121_spill] sm:$0xff] %v10294_v31  ;;  %5387 = vmatpush1.bf16.msra.mxu0 %v5386_v28  ;;  %v14565_v43 = vld [vmem:[#allocation96_spill] sm:$0xff]  ;;  %v10309_v53 = vadd.s32 %v2162_v10, %v14566_v26  ;;  %5436 = vmatprep.subr.bf16.mxu1 %v14530_v14  ;;  %v5389_v34 = vpack.c.bf16 %v3970_v23, %v3969_v16  ;;  %v3971_v11 = vld [vmem:[#allocation5 + $0x50] sm:$0xff] }
 0x2bf   :  { %v10306_v42 = vadd.s32 %v2163_v22, %v14565_v43  ;;  %5388 = vmatprep.subr.bf16.mxu0 %v14530_v14  ;;  %v3972_v25 = vld [vmem:[#allocation5 + $0x58] sm:$0xff]  ;;  %v10318_v28 = vadd.s32 %v2188_v37, %v9663_v63  ;;  %vm2073_vm12 = vcmp.eq.s32.totalorder %v6259_v13, %v14558_v52  ;;  %v2167_v43 = vsel %vm2071_vm10, 1, %v13664_v60 }
 0x2c0   :  { %vm2098_vm13 = vcmp.eq.s32.totalorder %v6246_v61, %v14568_v58  ;;  %v5686_v10 = vld [vmem:[#allocation2 + $0x98] sm:$0xff]  ;;  %v10329_v23 = vadd.s32 %v2189_v33, %v9666_v45  ;;  %v2168_v63 = vsel %vm2072_vm11, 1, %v13664_v60  ;;  %vm2099_vm14 = vcmp.eq.s32.totalorder %v6255_v0, %v14568_v58  ;;  %v10340_v22 = vpop.permute.xlu0 %2411 }
 0x2c1   :  { %14567 = vst [vmem:[#allocation92_spill] sm:$0xff] %v10318_v28  ;;  %3539 = vperm.xlu0 %5553, %v5686_v10   ;;  %vm2100_vm15 = vcmp.eq.s32.totalorder %v6259_v13, %v14568_v58  ;;  %5517 = vset.pattern.permute.xlu1 %v14360_v30  ;;  %14570 = vst [vmem:[#allocation30_spill] sm:$0xff] %v10340_v22  ;;  %v14571_v16 = vld [vmem:[#allocation50_spill] sm:$0xff]  ;;  %v5392_v45 = vpack.c.bf16 %v3972_v25, %v3971_v11  ;;  %v2169_v26 = vsel %vm2073_vm12, 1, %v13664_v60 }
 0x2c2   :  { %14569 = vst [vmem:[#allocation56_spill] sm:$0xff] %v10329_v23  ;;  %vm2077_vm0 = vcmp.eq.s32.totalorder %v6246_v61, %v14571_v16  ;;  %vm2078_vm1 = vcmp.eq.s32.totalorder %v6255_v0, %v14571_v16  ;;  %5452 = vmatpush1.bf16.msra.mxu1 %v5389_v34  ;;  %5390 = vmatpush1.bf16.msra.mxu0 %v5389_v34  ;;  %v14573_v33 = vld [vmem:[#allocation130_spill] sm:$0xff]  ;;  %v2194_v23 = vsel %vm2098_vm13, 1, %v13664_v60  ;;  %v3973_v34 = vld [vmem:[#allocation5 + $0x60] sm:$0xff]  ;;  %v2195_v52 = vsel %vm2099_vm14, 1, %v13664_v60 }
 0x2c3   :  { %v10347_v37 = vadd.s32 %v2190_v59, %v9672_v38  ;;  %v10354_v10 = vadd.s32 %v2167_v43, %v14573_v33  ;;  %5437 = vmatprep.subr.bf16.mxu1 %v14530_v14  ;;  %5391 = vmatprep.subr.bf16.mxu0 %v14530_v14  ;;  %v3974_v38 = vld [vmem:[#allocation5 + $0x68] sm:$0xff]  ;;  %v10362_v59 = vpop.permute.xlu1 %2399  ;;  %v14576_v11 = vld [vmem:[#allocation70_spill] sm:$0xff]  ;;  %vm2079_vm2 = vcmp.eq.s32.totalorder %v6259_v13, %v14571_v16 }
 0x2c4   :  { %14575 = vst [vmem:[#allocation114_spill] sm:$0xff] %v10362_v59  ;;  %v10365_v25 = vadd.s32 %v2168_v63, %v14576_v11  ;;  %v14578_v43 = vld [vmem:[#allocation18_spill] sm:$0xff]  ;;  %3494 = vperm.xlu1 %5517, %v10171_v36   ;;  %v5687_v33 = vld [vmem:[#allocation2 + $0xa8] sm:$0xff]  ;;  %v2196_v63 = vsel %vm2100_vm15, 1, %v13664_v60  ;;  %v2173_v11 = vsel %vm2077_vm0, 1, %v13664_v60  ;;  %v10390_v36 = vpop.permute.xlu0 %2420  ;;  %v10396_v58 = vadd.s32 %v2194_v23, %v9708_v44 }
 0x2c5   :  { %14572 = vst [vmem:[#allocation101_spill] sm:$0xff] %v10347_v37  ;;  %14574 = vst [vmem:[#allocation71_spill] sm:$0xff] %v10354_v10  ;;  %vm2104_vm3 = vcmp.eq.s32.totalorder %v6246_v61, %v14578_v43  ;;  %3545 = vperm.xlu0 %5553, %v5687_v33   ;;  %v2174_v37 = vsel %vm2078_vm1, 1, %v13664_v60  ;;  %vm2105_vm4 = vcmp.eq.s32.totalorder %v6255_v0, %v14578_v43  ;;  %v14580_v33 = vld [vmem:[#allocation24_spill] sm:$0xff]  ;;  %v2175_v10 = vsel %vm2079_vm2, 1, %v13664_v60  ;;  %v3975_v23 = vld [vmem:[#allocation5 + $0x70] sm:$0xff] }
 0x2c6   :  { %14577 = vst [vmem:[#allocation75_spill] sm:$0xff] %v10365_v25  ;;  %14579 = vst [vmem:[#allocation85_spill] sm:$0xff] %v10390_v36  ;;  %v10393_v28 = vadd.s32 %v2169_v26, %v14580_v33  ;;  %5453 = vmatpush1.bf16.msra.mxu1 %v5392_v45  ;;  %5393 = vmatpush1.bf16.msra.mxu0 %v5392_v45  ;;  %v5395_v31 = vpack.c.bf16 %v3974_v38, %v3973_v34  ;;  %v2200_v44 = vsel %vm2104_vm3, 1, %v13664_v60  ;;  %v3976_v45 = vld [vmem:[#allocation5 + $0x78] sm:$0xff]  ;;  %v14585_v26 = vld [vmem:[#allocation128_spill] sm:$0xff] }
 0x2c7   :  { %14582 = vst [vmem:[#allocation57_spill] sm:$0xff] %v10396_v58  ;;  %v10399_v59 = vadd.s32 %v2195_v52, %v9711_v1  ;;  %vm2106_vm5 = vcmp.eq.s32.totalorder %v6259_v13, %v14578_v43  ;;  %5438 = vmatprep.subr.bf16.mxu1 %v14530_v14  ;;  %v10413_v1 = vadd.s32 %v2196_v63, %v9721_v4  ;;  %v14586_v16 = vld [vmem:[#allocation21_spill] sm:$0xff]  ;;  %v2201_v52 = vsel %vm2105_vm4, 1, %v13664_v60  ;;  %v14587_v33 = vld [vmem:[#allocation51_spill] sm:$0xff]  ;;  %v10434_v4 = vpop.permute.xlu1 %2786 }
 0x2c8   :  { %14581 = vst [vmem:[#allocation139_spill] sm:$0xff] %v10393_v28  ;;  %v10416_v34 = vadd.s32 %v2173_v11, %v14585_v26  ;;  %v10419_v38 = vadd.s32 %v2174_v37, %v14586_v16  ;;  %5394 = vmatprep.subr.bf16.mxu0 %v14530_v14  ;;  %5519 = vset.pattern.permute.xlu1 %v14306_v56  ;;  %14588 = vst [vmem:[#allocation65_spill] sm:$0xff] %v10434_v4  ;;  %v14589_v37 = vld [vmem:[#allocation122_spill] sm:$0xff]  ;;  %v2202_v11 = vsel %vm2106_vm5, 1, %v13664_v60 }
 0x2c9   :  { %14583 = vst [vmem:[#allocation126_spill] sm:$0xff] %v10399_v59  ;;  %14584 = vst [vmem:[#allocation118_spill] sm:$0xff] %v10413_v1  ;;  %vm2083_vm6 = vcmp.eq.s32.totalorder %v6246_v61, %v14587_v33  ;;  %vm2084_vm7 = vcmp.eq.s32.totalorder %v6255_v0, %v14587_v33  ;;  %vm2085_vm8 = vcmp.eq.s32.totalorder %v6259_v13, %v14587_v33  ;;  %3185 = vperm.xlu1 %5519, %v10098_v9   ;;  %v14592_v59 = vld [vmem:[#allocation83_spill] sm:$0xff] }
 0x2ca   :  { %3548 = vperm.xlu0 %5553, %v10101_v15   ;;  %v10438_v63 = vadd.s32 %v2175_v10, %v14589_v37  ;;  %v10445_v26 = vadd.s32 %v2200_v44, %v9756_v6  ;;  %5454 = vmatpush1.bf16.msra.mxu1 %v5395_v31  ;;  %v5398_v16 = vpack.c.bf16 %v3976_v45, %v3975_v23  ;;  %v3977_v15 = vld [vmem:[#allocation5 + $0x80] sm:$0xff]  ;;  %v3978_v10 = vld [vmem:[#allocation5 + $0x88] sm:$0xff]  ;;  %v10456_v6 = vpop.permute.xlu0 %3098  ;;  %v2181_v43 = vsel %vm2085_vm8, 1, %v13664_v60  ;;  %v3980_v28 = vld [vmem:[#allocation5 + $0x98] sm:$0xff] }
 0x2cb   :  { %5396 = vmatpush1.bf16.msra.mxu0 %v5395_v31  ;;  %v10448_v1 = vadd.s32 %v2201_v52, %v9759_v57  ;;  %vm2110_vm9 = vcmp.eq.s32.totalorder %v6246_v61, %v14592_v59  ;;  %vm2111_vm10 = vcmp.eq.s32.totalorder %v6255_v0, %v14592_v59  ;;  %5439 = vmatprep.subr.bf16.mxu1 %v14530_v14  ;;  %v2179_v57 = vsel %vm2083_vm6, 1, %v13664_v60  ;;  %v14594_v23 = vld [vmem:[#allocation39_spill] sm:$0xff]  ;;  %v14595_v52 = vld [vmem:[#allocation32_spill] sm:$0xff]  ;;  %v10504_v25 = vpop.permute.xlu1 %2405 }
 0x2cc   :  { %14590 = vst [vmem:[#allocation109_spill] sm:$0xff] %v10445_v26  ;;  %5397 = vmatprep.subr.bf16.mxu0 %v14530_v14  ;;  %v2180_v31 = vsel %vm2084_vm7, 1, %v13664_v60  ;;  %vm2112_vm11 = vcmp.eq.s32.totalorder %v6259_v13, %v14592_v59  ;;  %v10473_v44 = vadd.s32 %v2202_v11, %v9769_v54  ;;  %vm2089_vm12 = vcmp.eq.s32.totalorder %v6246_v61, %v14594_v23  ;;  %v14596_v37 = vld [vmem:[#allocation44_spill] sm:$0xff]  ;;  %v3979_v59 = vld [vmem:[#allocation5 + $0x90] sm:$0xff] }
 0x2cd   :  { %14591 = vst [vmem:[#allocation45_spill] sm:$0xff] %v10448_v1  ;;  %vm2090_vm13 = vcmp.eq.s32.totalorder %v6255_v0, %v14594_v23  ;;  %vm2091_vm14 = vcmp.eq.s32.totalorder %v6259_v13, %v14594_v23  ;;  %3113 = vperm.xlu1 %5519, %v14559_v40   ;;  %v2206_v45 = vsel %vm2110_vm9, 1, %v13664_v60  ;;  %v2207_v54 = vsel %vm2111_vm10, 1, %v13664_v60  ;;  %v14598_v40 = vld [vmem:[#allocation104_spill] sm:$0xff]  ;;  %14602 = vst [vmem:[#allocation66_spill] sm:$0xff] %v10504_v25  ;;  %v14606_v23 = vld [vmem:[#allocation98_spill] sm:$0xff] }
 0x2ce   :  { %14593 = vst [vmem:[#allocation89_spill] sm:$0xff] %v10473_v44  ;;  %vm2116_vm15 = vcmp.eq.s32.totalorder %v6246_v61, %v14595_v52  ;;  %5455 = vmatpush1.bf16.msra.mxu1 %v5398_v16  ;;  %v5401_v33 = vpack.c.bf16 %v3978_v10, %v3977_v15  ;;  %v10493_v11 = vadd.s32 %v2179_v57, %v14596_v37  ;;  %v14600_v44 = vld [vmem:[#allocation80_spill] sm:$0xff]  ;;  %v2208_v58 = vsel %vm2112_vm11, 1, %v13664_v60 }
 0x2cf   :  { %5399 = vmatpush1.bf16.msra.mxu0 %v5398_v16  ;;  %v10496_v26 = vadd.s32 %v2180_v31, %v14598_v40  ;;  %v10499_v1 = vadd.s32 %v2181_v43, %v14600_v44  ;;  %5440 = vmatprep.subr.bf16.mxu1 %v14530_v14  ;;  %v10506_v16 = vpop.permute.xlu0 %3173  ;;  %v2185_v15 = vsel %vm2089_vm12, 1, %v13664_v60  ;;  %v2186_v10 = vsel %vm2090_vm13, 1, %v13664_v60  ;;  %v14608_v40 = vld [vmem:[#allocation120_spill] sm:$0xff] }
 0x2d0   :  { %14597 = vst [vmem:[#allocation94_spill] sm:$0xff] %v10493_v11  ;;  %5400 = vmatprep.subr.bf16.mxu0 %v14530_v14  ;;  %14603 = vst [vmem:[#allocation37_spill] sm:$0xff] %v10506_v16  ;;  %v2187_v57 = vsel %vm2091_vm14, 1, %v13664_v60  ;;  %vm2117_vm0 = vcmp.eq.s32.totalorder %v6255_v0, %v14595_v52  ;;  %v10523_v31 = vadd.s32 %v2206_v45, %v9804_v27  ;;  %v2212_v44 = vsel %vm2116_vm15, 1, %v13664_v60  ;;  %v14609_v27 = vld [vmem:[#allocation60_spill] sm:$0xff] }
 0x2d1   :  { %14599 = vst [vmem:[#allocation22_spill] sm:$0xff] %v10496_v26  ;;  %14601 = vst [vmem:[#allocation96_spill] sm:$0xff] %v10499_v1  ;;  %v10526_v43 = vadd.s32 %v2207_v54, %v9807_v7  ;;  %vm2118_vm1 = vcmp.eq.s32.totalorder %v6259_v13, %v14595_v52  ;;  %5520 = vset.pattern.permute.xlu1 %v14360_v30  ;;  %v10536_v37 = vadd.s32 %v2208_v58, %v14606_v23  ;;  %v14611_v54 = vld [vmem:[#allocation115_spill] sm:$0xff]  ;;  %v3982_v23 = vld [vmem:[#allocation5 + $0xa8] sm:$0xff] }
 0x2d2   :  { %14604 = vst [vmem:[#allocation50_spill] sm:$0xff] %v10523_v31  ;;  %vm2095_vm2 = vcmp.eq.s32.totalorder %v6246_v61, %v14608_v40  ;;  %5456 = vmatpush1.bf16.msra.mxu1 %v5401_v33  ;;  %v5404_v7 = vpack.c.bf16 %v3980_v28, %v3979_v59  ;;  %v10541_v45 = vadd.s32 %v2185_v15, %v14609_v27  ;;  %v14613_v31 = vld [vmem:[#allocation119_spill] sm:$0xff]  ;;  %v2213_v1 = vsel %vm2117_vm0, 1, %v13664_v60  ;;  %v14615_v59 = vld [vmem:[#allocation93_spill] sm:$0xff] }
 0x2d3   :  { %14605 = vst [vmem:[#allocation130_spill] sm:$0xff] %v10526_v43  ;;  %14607 = vst [vmem:[#allocation70_spill] sm:$0xff] %v10536_v37  ;;  %5402 = vmatpush1.bf16.msra.mxu0 %v5401_v33  ;;  %v10544_v43 = vadd.s32 %v2186_v10, %v14611_v54  ;;  %v10547_v36 = vadd.s32 %v2187_v57, %v14613_v31  ;;  %5441 = vmatprep.subr.bf16.mxu1 %v14530_v14  ;;  %v3981_v58 = vld [vmem:[#allocation5 + $0xa0] sm:$0xff]  ;;  %v10552_v37 = vpop.permute.xlu0 %3107  ;;  %v2214_v28 = vsel %vm2118_vm1, 1, %v13664_v60  ;;  %v3984_v27 = vld [vmem:[#allocation5 + $0xb8] sm:$0xff] }
 0x2d4   :  { %14610 = vst [vmem:[#allocation18_spill] sm:$0xff] %v10541_v45  ;;  %3569 = vperm.xlu1 %5520, %v10098_v9   ;;  %v10559_v33 = vadd.s32 %v2212_v44, %v9849_v32  ;;  %vm2096_vm3 = vcmp.eq.s32.totalorder %v6255_v0, %v14608_v40  ;;  %vm2097_vm4 = vcmp.eq.s32.totalorder %v6259_v13, %v14608_v40  ;;  %v2191_v9 = vsel %vm2095_vm2, 1, %v13664_v60  ;;  %v10576_v32 = vpop.permute.xlu1 %3170  ;;  %v14617_v52 = vld [vmem:[#allocation19_spill] sm:$0xff]  ;;  %v3983_v44 = vld [vmem:[#allocation5 + $0xb0] sm:$0xff] }
 0x2d5   :  { %14612 = vst [vmem:[#allocation24_spill] sm:$0xff] %v10544_v43  ;;  %14614 = vst [vmem:[#allocation128_spill] sm:$0xff] %v10547_v36  ;;  %5403 = vmatprep.subr.bf16.mxu0 %v14530_v14  ;;  %vm2122_vm5 = vcmp.eq.s32.totalorder %v6246_v61, %v14615_v59  ;;  %vm2123_vm6 = vcmp.eq.s32.totalorder %v6255_v0, %v14615_v59  ;;  %vm2124_vm7 = vcmp.eq.s32.totalorder %v6259_v13, %v14615_v59  ;;  %v14621_v54 = vld [vmem:[#allocation54_spill] sm:$0xff]  ;;  %v14625_v45 = vld [vmem:[#allocation113_spill] sm:$0xff] }
 0x2d6   :  { %14616 = vst [vmem:[#allocation21_spill] sm:$0xff] %v10576_v32  ;;  %vm2101_vm8 = vcmp.eq.s32.totalorder %v6246_v61, %v14617_v52  ;;  %vm2102_vm9 = vcmp.eq.s32.totalorder %v6255_v0, %v14617_v52  ;;  %5457 = vmatpush1.bf16.msra.mxu1 %v5404_v7  ;;  %v5407_v15 = vpack.c.bf16 %v3982_v23, %v3981_v58  ;;  %v2192_v31 = vsel %vm2096_vm3, 1, %v13664_v60  ;;  %v10606_v58 = vld [vmem:[#allocation2 + $0x30] sm:$0xff] }
 0x2d7   :  { %5405 = vmatpush1.bf16.msra.mxu0 %v5404_v7  ;;  %v10583_v10 = vadd.s32 %v2213_v1, %v9852_v12  ;;  %v10586_v57 = vadd.s32 %v2214_v28, %v9859_v21  ;;  %vm2103_vm10 = vcmp.eq.s32.totalorder %v6259_v13, %v14617_v52  ;;  %5442 = vmatprep.subr.bf16.mxu1 %v14530_v14  ;;  %v2193_v12 = vsel %vm2097_vm4, 1, %v13664_v60  ;;  %v14619_v1 = vld [vmem:[#allocation102_spill] sm:$0xff]  ;;  %v10610_v23 = vpop.permute.xlu0 %3182 }
 0x2d8   :  { %5521 = vset.pattern.permute.xlu1 %v14276_v20  ;;  %v10598_v7 = vadd.s32 %v2191_v9, %v14619_v1  ;;  %v2218_v21 = vsel %vm2122_vm5, 1, %v13664_v60  ;;  %vm2128_vm11 = vcmp.eq.s32.totalorder %v6246_v61, %v14621_v54  ;;  %5406 = vmatprep.subr.bf16.mxu0 %v14530_v14  ;;  %14622 = vst [vmem:[#allocation83_spill] sm:$0xff] %v10610_v23  ;;  %v2219_v40 = vsel %vm2123_vm6, 1, %v13664_v60 }
 0x2d9   :  { %14618 = vst [vmem:[#allocation51_spill] sm:$0xff] %v10586_v57  ;;  %2732 = vperm.xlu1 %5521, %v10606_v58   ;;  %v2220_v28 = vsel %vm2124_vm7, 1, %v13664_v60  ;;  %v2197_v9 = vsel %vm2101_vm8, 1, %v13664_v60  ;;  %v2198_v1 = vsel %vm2102_vm9, 1, %v13664_v60  ;;  %v2199_v43 = vsel %vm2103_vm10, 1, %v13664_v60 }
 0x2da   :  { %14620 = vst [vmem:[#allocation122_spill] sm:$0xff] %v10598_v7  ;;  %v14623_v7 = vld [vmem:[#allocation26_spill] sm:$0xff]  ;;  %vm2129_vm12 = vcmp.eq.s32.totalorder %v6255_v0, %v14621_v54  ;;  %5458 = vmatpush1.bf16.msra.mxu1 %v5407_v15  ;;  %v5410_v59 = vpack.c.bf16 %v3984_v27, %v3983_v44  ;;  %v10638_v57 = vadd.s32 %v2193_v12, %v14625_v45  ;;  %v2224_v52 = vsel %vm2128_vm11, 1, %v13664_v60  ;;  %v10651_v44 = vpop.permute.xlu1 %2789 }
 0x2db   :  { %v10629_v36 = vadd.s32 %v2192_v31, %v14623_v7  ;;  %5408 = vmatpush1.bf16.msra.mxu0 %v5407_v15  ;;  %v10641_v26 = vadd.s32 %v2218_v21, %v9897_v51  ;;  %vm2130_vm13 = vcmp.eq.s32.totalorder %v6259_v13, %v14621_v54  ;;  %5443 = vmatprep.subr.bf16.mxu1 %v14530_v14  ;;  %v3985_v15 = vld [vmem:[#allocation5 + $0xc0] sm:$0xff]  ;;  %v3986_v31 = vld [vmem:[#allocation5 + $0xc8] sm:$0xff]  ;;  %v14629_v27 = vld [vmem:[#allocation46_spill] sm:$0xff] }
 0x2dc   :  { %14626 = vst [vmem:[#allocation32_spill] sm:$0xff] %v10638_v57  ;;  %5409 = vmatprep.subr.bf16.mxu0 %v14530_v14  ;;  %14627 = vst [vmem:[#allocation44_spill] sm:$0xff] %v10651_v44  ;;  %v10654_v45 = vadd.s32 %v2219_v40, %v9900_v50  ;;  %v10657_v51 = vadd.s32 %v2220_v28, %v9909_v24  ;;  %v10660_v12 = vadd.s32 %v2197_v9, %v14629_v27  ;;  %v14631_v7 = vld [vmem:[#allocation52_spill] sm:$0xff]  ;;  %v14633_v57 = vld [vmem:[#allocation17_spill] sm:$0xff]  ;;  %v10689_v9 = vpop.permute.xlu0 %3116 }
 0x2dd   :  { %14624 = vst [vmem:[#allocation39_spill] sm:$0xff] %v10629_v36  ;;  %v10663_v21 = vadd.s32 %v2198_v1, %v14631_v7  ;;  %5522 = vset.pattern.permute.xlu1 %v14291_v48  ;;  %v10667_v36 = vadd.s32 %v2199_v43, %v14633_v57  ;;  %v2225_v50 = vsel %vm2129_vm12, 1, %v13664_v60  ;;  %v14635_v40 = vld [vmem:[#allocation116_spill] sm:$0xff]  ;;  %v10677_v24 = vld [vmem:[#allocation2 + $0xf8] sm:$0xff]  ;;  %v2226_v48 = vsel %vm2130_vm13, 1, %v13664_v60  ;;  %14638 = vst [vmem:[#allocation115_spill] sm:$0xff] %v10689_v9 }
 0x2de   :  { %14628 = vst [vmem:[#allocation104_spill] sm:$0xff] %v10657_v51  ;;  %14630 = vst [vmem:[#allocation80_spill] sm:$0xff] %v10660_v12  ;;  %vm2113_vm14 = vcmp.eq.s32.totalorder %v6246_v61, %v14635_v40  ;;  %vm2114_vm15 = vcmp.eq.s32.totalorder %v6255_v0, %v14635_v40  ;;  %2423 = vperm.xlu1 %5522, %v10677_v24   ;;  %v10685_v43 = vadd.s32 %v2224_v52, %v9951_v46  ;;  %v14637_v57 = vld [vmem:[#allocation107_spill] sm:$0xff]  ;;  %v3987_v46 = vld [vmem:[#allocation5 + $0xd0] sm:$0xff] }
 0x2df   :  { %14632 = vst [vmem:[#allocation98_spill] sm:$0xff] %v10663_v21  ;;  %14634 = vst [vmem:[#allocation120_spill] sm:$0xff] %v10667_v36  ;;  %vm2107_vm0 = vcmp.eq.s32.totalorder %v6246_v61, %v14637_v57  ;;  %5459 = vmatpush1.bf16.msra.mxu1 %v5410_v59  ;;  %5411 = vmatpush1.bf16.msra.mxu0 %v5410_v59  ;;  %v5413_v28 = vpack.c.bf16 %v3986_v31, %v3985_v15  ;;  %v3988_v54 = vld [vmem:[#allocation5 + $0xd8] sm:$0xff]  ;;  %v2209_v59 = vsel %vm2113_vm14, 1, %v13664_v60  ;;  %v10724_v31 = vpop.permute.xlu1 %3554  ;;  %v5690_v12 = vld [vmem:[#allocation2 + $0xf0] sm:$0xff] }
 0x2e0   :  { %14636 = vst [vmem:[#allocation60_spill] sm:$0xff] %v10685_v43  ;;  %vm2108_vm1 = vcmp.eq.s32.totalorder %v6255_v0, %v14637_v57  ;;  %vm2497_vm2 = vcmp.eq.s32.totalorder %v6246_v61, %v10291_v17  ;;  %vm2498_vm3 = vcmp.eq.s32.totalorder %v6255_v0, %v10291_v17  ;;  %5444 = vmatprep.subr.bf16.mxu1 %v14530_v14  ;;  %v2210_v52 = vsel %vm2114_vm15, 1, %v13664_v60  ;;  %v14643_v21 = vld [vmem:[#allocation78_spill] sm:$0xff]  ;;  %v3989_v51 = vld [vmem:[#allocation5 + $0xe0] sm:$0xff]  ;;  %v3990_v9 = vld [vmem:[#allocation5 + $0xe8] sm:$0xff] }
 0x2e1   :  { %5412 = vmatprep.subr.bf16.mxu0 %v14530_v14  ;;  %v10700_v1 = vadd.s32 %v2225_v50, %v9954_v55  ;;  %vm2109_vm4 = vcmp.eq.s32.totalorder %v6259_v13, %v14637_v57  ;;  %v10713_v15 = vadd.s32 %v2226_v48, %v9959_v3  ;;  %v2203_v55 = vsel %vm2107_vm0, 1, %v13664_v60  ;;  %14641 = vst [vmem:[#allocation19_spill] sm:$0xff] %v10724_v31  ;;  %v14644_v17 = vld [vmem:[#allocation106_spill] sm:$0xff] }
 0x2e2   :  { %vm2881_vm5 = vcmp.eq.s32.totalorder %v6246_v61, %v10434_v4  ;;  %vm2882_vm6 = vcmp.eq.s32.totalorder %v6255_v0, %v10434_v4  ;;  %5523 = vset.pattern.permute.xlu1 %v14306_v56  ;;  %v2204_v3 = vsel %vm2108_vm1, 1, %v13664_v60  ;;  %v2593_v27 = vsel %vm2497_vm2, 1, %v13664_v60  ;;  %v14651_v43 = vld [vmem:[#allocation58_spill] sm:$0xff] }
 0x2e3   :  { %14639 = vst [vmem:[#allocation119_spill] sm:$0xff] %v10700_v1  ;;  %14640 = vst [vmem:[#allocation93_spill] sm:$0xff] %v10713_v15  ;;  %v2594_v7 = vsel %vm2498_vm3, 1, %v13664_v60  ;;  %5460 = vmatpush1.bf16.msra.mxu1 %v5413_v28  ;;  %5414 = vmatpush1.bf16.msra.mxu0 %v5413_v28  ;;  %v5416_v50 = vpack.c.bf16 %v3988_v54, %v3987_v46  ;;  %v2205_v48 = vsel %vm2109_vm4, 1, %v13664_v60  ;;  %v14642_v15 = vld [vmem:[#allocation34_spill] sm:$0xff]  ;;  %v14646_v28 = vld [vmem:[#allocation123_spill] sm:$0xff]  ;;  %v10754_v46 = vpop.permute.xlu0 %3119 }
 0x2e4   :  { %v2305_v36 = vadd.s32 %v2209_v59, %v14642_v15  ;;  %v2306_v57 = vadd.s32 %v2210_v52, %v14643_v21  ;;  %vm3265_vm7 = vcmp.eq.s32.totalorder %v6246_v61, %v10576_v32  ;;  %5445 = vmatprep.subr.bf16.mxu1 %v14530_v14  ;;  %3188 = vperm.xlu1 %5523, %v5690_v12   ;;  %v2977_v21 = vsel %vm2881_vm5, 1, %v13664_v60  ;;  %v14648_v59 = vld [vmem:[#allocation28_spill] sm:$0xff] }
 0x2e5   :  { %v10745_v1 = vadd.s32 %v2203_v55, %v14644_v17  ;;  %vm2809_vm8 = vcmp.eq.s32.totalorder %v6246_v61, %v14646_v28  ;;  %5415 = vmatprep.subr.bf16.mxu0 %v14530_v14  ;;  %14647 = vst [vmem:[#allocation54_spill] sm:$0xff] %v10754_v46  ;;  %v2978_v54 = vsel %vm2882_vm6, 1, %v13664_v60  ;;  %v10761_v17 = vadd.s32 %v2204_v3, %v14648_v59  ;;  %v14650_v52 = vld [vmem:[#allocation20_spill] sm:$0xff]  ;;  %v10765_v55 = vpop.permute.xlu1 %3482 }
 0x2e6   :  { %vm2134_vm9 = vcmp.eq.s32.totalorder %v6246_v61, %v14650_v52  ;;  %v2689_v15 = vadd.s32 %v2593_v27, %v2305_v36  ;;  %v10768_v11 = vadd.s32 %v2205_v48, %v14651_v43  ;;  %v3361_v46 = vsel %vm3265_vm7, 1, %v13664_v60  ;;  %v3991_v43 = vld [vmem:[#allocation5 + $0xf0] sm:$0xff] }
 0x2e7   :  { %14645 = vst [vmem:[#allocation102_spill] sm:$0xff] %v10745_v1  ;;  %14649 = vst [vmem:[#allocation26_spill] sm:$0xff] %v10761_v17  ;;  %v2690_v1 = vadd.s32 %v2594_v7, %v2306_v57  ;;  %5461 = vmatpush1.bf16.msra.mxu1 %v5416_v50  ;;  %vm3649_vm10 = vcmp.eq.s32.totalorder %v6246_v61, %v10724_v31  ;;  %5417 = vmatpush1.bf16.msra.mxu0 %v5416_v50  ;;  %v2905_v36 = vsel %vm2809_vm8, 1, %v13664_v60  ;;  %v3992_v7 = vld [vmem:[#allocation5 + $0xf8] sm:$0xff] }
 0x2e8   :  { %14652 = vst [vmem:[#allocation113_spill] sm:$0xff] %v10768_v11  ;;  %v5419_v3 = vpack.c.bf16 %v3990_v9, %v3989_v51  ;;  %v3073_v27 = vadd.s32 %v2977_v21, %v2689_v15  ;;  %5446 = vmatprep.subr.bf16.mxu1 %v14530_v14  ;;  %5524 = vset.pattern.permute.xlu1 %v14276_v20  ;;  %v14653_v57 = vld [vmem:[#allocation138_spill] sm:$0xff]  ;;  %v3745_v21 = vsel %vm3649_vm10, 1, %v13664_v60  ;;  %v10804_v15 = vpop.permute.xlu0 %3131 }
 0x2e9   :  { %v3074_v48 = vadd.s32 %v2978_v54, %v2690_v1  ;;  %vm3266_vm11 = vcmp.eq.s32.totalorder %v6255_v0, %v10576_v32  ;;  %vm2425_vm12 = vcmp.eq.s32.totalorder %v6246_v61, %v14653_v57  ;;  %vm2426_vm13 = vcmp.eq.s32.totalorder %v6255_v0, %v14653_v57  ;;  %2807 = vperm.xlu1 %5524, %v10677_v24   ;;  %v10802_v59 = vpop.permute.xlu1 %2408 }
 0x2ea   :  { %5418 = vmatprep.subr.bf16.mxu0 %v14530_v14  ;;  %v3362_v51 = vsel %vm3266_vm11, 1, %v13664_v60  ;;  %vm3650_vm14 = vcmp.eq.s32.totalorder %v6255_v0, %v10724_v31  ;;  %v3457_v50 = vadd.s32 %v3361_v46, %v3073_v27  ;;  %vm2135_vm15 = vcmp.eq.s32.totalorder %v6255_v0, %v14650_v52  ;;  %14654 = vst [vmem:[#allocation46_spill] sm:$0xff] %v10802_v59 }
 0x2eb   :  { %v3458_v9 = vadd.s32 %v3362_v51, %v3074_v48  ;;  %v3746_v1 = vsel %vm3650_vm14, 1, %v13664_v60  ;;  %vm3193_vm0 = vcmp.eq.s32.totalorder %v6246_v61, %v10456_v6  ;;  %5462 = vmatpush1.bf16.msra.mxu1 %v5419_v3  ;;  %5420 = vmatpush1.bf16.msra.mxu0 %v5419_v3  ;;  %v5422_v54 = vpack.c.bf16 %v3992_v7, %v3991_v43  ;;  %v14656_v3 = vld [vmem:[#allocation125_spill] sm:$0xff] }
 0x2ec   :  { %14655 = vst [vmem:[#allocation52_spill] sm:$0xff] %v10804_v15  ;;  %vm2810_vm1 = vcmp.eq.s32.totalorder %v6255_v0, %v14646_v28  ;;  %v2521_v46 = vsel %vm2425_vm12, 1, %v13664_v60  ;;  %5447 = vmatprep.subr.bf16.mxu1 %v14530_v14  ;;  %5421 = vmatprep.subr.bf16.mxu0 %v14530_v14  ;;  %v3841_v48 = vadd.s32 %v3745_v21, %v3457_v50  ;;  %v2522_v7 = vsel %vm2426_vm13, 1, %v13664_v60 }
 0x2ed   :  { %v3842_v27 = vadd.s32 %v3746_v1, %v3458_v9  ;;  %vm2136_vm2 = vcmp.eq.s32.totalorder %v6259_v13, %v14650_v52  ;;  %v2617_v43 = vadd.s32 %v2905_v36, %v14656_v3  ;;  %vm3577_vm3 = vcmp.eq.s32.totalorder %v6246_v61, %v10765_v55  ;;  %5525 = vset.pattern.permute.xlu1 %v14360_v30 }
 0x2ee   :  { %v2230_v14 = vsel %vm2134_vm9, 1, %v13664_v60  ;;  %v3289_v36 = vsel %vm3193_vm0, 1, %v13664_v60  ;;  %3572 = vperm.xlu1 %5525, %v5690_v12   ;;  %v3937_v9 = vcvt.s32.f32 %v3841_v48  ;;  %v2231_v1 = vsel %vm2135_vm15, 1, %v13664_v60  ;;  %v14657_v12 = vld [vmem:[#allocation47_spill] sm:$0xff] }
 0x2ef   :  { %v3938_v51 = vcvt.s32.f32 %v3842_v27  ;;  %vm2115_vm4 = vcmp.eq.s32.totalorder %v6259_v13, %v14635_v40  ;;  %v3001_v50 = vadd.s32 %v2617_v43, %v2521_v46  ;;  %5463 = vmatpush1.bf16.msra.mxu1 %v5422_v54  ;;  %5423 = vmatpush1.bf16.msra.mxu0 %v5422_v54  ;;  %v2906_v21 = vsel %vm2810_vm1, 1, %v13664_v60  ;;  %v10851_v54 = vpop.permute.xlu1 %3101  ;;  %v10858_v43 = vpop.permute.xlu0 %3134 }
 0x2f0   :  { %v2618_v27 = vadd.s32 %v2522_v7, %v14657_v12  ;;  %vm3194_vm5 = vcmp.eq.s32.totalorder %v6255_v0, %v10456_v6  ;;  %vm3578_vm6 = vcmp.eq.s32.totalorder %v6255_v0, %v10765_v55  ;;  %v3673_v46 = vsel %vm3577_vm3, 1, %v13664_v60  ;;  %14658 = vst [vmem:[#allocation17_spill] sm:$0xff] %v10858_v43 }
 0x2f1   :  { %4278 = vmatprep.mubr.f32.mxu1 %v3938_v51  ;;  %vm2811_vm7 = vcmp.eq.s32.totalorder %v6259_v13, %v14646_v28  ;;  %vm2500_vm8 = vcmp.eq.s32.totalorder %v6246_v61, %v10504_v25  ;;  %v3385_v48 = vadd.s32 %v3289_v36, %v3001_v50  ;;  %v3290_v3 = vsel %vm3194_vm5, 1, %v13664_v60  ;;  %v14659_v51 = vld [vmem:[#allocation76_spill] sm:$0xff] }
 0x2f2   :  { %v2232_v7 = vsel %vm2136_vm2, 1, %v13664_v60  ;;  %vm2119_vm9 = vcmp.eq.s32.totalorder %v6246_v61, %v14659_v51  ;;  %vm2501_vm10 = vcmp.eq.s32.totalorder %v6255_v0, %v10504_v25  ;;  %4279 = vmatmul.mubr.f32.vlgmr.msra.gmra.mrb[0].mxu1 %v3937_v9  ;;  %3500 = vperm.xlu1 %5525, %v10606_v58   ;;  %v3002_v12 = vadd.s32 %v2906_v21, %v2618_v27  ;;  %v14667_v25 = vld [vmem:[#allocation62_spill] sm:$0xff] }
 0x2f3   :  { %vm2120_vm11 = vcmp.eq.s32.totalorder %v6255_v0, %v14659_v51  ;;  %vm2121_vm12 = vcmp.eq.s32.totalorder %v6259_v13, %v14659_v51  ;;  %v3674_v52 = vsel %vm3578_vm6, 1, %v13664_v60  ;;  %v3769_v36 = vadd.s32 %v3673_v46, %v3385_v48  ;;  %v10894_v48 = vpop.permute.xlu1 %2792  ;;  %v10907_v32 = vpop.permute.xlu0 %3557 }
 0x2f4   :  { %v2596_v50 = vsel %vm2500_vm8, 1, %v13664_v60  ;;  %vm2884_vm13 = vcmp.eq.s32.totalorder %v6246_v61, %v10651_v44  ;;  %vm2885_vm14 = vcmp.eq.s32.totalorder %v6255_v0, %v10651_v44  ;;  %v3386_v58 = vadd.s32 %v3290_v3, %v3002_v12  ;;  %14661 = vst [vmem:[#allocation107_spill] sm:$0xff] %v10894_v48  ;;  %14662 = vst [vmem:[#allocation34_spill] sm:$0xff] %v10907_v32 }
 0x2f5   :  { %v10883_v9 = vadd.s32 %v2230_v14, %v9999_v35  ;;  %v2211_v21 = vsel %vm2115_vm4, 1, %v13664_v60  ;;  %v2907_v27 = vsel %vm2811_vm7, 1, %v13664_v60  ;;  %v2597_v46 = vsel %vm2501_vm10, 1, %v13664_v60 }
 0x2f6   :  { %v2215_v35 = vsel %vm2119_vm9, 1, %v13664_v60  ;;  %v2216_v14 = vsel %vm2120_vm11, 1, %v13664_v60  ;;  %v2217_v3 = vsel %vm2121_vm12, 1, %v13664_v60  ;;  %v3770_v40 = vadd.s32 %v3674_v52, %v3386_v58  ;;  %5526 = vset.pattern.permute.xlu1 %v14306_v56 }
 0x2f7   :  { %14660 = vst [vmem:[#allocation116_spill] sm:$0xff] %v10883_v9  ;;  %v2692_v12 = vadd.s32 %v2596_v50, %v10559_v33  ;;  %v2980_v28 = vsel %vm2884_vm13, 1, %v13664_v60  ;;  %v2981_v31 = vsel %vm2885_vm14, 1, %v13664_v60  ;;  %v3865_v44 = vcvt.s32.f32 %v3769_v36  ;;  %3191 = vperm.xlu1 %5526, %v10677_v24   ;;  %v14665_v36 = vld [vmem:[#allocation67_spill] sm:$0xff] }
 0x2f8   :  { %v2693_v51 = vadd.s32 %v2597_v46, %v10583_v10  ;;  %vm3268_vm15 = vcmp.eq.s32.totalorder %v6246_v61, %v10506_v16  ;;  %vm3269_vm0 = vcmp.eq.s32.totalorder %v6255_v0, %v10506_v16  ;;  %v3866_v52 = vcvt.s32.f32 %v3770_v40  ;;  %v10926_v10 = vpop.permute.xlu1 %2720  ;;  %v14668_v46 = vld [vmem:[#allocation129_spill] sm:$0xff] }
 0x2f9   :  { %v10915_v33 = vadd.s32 %v2231_v1, %v10002_v49  ;;  %v10918_v50 = vadd.s32 %v2232_v7, %v10011_v39  ;;  %v10921_v58 = vadd.s32 %v2211_v21, %v14665_v36  ;;  %v10924_v4 = vadd.s32 %v2907_v27, %v14667_v25  ;;  %v14669_v49 = vld [vmem:[#allocation111_spill] sm:$0xff]  ;;  %v14670_v1 = vld [vmem:[#allocation97_spill] sm:$0xff]  ;;  %v14672_v27 = vld [vmem:[#allocation124_spill] sm:$0xff] }
 0x2fa   :  { %v10929_v11 = vadd.s32 %v2215_v35, %v14668_v46  ;;  %v3076_v17 = vadd.s32 %v2980_v28, %v2692_v12  ;;  %v3077_v16 = vadd.s32 %v2981_v31, %v2693_v51  ;;  %4158 = vmatprep.mubr.f32.mxu0 %v3866_v52  ;;  %vm3653_vm1 = vcmp.eq.s32.totalorder %v6255_v0, %v10907_v32  ;;  %v14673_v31 = vld [vmem:[#allocation100_spill] sm:$0xff]  ;;  %v14674_v35 = vld [vmem:[#allocation79_spill] sm:$0xff] }
 0x2fb   :  { %14663 = vst [vmem:[#allocation78_spill] sm:$0xff] %v10915_v33  ;;  %14664 = vst [vmem:[#allocation106_spill] sm:$0xff] %v10918_v50  ;;  %v10934_v39 = vadd.s32 %v2216_v14, %v14669_v49  ;;  %v10937_v7 = vadd.s32 %v2217_v3, %v14670_v1  ;;  %v3364_v25 = vsel %vm3268_vm15, 1, %v13664_v60  ;;  %v3365_v21 = vsel %vm3269_vm0, 1, %v13664_v60  ;;  %4159 = vmatmul.mubr.f32.vlgmr.msra.gmra.mrb[0].mxu0 %v3865_v44  ;;  %v14707_v33 = vld [vmem:[#allocation136_spill] sm:$0xff] }
 0x2fc   :  { %14666 = vst [vmem:[#allocation123_spill] sm:$0xff] %v10921_v58  ;;  %5527 = vset.pattern.permute.xlu1 %v14360_v30  ;;  %vm2812_vm2 = vcmp.eq.s32.totalorder %v6246_v61, %v14672_v27  ;;  %vm2125_vm3 = vcmp.eq.s32.totalorder %v6246_v61, %v14673_v31  ;;  %vm2429_vm4 = vcmp.eq.s32.totalorder %v6255_v0, %v14674_v35  ;;  %v3749_v44 = vsel %vm3653_vm1, 1, %v13664_v60  ;;  %v14680_v58 = vld [vmem:[#allocation133_spill] sm:$0xff] }
 0x2fd   :  { %14671 = vst [vmem:[#allocation28_spill] sm:$0xff] %v10937_v7  ;;  %vm3652_vm5 = vcmp.eq.s32.totalorder %v6246_v61, %v10907_v32  ;;  %3575 = vperm.xlu1 %5527, %v10677_v24   ;;  %vm2813_vm6 = vcmp.eq.s32.totalorder %v6255_v0, %v14672_v27  ;;  %vm2127_vm7 = vcmp.eq.s32.totalorder %v6259_v13, %v14673_v31  ;;  %v10962_v24 = vpop.permute.xlu1 %3485  ;;  %v2908_v40 = vsel %vm2812_vm2, 1, %v13664_v60 }
 0x2fe   :  { %vm2428_vm8 = vcmp.eq.s32.totalorder %v6246_v61, %v14674_v35  ;;  %vm2814_vm9 = vcmp.eq.s32.totalorder %v6259_v13, %v14672_v27  ;;  %vm2126_vm10 = vcmp.eq.s32.totalorder %v6255_v0, %v14673_v31  ;;  %v3461_v14 = vadd.s32 %v3365_v21, %v3077_v16  ;;  %v5691_v21 = vld [vmem:[#allocation2 + $0x40] sm:$0xff] }
 0x2ff   :  { %v3460_v3 = vadd.s32 %v3364_v25, %v3076_v17  ;;  %v2221_v12 = vsel %vm2125_vm3, 1, %v13664_v60  ;;  %v2525_v28 = vsel %vm2429_vm4, 1, %v13664_v60  ;;  %v3748_v51 = vsel %vm3652_vm5, 1, %v13664_v60  ;;  %v14675_v25 = vld [vmem:[#allocation108_spill] sm:$0xff] }
 0x300   :  { %v2223_v52 = vsel %vm2127_vm7, 1, %v13664_v60  ;;  %v2524_v36 = vsel %vm2428_vm8, 1, %v13664_v60  ;;  %v3845_v46 = vadd.s32 %v3749_v44, %v3461_v14  ;;  %v2909_v16 = vsel %vm2813_vm6, 1, %v13664_v60 }
 0x301   :  { %5528 = vset.pattern.permute.xlu1 %v14276_v20  ;;  %v3844_v49 = vadd.s32 %v3748_v51, %v3460_v3  ;;  %v10976_v17 = vsel %vm2814_vm9, 1, %v13664_v60  ;;  %v2222_v1 = vsel %vm2126_vm10, 1, %v13664_v60  ;;  %vm2890_vm11 = vcmp.eq.s32.totalorder %v6246_v61, %v14675_v25  ;;  %v14676_v3 = vld [vmem:[#allocation73_spill] sm:$0xff]  ;;  %v14678_v51 = vld [vmem:[#allocation23_spill] sm:$0xff]  ;;  %v10993_v32 = vpop.permute.xlu1 %3176 }
 0x302   :  { %2738 = vperm.xlu1 %5528, %v5691_v21   ;;  %v2621_v31 = vadd.s32 %v2525_v28, %v10052_v5  ;;  %vm3197_vm12 = vcmp.eq.s32.totalorder %v6255_v0, %v10851_v54  ;;  %v3941_v44 = vcvt.s32.f32 %v3845_v46  ;;  %v10985_v27 = vadd.s32 %v2223_v52, %v14676_v3  ;;  %14679 = vst [vmem:[#allocation58_spill] sm:$0xff] %v10993_v32  ;;  %v14681_v28 = vld [vmem:[#allocation132_spill] sm:$0xff] }
 0x303   :  { %v3940_v14 = vcvt.s32.f32 %v3844_v49  ;;  %v10988_v50 = vadd.s32 %v2221_v12, %v14678_v51  ;;  %v2620_v7 = vadd.s32 %v2524_v36, %v10049_v19  ;;  %vm3196_vm13 = vcmp.eq.s32.totalorder %v6246_v61, %v10851_v54 }
 0x304   :  { %14677 = vst [vmem:[#allocation20_spill] sm:$0xff] %v10985_v27  ;;  %v10996_v5 = vadd.s32 %v2222_v1, %v14680_v58  ;;  %vm2891_vm14 = vcmp.eq.s32.totalorder %v6255_v0, %v14675_v25  ;;  %vm2432_vm15 = vcmp.eq.s32.totalorder %v6255_v0, %v14681_v28  ;;  %4283 = vmatprep.mubr.f32.mxu1 %v3941_v44  ;;  %v3293_v19 = vsel %vm3197_vm12, 1, %v13664_v60 }
 0x305   :  { %vm3581_vm0 = vcmp.eq.s32.totalorder %v6255_v0, %v10962_v24  ;;  %vm2892_vm1 = vcmp.eq.s32.totalorder %v6259_v13, %v14675_v25  ;;  %vm2431_vm2 = vcmp.eq.s32.totalorder %v6246_v61, %v14681_v28  ;;  %4284 = vmatmul.mubr.f32.gmra.mrb[2].mxu1 %v3940_v14  ;;  %vm3580_vm3 = vcmp.eq.s32.totalorder %v6246_v61, %v10962_v24  ;;  %v11023_v1 = vpop.permute.xlu1 %3104 }
 0x306   :  { %5529 = vset.pattern.permute.xlu1 %v14306_v56  ;;  %v2986_v58 = vsel %vm2890_vm11, 1, %v13664_v60  ;;  %v3292_v12 = vsel %vm3196_vm13, 1, %v13664_v60  ;;  %vm2816_vm4 = vcmp.eq.s32.totalorder %v6255_v0, %v10926_v10  ;;  %v3005_v52 = vadd.s32 %v2909_v16, %v2621_v31  ;;  %14682 = vst [vmem:[#allocation138_spill] sm:$0xff] %v11023_v1 }
 0x307   :  { %3122 = vperm.xlu1 %5529, %v5691_v21   ;;  %v2528_v36 = vsel %vm2432_vm15, 1, %v13664_v60  ;;  %vm2815_vm5 = vcmp.eq.s32.totalorder %v6246_v61, %v10926_v10  ;;  %v3677_v46 = vsel %vm3581_vm0, 1, %v13664_v60  ;;  %v3004_v49 = vadd.s32 %v2908_v40, %v2620_v7  ;;  %v14683_v7 = vld [vmem:[#allocation33_spill] sm:$0xff] }
 0x308   :  { %v2987_v44 = vsel %vm2891_vm14, 1, %v13664_v60  ;;  %v2527_v16 = vsel %vm2431_vm2, 1, %v13664_v60  ;;  %v3389_v21 = vadd.s32 %v3293_v19, %v3005_v52  ;;  %v3676_v31 = vsel %vm3580_vm3, 1, %v13664_v60 }
 0x309   :  { %v2912_v14 = vsel %vm2816_vm4, 1, %v13664_v60  ;;  %v3388_v3 = vadd.s32 %v3292_v12, %v3004_v49  ;;  %vm3199_vm6 = vcmp.eq.s32.totalorder %v6246_v61, %v11023_v1  ;;  %vm3200_vm7 = vcmp.eq.s32.totalorder %v6255_v0, %v11023_v1  ;;  %v5692_v49 = vld [vmem:[#allocation2 + $0x48] sm:$0xff] }
 0x30a   :  { %vm2131_vm8 = vcmp.eq.s32.totalorder %v6246_v61, %v14683_v7  ;;  %v2624_v40 = vadd.s32 %v2528_v36, %v10111_v18  ;;  %v2911_v51 = vsel %vm2815_vm5, 1, %v13664_v60  ;;  %v3773_v19 = vadd.s32 %v3677_v46, %v3389_v21  ;;  %v11055_v46 = vpop.permute.xlu1 %3560 }
 0x30b   :  { %5530 = vset.pattern.permute.xlu1 %v14276_v20  ;;  %v11045_v52 = vadd.s32 %v2986_v58, %v10641_v26  ;;  %v2623_v12 = vadd.s32 %v2527_v16, %v10108_v29  ;;  %v3772_v27 = vadd.s32 %v3676_v31, %v3388_v3  ;;  %v3296_v43 = vsel %vm3200_vm7, 1, %v13664_v60  ;;  %14684 = vst [vmem:[#allocation125_spill] sm:$0xff] %v11055_v46  ;;  %v11062_v58 = vpop.permute.xlu0 %3488 }
 0x30c   :  { %2741 = vperm.xlu1 %5530, %v5692_v49   ;;  %vm2504_vm9 = vcmp.eq.s32.totalorder %v6255_v0, %v10802_v59  ;;  %v3008_v15 = vadd.s32 %v2912_v14, %v2624_v40  ;;  %v3869_v18 = vcvt.s32.f32 %v3773_v19  ;;  %v3295_v36 = vsel %vm3199_vm6, 1, %v13664_v60 }
 0x30d   :  { %v11058_v26 = vadd.s32 %v2987_v44, %v10654_v45  ;;  %vm2503_vm10 = vcmp.eq.s32.totalorder %v6246_v61, %v10802_v59  ;;  %v3007_v29 = vadd.s32 %v2911_v51, %v2623_v12  ;;  %v3868_v16 = vcvt.s32.f32 %v3772_v27  ;;  %v14706_v59 = vld [vmem:[#allocation55_spill] sm:$0xff] }
 0x30e   :  { %vm2888_vm11 = vcmp.eq.s32.totalorder %v6255_v0, %v10894_v48  ;;  %vm3583_vm12 = vcmp.eq.s32.totalorder %v6246_v61, %v11062_v58  ;;  %vm3584_vm13 = vcmp.eq.s32.totalorder %v6255_v0, %v11062_v58  ;;  %4163 = vmatprep.mubr.f32.mxu0 %v3869_v18  ;;  %v3392_v21 = vadd.s32 %v3296_v43, %v3008_v15  ;;  %v11103_v31 = vpop.permute.xlu1 %2723 }
 0x30f   :  { %v11074_v45 = vsel %vm2892_vm1, 1, %v13664_v60  ;;  %v2600_v27 = vsel %vm2504_vm9, 1, %v13664_v60  ;;  %vm2887_vm14 = vcmp.eq.s32.totalorder %v6246_v61, %v10894_v48  ;;  %4164 = vmatmul.mubr.f32.gmra.mrb[2].mxu0 %v3868_v16  ;;  %v3391_v44 = vadd.s32 %v3295_v36, %v3007_v29 }
 0x310   :  { %14685 = vst [vmem:[#allocation47_spill] sm:$0xff] %v11074_v45  ;;  %5531 = vset.pattern.permute.xlu1 %v14306_v56  ;;  %vm2132_vm15 = vcmp.eq.s32.totalorder %v6255_v0, %v14683_v7  ;;  %vm2133_vm0 = vcmp.eq.s32.totalorder %v6259_v13, %v14683_v7  ;;  %v2599_v15 = vsel %vm2503_vm10, 1, %v13664_v60  ;;  %vm3272_vm1 = vcmp.eq.s32.totalorder %v6255_v0, %v10993_v32 }
 0x311   :  { %3125 = vperm.xlu1 %5531, %v5692_v49   ;;  %v2984_v43 = vsel %vm2888_vm11, 1, %v13664_v60  ;;  %vm3271_vm2 = vcmp.eq.s32.totalorder %v6246_v61, %v10993_v32  ;;  %v3680_v25 = vsel %vm3584_vm13, 1, %v13664_v60  ;;  %v3679_v14 = vsel %vm3583_vm12, 1, %v13664_v60  ;;  %v14705_v32 = vld [vmem:[#allocation16_spill] sm:$0xff] }
 0x312   :  { %v2227_v3 = vsel %vm2131_vm8, 1, %v13664_v60  ;;  %v2696_v40 = vadd.s32 %v2600_v27, %v10934_v39  ;;  %v2983_v51 = vsel %vm2887_vm14, 1, %v13664_v60  ;;  %v3776_v19 = vadd.s32 %v3680_v25, %v3392_v21  ;;  %v14686_v27 = vld [vmem:[#allocation127_spill] sm:$0xff]  ;;  %v14688_v25 = vld [vmem:[#allocation134_spill] sm:$0xff] }
 0x313   :  { %v2228_v12 = vsel %vm2132_vm15, 1, %v13664_v60  ;;  %v2695_v18 = vadd.s32 %v2599_v15, %v10929_v11  ;;  %v3368_v36 = vsel %vm3272_vm1, 1, %v13664_v60  ;;  %v3775_v29 = vadd.s32 %v3679_v14, %v3391_v44  ;;  %v14687_v15 = vld [vmem:[#allocation59_spill] sm:$0xff] }
 0x314   :  { %v3080_v16 = vadd.s32 %v2984_v43, %v2696_v40  ;;  %v3367_v45 = vsel %vm3271_vm2, 1, %v13664_v60  ;;  %vm3656_vm3 = vcmp.eq.s32.totalorder %v6255_v0, %v11055_v46  ;;  %v3872_v39 = vcvt.s32.f32 %v3776_v19  ;;  %v11139_v19 = vpop.permute.xlu1 %2414 }
 0x315   :  { %5532 = vset.pattern.permute.xlu1 %v14360_v30  ;;  %vm2821_vm4 = vcmp.eq.s32.totalorder %v6246_v61, %v14686_v27  ;;  %v3079_v21 = vadd.s32 %v2983_v51, %v2695_v18  ;;  %vm3655_vm5 = vcmp.eq.s32.totalorder %v6246_v61, %v11055_v46  ;;  %v3871_v11 = vcvt.s32.f32 %v3775_v29  ;;  %14689 = vst [vmem:[#allocation76_spill] sm:$0xff] %v11139_v19  ;;  %v14691_v29 = vld [vmem:[#allocation74_spill] sm:$0xff]  ;;  %v5694_v46 = vld [vmem:[#allocation2 + $0x60] sm:$0xff] }
 0x316   :  { %3509 = vperm.xlu1 %5532, %v5692_v49   ;;  %v2229_v44 = vsel %vm2133_vm0, 1, %v13664_v60  ;;  %v11134_v43 = vadd.s32 %v2227_v3, %v14687_v15  ;;  %v11137_v14 = vadd.s32 %v2228_v12, %v14688_v25  ;;  %4168 = vmatprep.mubr.f32.mxu0 %v3872_v39  ;;  %v3464_v40 = vadd.s32 %v3368_v36, %v3080_v16  ;;  %v14690_v3 = vld [vmem:[#allocation68_spill] sm:$0xff]  ;;  %v5693_v36 = vld [vmem:[#allocation2 + $0x50] sm:$0xff] }
 0x317   :  { %vm2427_vm6 = vcmp.eq.s32.totalorder %v6259_v13, %v14653_v57  ;;  %vm2430_vm7 = vcmp.eq.s32.totalorder %v6259_v13, %v14674_v35  ;;  %4169 = vmatmul.mubr.f32.gmra.mrb[4].mxu0 %v3871_v11  ;;  %v3752_v7 = vsel %vm3656_vm3, 1, %v13664_v60  ;;  %v3463_v49 = vadd.s32 %v3367_v45, %v3079_v21 }
 0x318   :  { %vm2433_vm8 = vcmp.eq.s32.totalorder %v6259_v13, %v14681_v28  ;;  %vm2437_vm9 = vcmp.eq.s32.totalorder %v6246_v61, %v14690_v3  ;;  %v3848_v51 = vadd.s32 %v3752_v7, %v3464_v40  ;;  %v3751_v57 = vsel %vm3655_vm5, 1, %v13664_v60  ;;  %v11179_v15 = vpop.permute.xlu1 %3179  ;;  %v14694_v40 = vld [vmem:[#allocation87_spill] sm:$0xff] }
 0x319   :  { %vm2822_vm10 = vcmp.eq.s32.totalorder %v6255_v0, %v14686_v27  ;;  %vm2823_vm11 = vcmp.eq.s32.totalorder %v6259_v13, %v14686_v27  ;;  %vm2438_vm12 = vcmp.eq.s32.totalorder %v6255_v0, %v14690_v3  ;;  %v3847_v35 = vadd.s32 %v3751_v57, %v3463_v49  ;;  %14693 = vst [vmem:[#allocation62_spill] sm:$0xff] %v11179_v15  ;;  %v14696_v27 = vld [vmem:[#allocation77_spill] sm:$0xff] }
 0x31a   :  { %5533 = vset.pattern.permute.xlu1 %v14306_v56  ;;  %v2523_v45 = vsel %vm2427_vm6, 1, %v13664_v60  ;;  %v2526_v12 = vsel %vm2430_vm7, 1, %v13664_v60  ;;  %vm2439_vm13 = vcmp.eq.s32.totalorder %v6259_v13, %v14690_v3  ;;  %v3944_v18 = vcvt.s32.f32 %v3848_v51  ;;  %v14699_v3 = vld [vmem:[#allocation99_spill] sm:$0xff] }
 0x31b   :  { %3128 = vperm.xlu1 %5533, %v5693_v36   ;;  %v11169_v16 = vadd.s32 %v2229_v44, %v14691_v29  ;;  %v2529_v39 = vsel %vm2433_vm8, 1, %v13664_v60  ;;  %v2533_v21 = vsel %vm2437_vm9, 1, %v13664_v60  ;;  %v3943_v11 = vcvt.s32.f32 %v3847_v35  ;;  %v14702_v29 = vld [vmem:[#allocation137_spill] sm:$0xff] }
 0x31c   :  { %v11185_v25 = vsel %vm2821_vm4, 1, %v13664_v60  ;;  %v11191_v28 = vsel %vm2822_vm10, 1, %v13664_v60  ;;  %v2534_v44 = vsel %vm2438_vm12, 1, %v13664_v60  ;;  %vm2434_vm14 = vcmp.eq.s32.totalorder %v6246_v61, %v14694_v40  ;;  %4288 = vmatprep.mubr.f32.mxu1 %v3944_v18 }
 0x31d   :  { %14692 = vst [vmem:[#allocation67_spill] sm:$0xff] %v11169_v16  ;;  %v11203_v7 = vsel %vm2823_vm11, 1, %v13664_v60  ;;  %v11206_v49 = vadd.s32 %v10924_v4, %v2523_v45  ;;  %v11209_v51 = vadd.s32 %v2526_v12, %v10057_v41  ;;  %v2535_v57 = vsel %vm2439_vm13, 1, %v13664_v60  ;;  %4289 = vmatmul.mubr.f32.gmra.mrb[4].mxu1 %v3943_v11 }
 0x31e   :  { %14695 = vst [vmem:[#allocation129_spill] sm:$0xff] %v11203_v7  ;;  %v11216_v35 = vadd.s32 %v2529_v39, %v10118_v62  ;;  %v11219_v18 = vadd.s32 %v2533_v21, %v10177_v2  ;;  %vm2435_vm15 = vcmp.eq.s32.totalorder %v6255_v0, %v14694_v40  ;;  %vm2436_vm0 = vcmp.eq.s32.totalorder %v6259_v13, %v14694_v40  ;;  %v14697_v62 = vld [vmem:[#allocation72_spill] sm:$0xff] }
 0x31f   :  { %5534 = vset.pattern.permute.xlu1 %v14360_v30  ;;  %v11227_v41 = vadd.s32 %v2534_v44, %v10180_v47  ;;  %v2530_v4 = vsel %vm2434_vm14, 1, %v13664_v60  ;;  %vm2443_vm1 = vcmp.eq.s32.totalorder %v6246_v61, %v14696_v27  ;;  %vm2444_vm2 = vcmp.eq.s32.totalorder %v6255_v0, %v14696_v27  ;;  %v11243_v47 = vpop.permute.xlu1 %2798 }
 0x320   :  { %3512 = vperm.xlu1 %5534, %v5693_v36   ;;  %v11235_v2 = vadd.s32 %v2535_v57, %v14697_v62  ;;  %vm2445_vm3 = vcmp.eq.s32.totalorder %v6259_v13, %v14696_v27  ;;  %vm2440_vm4 = vcmp.eq.s32.totalorder %v6246_v61, %v14699_v3  ;;  %vm2441_vm5 = vcmp.eq.s32.totalorder %v6255_v0, %v14699_v3  ;;  %v14701_v36 = vld [vmem:[#allocation64_spill] sm:$0xff]  ;;  %v14704_v62 = vld [vmem:[#allocation25_spill] sm:$0xff] }
 0x321   :  { %14700 = vst [vmem:[#allocation97_spill] sm:$0xff] %v11243_v47  ;;  %v2531_v45 = vsel %vm2435_vm15, 1, %v13664_v60  ;;  %v2532_v12 = vsel %vm2436_vm0, 1, %v13664_v60  ;;  %vm2442_vm6 = vcmp.eq.s32.totalorder %v6259_v13, %v14699_v3  ;;  %vm2449_vm7 = vcmp.eq.s32.totalorder %v6246_v61, %v14701_v36 }
 0x322   :  { %14698 = vst [vmem:[#allocation111_spill] sm:$0xff] %v11235_v2  ;;  %v11252_v39 = vadd.s32 %v2530_v4, %v14702_v29  ;;  %v2539_v21 = vsel %vm2443_vm1, 1, %v13664_v60  ;;  %v2540_v11 = vsel %vm2444_vm2, 1, %v13664_v60  ;;  %vm2450_vm8 = vcmp.eq.s32.totalorder %v6255_v0, %v14701_v36  ;;  %v14703_v4 = vld [vmem:[#allocation105_spill] sm:$0xff] }
 0x323   :  { %v2541_v44 = vsel %vm2445_vm3, 1, %v13664_v60  ;;  %v2536_v40 = vsel %vm2440_vm4, 1, %v13664_v60  ;;  %v2537_v57 = vsel %vm2441_vm5, 1, %v13664_v60  ;;  %vm2451_vm9 = vcmp.eq.s32.totalorder %v6259_v13, %v14701_v36 }
 0x324   :  { %5535 = vset.pattern.permute.xlu1 %v14276_v20  ;;  %v11265_v27 = vadd.s32 %v2531_v45, %v14703_v4  ;;  %v11268_v3 = vadd.s32 %v2532_v12, %v14704_v62  ;;  %v2538_v29 = vsel %vm2442_vm6, 1, %v13664_v60  ;;  %v2545_v16 = vsel %vm2449_vm7, 1, %v13664_v60  ;;  %v11281_v45 = vpop.permute.xlu1 %3563  ;;  %v14709_v12 = vld [vmem:[#allocation49_spill] sm:$0xff]  ;;  %v14710_v62 = vld [vmem:[#allocation27_spill] sm:$0xff] }
 0x325   :  { %2750 = vperm.xlu1 %5535, %v5694_v46   ;;  %v11273_v48 = vadd.s32 %v2539_v21, %v14705_v32  ;;  %v11276_v7 = vadd.s32 %v2540_v11, %v14706_v59  ;;  %v2546_v2 = vsel %vm2450_vm8, 1, %v13664_v60  ;;  %vm2448_vm10 = vcmp.eq.s32.totalorder %v6259_v13, %v14707_v33  ;;  %14708 = vst [vmem:[#allocation124_spill] sm:$0xff] %v11281_v45  ;;  %v14711_v46 = vld [vmem:[#allocation86_spill] sm:$0xff] }
 0x326   :  { %v11284_v4 = vadd.s32 %v2541_v44, %v14709_v12  ;;  %v11287_v9 = vadd.s32 %v2536_v40, %v14710_v62  ;;  %v11290_v1 = vadd.s32 %v2537_v57, %v14711_v46  ;;  %v2547_v32 = vsel %vm2451_vm9, 1, %v13664_v60  ;;  %v14712_v59 = vld [vmem:[#allocation110_spill] sm:$0xff]  ;;  %v14715_v57 = vld [vmem:[#allocation112_spill] sm:$0xff] }
 0x327   :  { %v11297_v21 = vadd.s32 %v2538_v29, %v14712_v59  ;;  %v11300_v11 = vadd.s32 %v2545_v16, %v10297_v8  ;;  %vm2446_vm11 = vcmp.eq.s32.totalorder %v6246_v61, %v14707_v33  ;;  %vm2447_vm12 = vcmp.eq.s32.totalorder %v6255_v0, %v14707_v33  ;;  %v14717_v16 = vld [vmem:[#allocation35_spill] sm:$0xff] }
 0x328   :  { %v11307_v44 = vadd.s32 %v2546_v2, %v10309_v53  ;;  %v2544_v40 = vsel %vm2448_vm10, 1, %v13664_v60  ;;  %vm2452_vm13 = vcmp.eq.s32.totalorder %v6246_v61, %v14715_v57  ;;  %vm2453_vm14 = vcmp.eq.s32.totalorder %v6255_v0, %v14715_v57  ;;  %v5695_v53 = vld [vmem:[#allocation2 + $0x58] sm:$0xff]  ;;  %v11324_v33 = vpop.permute.xlu1 %3491 }
 0x329   :  { %14713 = vst [vmem:[#allocation100_spill] sm:$0xff] %v11300_v11  ;;  %5536 = vset.pattern.permute.xlu1 %v14360_v30  ;;  %v11316_v8 = vadd.s32 %v2547_v32, %v10306_v42  ;;  %vm2455_vm15 = vcmp.eq.s32.totalorder %v6246_v61, %v14717_v16  ;;  %vm2454_vm0 = vcmp.eq.s32.totalorder %v6259_v13, %v14715_v57  ;;  %v11327_v2 = vsel %vm2446_vm11, 1, %v13664_v60  ;;  %v14718_v42 = vld [vmem:[#allocation29_spill] sm:$0xff] }
 0x32a   :  { %14714 = vst [vmem:[#allocation79_spill] sm:$0xff] %v11307_v44  ;;  %vm2507_vm1 = vcmp.eq.s32.totalorder %v6255_v0, %v10340_v22  ;;  %3515 = vperm.xlu1 %5536, %v5695_v53   ;;  %v11330_v36 = vsel %vm2447_vm12, 1, %v13664_v60  ;;  %vm2456_vm2 = vcmp.eq.s32.totalorder %v6255_v0, %v14717_v16  ;;  %vm2457_vm3 = vcmp.eq.s32.totalorder %v6259_v13, %v14717_v16  ;;  %v14722_v16 = vld [vmem:[#allocation131_spill] sm:$0xff]  ;;  %v14726_v44 = vld [vmem:[#allocation82_spill] sm:$0xff] }
 0x32b   :  { %14716 = vst [vmem:[#allocation108_spill] sm:$0xff] %v11316_v8  ;;  %v11337_v29 = vadd.s32 %v2544_v40, %v14718_v42  ;;  %v2548_v12 = vsel %vm2452_vm13, 1, %v13664_v60  ;;  %v2549_v62 = vsel %vm2453_vm14, 1, %v13664_v60  ;;  %vm2506_vm4 = vcmp.eq.s32.totalorder %v6246_v61, %v10340_v22  ;;  %v14724_v42 = vld [vmem:[#allocation38_spill] sm:$0xff] }
 0x32c   :  { %v11344_v46 = vsel %vm2455_vm15, 1, %v13664_v60  ;;  %v2550_v32 = vsel %vm2454_vm0, 1, %v13664_v60  ;;  %v2603_v59 = vsel %vm2507_vm1, 1, %v13664_v60  ;;  %vm3275_vm5 = vcmp.eq.s32.totalorder %v6255_v0, %v11179_v15 }
 0x32d   :  { %14719 = vst [vmem:[#allocation73_spill] sm:$0xff] %v11344_v46  ;;  %v11351_v40 = vsel %vm2456_vm2, 1, %v13664_v60  ;;  %v11354_v57 = vsel %vm2457_vm3, 1, %v13664_v60  ;;  %vm2510_vm6 = vcmp.eq.s32.totalorder %v6255_v0, %v11139_v19  ;;  %vm3274_vm7 = vcmp.eq.s32.totalorder %v6246_v61, %v11179_v15 }
 0x32e   :  { %14720 = vst [vmem:[#allocation23_spill] sm:$0xff] %v11351_v40  ;;  %14721 = vst [vmem:[#allocation133_spill] sm:$0xff] %v11354_v57  ;;  %5538 = vset.pattern.permute.xlu1 %v14276_v20  ;;  %v11362_v53 = vadd.s32 %v2548_v12, %v14722_v16  ;;  %v11365_v22 = vadd.s32 %v2549_v62, %v14724_v42  ;;  %v2602_v46 = vsel %vm2506_vm4, 1, %v13664_v60  ;;  %v5696_v57 = vld [vmem:[#allocation2 + $0x68] sm:$0xff]  ;;  %v14725_v40 = vld [vmem:[#allocation103_spill] sm:$0xff]  ;;  %v3371_v12 = vsel %vm3275_vm5, 1, %v13664_v60  ;;  %v11379_v62 = vpop.permute.xlu1 %2417 }
 0x32f   :  { %vm3202_vm8 = vcmp.eq.s32.totalorder %v6246_v61, %v10552_v37  ;;  %2753 = vperm.xlu1 %5538, %v5696_v57   ;;  %v11371_v8 = vadd.s32 %v2550_v32, %v14725_v40  ;;  %vm2461_vm9 = vcmp.eq.s32.totalorder %v6246_v61, %v14726_v44  ;;  %v3083_v11 = vadd.s32 %v11058_v26, %v2603_v59 }
 0x330   :  { %14723 = vst [vmem:[#allocation132_spill] sm:$0xff] %v11362_v53  ;;  %vm2894_vm10 = vcmp.eq.s32.totalorder %v6255_v0, %v11243_v47  ;;  %14727 = vst [vmem:[#allocation33_spill] sm:$0xff] %v11379_v62  ;;  %vm2462_vm11 = vcmp.eq.s32.totalorder %v6255_v0, %v14726_v44  ;;  %vm2509_vm12 = vcmp.eq.s32.totalorder %v6246_v61, %v11139_v19  ;;  %v2606_v32 = vsel %vm2510_vm6, 1, %v13664_v60 }
 0x331   :  { %v3370_v26 = vsel %vm3274_vm7, 1, %v13664_v60  ;;  %vm3659_vm13 = vcmp.eq.s32.totalorder %v6255_v0, %v11281_v45  ;;  %v3082_v59 = vadd.s32 %v11045_v52, %v2602_v46  ;;  %vm3203_vm14 = vcmp.eq.s32.totalorder %v6255_v0, %v10552_v37 }
 0x332   :  { %v3298_v40 = vsel %vm3202_vm8, 1, %v13664_v60  ;;  %vm3658_vm15 = vcmp.eq.s32.totalorder %v6246_v61, %v11281_v45  ;;  %vm3278_vm0 = vcmp.eq.s32.totalorder %v6255_v0, %v10610_v23  ;;  %v3467_v16 = vadd.s32 %v3371_v12, %v3083_v11 }
 0x333   :  { %vm2893_vm1 = vcmp.eq.s32.totalorder %v6246_v61, %v11243_v47  ;;  %v2990_v52 = vsel %vm2894_vm10, 1, %v13664_v60  ;;  %5539 = vset.pattern.permute.xlu1 %v14306_v56  ;;  %v2605_v46 = vsel %vm2509_vm12, 1, %v13664_v60  ;;  %v2702_v42 = vadd.s32 %v2606_v32, %v10996_v5  ;;  %v11417_v47 = vpop.permute.xlu1 %3110 }
 0x334   :  { %v3466_v15 = vadd.s32 %v3370_v26, %v3082_v59  ;;  %v3755_v19 = vsel %vm3659_vm13, 1, %v13664_v60  ;;  %3137 = vperm.xlu1 %5539, %v5696_v57   ;;  %v3299_v45 = vsel %vm3203_vm14, 1, %v13664_v60  ;;  %vm2819_vm2 = vcmp.eq.s32.totalorder %v6255_v0, %v11103_v31 }
 0x335   :  { %v3851_v11 = vadd.s32 %v3755_v19, %v3467_v16  ;;  %v3754_v12 = vsel %vm3658_vm15, 1, %v13664_v60  ;;  %vm2818_vm3 = vcmp.eq.s32.totalorder %v6246_v61, %v11103_v31  ;;  %v2989_v53 = vsel %vm2893_vm1, 1, %v13664_v60  ;;  %v11428_v19 = vpop.permute.xlu0 %3566 }
 0x336   :  { %v3086_v5 = vadd.s32 %v2990_v52, %v2702_v42  ;;  %v3850_v32 = vadd.s32 %v3754_v12, %v3466_v15  ;;  %vm3277_vm4 = vcmp.eq.s32.totalorder %v6246_v61, %v10610_v23  ;;  %v3374_v57 = vsel %vm3278_vm0, 1, %v13664_v60  ;;  %14728 = vst [vmem:[#allocation127_spill] sm:$0xff] %v11428_v19 }
 0x337   :  { %v2701_v26 = vadd.s32 %v2605_v46, %v10988_v50  ;;  %v3947_v59 = vcvt.s32.f32 %v3851_v11  ;;  %v3010_v16 = vadd.s32 %v3298_v40, %v11252_v39  ;;  %vm3662_vm5 = vcmp.eq.s32.totalorder %v6255_v0, %v11428_v19  ;;  %v5697_v40 = vld [vmem:[#allocation2 + $0x70] sm:$0xff] }
 0x338   :  { %v2915_v15 = vsel %vm2819_vm2, 1, %v13664_v60  ;;  %v3946_v52 = vcvt.s32.f32 %v3850_v32  ;;  %5540 = vset.pattern.permute.xlu1 %v14276_v20  ;;  %v3011_v42 = vadd.s32 %v3299_v45, %v11265_v27  ;;  %v2914_v12 = vsel %vm2818_vm3, 1, %v13664_v60  ;;  %v11445_v27 = vpop.permute.xlu1 %2801 }
 0x339   :  { %v3085_v23 = vadd.s32 %v2989_v53, %v2701_v26  ;;  %vm3587_vm6 = vcmp.eq.s32.totalorder %v6255_v0, %v11324_v33  ;;  %4293 = vmatprep.mubr.f32.mxu1 %v3947_v59  ;;  %v3373_v50 = vsel %vm3277_vm4, 1, %v13664_v60  ;;  %vm3661_vm7 = vcmp.eq.s32.totalorder %v6246_v61, %v11428_v19  ;;  %2756 = vperm.xlu1 %5540, %v5697_v40  }
 0x33a   :  { %vm3586_vm8 = vcmp.eq.s32.totalorder %v6246_v61, %v11324_v33  ;;  %4294 = vmatmul.mubr.f32.gmra.mrb[6].mxu1 %v3946_v52  ;;  %v3470_v39 = vadd.s32 %v3374_v57, %v3086_v5  ;;  %14729 = vst [vmem:[#allocation59_spill] sm:$0xff] %v11445_v27  ;;  %vm2463_vm10 = vcmp.eq.s32.totalorder %v6259_v13, %v14726_v44  ;;  %v2557_v45 = vsel %vm2461_vm9, 1, %v13664_v60  ;;  %v14730_v44 = vld [vmem:[#allocation43_spill] sm:$0xff] }
 0x33b   :  { %v3395_v53 = vadd.s32 %v3011_v42, %v2915_v15  ;;  %v3758_v46 = vsel %vm3662_vm5, 1, %v13664_v60  ;;  %v2558_v11 = vsel %vm2462_vm11, 1, %v13664_v60  ;;  %v3394_v5 = vadd.s32 %v3010_v16, %v2914_v12 }
 0x33c   :  { %v3854_v32 = vadd.s32 %v3758_v46, %v3470_v39  ;;  %v3683_v57 = vsel %vm3587_vm6, 1, %v13664_v60  ;;  %v3682_v59 = vsel %vm3586_vm8, 1, %v13664_v60  ;;  %v3469_v15 = vadd.s32 %v3373_v50, %v3085_v23  ;;  %v14731_v39 = vld [vmem:[#allocation48_spill] sm:$0xff]  ;;  %v11478_v23 = vpop.permute.xlu0 %3497  ;;  %v11480_v46 = vpop.permute.xlu1 %2729 }
 0x33d   :  { %v3779_v26 = vadd.s32 %v3683_v57, %v3395_v53  ;;  %v3757_v52 = vsel %vm3661_vm7, 1, %v13664_v60  ;;  %v2559_v42 = vsel %vm2463_vm10, 1, %v13664_v60  ;;  %vm2460_vm9 = vcmp.eq.s32.totalorder %v6259_v13, %v14730_v44  ;;  %5542 = vset.pattern.permute.xlu1 %v14306_v56  ;;  %v14732_v57 = vld [vmem:[#allocation31_spill] sm:$0xff] }
 0x33e   :  { %v3950_v16 = vcvt.s32.f32 %v3854_v32  ;;  %v3778_v12 = vadd.s32 %v3682_v59, %v3394_v5  ;;  %vm2458_vm11 = vcmp.eq.s32.totalorder %v6246_v61, %v14730_v44  ;;  %vm2467_vm12 = vcmp.eq.s32.totalorder %v6246_v61, %v14731_v39  ;;  %3140 = vperm.xlu1 %5542, %v5697_v40  }
 0x33f   :  { %v3875_v50 = vcvt.s32.f32 %v3779_v26  ;;  %v3853_v53 = vadd.s32 %v3757_v52, %v3469_v15  ;;  %vm2459_vm13 = vcmp.eq.s32.totalorder %v6255_v0, %v14730_v44  ;;  %vm2468_vm14 = vcmp.eq.s32.totalorder %v6255_v0, %v14731_v39 }
 0x340   :  { %vm2469_vm15 = vcmp.eq.s32.totalorder %v6259_v13, %v14731_v39  ;;  %4298 = vmatprep.mubr.f32.mxu1 %v3950_v16  ;;  %v3874_v5 = vcvt.s32.f32 %v3778_v12  ;;  %v2556_v32 = vsel %vm2460_vm9, 1, %v13664_v60  ;;  %vm2464_vm0 = vcmp.eq.s32.totalorder %v6246_v61, %v14732_v57 }
 0x341   :  { %vm2465_vm1 = vcmp.eq.s32.totalorder %v6255_v0, %v14732_v57  ;;  %4173 = vmatprep.mubr.f32.mxu0 %v3875_v50  ;;  %v3949_v26 = vcvt.s32.f32 %v3853_v53  ;;  %v11497_v59 = vadd.s32 %v2557_v45, %v10416_v34  ;;  %v11500_v15 = vadd.s32 %v2558_v11, %v10419_v38  ;;  %v14737_v11 = vld [vmem:[#allocation141_spill] sm:$0xff]  ;;  %v14739_v50 = vld [vmem:[#allocation94_spill] sm:$0xff] }
 0x342   :  { %v2563_v52 = vsel %vm2467_vm12, 1, %v13664_v60  ;;  %vm2466_vm2 = vcmp.eq.s32.totalorder %v6259_v13, %v14732_v57  ;;  %4174 = vmatmul.mubr.f32.gmra.mrb[6].mxu0 %v3874_v5  ;;  %v11509_v16 = vadd.s32 %v2559_v42, %v10438_v63  ;;  %v11515_v34 = vsel %vm2458_vm11, 1, %v13664_v60  ;;  %5543 = vset.pattern.permute.xlu1 %v14360_v30  ;;  %v11547_v5 = vpop.permute.xlu0 %3503  ;;  %v14743_v57 = vld [vmem:[#allocation96_spill] sm:$0xff] }
 0x343   :  { %14733 = vst [vmem:[#allocation134_spill] sm:$0xff] %v11500_v15  ;;  %14735 = vst [vmem:[#allocation74_spill] sm:$0xff] %v11515_v34  ;;  %v2564_v38 = vsel %vm2468_vm14, 1, %v13664_v60  ;;  %v2565_v45 = vsel %vm2469_vm15, 1, %v13664_v60  ;;  %4299 = vmatmul.mubr.f32.gmra.mrb[8].mxu1 %v3949_v26  ;;  %v11530_v63 = vsel %vm2459_vm13, 1, %v13664_v60  ;;  %v11533_v42 = vadd.s32 %v2556_v32, %v14737_v11  ;;  %3524 = vperm.xlu1 %5543, %v5697_v40   ;;  %v11553_v32 = vpop.permute.xlu1 %3494  ;;  %v14741_v26 = vld [vmem:[#allocation22_spill] sm:$0xff] }
 0x344   :  { %14734 = vst [vmem:[#allocation68_spill] sm:$0xff] %v11509_v16  ;;  %14736 = vst [vmem:[#allocation87_spill] sm:$0xff] %v11530_v63  ;;  %v2560_v12 = vsel %vm2464_vm0, 1, %v13664_v60  ;;  %v2561_v39 = vsel %vm2465_vm1, 1, %v13664_v60  ;;  %v11544_v53 = vadd.s32 %v2563_v52, %v14739_v50  ;;  %v2562_v44 = vsel %vm2466_vm2, 1, %v13664_v60  ;;  %v14745_v52 = vld [vmem:[#allocation42_spill] sm:$0xff] }
 0x345   :  { %14738 = vst [vmem:[#allocation77_spill] sm:$0xff] %v11533_v42  ;;  %vm2512_vm3 = vcmp.eq.s32.totalorder %v6246_v61, %v11379_v62  ;;  %vm2513_vm4 = vcmp.eq.s32.totalorder %v6255_v0, %v11379_v62  ;;  %v11556_v11 = vadd.s32 %v2564_v38, %v14741_v26  ;;  %v11559_v40 = vadd.s32 %v2565_v45, %v14743_v57  ;;  %v14746_v50 = vld [vmem:[#allocation40_spill] sm:$0xff]  ;;  %v14750_v38 = vld [vmem:[#allocation142_spill] sm:$0xff] }
 0x346   :  { %14740 = vst [vmem:[#allocation72_spill] sm:$0xff] %v11544_v53  ;;  %vm2473_vm5 = vcmp.eq.s32.totalorder %v6246_v61, %v14745_v52  ;;  %vm2474_vm6 = vcmp.eq.s32.totalorder %v6255_v0, %v14745_v52  ;;  %v11566_v19 = vadd.s32 %v2560_v12, %v14746_v50  ;;  %v14748_v53 = vld [vmem:[#allocation84_spill] sm:$0xff]  ;;  %vm2897_vm7 = vcmp.eq.s32.totalorder %v6255_v0, %v11445_v27 }
 0x347   :  { %14742 = vst [vmem:[#allocation99_spill] sm:$0xff] %v11556_v11  ;;  %14744 = vst [vmem:[#allocation64_spill] sm:$0xff] %v11559_v40  ;;  %v11569_v42 = vadd.s32 %v2561_v39, %v14748_v53  ;;  %vm2824_vm8 = vcmp.eq.s32.totalorder %v6246_v61, %v11480_v46  ;;  %v11576_v45 = vadd.s32 %v2562_v44, %v14750_v38  ;;  %v2608_v26 = vsel %vm2512_vm3, 1, %v13664_v60  ;;  %v5698_v53 = vld [vmem:[#allocation2 + $0x78] sm:$0xff]  ;;  %v3994_v15 = vld [vmem:[#allocation5 + $0x108] sm:$0xff] }
 0x348   :  { %14747 = vst [vmem:[#allocation137_spill] sm:$0xff] %v11566_v19  ;;  %v2609_v57 = vsel %vm2513_vm4, 1, %v13664_v60  ;;  %vm2825_vm10 = vcmp.eq.s32.totalorder %v6255_v0, %v11480_v46  ;;  %5544 = vset.pattern.permute.xlu1 %v14306_v56  ;;  %v11584_v12 = vsel %vm2473_vm5, 1, %v13664_v60  ;;  %v11587_v39 = vsel %vm2474_vm6, 1, %v13664_v60  ;;  %v11598_v62 = vpop.permute.xlu1 %3185  ;;  %v14756_v40 = vld [vmem:[#allocation119_spill] sm:$0xff] }
 0x349   :  { %14749 = vst [vmem:[#allocation105_spill] sm:$0xff] %v11569_v42  ;;  %14751 = vst [vmem:[#allocation25_spill] sm:$0xff] %v11576_v45  ;;  %vm3205_vm9 = vcmp.eq.s32.totalorder %v6246_v61, %v11417_v47  ;;  %vm3206_vm11 = vcmp.eq.s32.totalorder %v6255_v0, %v11417_v47  ;;  %3143 = vperm.xlu1 %5544, %v5698_v53   ;;  %vm2896_vm12 = vcmp.eq.s32.totalorder %v6246_v61, %v11445_v27  ;;  %v14755_v53 = vld [vmem:[#allocation60_spill] sm:$0xff] }
 0x34a   :  { %14752 = vst [vmem:[#allocation16_spill] sm:$0xff] %v11584_v12  ;;  %14753 = vst [vmem:[#allocation55_spill] sm:$0xff] %v11587_v39  ;;  %v2993_v44 = vsel %vm2897_vm7, 1, %v13664_v60  ;;  %v2920_v50 = vsel %vm2824_vm8, 1, %v13664_v60  ;;  %v2921_v38 = vsel %vm2825_vm10, 1, %v13664_v60  ;;  %vm3592_vm13 = vcmp.eq.s32.totalorder %v6246_v61, %v11478_v23  ;;  %v11604_v39 = vpop.permute.xlu0 %3506 }
 0x34b   :  { %14754 = vst [vmem:[#allocation136_spill] sm:$0xff] %v11598_v62  ;;  %vm3593_vm14 = vcmp.eq.s32.totalorder %v6255_v0, %v11478_v23  ;;  %v2704_v12 = vadd.s32 %v2608_v26, %v14755_v53  ;;  %v2705_v27 = vadd.s32 %v2609_v57, %v14756_v40  ;;  %v3301_v11 = vsel %vm3205_vm9, 1, %v13664_v60  ;;  %v5699_v57 = vld [vmem:[#allocation2 + $0x88] sm:$0xff] }
 0x34c   :  { %v3302_v45 = vsel %vm3206_vm11, 1, %v13664_v60  ;;  %vm3589_vm15 = vcmp.eq.s32.totalorder %v6246_v61, %v11553_v32  ;;  %vm3590_vm0 = vcmp.eq.s32.totalorder %v6255_v0, %v11553_v32  ;;  %vm2475_vm1 = vcmp.eq.s32.totalorder %v6259_v13, %v14745_v52 }
 0x34d   :  { %v2992_v42 = vsel %vm2896_vm12, 1, %v13664_v60  ;;  %v3089_v19 = vadd.s32 %v2993_v44, %v2705_v27  ;;  %v3016_v26 = vadd.s32 %v2920_v50, %v11287_v9  ;;  %v3017_v40 = vadd.s32 %v2921_v38, %v11290_v1  ;;  %5545 = vset.pattern.permute.xlu1 %v14276_v20  ;;  %v11628_v44 = vpop.permute.xlu1 %3113 }
 0x34e   :  { %vm3280_vm2 = vcmp.eq.s32.totalorder %v6246_v61, %v11598_v62  ;;  %vm3281_vm3 = vcmp.eq.s32.totalorder %v6255_v0, %v11598_v62  ;;  %2765 = vperm.xlu1 %5545, %v5699_v57   ;;  %v3014_v53 = vadd.s32 %v11191_v28, %v11227_v41  ;;  %v3013_v27 = vadd.s32 %v11185_v25, %v11219_v18  ;;  %v11641_v18 = vpop.permute.xlu0 %3518 }
 0x34f   :  { %v3686_v9 = vsel %vm3590_vm0, 1, %v13664_v60  ;;  %v3685_v1 = vsel %vm3589_vm15, 1, %v13664_v60  ;;  %vm3208_vm4 = vcmp.eq.s32.totalorder %v6246_v61, %v11628_v44  ;;  %vm3209_vm5 = vcmp.eq.s32.totalorder %v6255_v0, %v11628_v44  ;;  %14757 = vst [vmem:[#allocation49_spill] sm:$0xff] %v11641_v18  ;;  %v5700_v18 = vld [vmem:[#allocation2 + $0x80] sm:$0xff] }
 0x350   :  { %v3398_v50 = vadd.s32 %v3302_v45, %v3014_v53  ;;  %v3397_v28 = vadd.s32 %v3301_v11, %v3013_v27  ;;  %v3304_v41 = vsel %vm3208_vm4, 1, %v13664_v60  ;;  %v3305_v25 = vsel %vm3209_vm5, 1, %v13664_v60  ;;  %v14758_v27 = vld [vmem:[#allocation117_spill] sm:$0xff] }
 0x351   :  { %v3377_v38 = vsel %vm3281_vm3, 1, %v13664_v60  ;;  %v3401_v16 = vadd.s32 %v3305_v25, %v3017_v40  ;;  %v3689_v63 = vsel %vm3593_vm14, 1, %v13664_v60  ;;  %v3400_v34 = vadd.s32 %v3304_v41, %v3016_v26 }
 0x352   :  { %v3376_v11 = vsel %vm3280_vm2, 1, %v13664_v60  ;;  %v3782_v45 = vadd.s32 %v3686_v9, %v3398_v50  ;;  %v3781_v53 = vadd.s32 %v3685_v1, %v3397_v28  ;;  %5546 = vset.pattern.permute.xlu1 %v14306_v56  ;;  %v3688_v40 = vsel %vm3592_vm13, 1, %v13664_v60 }
 0x353   :  { %vm2470_vm6 = vcmp.eq.s32.totalorder %v6246_v61, %v14758_v27  ;;  %v3088_v25 = vadd.s32 %v2992_v42, %v2704_v12  ;;  %3146 = vperm.xlu1 %5546, %v5700_v18   ;;  %v3785_v26 = vadd.s32 %v3689_v63, %v3401_v16  ;;  %v3784_v41 = vadd.s32 %v3688_v40, %v3400_v34  ;;  %v11661_v50 = vpop.permute.xlu1 %3569  ;;  %v3993_v12 = vld [vmem:[#allocation5 + $0x100] sm:$0xff]  ;;  %v14760_v16 = vld [vmem:[#allocation81_spill] sm:$0xff]  ;;  %v11675_v63 = vpop.permute.xlu0 %3521 }
 0x354   :  { %vm2471_vm7 = vcmp.eq.s32.totalorder %v6255_v0, %v14758_v27  ;;  %v3878_v9 = vcvt.s32.f32 %v3782_v45  ;;  %v3877_v1 = vcvt.s32.f32 %v3781_v53  ;;  %14759 = vst [vmem:[#allocation27_spill] sm:$0xff] %v11661_v50  ;;  %v3473_v28 = vadd.s32 %v3377_v38, %v3089_v19 }
 0x355   :  { %vm3664_vm8 = vcmp.eq.s32.totalorder %v6246_v61, %v11661_v50  ;;  %vm3665_vm10 = vcmp.eq.s32.totalorder %v6255_v0, %v11661_v50  ;;  %v3881_v62 = vcvt.s32.f32 %v3785_v26  ;;  %v3472_v42 = vadd.s32 %v3376_v11, %v3088_v25  ;;  %v3995_v25 = vld [vmem:[#allocation5 + $0x110] sm:$0xff]  ;;  %v3996_v26 = vld [vmem:[#allocation5 + $0x118] sm:$0xff] }
 0x356   :  { %vm2472_vm9 = vcmp.eq.s32.totalorder %v6259_v13, %v14758_v27  ;;  %vm2479_vm11 = vcmp.eq.s32.totalorder %v6246_v61, %v14760_v16  ;;  %4178 = vmatprep.mubr.f32.mxu0 %v3878_v9  ;;  %v3761_v34 = vsel %vm3665_vm10, 1, %v13664_v60  ;;  %v3760_v19 = vsel %vm3664_vm8, 1, %v13664_v60 }
 0x357   :  { %vm2480_vm12 = vcmp.eq.s32.totalorder %v6255_v0, %v14760_v16  ;;  %4179 = vmatmul.mubr.f32.gmra.mrb[8].mxu0 %v3877_v1  ;;  %3149 = vperm.xlu1 %5546, %v5699_v57   ;;  %v3880_v38 = vcvt.s32.f32 %v3784_v41  ;;  %v3857_v11 = vadd.s32 %v3761_v34, %v3473_v28  ;;  %v3856_v45 = vadd.s32 %v3760_v19, %v3472_v42  ;;  %v14761_v41 = vld [vmem:[#allocation61_spill] sm:$0xff] }
 0x358   :  { %v11681_v53 = vsel %vm2475_vm1, 1, %v13664_v60  ;;  %v11687_v40 = vsel %vm2470_vm6, 1, %v13664_v60  ;;  %vm2481_vm13 = vcmp.eq.s32.totalorder %v6259_v13, %v14760_v16  ;;  %4183 = vmatprep.mubr.f32.mxu0 %v3881_v62  ;;  %v5424_v57 = vpack.c.bf16 %v3994_v15, %v3993_v12  ;;  %v11699_v9 = vpop.permute.xlu1 %2732  ;;  %v14764_v12 = vld [vmem:[#allocation135_spill] sm:$0xff]  ;;  %v14765_v19 = vld [vmem:[#allocation85_spill] sm:$0xff] }
 0x359   :  { %v11695_v52 = vsel %vm2471_vm7, 1, %v13664_v60  ;;  %vm2476_vm14 = vcmp.eq.s32.totalorder %v6246_v61, %v14761_v41  ;;  %v3953_v1 = vcvt.s32.f32 %v3857_v11  ;;  %v3952_v28 = vcvt.s32.f32 %v3856_v45  ;;  %v11746_v11 = vpop.permute.xlu0 %2804 }
 0x35a   :  { %v11705_v62 = vsel %vm2472_vm9, 1, %v13664_v60  ;;  %v11711_v15 = vsel %vm2479_vm11, 1, %v13664_v60  ;;  %v11717_v42 = vsel %vm2480_vm12, 1, %v13664_v60  ;;  %vm2477_vm15 = vcmp.eq.s32.totalorder %v6255_v0, %v14761_v41  ;;  %5425 = vmatprep.subr.bf16.mxu1 %v5424_v57  ;;  %14767 = vst [vmem:[#allocation112_spill] sm:$0xff] %v11746_v11 }
 0x35b   :  { %14762 = vst [vmem:[#allocation86_spill] sm:$0xff] %v11717_v42  ;;  %v11722_v27 = vsel %vm2481_vm13, 1, %v13664_v60  ;;  %vm2478_vm0 = vcmp.eq.s32.totalorder %v6259_v13, %v14761_v41  ;;  %vm2485_vm1 = vcmp.eq.s32.totalorder %v6246_v61, %v14764_v12  ;;  %5547 = vset.pattern.permute.xlu1 %v14360_v30  ;;  %4184 = vmatmul.mubr.f32.gmra.mrb[10].mxu0 %v3880_v38  ;;  %v11730_v16 = vsel %vm2476_vm14, 1, %v13664_v60  ;;  %v14766_v38 = vld [vmem:[#allocation115_spill] sm:$0xff] }
 0x35c   :  { %14763 = vst [vmem:[#allocation110_spill] sm:$0xff] %v11722_v27  ;;  %v5428_v34 = vpack.c.bf16 %v3996_v26, %v3995_v25  ;;  %vm2486_vm2 = vcmp.eq.s32.totalorder %v6255_v0, %v14764_v12  ;;  %vm3195_vm3 = vcmp.eq.s32.totalorder %v6259_v13, %v10456_v6  ;;  %vm3204_vm4 = vcmp.eq.s32.totalorder %v6259_v13, %v10552_v37 }
 0x35d   :  { %3530 = vperm.xlu1 %5547, %v5700_v18   ;;  %4303 = vmatprep.mubr.f32.mxu1 %v3953_v1  ;;  %vm2487_vm5 = vcmp.eq.s32.totalorder %v6259_v13, %v14764_v12  ;;  %vm2515_vm6 = vcmp.eq.s32.totalorder %v6246_v61, %v14765_v19  ;;  %vm2516_vm7 = vcmp.eq.s32.totalorder %v6255_v0, %v14765_v19  ;;  %v11752_v18 = vsel %vm2477_vm15, 1, %v13664_v60  ;;  %v11764_v25 = vpop.permute.xlu1 %2423 }
 0x35e   :  { %vm3211_vm8 = vcmp.eq.s32.totalorder %v6246_v61, %v14766_v38  ;;  %4304 = vmatmul.mubr.f32.gmra.mrb[10].mxu1 %v3952_v28  ;;  %v11758_v45 = vsel %vm2478_vm0, 1, %v13664_v60  ;;  %vm3212_vm10 = vcmp.eq.s32.totalorder %v6255_v0, %v14766_v38  ;;  %vm3213_vm9 = vcmp.eq.s32.totalorder %v6259_v13, %v14766_v38  ;;  %v14771_v38 = vld [vmem:[#allocation54_spill] sm:$0xff] }
 0x35f   :  { %5427 = vmatpush3.bf16.msra.mxu1 %v5424_v57  ;;  %v11770_v26 = vsel %vm2485_vm1, 1, %v13664_v60  ;;  %v11776_v41 = vsel %vm2486_vm2, 1, %v13664_v60  ;;  %v3291_v1 = vsel %vm3195_vm3, 1, %v13664_v60  ;;  %v3300_v57 = vsel %vm3204_vm4, 1, %v13664_v60 }
 0x360   :  { %14768 = vst [vmem:[#allocation35_spill] sm:$0xff] %v11770_v26  ;;  %14769 = vst [vmem:[#allocation29_spill] sm:$0xff] %v11776_v41  ;;  %5429 = vmatprep.subr.bf16.mxu1 %v5428_v34  ;;  %v11790_v28 = vsel %vm2487_vm5, 1, %v13664_v60  ;;  %v2611_v50 = vsel %vm2515_vm6, 1, %v13664_v60  ;;  %v2612_v6 = vsel %vm2516_vm7, 1, %v13664_v60  ;;  %v3307_v37 = vsel %vm3211_vm8, 1, %v13664_v60 }
 0x361   :  { %14770 = vst [vmem:[#allocation131_spill] sm:$0xff] %v11790_v28  ;;  %5548 = vset.pattern.permute.xlu1 %v14276_v20  ;;  %v3308_v12 = vsel %vm3212_vm10, 1, %v13664_v60  ;;  %v3309_v28 = vsel %vm3213_vm9, 1, %v13664_v60  ;;  %vm3579_vm11 = vcmp.eq.s32.totalorder %v6259_v13, %v10765_v55  ;;  %vm3198_vm12 = vcmp.eq.s32.totalorder %v6259_v13, %v10851_v54  ;;  %v5701_v41 = vld [vmem:[#allocation2 + $0x98] sm:$0xff] }
 0x362   :  { %2771 = vperm.xlu1 %5548, %v5701_v41   ;;  %v3387_v26 = vadd.s32 %v3291_v1, %v11206_v49  ;;  %v11813_v27 = vadd.s32 %v3300_v57, %v11268_v3  ;;  %vm3216_vm13 = vcmp.eq.s32.totalorder %v6259_v13, %v14771_v38  ;;  %vm2817_vm14 = vcmp.eq.s32.totalorder %v6259_v13, %v10926_v10  ;;  %v11828_v49 = vpop.permute.xlu0 %2735 }
 0x363   :  { %5431 = vmatpush3.bf16.msra.mxu1 %v5428_v34  ;;  %v11820_v42 = vadd.s32 %v3307_v37, %v11273_v48  ;;  %vm3214_vm15 = vcmp.eq.s32.totalorder %v6246_v61, %v14771_v38  ;;  %vm3215_vm0 = vcmp.eq.s32.totalorder %v6255_v0, %v14771_v38  ;;  %vm3582_vm1 = vcmp.eq.s32.totalorder %v6259_v13, %v10962_v24  ;;  %v11844_v1 = vpop.permute.xlu1 %3188 }
 0x364   :  { %v11831_v3 = vadd.s32 %v3308_v12, %v11276_v7  ;;  %v11834_v10 = vadd.s32 %v3309_v28, %v11284_v4  ;;  %v3675_v48 = vsel %vm3579_vm11, 1, %v13664_v60  ;;  %v3294_v34 = vsel %vm3198_vm12, 1, %v13664_v60  ;;  %14772 = vst [vmem:[#allocation38_spill] sm:$0xff] %v11844_v1  ;;  %v5702_v28 = vld [vmem:[#allocation2 + $0x90] sm:$0xff] }
 0x365   :  { %v3312_v24 = vsel %vm3216_vm13, 1, %v13664_v60  ;;  %v3006_v7 = vadd.s32 %v10976_v17, %v11209_v51  ;;  %v2913_v4 = vsel %vm2817_vm14, 1, %v13664_v60  ;;  %vm3585_vm2 = vcmp.eq.s32.totalorder %v6259_v13, %v11062_v58 }
 0x366   :  { %5549 = vset.pattern.permute.xlu1 %v14306_v56  ;;  %v3310_v55 = vsel %vm3214_vm15, 1, %v13664_v60  ;;  %v3311_v57 = vsel %vm3215_vm0, 1, %v13664_v60  ;;  %v3678_v54 = vsel %vm3582_vm1, 1, %v13664_v60  ;;  %vm2831_vm3 = vcmp.eq.s32.totalorder %v6255_v0, %v11828_v49 }
 0x367   :  { %3152 = vperm.xlu1 %5549, %v5702_v28   ;;  %v11858_v37 = vadd.s32 %v3675_v48, %v3387_v26  ;;  %v3390_v17 = vadd.s32 %v3294_v34, %v3006_v7  ;;  %vm2899_vm4 = vcmp.eq.s32.totalorder %v6246_v61, %v11746_v11  ;;  %vm2900_vm5 = vcmp.eq.s32.totalorder %v6255_v0, %v11746_v11 }
 0x368   :  { %v11865_v58 = vadd.s32 %v3312_v24, %v11337_v29  ;;  %v11868_v51 = vadd.s32 %v2913_v4, %v11216_v35  ;;  %v11871_v12 = vsel %vm3585_vm2, 1, %v13664_v60  ;;  %vm2830_vm6 = vcmp.eq.s32.totalorder %v6246_v61, %v11828_v49  ;;  %v11882_v29 = vpop.permute.xlu1 %2807  ;;  %v14773_v24 = vld [vmem:[#allocation91_spill] sm:$0xff] }
 0x369   :  { %v11875_v26 = vadd.s32 %v3678_v54, %v3390_v17  ;;  %v2927_v38 = vsel %vm2831_vm3, 1, %v13664_v60  ;;  %vm3283_vm7 = vcmp.eq.s32.totalorder %v6246_v61, %v11844_v1  ;;  %vm3284_vm8 = vcmp.eq.s32.totalorder %v6255_v0, %v11844_v1  ;;  %v14774_v17 = vld [vmem:[#allocation140_spill] sm:$0xff] }
 0x36a   :  { %v2707_v35 = vadd.s32 %v2611_v50, %v11134_v43  ;;  %v2995_v48 = vsel %vm2899_vm4, 1, %v13664_v60  ;;  %v2996_v34 = vsel %vm2900_vm5, 1, %v13664_v60  ;;  %v2639_v7 = vadd.s32 %v11330_v36, %v14773_v24 }
 0x36b   :  { %3155 = vperm.xlu1 %5549, %v5701_v41   ;;  %v2708_v4 = vadd.s32 %v2612_v6, %v11137_v14  ;;  %v2926_v54 = vsel %vm2830_vm6, 1, %v13664_v60  ;;  %vm2827_vm10 = vcmp.eq.s32.totalorder %v6246_v61, %v11699_v9  ;;  %vm2828_vm9 = vcmp.eq.s32.totalorder %v6255_v0, %v11699_v9 }
 0x36c   :  { %v2638_v43 = vadd.s32 %v11327_v2, %v14774_v17  ;;  %v3023_v50 = vadd.s32 %v2927_v38, %v2639_v7  ;;  %v3379_v1 = vsel %vm3283_vm7, 1, %v13664_v60  ;;  %v3380_v11 = vsel %vm3284_vm8, 1, %v13664_v60 }
 0x36d   :  { %vm3594_vm11 = vcmp.eq.s32.totalorder %v6259_v13, %v11478_v23  ;;  %vm3598_vm12 = vcmp.eq.s32.totalorder %v6246_v61, %v11547_v5  ;;  %v3091_v14 = vadd.s32 %v2995_v48, %v2707_v35  ;;  %v3092_v36 = vadd.s32 %v2996_v34, %v2708_v4  ;;  %v11908_v38 = vpop.permute.xlu1 %3572  ;;  %v14776_v34 = vld [vmem:[#allocation138_spill] sm:$0xff] }
 0x36e   :  { %vm3599_vm13 = vcmp.eq.s32.totalorder %v6255_v0, %v11547_v5  ;;  %v3022_v41 = vadd.s32 %v2926_v54, %v2638_v43  ;;  %v2923_v6 = vsel %vm2827_vm10, 1, %v13664_v60  ;;  %v2924_v2 = vsel %vm2828_vm9, 1, %v13664_v60  ;;  %14775 = vst [vmem:[#allocation103_spill] sm:$0xff] %v11908_v38 }
 0x36f   :  { %5550 = vset.pattern.permute.xlu1 %v14360_v30  ;;  %vm3667_vm14 = vcmp.eq.s32.totalorder %v6246_v61, %v11908_v38  ;;  %vm3668_vm15 = vcmp.eq.s32.totalorder %v6255_v0, %v11908_v38  ;;  %v3476_v35 = vadd.s32 %v3380_v11, %v3092_v36  ;;  %v3475_v48 = vadd.s32 %v3379_v1, %v3091_v14  ;;  %v5703_v14 = vld [vmem:[#allocation2 + $0xa8] sm:$0xff] }
 0x370   :  { %3536 = vperm.xlu1 %5550, %v5702_v28   ;;  %vm3201_vm0 = vcmp.eq.s32.totalorder %v6259_v13, %v14776_v34  ;;  %v3764_v24 = vsel %vm3668_vm15, 1, %v13664_v60  ;;  %v3763_v7 = vsel %vm3667_vm14, 1, %v13664_v60  ;;  %v3407_v4 = vadd.s32 %v3311_v57, %v3023_v50 }
 0x371   :  { %v3860_v54 = vadd.s32 %v3764_v24, %v3476_v35  ;;  %v3859_v17 = vadd.s32 %v3763_v7, %v3475_v48  ;;  %v3695_v28 = vsel %vm3599_vm13, 1, %v13664_v60  ;;  %v3694_v11 = vsel %vm3598_vm12, 1, %v13664_v60  ;;  %v11930_v57 = vpop.permute.xlu1 %3500 }
 0x372   :  { %v3403_v1 = vadd.s32 %v11820_v42, %v2923_v6  ;;  %v3404_v43 = vadd.s32 %v11831_v3, %v2924_v2  ;;  %vm2518_vm1 = vcmp.eq.s32.totalorder %v6246_v61, %v11764_v25  ;;  %v3406_v50 = vadd.s32 %v3310_v55, %v3022_v41 }
 0x373   :  { %vm2519_vm2 = vcmp.eq.s32.totalorder %v6255_v0, %v11764_v25  ;;  %vm3595_vm3 = vcmp.eq.s32.totalorder %v6246_v61, %v11930_v57  ;;  %vm3596_vm4 = vcmp.eq.s32.totalorder %v6255_v0, %v11930_v57  ;;  %v3956_v42 = vcvt.s32.f32 %v3860_v54 }
 0x374   :  { %5551 = vset.pattern.permute.xlu1 %v14276_v20  ;;  %v3955_v3 = vcvt.s32.f32 %v3859_v17  ;;  %v3692_v36 = vsel %vm3596_vm4, 1, %v13664_v60  ;;  %v3691_v6 = vsel %vm3595_vm3, 1, %v13664_v60  ;;  %v3791_v55 = vadd.s32 %v3695_v28, %v3407_v4 }
 0x375   :  { %2777 = vperm.xlu1 %5551, %v5703_v14   ;;  %vm2902_vm5 = vcmp.eq.s32.totalorder %v6246_v61, %v11882_v29  ;;  %vm2903_vm6 = vcmp.eq.s32.totalorder %v6255_v0, %v11882_v29  ;;  %4308 = vmatprep.mubr.f32.mxu1 %v3956_v42  ;;  %v3788_v41 = vadd.s32 %v3692_v36, %v3404_v43  ;;  %v3690_v35 = vsel %vm3594_vm11, 1, %v13664_v60  ;;  %v14777_v43 = vld [vmem:[#allocation116_spill] sm:$0xff] }
 0x376   :  { %v3787_v2 = vadd.s32 %v3691_v6, %v3403_v1  ;;  %vm3600_vm7 = vcmp.eq.s32.totalorder %v6259_v13, %v11547_v5  ;;  %v2614_v48 = vsel %vm2518_vm1, 1, %v13664_v60  ;;  %v2615_v24 = vsel %vm2519_vm2, 1, %v13664_v60  ;;  %4309 = vmatmul.mubr.f32.gmra.mrb[12].mxu1 %v3955_v3  ;;  %v11963_v7 = vpop.permute.xlu1 %3191  ;;  %v14778_v3 = vld [vmem:[#allocation78_spill] sm:$0xff] }
 0x377   :  { %v3297_v23 = vsel %vm3201_vm0, 1, %v13664_v60  ;;  %v3884_v4 = vcvt.s32.f32 %v3788_v41  ;;  %v3790_v17 = vadd.s32 %v3694_v11, %v3406_v50  ;;  %v2998_v28 = vsel %vm2902_vm5, 1, %v13664_v60  ;;  %v5704_v11 = vld [vmem:[#allocation2 + $0xa0] sm:$0xff] }
 0x378   :  { %v3883_v54 = vcvt.s32.f32 %v3787_v2  ;;  %v2999_v1 = vsel %vm2903_vm6, 1, %v13664_v60  ;;  %vm3286_vm8 = vcmp.eq.s32.totalorder %v6246_v61, %v11963_v7  ;;  %vm3287_vm10 = vcmp.eq.s32.totalorder %v6255_v0, %v11963_v7 }
 0x379   :  { %5552 = vset.pattern.permute.xlu1 %v14306_v56  ;;  %v3393_v34 = vadd.s32 %v11871_v12, %v11868_v51  ;;  %v2710_v42 = vadd.s32 %v2614_v48, %v14777_v43  ;;  %v2711_v36 = vadd.s32 %v2615_v24, %v14778_v3  ;;  %4188 = vmatprep.mubr.f32.mxu0 %v3884_v4  ;;  %v3887_v50 = vcvt.s32.f32 %v3791_v55 }
 0x37a   :  { %3158 = vperm.xlu1 %5552, %v5704_v11   ;;  %v3870_v6 = vcvt.s32.f32 %v11875_v26  ;;  %v3018_v41 = vadd.s32 %v3690_v35, %v11297_v21  ;;  %v3382_v2 = vsel %vm3286_vm8, 1, %v13664_v60  ;;  %v3383_v38 = vsel %vm3287_vm10, 1, %v13664_v60  ;;  %4189 = vmatmul.mubr.f32.gmra.mrb[12].mxu0 %v3883_v54  ;;  %v14779_v54 = vld [vmem:[#allocation111_spill] sm:$0xff] }
 0x37b   :  { %v11984_v51 = vsel %vm3600_vm7, 1, %v13664_v60  ;;  %v11986_v12 = vadd.s32 %v3393_v34, %v3297_v23  ;;  %v3094_v48 = vadd.s32 %v2998_v28, %v2710_v42  ;;  %v3095_v24 = vadd.s32 %v2999_v1, %v2711_v36  ;;  %4193 = vmatprep.mubr.f32.mxu0 %v3887_v50  ;;  %v14781_v50 = vld [vmem:[#allocation52_spill] sm:$0xff] }
 0x37c   :  { %vm2820_vm9 = vcmp.eq.s32.totalorder %v6259_v13, %v11103_v31  ;;  %vm3588_vm11 = vcmp.eq.s32.totalorder %v6259_v13, %v11324_v33  ;;  %vm3207_vm12 = vcmp.eq.s32.totalorder %v6259_v13, %v11417_v47  ;;  %v11994_v21 = vpop.permute.xlu1 %3575  ;;  %v3886_v55 = vcvt.s32.f32 %v3790_v17  ;;  %v14780_v17 = vld [vmem:[#allocation129_spill] sm:$0xff] }
 0x37d   :  { %vm3670_vm13 = vcmp.eq.s32.totalorder %v6246_v61, %v11994_v21  ;;  %vm3671_vm14 = vcmp.eq.s32.totalorder %v6255_v0, %v11994_v21  ;;  %v3479_v5 = vadd.s32 %v3383_v38, %v3095_v24  ;;  %v3478_v35 = vadd.s32 %v3382_v2, %v3094_v48  ;;  %v14782_v2 = vld [vmem:[#allocation17_spill] sm:$0xff] }
 0x37e   :  { %3161 = vperm.xlu1 %5552, %v5703_v14   ;;  %vm2826_vm15 = vcmp.eq.s32.totalorder %v6259_v13, %v11480_v46  ;;  %vm3591_vm0 = vcmp.eq.s32.totalorder %v6259_v13, %v11553_v32  ;;  %4194 = vmatmul.mubr.f32.gmra.mrb[14].mxu0 %v3886_v55  ;;  %v3767_v23 = vsel %vm3671_vm14, 1, %v13664_v60  ;;  %v3766_v4 = vsel %vm3670_vm13, 1, %v13664_v60 }
 0x37f   :  { %vm3602_vm1 = vcmp.eq.s32.totalorder %v6255_v0, %v11604_v39  ;;  %vm3603_vm2 = vcmp.eq.s32.totalorder %v6259_v13, %v11604_v39  ;;  %v3863_v14 = vadd.s32 %v3767_v23, %v3479_v5  ;;  %v3862_v38 = vadd.s32 %v3766_v4, %v3478_v35  ;;  %v14783_v4 = vld [vmem:[#allocation100_spill] sm:$0xff] }
 0x380   :  { %v2916_v46 = vsel %vm2820_vm9, 1, %v13664_v60  ;;  %v3684_v32 = vsel %vm3588_vm11, 1, %v13664_v60  ;;  %v3015_v28 = vadd.s32 %v14780_v17, %v14779_v54  ;;  %v3303_v1 = vsel %vm3207_vm12, 1, %v13664_v60 }
 0x381   :  { %v2922_v34 = vsel %vm2826_vm15, 1, %v13664_v60  ;;  %v3687_v43 = vsel %vm3591_vm0, 1, %v13664_v60  ;;  %v2739_v31 = vpop.permute.xlu1 %2738  ;;  %v3959_v42 = vcvt.s32.f32 %v3863_v14  ;;  %v3958_v3 = vcvt.s32.f32 %v3862_v38  ;;  %v14784_v14 = vld [vmem:[#allocation79_spill] sm:$0xff] }
 0x382   :  { %5554 = vset.pattern.permute.xlu1 %v14360_v30  ;;  %vm3210_vm3 = vcmp.eq.s32.totalorder %v6259_v13, %v11628_v44  ;;  %vm2833_vm4 = vcmp.eq.s32.totalorder %v6246_v61, %v2739_v31  ;;  %vm2834_vm5 = vcmp.eq.s32.totalorder %v6255_v0, %v2739_v31  ;;  %vm3997_vm6 = vcmask 261120  }
 0x383   :  { %3542 = vperm.xlu1 %5554, %v5704_v11   ;;  %v3396_v47 = vadd.s32 %v11813_v27, %v2916_v46  ;;  %v3399_v33 = vadd.s32 %v3303_v1, %v3015_v28  ;;  %vm2829_vm7 = vcmp.eq.s32.totalorder %v6259_v13, %v11699_v9  ;;  %4313 = vmatprep.mubr.f32.mxu1 %v3959_v42  ;;  %v3867_v36 = vcvt.s32.f32 %v11858_v37  ;;  %v12063_v46 = vld [vmem:[#allocation2 + $0xb8] sm:$0xff] }
 0x384   :  { %vm3226_vm8 = vcmp.eq.s32.totalorder %v6246_v61, %v14781_v50  ;;  %vm3229_vm10 = vcmp.eq.s32.totalorder %v6246_v61, %v14782_v2  ;;  %vm3601_vm9 = vcmp.eq.s32.totalorder %v6246_v61, %v11604_v39  ;;  %v3699_v27 = vsel %vm3603_vm2, 1, %v13664_v60  ;;  %4314 = vmatmul.mubr.f32.gmra.mrb[14].mxu1 %v3958_v3  ;;  %v14785_v3 = vld [vmem:[#allocation108_spill] sm:$0xff] }
 0x385   :  { %v2929_v11 = vsel %vm2833_vm4, 1, %v13664_v60  ;;  %v2930_v9 = vsel %vm2834_vm5, 1, %v13664_v60  ;;  %v3780_v37 = vadd.s32 %v3684_v32, %v3396_v47  ;;  %v3402_v48 = vadd.s32 %v3018_v41, %v2922_v34  ;;  %5328 = vmatprep.mubr.msk.f32.mxu1 %vm3997_vm6, %v3867_v36  ;;  %v5706_v36 = vld [vmem:[#allocation2 + $0xb0] sm:$0xff] }
 0x386   :  { %v3783_v24 = vadd.s32 %v3687_v43, %v3399_v33  ;;  %v3306_v55 = vsel %vm3210_vm3, 1, %v13664_v60  ;;  %v2925_v5 = vsel %vm2829_vm7, 1, %v13664_v60  ;;  %vm3597_vm11 = vcmp.eq.s32.totalorder %v6259_v13, %v11930_v57  ;;  %v3123_v35 = vpop.permute.xlu1 %3122 }
 0x387   :  { %5555 = vset.pattern.permute.xlu1 %v14276_v20  ;;  %v3873_v23 = vcvt.s32.f32 %v11986_v12  ;;  %v3698_v41 = vsel %vm3602_vm1, 1, %v13664_v60  ;;  %v3025_v44 = vadd.s32 %v2929_v11, %v14783_v4  ;;  %v3026_v38 = vadd.s32 %v2930_v9, %v14784_v14  ;;  %v2745_v4 = vpop.permute.xlu0 %2744 }
 0x388   :  { %2783 = vperm.xlu1 %5555, %v12063_v46   ;;  %vm3217_vm12 = vcmp.eq.s32.totalorder %v6246_v61, %v3123_v35  ;;  %vm3218_vm13 = vcmp.eq.s32.totalorder %v6255_v0, %v3123_v35  ;;  %vm2835_vm14 = vcmp.eq.s32.totalorder %v6259_v13, %v2739_v31  ;;  %5329 = vmatmul.mubr.msk.f32.vlgmr.msra.gmra.mrb[16].mxu1 %vm3997_vm6, %v3870_v6  ;;  %v3697_v32 = vsel %vm3601_vm9, 1, %v13664_v60 }
 0x389   :  { %v3313_v20 = vsel %vm3217_vm12, 1, %v13664_v60  ;;  %v3314_v12 = vsel %vm3218_vm13, 1, %v13664_v60  ;;  %vm2832_vm15 = vcmp.eq.s32.totalorder %v6259_v13, %v11828_v49  ;;  %v3693_v54 = vsel %vm3597_vm11, 1, %v13664_v60  ;;  %5331 = vmatprep.mubr.msk.f32.mxu1 %vm3997_vm6, %v3873_v23 }
 0x38a   :  { %v3410_v17 = vadd.s32 %v3314_v12, %v3026_v38  ;;  %v3409_v28 = vadd.s32 %v3313_v20, %v3025_v44  ;;  %v3786_v26 = vadd.s32 %v3402_v48, %v3306_v55  ;;  %v3405_v6 = vadd.s32 %v11834_v10, %v2925_v5 }
 0x38b   :  { %vm3219_vm0 = vcmp.eq.s32.totalorder %v6259_v13, %v3123_v35  ;;  %v3876_v1 = vcvt.s32.f32 %v3780_v37  ;;  %v2931_v39 = vsel %vm2835_vm14, 1, %v13664_v60  ;;  %v2742_v34 = vpop.permute.xlu1 %2741  ;;  %v3879_v43 = vcvt.s32.f32 %v3783_v24 }
 0x38c   :  { %5556 = vset.pattern.permute.xlu1 %v14306_v56  ;;  %v3794_v31 = vadd.s32 %v3698_v41, %v3410_v17  ;;  %v3793_v42 = vadd.s32 %v3697_v32, %v3409_v28  ;;  %v3408_v57 = vadd.s32 %v11984_v51, %v11865_v58  ;;  %v3027_v47 = vadd.s32 %v3699_v27, %v14785_v3  ;;  %v14786_v17 = vld [vmem:[#allocation132_spill] sm:$0xff]  ;;  %v14788_v3 = vld [vmem:[#allocation75_spill] sm:$0xff] }
 0x38d   :  { %v2928_v10 = vsel %vm2832_vm15, 1, %v13664_v60  ;;  %v3789_v33 = vadd.s32 %v3693_v54, %v3405_v6  ;;  %3164 = vperm.xlu1 %5556, %v5706_v36   ;;  %5332 = vmatmul.mubr.msk.f32.gmra.mrb[18].mxu1 %vm3997_vm6, %v3876_v1  ;;  %v3315_v56 = vsel %vm3219_vm0, 1, %v13664_v60  ;;  %vm2837_vm1 = vcmp.eq.s32.totalorder %v6255_v0, %v2742_v34  ;;  %v14791_v36 = vld [vmem:[#allocation133_spill] sm:$0xff] }
 0x38e   :  { %vm2838_vm2 = vcmp.eq.s32.totalorder %v6259_v13, %v2742_v34  ;;  %5334 = vmatprep.mubr.msk.f32.mxu1 %vm3997_vm6, %v3879_v43  ;;  %v3890_v58 = vcvt.s32.f32 %v3794_v31  ;;  %vm3228_vm3 = vcmp.eq.s32.totalorder %v6259_v13, %v14781_v50  ;;  %v3411_v51 = vadd.s32 %v3027_v47, %v2931_v39  ;;  %v14789_v47 = vld [vmem:[#allocation23_spill] sm:$0xff] }
 0x38f   :  { %vm2836_vm4 = vcmp.eq.s32.totalorder %v6246_v61, %v2742_v34  ;;  %v3889_v49 = vcvt.s32.f32 %v3793_v42  ;;  %v12108_v27 = vsel %vm3226_vm8, 1, %v13664_v60  ;;  %v3325_v11 = vsel %vm3229_vm10, 1, %v13664_v60  ;;  %v14787_v42 = vld [vmem:[#allocation134_spill] sm:$0xff] }
 0x390   :  { %v3792_v9 = vadd.s32 %v3408_v57, %v2928_v10  ;;  %4198 = vmatprep.mubr.f32.mxu0 %v3890_v58  ;;  %v3882_v37 = vcvt.s32.f32 %v3786_v26  ;;  %v3795_v48 = vadd.s32 %v3411_v51, %v3315_v56  ;;  %v2933_v24 = vsel %vm2837_vm1, 1, %v13664_v60  ;;  %v3126_v5 = vpop.permute.xlu1 %3125 }
 0x391   :  { %v2934_v55 = vsel %vm2838_vm2, 1, %v13664_v60  ;;  %3167 = vperm.xlu1 %5556, %v12063_v46   ;;  %4199 = vmatmul.mubr.f32.gmra.mrb[16].mxu0 %v3889_v49  ;;  %v3885_v35 = vcvt.s32.f32 %v3789_v33  ;;  %v2932_v23 = vsel %vm2836_vm4, 1, %v13664_v60  ;;  %vm3220_vm5 = vcmp.eq.s32.totalorder %v6246_v61, %v3126_v5  ;;  %v14790_v33 = vld [vmem:[#allocation139_spill] sm:$0xff] }
 0x392   :  { %vm3221_vm7 = vcmp.eq.s32.totalorder %v6255_v0, %v3126_v5  ;;  %vm3222_vm8 = vcmp.eq.s32.totalorder %v6259_v13, %v3126_v5  ;;  %5335 = vmatmul.mubr.msk.f32.gmra.mrb[20].mxu1 %vm3997_vm6, %v3882_v37  ;;  %v12126_v41 = vsel %vm3228_vm3, 1, %v13664_v60  ;;  %vm3230_vm10 = vcmp.eq.s32.totalorder %v6255_v0, %v14782_v2  ;;  %v14793_v5 = vld [vmem:[#allocation71_spill] sm:$0xff] }
 0x393   :  { %v3317_v44 = vsel %vm3221_vm7, 1, %v13664_v60  ;;  %v3318_v14 = vsel %vm3222_vm8, 1, %v13664_v60  ;;  %5337 = vmatprep.mubr.msk.f32.mxu1 %vm3997_vm6, %v3885_v35  ;;  %v3029_v38 = vadd.s32 %v2933_v24, %v11365_v22  ;;  %v3030_v20 = vadd.s32 %v2934_v55, %v11371_v8  ;;  %v2748_v24 = vpop.permute.xlu0 %2747  ;;  %v14792_v55 = vld [vmem:[#allocation49_spill] sm:$0xff] }
 0x394   :  { %v3316_v12 = vsel %vm3220_vm5, 1, %v13664_v60  ;;  %v3888_v32 = vcvt.s32.f32 %v3792_v9  ;;  %vm3231_vm9 = vcmp.eq.s32.totalorder %v6259_v13, %v14782_v2  ;;  %v12139_v54 = vadd.s32 %v3325_v11, %v11497_v59  ;;  %v14794_v35 = vld [vmem:[#allocation73_spill] sm:$0xff] }
 0x395   :  { %v3028_v28 = vadd.s32 %v2932_v23, %v14786_v17  ;;  %5557 = vset.pattern.permute.xlu1 %v14360_v30  ;;  %v3891_v26 = vcvt.s32.f32 %v3795_v48  ;;  %v3326_v6 = vsel %vm3230_vm10, 1, %v13664_v60  ;;  %vm2840_vm11 = vcmp.eq.s32.totalorder %v6255_v0, %v2745_v4  ;;  %v3510_v8 = vpop.permute.xlu1 %3509 }
 0x396   :  { %v3414_v22 = vadd.s32 %v3318_v14, %v3030_v20  ;;  %3551 = vperm.xlu1 %5557, %v12063_v46   ;;  %5338 = vmatmul.mubr.msk.f32.gmra.mrb[22].mxu1 %vm3997_vm6, %v3888_v32  ;;  %v3413_v1 = vadd.s32 %v3317_v44, %v3029_v38  ;;  %vm3604_vm12 = vcmp.eq.s32.totalorder %v6246_v61, %v3510_v8  ;;  %v2936_v58 = vsel %vm2840_vm11, 1, %v13664_v60 }
 0x397   :  { %vm3605_vm13 = vcmp.eq.s32.totalorder %v6255_v0, %v3510_v8  ;;  %vm3606_vm14 = vcmp.eq.s32.totalorder %v6259_v13, %v3510_v8  ;;  %5340 = vmatprep.mubr.msk.f32.mxu1 %vm3997_vm6, %v3891_v26  ;;  %v3412_v30 = vadd.s32 %v3316_v12, %v3028_v28  ;;  %vm2841_vm15 = vcmp.eq.s32.totalorder %v6259_v13, %v2745_v4 }
 0x398   :  { %v3702_v59 = vsel %vm3606_vm14, 1, %v13664_v60  ;;  %v3701_v39 = vsel %vm3605_vm13, 1, %v13664_v60  ;;  %v3700_v46 = vsel %vm3604_vm12, 1, %v13664_v60  ;;  %vm2839_vm0 = vcmp.eq.s32.totalorder %v6246_v61, %v2745_v4 }
 0x399   :  { %v3798_v34 = vadd.s32 %v3702_v59, %v3414_v22  ;;  %v3797_v43 = vadd.s32 %v3701_v39, %v3413_v1  ;;  %v3796_v31 = vadd.s32 %v3700_v46, %v3412_v30  ;;  %v12157_v57 = vadd.s32 %v3326_v6, %v14787_v42  ;;  %v14796_v42 = vld [vmem:[#allocation74_spill] sm:$0xff] }
 0x39a   :  { %v2648_v10 = vadd.s32 %v14789_v47, %v14788_v3  ;;  %v2649_v56 = vadd.s32 %v14791_v36, %v14790_v33  ;;  %v2937_v51 = vsel %vm2841_vm15, 1, %v13664_v60  ;;  %v3129_v49 = vpop.permute.xlu1 %3128  ;;  %vm3227_vm1 = vcmp.eq.s32.totalorder %v6255_v0, %v14781_v50  ;;  %v14797_v47 = vld [vmem:[#allocation69_spill] sm:$0xff] }
 0x39b   :  { %v3893_v11 = vcvt.s32.f32 %v3797_v43  ;;  %v3894_v9 = vcvt.s32.f32 %v3798_v34  ;;  %v3892_v37 = vcvt.s32.f32 %v3796_v31  ;;  %v2935_v48 = vsel %vm2839_vm0, 1, %v13664_v60  ;;  %v14795_v31 = vld [vmem:[#allocation53_spill] sm:$0xff] }
 0x39c   :  { %vm3223_vm2 = vcmp.eq.s32.totalorder %v6246_v61, %v3129_v49  ;;  %vm3224_vm3 = vcmp.eq.s32.totalorder %v6255_v0, %v3129_v49  ;;  %vm3225_vm4 = vcmp.eq.s32.totalorder %v6259_v13, %v3129_v49  ;;  %vm3613_vm5 = vcmp.eq.s32.totalorder %v6246_v61, %v14792_v55 }
 0x39d   :  { %v2647_v23 = vadd.s32 %v14794_v35, %v14793_v5  ;;  %v3320_v4 = vsel %vm3224_vm3, 1, %v13664_v60  ;;  %v3321_v44 = vsel %vm3225_vm4, 1, %v13664_v60  ;;  %4203 = vmatprep.mubr.f32.mxu0 %v3893_v11  ;;  %5341 = vmatmul.mubr.msk.f32.gmra.mrb[24].mxu1 %vm3997_vm6, %v3894_v9  ;;  %v3327_v14 = vsel %vm3231_vm9, 1, %v13664_v60  ;;  %v14799_v11 = vld [vmem:[#allocation68_spill] sm:$0xff]  ;;  %v14800_v5 = vld [vmem:[#allocation77_spill] sm:$0xff] }
 0x39e   :  { %v3032_v38 = vadd.s32 %v2936_v58, %v2648_v10  ;;  %v3033_v20 = vadd.s32 %v2937_v51, %v2649_v56  ;;  %v3319_v12 = vsel %vm3223_vm2, 1, %v13664_v60  ;;  %4204 = vmatmul.mubr.f32.gmra.mrb[18].mxu0 %v3892_v37  ;;  %vm3614_vm7 = vcmp.eq.s32.totalorder %v6255_v0, %v14792_v55  ;;  %v14798_v10 = vld [vmem:[#allocation87_spill] sm:$0xff] }
 0x39f   :  { %vm3615_vm8 = vcmp.eq.s32.totalorder %v6259_v13, %v14792_v55  ;;  %v3031_v32 = vadd.s32 %v2935_v48, %v2647_v23  ;;  %vm2842_vm10 = vcmp.eq.s32.totalorder %v6246_v61, %v2748_v24  ;;  %v3709_v17 = vsel %vm3613_vm5, 1, %v13664_v60  ;;  %v3513_v28 = vpop.permute.xlu1 %3512  ;;  %v12222_v23 = vpop.permute.xlu0 %2759 }
 0x3a0   :  { %vm2843_vm11 = vcmp.eq.s32.totalorder %v6255_v0, %v2748_v24  ;;  %v3417_v2 = vadd.s32 %v3321_v44, %v3033_v20  ;;  %v3416_v26 = vadd.s32 %v3320_v4, %v3032_v38  ;;  %vm3607_vm9 = vcmp.eq.s32.totalorder %v6246_v61, %v3513_v28  ;;  %v14801_v4 = vld [vmem:[#allocation41_spill] sm:$0xff] }
 0x3a1   :  { %vm3608_vm12 = vcmp.eq.s32.totalorder %v6255_v0, %v3513_v28  ;;  %vm3609_vm13 = vcmp.eq.s32.totalorder %v6259_v13, %v3513_v28  ;;  %v3415_v6 = vadd.s32 %v3319_v12, %v3031_v32  ;;  %v2938_v22 = vsel %vm2842_vm10, 1, %v13664_v60 }
 0x3a2   :  { %v3705_v8 = vsel %vm3609_vm13, 1, %v13664_v60  ;;  %v3704_v1 = vsel %vm3608_vm12, 1, %v13664_v60  ;;  %v3703_v30 = vsel %vm3607_vm9, 1, %v13664_v60  ;;  %v2939_v59 = vsel %vm2843_vm11, 1, %v13664_v60 }
 0x3a3   :  { %v3801_v39 = vadd.s32 %v3705_v8, %v3417_v2  ;;  %v3800_v46 = vadd.s32 %v3704_v1, %v3416_v26  ;;  %v3799_v34 = vadd.s32 %v3703_v30, %v3415_v6  ;;  %v3710_v43 = vsel %vm3614_vm7, 1, %v13664_v60  ;;  %v12251_v6 = vpop.permute.xlu0 %2762  ;;  %v14802_v30 = vld [vmem:[#allocation95_spill] sm:$0xff] }
 0x3a4   :  { %v2650_v3 = vadd.s32 %v14796_v42, %v14795_v31  ;;  %v2651_v33 = vadd.s32 %v14798_v10, %v14797_v47  ;;  %vm2844_vm14 = vcmp.eq.s32.totalorder %v6259_v13, %v2748_v24  ;;  %v3711_v36 = vsel %vm3615_vm8, 1, %v13664_v60  ;;  %v2751_v56 = vpop.permute.xlu1 %2750 }
 0x3a5   :  { %v3896_v58 = vcvt.s32.f32 %v3800_v46  ;;  %v3897_v51 = vcvt.s32.f32 %v3801_v39  ;;  %v3895_v49 = vcvt.s32.f32 %v3799_v34  ;;  %v3039_v9 = vadd.s32 %v3327_v14, %v14799_v11 }
 0x3a6   :  { %v3034_v37 = vadd.s32 %v2938_v22, %v2650_v3  ;;  %v3035_v48 = vadd.s32 %v2939_v59, %v2651_v33  ;;  %vm2847_vm15 = vcmp.eq.s32.totalorder %v6259_v13, %v2751_v56  ;;  %v3323_v24 = vsel %vm3227_vm1, 1, %v13664_v60 }
 0x3a7   :  { %v3036_v35 = vadd.s32 %v12126_v41, %v14800_v5  ;;  %v2940_v55 = vsel %vm2844_vm14, 1, %v13664_v60  ;;  %vm2846_vm0 = vcmp.eq.s32.totalorder %v6255_v0, %v2751_v56  ;;  %4208 = vmatprep.mubr.f32.mxu0 %v3896_v58  ;;  %5343 = vmatprep.mubr.msk.f32.mxu1 %vm3997_vm6, %v3897_v51  ;;  %vm2482_vm2 = vcmp.eq.s32.totalorder %v6246_v61, %v14801_v4  ;;  %v14804_v58 = vld [vmem:[#allocation105_spill] sm:$0xff] }
 0x3a8   :  { %v3421_v44 = vadd.s32 %v3709_v17, %v12139_v54  ;;  %v3422_v50 = vadd.s32 %v3710_v43, %v12157_v57  ;;  %v3423_v14 = vadd.s32 %v3711_v36, %v3039_v9  ;;  %vm2845_vm1 = vcmp.eq.s32.totalorder %v6246_v61, %v2751_v56  ;;  %4209 = vmatmul.mubr.f32.gmra.mrb[20].mxu0 %v3895_v49  ;;  %v14803_v36 = vld [vmem:[#allocation137_spill] sm:$0xff] }
 0x3a9   :  { %vm3616_vm3 = vcmp.eq.s32.totalorder %v6246_v61, %v11675_v63  ;;  %vm3617_vm4 = vcmp.eq.s32.totalorder %v6255_v0, %v11675_v63  ;;  %vm3618_vm5 = vcmp.eq.s32.totalorder %v6259_v13, %v11675_v63  ;;  %v2943_v41 = vsel %vm2847_vm15, 1, %v13664_v60  ;;  %v3516_v38 = vpop.permute.xlu1 %3515 }
 0x3aa   :  { %v3420_v54 = vadd.s32 %v3036_v35, %v2940_v55  ;;  %v2942_v57 = vsel %vm2846_vm0, 1, %v13664_v60  ;;  %v3419_v20 = vadd.s32 %v3323_v24, %v3035_v48  ;;  %v3418_v12 = vadd.s32 %v12108_v27, %v3034_v37  ;;  %v14805_v37 = vld [vmem:[#allocation25_spill] sm:$0xff]  ;;  %v12294_v24 = vpop.permute.xlu0 %2768 }
 0x3ab   :  { %v2941_v32 = vsel %vm2845_vm1, 1, %v13664_v60  ;;  %vm3610_vm7 = vcmp.eq.s32.totalorder %v6246_v61, %v3516_v38  ;;  %vm3611_vm8 = vcmp.eq.s32.totalorder %v6255_v0, %v3516_v38  ;;  %vm3612_vm10 = vcmp.eq.s32.totalorder %v6259_v13, %v3516_v38 }
 0x3ac   :  { %v3807_v17 = vadd.s32 %v3423_v14, %v2943_v41  ;;  %v3708_v2 = vsel %vm3612_vm10, 1, %v13664_v60  ;;  %v3707_v28 = vsel %vm3611_vm8, 1, %v13664_v60  ;;  %v3706_v26 = vsel %vm3610_vm7, 1, %v13664_v60 }
 0x3ad   :  { %vm2483_vm11 = vcmp.eq.s32.totalorder %v6255_v0, %v14801_v4  ;;  %v3806_v27 = vadd.s32 %v3422_v50, %v2942_v57  ;;  %v3804_v22 = vadd.s32 %v3708_v2, %v3420_v54  ;;  %v3803_v8 = vadd.s32 %v3707_v28, %v3419_v20  ;;  %v14806_v20 = vld [vmem:[#allocation63_spill] sm:$0xff]  ;;  %v14807_v28 = vld [vmem:[#allocation102_spill] sm:$0xff] }
 0x3ae   :  { %v3802_v1 = vadd.s32 %v3706_v26, %v3418_v12  ;;  %vm2491_vm9 = vcmp.eq.s32.totalorder %v6246_v61, %v14802_v30  ;;  %v3712_v59 = vsel %vm3616_vm3, 1, %v13664_v60  ;;  %v3713_v39 = vsel %vm3617_vm4, 1, %v13664_v60  ;;  %v2754_v43 = vpop.permute.xlu1 %2753 }
 0x3af   :  { %v3714_v46 = vsel %vm3618_vm5, 1, %v13664_v60  ;;  %v3805_v34 = vadd.s32 %v3421_v44, %v2941_v32  ;;  %v3899_v31 = vcvt.s32.f32 %v3803_v8  ;;  %v3900_v42 = vcvt.s32.f32 %v3804_v22  ;;  %v14809_v8 = vld [vmem:[#allocation88_spill] sm:$0xff] }
 0x3b0   :  { %v3898_v3 = vcvt.s32.f32 %v3802_v1  ;;  %vm2848_vm12 = vcmp.eq.s32.totalorder %v6246_v61, %v2754_v43  ;;  %vm2849_vm13 = vcmp.eq.s32.totalorder %v6255_v0, %v2754_v43  ;;  %vm2850_vm14 = vcmp.eq.s32.totalorder %v6259_v13, %v2754_v43  ;;  %v14810_v1 = vld [vmem:[#allocation113_spill] sm:$0xff] }
 0x3b1   :  { %v3903_v47 = vcvt.s32.f32 %v3807_v17  ;;  %vm2492_vm15 = vcmp.eq.s32.totalorder %v6255_v0, %v14802_v30  ;;  %v2944_v10 = vsel %vm2848_vm12, 1, %v13664_v60  ;;  %v2945_v63 = vsel %vm2849_vm13, 1, %v13664_v60  ;;  %4213 = vmatprep.mubr.f32.mxu0 %v3899_v31  ;;  %5344 = vmatmul.mubr.msk.f32.gmra.mrb[26].mxu1 %vm3997_vm6, %v3900_v42  ;;  %v14811_v31 = vld [vmem:[#allocation114_spill] sm:$0xff] }
 0x3b2   :  { %v3902_v33 = vcvt.s32.f32 %v3806_v27  ;;  %vm2484_vm0 = vcmp.eq.s32.totalorder %v6259_v13, %v14801_v4  ;;  %v3040_v56 = vadd.s32 %v3712_v59, %v14803_v36  ;;  %v3041_v51 = vadd.s32 %v3713_v39, %v14804_v58  ;;  %4214 = vmatmul.mubr.f32.gmra.mrb[22].mxu0 %v3898_v3  ;;  %v14808_v27 = vld [vmem:[#allocation26_spill] sm:$0xff]  ;;  %v12326_v59 = vpop.permute.xlu0 %2774 }
 0x3b3   :  { %v2946_v49 = vsel %vm2850_vm14, 1, %v13664_v60  ;;  %5346 = vmatprep.mubr.msk.f32.mxu1 %vm3997_vm6, %v3903_v47  ;;  %v12285_v11 = vsel %vm2482_vm2, 1, %v13664_v60  ;;  %vm2493_vm1 = vcmp.eq.s32.totalorder %v6259_v13, %v14802_v30  ;;  %v2587_v9 = vsel %vm2491_vm9, 1, %v13664_v60  ;;  %v3138_v44 = vpop.permute.xlu1 %3137  ;;  %v14812_v47 = vld [vmem:[#allocation30_spill] sm:$0xff] }
 0x3b4   :  { %v3042_v48 = vadd.s32 %v3714_v46, %v14805_v37  ;;  %4218 = vmatprep.mubr.f32.mxu0 %v3902_v33  ;;  %v2588_v5 = vsel %vm2492_vm15, 1, %v13664_v60  ;;  %v3424_v35 = vadd.s32 %v3040_v56, %v2944_v10  ;;  %v3425_v55 = vadd.s32 %v3041_v51, %v2945_v63  ;;  %v14813_v10 = vld [vmem:[#allocation65_spill] sm:$0xff]  ;;  %v14814_v4 = vld [vmem:[#allocation66_spill] sm:$0xff]  ;;  %v14815_v56 = vld [vmem:[#allocation123_spill] sm:$0xff] }
 0x3b5   :  { %v3901_v50 = vcvt.s32.f32 %v3805_v34  ;;  %vm3232_vm2 = vcmp.eq.s32.totalorder %v6246_v61, %v3138_v44  ;;  %vm3233_vm3 = vcmp.eq.s32.totalorder %v6255_v0, %v3138_v44  ;;  %vm3234_vm4 = vcmp.eq.s32.totalorder %v6259_v13, %v3138_v44 }
 0x3b6   :  { %v3426_v14 = vadd.s32 %v3042_v48, %v2946_v49  ;;  %v2589_v41 = vsel %vm2493_vm1, 1, %v13664_v60  ;;  %v3328_v54 = vsel %vm3232_vm2, 1, %v13664_v60  ;;  %v3329_v57 = vsel %vm3233_vm3, 1, %v13664_v60 }
 0x3b7   :  { %v3330_v38 = vsel %vm3234_vm4, 1, %v13664_v60  ;;  %4219 = vmatmul.mubr.f32.gmra.mrb[24].mxu0 %v3901_v50  ;;  %vm2499_vm5 = vcmp.eq.s32.totalorder %v6259_v13, %v14806_v20  ;;  %v3808_v12 = vadd.s32 %v3424_v35, %v3328_v54  ;;  %v3809_v32 = vadd.s32 %v3425_v55, %v3329_v57  ;;  %v14817_v57 = vld [vmem:[#allocation44_spill] sm:$0xff] }
 0x3b8   :  { %v3810_v17 = vadd.s32 %v3426_v14, %v3330_v38  ;;  %v12313_v2 = vsel %vm2483_vm11, 1, %v13664_v60  ;;  %v12316_v26 = vadd.s32 %v2587_v9, %v14807_v28  ;;  %v12319_v22 = vadd.s32 %v2588_v5, %v14808_v27  ;;  %v2757_v42 = vpop.permute.xlu1 %2756  ;;  %v12394_v5 = vpop.permute.xlu0 %2780  ;;  %v14816_v14 = vld [vmem:[#allocation21_spill] sm:$0xff]  ;;  %v14818_v38 = vld [vmem:[#allocation36_spill] sm:$0xff] }
 0x3b9   :  { %vm2488_vm7 = vcmp.eq.s32.totalorder %v6246_v61, %v14809_v8  ;;  %v12324_v30 = vadd.s32 %v2589_v41, %v14810_v1  ;;  %v3905_v39 = vcvt.s32.f32 %v3809_v32  ;;  %v3904_v34 = vcvt.s32.f32 %v3808_v12  ;;  %v14819_v12 = vld [vmem:[#allocation99_spill] sm:$0xff] }
 0x3ba   :  { %v3906_v46 = vcvt.s32.f32 %v3810_v17  ;;  %vm2489_vm8 = vcmp.eq.s32.totalorder %v6255_v0, %v14809_v8  ;;  %vm2490_vm10 = vcmp.eq.s32.totalorder %v6259_v13, %v14809_v8  ;;  %v2595_v43 = vsel %vm2499_vm5, 1, %v13664_v60  ;;  %v14820_v17 = vld [vmem:[#allocation64_spill] sm:$0xff]  ;;  %v14821_v8 = vld [vmem:[#allocation90_spill] sm:$0xff] }
 0x3bb   :  { %vm2494_vm11 = vcmp.eq.s32.totalorder %v6246_v61, %v14811_v31  ;;  %v12339_v3 = vsel %vm2484_vm0, 1, %v13664_v60  ;;  %vm2495_vm9 = vcmp.eq.s32.totalorder %v6255_v0, %v14811_v31  ;;  %vm2508_vm12 = vcmp.eq.s32.totalorder %v6259_v13, %v14812_v47  ;;  %4223 = vmatprep.mubr.f32.mxu0 %v3905_v39  ;;  %v14822_v39 = vld [vmem:[#allocation121_spill] sm:$0xff] }
 0x3bc   :  { %vm2883_vm13 = vcmp.eq.s32.totalorder %v6259_v13, %v14813_v10  ;;  %5347 = vmatmul.mubr.msk.f32.gmra.mrb[28].mxu1 %vm3997_vm6, %v3906_v46  ;;  %v12352_v63 = vsel %vm2488_vm7, 1, %v13664_v60  ;;  %vm2502_vm14 = vcmp.eq.s32.totalorder %v6259_v13, %v14814_v4  ;;  %vm2852_vm15 = vcmp.eq.s32.totalorder %v6255_v0, %v2757_v42  ;;  %4224 = vmatmul.mubr.f32.gmra.mrb[26].mxu0 %v3904_v34 }
 0x3bd   :  { %vm2853_vm0 = vcmp.eq.s32.totalorder %v6259_v13, %v2757_v42  ;;  %v12362_v33 = vsel %vm2489_vm8, 1, %v13664_v60  ;;  %v12368_v36 = vsel %vm2490_vm10, 1, %v13664_v60  ;;  %v12371_v58 = vadd.s32 %v2595_v43, %v14815_v56  ;;  %v3141_v44 = vpop.permute.xlu1 %3140  ;;  %v14823_v43 = vld [vmem:[#allocation72_spill] sm:$0xff] }
 0x3be   :  { %vm2851_vm1 = vcmp.eq.s32.totalorder %v6246_v61, %v2757_v42  ;;  %v12378_v51 = vsel %vm2494_vm11, 1, %v13664_v60  ;;  %v12381_v49 = vsel %vm2495_vm9, 1, %v13664_v60  ;;  %v12384_v9 = vsel %vm2508_vm12, 1, %v13664_v60 }
 0x3bf   :  { %v12387_v37 = vsel %vm2883_vm13, 1, %v13664_v60  ;;  %v12390_v48 = vsel %vm2502_vm14, 1, %v13664_v60  ;;  %vm2854_vm2 = vcmp.eq.s32.totalorder %v6246_v61, %v12222_v23  ;;  %v2948_v35 = vsel %vm2852_vm15, 1, %v13664_v60 }
 0x3c0   :  { %v2949_v55 = vsel %vm2853_vm0, 1, %v13664_v60  ;;  %v2947_v50 = vsel %vm2851_vm1, 1, %v13664_v60  ;;  %vm3235_vm3 = vcmp.eq.s32.totalorder %v6246_v61, %v3141_v44  ;;  %vm3236_vm4 = vcmp.eq.s32.totalorder %v6255_v0, %v3141_v44 }
 0x3c1   :  { %vm3237_vm5 = vcmp.eq.s32.totalorder %v6259_v13, %v3141_v44  ;;  %vm3267_vm7 = vcmp.eq.s32.totalorder %v6259_v13, %v14816_v14  ;;  %vm2855_vm8 = vcmp.eq.s32.totalorder %v6255_v0, %v12222_v23  ;;  %vm2856_vm10 = vcmp.eq.s32.totalorder %v6259_v13, %v12222_v23 }
 0x3c2   :  { %v3332_v41 = vsel %vm3236_vm4, 1, %v13664_v60  ;;  %v3333_v54 = vsel %vm3237_vm5, 1, %v13664_v60  ;;  %vm2886_vm11 = vcmp.eq.s32.totalorder %v6259_v13, %v14817_v57  ;;  %v2662_v20 = vadd.s32 %v11687_v40, %v14818_v38  ;;  %v3525_v10 = vpop.permute.xlu1 %3524 }
 0x3c3   :  { %v3044_v32 = vadd.s32 %v2948_v35, %v14819_v12  ;;  %v3045_v28 = vadd.s32 %v2949_v55, %v14820_v17  ;;  %v3331_v27 = vsel %vm3235_vm3, 1, %v13664_v60  ;;  %v2663_v1 = vadd.s32 %v11695_v52, %v14821_v8 }
 0x3c4   :  { %v2664_v46 = vadd.s32 %v11705_v62, %v14822_v39  ;;  %v2950_v34 = vsel %vm2854_vm2, 1, %v13664_v60  ;;  %v3043_v42 = vadd.s32 %v2947_v50, %v14823_v43  ;;  %vm2517_vm9 = vcmp.eq.s32.totalorder %v6259_v13, %v14765_v19  ;;  %v3528_v62 = vpop.permute.xlu0 %3527 }
 0x3c5   :  { %v2951_v40 = vsel %vm2855_vm8, 1, %v13664_v60  ;;  %v2952_v47 = vsel %vm2856_vm10, 1, %v13664_v60  ;;  %v3429_v4 = vadd.s32 %v3333_v54, %v3045_v28  ;;  %v3428_v52 = vadd.s32 %v3332_v41, %v3044_v32  ;;  %v12437_v50 = vpop.f32.mrb[0].mxu1 }
 0x3c6   :  { %vm3619_vm12 = vcmp.eq.s32.totalorder %v6246_v61, %v3525_v10  ;;  %vm3620_vm13 = vcmp.eq.s32.totalorder %v6255_v0, %v3525_v10  ;;  %vm3621_vm14 = vcmp.eq.s32.totalorder %v6259_v13, %v3525_v10  ;;  %v3427_v23 = vadd.s32 %v3331_v27, %v3043_v42  ;;  %v4282_v17 = vpop.f32.mrb[1].mxu1 }
 0x3c7   :  { %v3715_v56 = vsel %vm3619_vm12, 1, %v13664_v60  ;;  %v3716_v35 = vsel %vm3620_vm13, 1, %v13664_v60  ;;  %v3717_v55 = vsel %vm3621_vm14, 1, %v13664_v60  ;;  %vm3622_vm15 = vcmp.eq.s32.totalorder %v6246_v61, %v3528_v62 }
 0x3c8   :  { %v3813_v44 = vadd.s32 %v3717_v55, %v3429_v4  ;;  %v3812_v41 = vadd.s32 %v3716_v35, %v3428_v52  ;;  %vm3623_vm0 = vcmp.eq.s32.totalorder %v6255_v0, %v3528_v62  ;;  %v3811_v54 = vadd.s32 %v3715_v56, %v3427_v23  ;;  %v3144_v27 = vpop.permute.xlu1 %3143  ;;  %v14824_v52 = vld [vmem:[#allocation104_spill] sm:$0xff]  ;;  %v14825_v56 = vld [vmem:[#allocation51_spill] sm:$0xff] }
 0x3c9   :  { %v3046_v38 = vadd.s32 %v2950_v34, %v2662_v20  ;;  %v3047_v12 = vadd.s32 %v2951_v40, %v2663_v1  ;;  %v3048_v32 = vadd.s32 %v2952_v47, %v2664_v46  ;;  %vm3624_vm1 = vcmp.eq.s32.totalorder %v6259_v13, %v3528_v62 }
 0x3ca   :  { %v3909_v28 = vcvt.s32.f32 %v3813_v44  ;;  %v3908_v8 = vcvt.s32.f32 %v3812_v41  ;;  %v3718_v39 = vsel %vm3622_vm15, 1, %v13664_v60  ;;  %v3907_v43 = vcvt.s32.f32 %v3811_v54 }
 0x3cb   :  { %vm3238_vm2 = vcmp.eq.s32.totalorder %v6246_v61, %v3144_v27  ;;  %vm3239_vm3 = vcmp.eq.s32.totalorder %v6255_v0, %v3144_v27  ;;  %vm3240_vm4 = vcmp.eq.s32.totalorder %v6259_v13, %v3144_v27  ;;  %v3719_v42 = vsel %vm3623_vm0, 1, %v13664_v60 }
 0x3cc   :  { %v3334_v20 = vsel %vm3238_vm2, 1, %v13664_v60  ;;  %v3335_v1 = vsel %vm3239_vm3, 1, %v13664_v60  ;;  %v3336_v46 = vsel %vm3240_vm4, 1, %v13664_v60  ;;  %4228 = vmatprep.mubr.f32.mxu0 %v3908_v8  ;;  %5349 = vmatprep.mubr.msk.f32.mxu1 %vm3997_vm6, %v3909_v28  ;;  %v3720_v34 = vsel %vm3624_vm1, 1, %v13664_v60  ;;  %v14828_v8 = vld [vmem:[#allocation18_spill] sm:$0xff] }
 0x3cd   :  { %v3363_v40 = vsel %vm3267_vm7, 1, %v13664_v60  ;;  %v3430_v47 = vadd.s32 %v3334_v20, %v3046_v38  ;;  %v3431_v10 = vadd.s32 %v3335_v1, %v3047_v12  ;;  %v3432_v4 = vadd.s32 %v3336_v46, %v3048_v32  ;;  %4229 = vmatmul.mubr.f32.gmra.mrb[28].mxu0 %v3907_v43  ;;  %v2766_v44 = vpop.permute.xlu1 %2765  ;;  %v14830_v20 = vld [vmem:[#allocation24_spill] sm:$0xff]  ;;  %v14831_v1 = vld [vmem:[#allocation55_spill] sm:$0xff] }
 0x3ce   :  { %v12457_v62 = vadd.s32 %v12384_v9, %v14824_v52  ;;  %v3075_v23 = vadd.s32 %v12387_v37, %v12371_v58  ;;  %v2694_v35 = vadd.s32 %v12390_v48, %v14825_v56  ;;  %v2982_v14 = vsel %vm2886_vm11, 1, %v13664_v60  ;;  %v14826_v37 = vld [vmem:[#allocation83_spill] sm:$0xff]  ;;  %v14827_v48 = vld [vmem:[#allocation46_spill] sm:$0xff]  ;;  %v12487_v38 = vpop.f32.mrb[0].mxu0  ;;  %v14833_v56 = vld [vmem:[#allocation37_spill] sm:$0xff] }
 0x3cf   :  { %vm2857_vm5 = vcmp.eq.s32.totalorder %v6246_v61, %v12251_v6  ;;  %v3816_v55 = vadd.s32 %v3720_v34, %v3432_v4  ;;  %v3815_v41 = vadd.s32 %v3719_v42, %v3431_v10  ;;  %v3814_v54 = vadd.s32 %v3718_v39, %v3430_v47  ;;  %v4162_v32 = vpop.f32.mrb[1].mxu0  ;;  %v14829_v39 = vld [vmem:[#allocation16_spill] sm:$0xff] }
 0x3d0   :  { %v12473_v58 = vsel %vm2517_vm9, 1, %v13664_v60  ;;  %v12475_v9 = vadd.s32 %v3363_v40, %v3075_v23  ;;  %vm3279_vm7 = vcmp.eq.s32.totalorder %v6259_v13, %v14826_v37  ;;  %vm2505_vm8 = vcmp.eq.s32.totalorder %v6259_v13, %v14827_v48  ;;  %v14832_v34 = vld [vmem:[#allocation128_spill] sm:$0xff]  ;;  %v3534_v48 = vpop.permute.xlu0 %3533 }
 0x3d1   :  { %v12481_v57 = vadd.s32 %v2982_v14, %v2694_v35  ;;  %vm2858_vm10 = vcmp.eq.s32.totalorder %v6255_v0, %v12251_v6  ;;  %vm2859_vm11 = vcmp.eq.s32.totalorder %v6259_v13, %v12251_v6  ;;  %v3912_v19 = vcvt.s32.f32 %v3816_v55  ;;  %v14834_v35 = vld [vmem:[#allocation19_spill] sm:$0xff]  ;;  %v14835_v6 = vld [vmem:[#allocation92_spill] sm:$0xff] }
 0x3d2   :  { %v2953_v12 = vsel %vm2857_vm5, 1, %v13664_v60  ;;  %vm2861_vm9 = vcmp.eq.s32.totalorder %v6255_v0, %v2766_v44  ;;  %vm2862_vm12 = vcmp.eq.s32.totalorder %v6259_v13, %v2766_v44  ;;  %v3911_v17 = vcvt.s32.f32 %v3815_v41  ;;  %v3147_v4 = vpop.permute.xlu1 %3146  ;;  %v14836_v55 = vld [vmem:[#allocation56_spill] sm:$0xff] }
 0x3d3   :  { %v12493_v28 = vsel %vm3279_vm7, 1, %v13664_v60  ;;  %v12496_v27 = vsel %vm2505_vm8, 1, %v13664_v60  ;;  %v2665_v43 = vadd.s32 %v14829_v39, %v14828_v8  ;;  %5350 = vmatmul.mubr.msk.f32.gmra.mrb[30].mxu1 %vm3997_vm6, %v3912_v19  ;;  %v3910_v42 = vcvt.s32.f32 %v3814_v54  ;;  %v14837_v54 = vld [vmem:[#allocation101_spill] sm:$0xff]  ;;  %v14838_v19 = vld [vmem:[#allocation34_spill] sm:$0xff] }
 0x3d4   :  { %v2666_v46 = vadd.s32 %v14831_v1, %v14830_v20  ;;  %v2667_v40 = vadd.s32 %v11681_v53, %v14832_v34  ;;  %v2954_v47 = vsel %vm2858_vm10, 1, %v13664_v60  ;;  %v2955_v10 = vsel %vm2859_vm11, 1, %v13664_v60  ;;  %4233 = vmatprep.mubr.f32.mxu0 %v3911_v17 }
 0x3d5   :  { %v3049_v52 = vadd.s32 %v2953_v12, %v2665_v43  ;;  %vm2860_vm13 = vcmp.eq.s32.totalorder %v6246_v61, %v2766_v44  ;;  %v2957_v23 = vsel %vm2861_vm9, 1, %v13664_v60  ;;  %v2958_v53 = vsel %vm2862_vm12, 1, %v13664_v60  ;;  %4234 = vmatmul.mubr.f32.gmra.mrb[30].mxu0 %v3910_v42 }
 0x3d6   :  { %vm3270_vm14 = vcmp.eq.s32.totalorder %v6259_v13, %v14833_v56  ;;  %vm3651_vm15 = vcmp.eq.s32.totalorder %v6259_v13, %v14834_v35  ;;  %v2668_v14 = vadd.s32 %v11730_v16, %v14835_v6  ;;  %v2669_v41 = vadd.s32 %v11752_v18, %v14836_v55  ;;  %v14839_v16 = vld [vmem:[#allocation107_spill] sm:$0xff]  ;;  %v3150_v32 = vpop.permute.xlu1 %3149 }
 0x3d7   :  { %v2670_v37 = vadd.s32 %v11758_v45, %v14837_v54  ;;  %vm3241_vm0 = vcmp.eq.s32.totalorder %v6246_v61, %v3147_v4  ;;  %vm3242_vm1 = vcmp.eq.s32.totalorder %v6255_v0, %v3147_v4  ;;  %vm3243_vm2 = vcmp.eq.s32.totalorder %v6259_v13, %v3147_v4 }
 0x3d8   :  { %vm3628_vm3 = vcmp.eq.s32.totalorder %v6246_v61, %v3534_v48  ;;  %vm3629_vm4 = vcmp.eq.s32.totalorder %v6255_v0, %v3534_v48  ;;  %vm3654_vm5 = vcmp.eq.s32.totalorder %v6259_v13, %v14838_v19  ;;  %vm2889_vm7 = vcmp.eq.s32.totalorder %v6259_v13, %v14839_v16  ;;  %v12552_v4 = vpop.f32.mrb[2].mxu1 }
 0x3d9   :  { %v2956_v18 = vsel %vm2860_vm13, 1, %v13664_v60  ;;  %v3053_v45 = vadd.s32 %v2957_v23, %v2669_v41  ;;  %v3054_v12 = vadd.s32 %v2958_v53, %v2670_v37  ;;  %vm3630_vm8 = vcmp.eq.s32.totalorder %v6259_v13, %v3534_v48  ;;  %v4287_v6 = vpop.f32.mrb[3].mxu1 }
 0x3da   :  { %v3337_v17 = vsel %vm3241_vm0, 1, %v13664_v60  ;;  %vm3244_vm10 = vcmp.eq.s32.totalorder %v6246_v61, %v3150_v32  ;;  %vm3245_vm11 = vcmp.eq.s32.totalorder %v6255_v0, %v3150_v32  ;;  %vm3246_vm9 = vcmp.eq.s32.totalorder %v6259_v13, %v3150_v32 }
 0x3db   :  { %v3338_v8 = vsel %vm3242_vm1, 1, %v13664_v60  ;;  %v3339_v39 = vsel %vm3243_vm2, 1, %v13664_v60  ;;  %v3341_v44 = vsel %vm3245_vm11, 1, %v13664_v60  ;;  %v3342_v43 = vsel %vm3246_vm9, 1, %v13664_v60 }
 0x3dc   :  { %v3050_v42 = vadd.s32 %v2954_v47, %v2666_v46  ;;  %v3051_v20 = vadd.s32 %v2955_v10, %v2667_v40  ;;  %v3340_v1 = vsel %vm3244_vm10, 1, %v13664_v60  ;;  %v3438_v34 = vadd.s32 %v3342_v43, %v3054_v12  ;;  %v3531_v47 = vpop.permute.xlu1 %3530 }
 0x3dd   :  { %v3052_v23 = vadd.s32 %v2956_v18, %v2668_v14  ;;  %v3437_v53 = vadd.s32 %v3341_v44, %v3053_v45  ;;  %v3724_v55 = vsel %vm3628_vm3, 1, %v13664_v60  ;;  %v3726_v41 = vsel %vm3630_vm8, 1, %v13664_v60 }
 0x3de   :  { %v3433_v54 = vadd.s32 %v3337_v17, %v3049_v52  ;;  %v3434_v37 = vadd.s32 %v3338_v8, %v3050_v42  ;;  %v3435_v46 = vadd.s32 %v3339_v39, %v3051_v20  ;;  %v3725_v40 = vsel %vm3629_vm4, 1, %v13664_v60  ;;  %v14840_v39 = vld [vmem:[#allocation20_spill] sm:$0xff] }
 0x3df   :  { %v3436_v10 = vadd.s32 %v3340_v1, %v3052_v23  ;;  %vm3625_vm12 = vcmp.eq.s32.totalorder %v6246_v61, %v3531_v47  ;;  %vm3626_vm13 = vcmp.eq.s32.totalorder %v6255_v0, %v3531_v47  ;;  %vm3627_vm0 = vcmp.eq.s32.totalorder %v6259_v13, %v3531_v47  ;;  %v14841_v42 = vld [vmem:[#allocation28_spill] sm:$0xff] }
 0x3e0   :  { %v3822_v14 = vadd.s32 %v3726_v41, %v3438_v34  ;;  %v3721_v18 = vsel %vm3625_vm12, 1, %v13664_v60  ;;  %v3722_v45 = vsel %vm3626_vm13, 1, %v13664_v60  ;;  %v3723_v52 = vsel %vm3627_vm0, 1, %v13664_v60 }
 0x3e1   :  { %v3819_v12 = vadd.s32 %v3723_v52, %v3435_v46  ;;  %v3818_v32 = vadd.s32 %v3722_v45, %v3434_v37  ;;  %v3817_v17 = vadd.s32 %v3721_v18, %v3433_v54  ;;  %v3821_v48 = vadd.s32 %v3725_v40, %v3437_v53  ;;  %v2772_v34 = vpop.permute.xlu1 %2771  ;;  %v14843_v46 = vld [vmem:[#allocation39_spill] sm:$0xff]  ;;  %v14844_v40 = vld [vmem:[#allocation86_spill] sm:$0xff] }
 0x3e2   :  { %v3366_v8 = vsel %vm3270_vm14, 1, %v13664_v60  ;;  %v12575_v44 = vadd.s32 %v12493_v28, %v14840_v39  ;;  %v3747_v43 = vsel %vm3651_vm15, 1, %v13664_v60  ;;  %v2697_v20 = vadd.s32 %v12496_v27, %v14841_v42  ;;  %v14846_v18 = vld [vmem:[#allocation110_spill] sm:$0xff]  ;;  %v14847_v39 = vld [vmem:[#allocation127_spill] sm:$0xff] }
 0x3e3   :  { %vm2863_vm1 = vcmp.eq.s32.totalorder %v6246_v61, %v12294_v24  ;;  %v3915_v1 = vcvt.s32.f32 %v3819_v12  ;;  %v3914_v23 = vcvt.s32.f32 %v3818_v32  ;;  %v3913_v56 = vcvt.s32.f32 %v3817_v17 }
 0x3e4   :  { %v3750_v28 = vsel %vm3654_vm5, 1, %v13664_v60  ;;  %v2985_v35 = vsel %vm2889_vm7, 1, %v13664_v60  ;;  %v3918_v53 = vcvt.s32.f32 %v3822_v14  ;;  %v3820_v6 = vadd.s32 %v3724_v55, %v3436_v10  ;;  %v14845_v14 = vld [vmem:[#allocation32_spill] sm:$0xff] }
 0x3e5   :  { %v3462_v27 = vadd.s32 %v3366_v8, %v12481_v57  ;;  %vm2864_vm14 = vcmp.eq.s32.totalorder %v6255_v0, %v12294_v24  ;;  %vm2865_vm15 = vcmp.eq.s32.totalorder %v6259_v13, %v12294_v24  ;;  %4238 = vmatprep.mubr.f32.mxu0 %v3914_v23  ;;  %5352 = vmatprep.mubr.msk.f32.mxu1 %vm3997_vm6, %v3915_v1  ;;  %v3917_v19 = vcvt.s32.f32 %v3821_v48  ;;  %v12608_v57 = vpop.f32.mrb[2].mxu0  ;;  %v14849_v24 = vld [vmem:[#allocation57_spill] sm:$0xff]  ;;  %v14851_v23 = vld [vmem:[#allocation118_spill] sm:$0xff] }
 0x3e6   :  { %v12600_v41 = vadd.s32 %v3747_v43, %v12475_v9  ;;  %v2959_v16 = vsel %vm2863_vm1, 1, %v13664_v60  ;;  %vm2867_vm2 = vcmp.eq.s32.totalorder %v6255_v0, %v2772_v34  ;;  %vm2868_vm3 = vcmp.eq.s32.totalorder %v6259_v13, %v2772_v34  ;;  %4239 = vmatmul.mubr.f32.gmra.mrb[32].mxu0 %v3913_v56  ;;  %5353 = vmatmul.mubr.msk.f32.gmra.mrb[32].mxu1 %vm3997_vm6, %v3918_v53  ;;  %v14842_v9 = vld [vmem:[#allocation122_spill] sm:$0xff]  ;;  %v4167_v10 = vpop.f32.mrb[3].mxu0  ;;  %v3153_v32 = vpop.permute.xlu1 %3152 }
 0x3e7   :  { %v12611_v55 = vadd.s32 %v3750_v28, %v3462_v27  ;;  %v12613_v54 = vadd.s32 %v2985_v35, %v2697_v20  ;;  %v2671_v37 = vadd.s32 %v11711_v15, %v14842_v9  ;;  %v2672_v47 = vadd.s32 %v14844_v40, %v14843_v46  ;;  %4243 = vmatprep.mubr.f32.mxu0 %v3917_v19  ;;  %v14848_v43 = vld [vmem:[#allocation58_spill] sm:$0xff] }
 0x3e8   :  { %v2673_v45 = vadd.s32 %v14846_v18, %v14845_v14  ;;  %v2960_v52 = vsel %vm2864_vm14, 1, %v13664_v60  ;;  %v2961_v12 = vsel %vm2865_vm15, 1, %v13664_v60  ;;  %v3916_v15 = vcvt.s32.f32 %v3820_v6  ;;  %v14850_v20 = vld [vmem:[#allocation126_spill] sm:$0xff] }
 0x3e9   :  { %v3055_v17 = vadd.s32 %v2959_v16, %v2671_v37  ;;  %vm2866_vm4 = vcmp.eq.s32.totalorder %v6246_v61, %v2772_v34  ;;  %v2963_v48 = vsel %vm2867_vm2, 1, %v13664_v60  ;;  %v2964_v8 = vsel %vm2868_vm3, 1, %v13664_v60  ;;  %v3540_v34 = vpop.permute.xlu0 %3539 }
 0x3ea   :  { %vm3663_vm5 = vcmp.eq.s32.totalorder %v6259_v13, %v14847_v39  ;;  %vm3273_vm7 = vcmp.eq.s32.totalorder %v6259_v13, %v14848_v43  ;;  %v2674_v42 = vadd.s32 %v12285_v11, %v14849_v24  ;;  %v2675_v1 = vadd.s32 %v12313_v2, %v14850_v20  ;;  %4244 = vmatmul.mubr.f32.gmra.mrb[34].mxu0 %v3916_v15  ;;  %v3156_v2 = vpop.permute.xlu1 %3155  ;;  %v12661_v16 = vpop.f32.mrb[4].mxu0 }
 0x3eb   :  { %v2676_v56 = vadd.s32 %v12339_v3, %v14851_v23  ;;  %vm3247_vm8 = vcmp.eq.s32.totalorder %v6246_v61, %v3153_v32  ;;  %vm3248_vm10 = vcmp.eq.s32.totalorder %v6255_v0, %v3153_v32  ;;  %vm3249_vm11 = vcmp.eq.s32.totalorder %v6259_v13, %v3153_v32  ;;  %v4172_v10 = vpop.f32.mrb[5].mxu0 }
 0x3ec   :  { %vm3634_vm9 = vcmp.eq.s32.totalorder %v6246_v61, %v3540_v34  ;;  %vm3635_vm12 = vcmp.eq.s32.totalorder %v6255_v0, %v3540_v34  ;;  %v2962_v11 = vsel %vm2866_vm4, 1, %v13664_v60  ;;  %v3059_v28 = vadd.s32 %v2963_v48, %v2675_v1 }
 0x3ed   :  { %v3060_v35 = vadd.s32 %v2964_v8, %v2676_v56  ;;  %vm3636_vm13 = vcmp.eq.s32.totalorder %v6259_v13, %v3540_v34  ;;  %v3343_v3 = vsel %vm3247_vm8, 1, %v13664_v60  ;;  %vm3250_vm0 = vcmp.eq.s32.totalorder %v6246_v61, %v3156_v2 }
 0x3ee   :  { %vm3251_vm1 = vcmp.eq.s32.totalorder %v6255_v0, %v3156_v2  ;;  %vm3252_vm14 = vcmp.eq.s32.totalorder %v6259_v13, %v3156_v2  ;;  %v3344_v53 = vsel %vm3248_vm10, 1, %v13664_v60  ;;  %v3345_v6 = vsel %vm3249_vm11, 1, %v13664_v60 }
 0x3ef   :  { %v3347_v27 = vsel %vm3251_vm1, 1, %v13664_v60  ;;  %v3348_v19 = vsel %vm3252_vm14, 1, %v13664_v60  ;;  %v3056_v9 = vadd.s32 %v2960_v52, %v2672_v47  ;;  %v3057_v37 = vadd.s32 %v2961_v12, %v2673_v45  ;;  %v3537_v45 = vpop.permute.xlu1 %3536 }
 0x3f0   :  { %v3346_v46 = vsel %vm3250_vm0, 1, %v13664_v60  ;;  %v3444_v40 = vadd.s32 %v3348_v19, %v3060_v35  ;;  %v3058_v14 = vadd.s32 %v2962_v11, %v2674_v42  ;;  %v3443_v18 = vadd.s32 %v3347_v27, %v3059_v28  ;;  %v12679_v23 = vpop.f32.mrb[4].mxu1  ;;  %v14852_v27 = vld [vmem:[#allocation125_spill] sm:$0xff]  ;;  %v14853_v19 = vld [vmem:[#allocation112_spill] sm:$0xff] }
 0x3f1   :  { %v3730_v32 = vsel %vm3634_vm9, 1, %v13664_v60  ;;  %v3732_v15 = vsel %vm3636_vm13, 1, %v13664_v60  ;;  %v3439_v48 = vadd.s32 %v3343_v3, %v3055_v17  ;;  %v3440_v8 = vadd.s32 %v3344_v53, %v3056_v9  ;;  %v4292_v2 = vpop.f32.mrb[5].mxu1 }
 0x3f2   :  { %v3441_v24 = vadd.s32 %v3345_v6, %v3057_v37  ;;  %v3731_v47 = vsel %vm3635_vm12, 1, %v13664_v60  ;;  %v3442_v52 = vadd.s32 %v3346_v46, %v3058_v14  ;;  %vm3631_vm15 = vcmp.eq.s32.totalorder %v6246_v61, %v3537_v45  ;;  %v14854_v37 = vld [vmem:[#allocation80_spill] sm:$0xff]  ;;  %v14855_v46 = vld [vmem:[#allocation35_spill] sm:$0xff]  ;;  %v14861_v2 = vld [vmem:[#allocation45_spill] sm:$0xff] }
 0x3f3   :  { %vm3632_vm2 = vcmp.eq.s32.totalorder %v6255_v0, %v3537_v45  ;;  %vm3633_vm3 = vcmp.eq.s32.totalorder %v6259_v13, %v3537_v45  ;;  %v3828_v12 = vadd.s32 %v3732_v15, %v3444_v40  ;;  %v3727_v42 = vsel %vm3631_vm15, 1, %v13664_v60  ;;  %v14856_v15 = vld [vmem:[#allocation98_spill] sm:$0xff] }
 0x3f4   :  { %v3728_v20 = vsel %vm3632_vm2, 1, %v13664_v60  ;;  %v3729_v17 = vsel %vm3633_vm3, 1, %v13664_v60  ;;  %v3823_v34 = vadd.s32 %v3727_v42, %v3439_v48  ;;  %v3827_v11 = vadd.s32 %v3731_v47, %v3443_v18  ;;  %v2778_v53 = vpop.permute.xlu1 %2777  ;;  %v14857_v48 = vld [vmem:[#allocation29_spill] sm:$0xff]  ;;  %v14860_v42 = vld [vmem:[#allocation131_spill] sm:$0xff] }
 0x3f5   :  { %v3825_v1 = vadd.s32 %v3729_v17, %v3441_v24  ;;  %v3824_v56 = vadd.s32 %v3728_v20, %v3440_v8  ;;  %v12685_v28 = vsel %vm3663_vm5, 1, %v13664_v60  ;;  %v3369_v35 = vsel %vm3273_vm7, 1, %v13664_v60 }
 0x3f6   :  { %vm2869_vm4 = vcmp.eq.s32.totalorder %v6246_v61, %v12326_v59  ;;  %vm2870_vm8 = vcmp.eq.s32.totalorder %v6255_v0, %v12326_v59  ;;  %vm2871_vm10 = vcmp.eq.s32.totalorder %v6259_v13, %v12326_v59  ;;  %v3919_v6 = vcvt.s32.f32 %v3823_v34  ;;  %v14858_v59 = vld [vmem:[#allocation67_spill] sm:$0xff] }
 0x3f7   :  { %v3921_v3 = vcvt.s32.f32 %v3825_v1  ;;  %v3920_v39 = vcvt.s32.f32 %v3824_v56  ;;  %vm3657_vm5 = vcmp.eq.s32.totalorder %v6259_v13, %v14852_v27  ;;  %vm2901_vm7 = vcmp.eq.s32.totalorder %v6259_v13, %v14853_v19 }
 0x3f8   :  { %v3924_v43 = vcvt.s32.f32 %v3828_v12  ;;  %v3826_v9 = vadd.s32 %v3730_v32, %v3442_v52  ;;  %v2677_v40 = vadd.s32 %v14855_v46, %v14854_v37  ;;  %v2965_v10 = vsel %vm2869_vm4, 1, %v13664_v60  ;;  %v12712_v32 = vpop.permute.xlu0 %3545  ;;  %v14859_v12 = vld [vmem:[#allocation120_spill] sm:$0xff] }
 0x3f9   :  { %v2966_v14 = vsel %vm2870_vm8, 1, %v13664_v60  ;;  %4248 = vmatprep.mubr.f32.mxu0 %v3920_v39  ;;  %5355 = vmatprep.mubr.msk.f32.mxu1 %vm3997_vm6, %v3921_v3  ;;  %v3923_v18 = vcvt.s32.f32 %v3827_v11  ;;  %v2678_v8 = vadd.s32 %v14857_v48, %v14856_v15  ;;  %v2967_v24 = vsel %vm2871_vm10, 1, %v13664_v60  ;;  %v3159_v56 = vpop.permute.xlu1 %3158  ;;  %v14862_v39 = vld [vmem:[#allocation89_spill] sm:$0xff] }
 0x3fa   :  { %vm2873_vm11 = vcmp.eq.s32.totalorder %v6255_v0, %v2778_v53  ;;  %vm2874_vm9 = vcmp.eq.s32.totalorder %v6259_v13, %v2778_v53  ;;  %4249 = vmatmul.mubr.f32.gmra.mrb[36].mxu0 %v3919_v6  ;;  %5356 = vmatmul.mubr.msk.f32.gmra.mrb[34].mxu1 %vm3997_vm6, %v3924_v43  ;;  %v12718_v47 = vadd.s32 %v3369_v35, %v12613_v54  ;;  %v12724_v45 = vsel %vm3657_vm5, 1, %v13664_v60 }
 0x3fb   :  { %v12728_v52 = vadd.s32 %v12473_v58, %v14858_v59  ;;  %v2679_v20 = vadd.s32 %v14860_v42, %v14859_v12  ;;  %4253 = vmatprep.mubr.f32.mxu0 %v3923_v18  ;;  %v12736_v54 = vsel %vm2901_vm7, 1, %v13664_v60  ;;  %v3061_v17 = vadd.s32 %v2965_v10, %v2677_v40 }
 0x3fc   :  { %v3062_v1 = vadd.s32 %v2966_v14, %v2678_v8  ;;  %v3922_v34 = vcvt.s32.f32 %v3826_v9  ;;  %vm2872_vm12 = vcmp.eq.s32.totalorder %v6246_v61, %v2778_v53  ;;  %v2969_v58 = vsel %vm2873_vm11, 1, %v13664_v60  ;;  %v14863_v53 = vld [vmem:[#allocation109_spill] sm:$0xff]  ;;  %v3549_v43 = vpop.permute.xlu0 %3548 }
 0x3fd   :  { %v3063_v11 = vadd.s32 %v2967_v24, %v2679_v20  ;;  %v2970_v35 = vsel %vm2874_vm9, 1, %v13664_v60  ;;  %vm2875_vm13 = vcmp.eq.s32.totalorder %v6246_v61, %v12394_v5  ;;  %vm2876_vm0 = vcmp.eq.s32.totalorder %v6255_v0, %v12394_v5  ;;  %v3162_v9 = vpop.permute.xlu1 %3161 }
 0x3fe   :  { %vm2877_vm1 = vcmp.eq.s32.totalorder %v6259_v13, %v12394_v5  ;;  %v2681_v3 = vadd.s32 %v12362_v33, %v14861_v2  ;;  %v2682_v6 = vadd.s32 %v12368_v36, %v14862_v39  ;;  %vm3253_vm14 = vcmp.eq.s32.totalorder %v6246_v61, %v3159_v56  ;;  %4254 = vmatmul.mubr.f32.gmra.mrb[38].mxu0 %v3922_v34 }
 0x3ff   :  { %vm3641_vm15 = vcmp.eq.s32.totalorder %v6255_v0, %v12712_v32  ;;  %v2680_v27 = vadd.s32 %v12352_v63, %v14863_v53  ;;  %vm3254_vm2 = vcmp.eq.s32.totalorder %v6255_v0, %v3159_v56  ;;  %vm3255_vm3 = vcmp.eq.s32.totalorder %v6259_v13, %v3159_v56 }
 0x400   :  { %vm3642_vm4 = vcmp.eq.s32.totalorder %v6259_v13, %v12712_v32  ;;  %v2968_v33 = vsel %vm2872_vm12, 1, %v13664_v60  ;;  %v3065_v19 = vadd.s32 %v2969_v58, %v2681_v3  ;;  %v3066_v36 = vadd.s32 %v2970_v35, %v2682_v6 }
 0x401   :  { %v3349_v37 = vsel %vm3253_vm14, 1, %v13664_v60  ;;  %vm3256_vm8 = vcmp.eq.s32.totalorder %v6246_v61, %v3162_v9  ;;  %vm3257_vm10 = vcmp.eq.s32.totalorder %v6255_v0, %v3162_v9  ;;  %vm3258_vm5 = vcmp.eq.s32.totalorder %v6259_v13, %v3162_v9 }
 0x402   :  { %vm2496_vm7 = vcmp.eq.s32.totalorder %v6259_v13, %v14811_v31  ;;  %v3350_v63 = vsel %vm3254_vm2, 1, %v13664_v60  ;;  %v3351_v46 = vsel %vm3255_vm3, 1, %v13664_v60  ;;  %v3353_v40 = vsel %vm3257_vm10, 1, %v13664_v60  ;;  %v3543_v20 = vpop.permute.xlu1 %3542 }
 0x403   :  { %v3354_v10 = vsel %vm3258_vm5, 1, %v13664_v60  ;;  %vm3640_vm11 = vcmp.eq.s32.totalorder %v6246_v61, %v12712_v32  ;;  %vm3643_vm9 = vcmp.eq.s32.totalorder %v6246_v61, %v3549_v43  ;;  %v3352_v14 = vsel %vm3256_vm8, 1, %v13664_v60 }
 0x404   :  { %v3450_v18 = vadd.s32 %v3354_v10, %v3066_v36  ;;  %v3737_v15 = vsel %vm3641_vm15, 1, %v13664_v60  ;;  %v3738_v48 = vsel %vm3642_vm4, 1, %v13664_v60  ;;  %v3064_v8 = vadd.s32 %v2968_v33, %v2680_v27 }
 0x405   :  { %v3449_v24 = vadd.s32 %v3353_v40, %v3065_v19  ;;  %vm3644_vm12 = vcmp.eq.s32.totalorder %v6255_v0, %v3549_v43  ;;  %v3445_v59 = vadd.s32 %v3349_v37, %v3061_v17  ;;  %v3446_v12 = vadd.s32 %v3350_v63, %v3062_v1 }
 0x406   :  { %v3447_v42 = vadd.s32 %v3351_v46, %v3063_v11  ;;  %v3448_v56 = vadd.s32 %v3352_v14, %v3064_v8  ;;  %vm3637_vm14 = vcmp.eq.s32.totalorder %v6246_v61, %v3543_v20  ;;  %vm3638_vm2 = vcmp.eq.s32.totalorder %v6255_v0, %v3543_v20 }
 0x407   :  { %vm3639_vm15 = vcmp.eq.s32.totalorder %v6259_v13, %v3543_v20  ;;  %v3834_v34 = vadd.s32 %v3738_v48, %v3450_v18  ;;  %v3733_v58 = vsel %vm3637_vm14, 1, %v13664_v60  ;;  %v3734_v35 = vsel %vm3638_vm2, 1, %v13664_v60  ;;  %v2784_v19 = vpop.permute.xlu1 %2783  ;;  %v14864_v48 = vld [vmem:[#allocation76_spill] sm:$0xff] }
 0x408   :  { %v3735_v2 = vsel %vm3639_vm15, 1, %v13664_v60  ;;  %v3830_v39 = vadd.s32 %v3734_v35, %v3446_v12  ;;  %v3829_v17 = vadd.s32 %v3733_v58, %v3445_v59  ;;  %v3833_v1 = vadd.s32 %v3737_v15, %v3449_v24  ;;  %v14865_v59 = vld [vmem:[#allocation50_spill] sm:$0xff] }
 0x409   :  { %v3831_v3 = vadd.s32 %v3735_v2, %v3447_v42  ;;  %v2971_v11 = vsel %vm2875_vm13, 1, %v13664_v60  ;;  %v2972_v6 = vsel %vm2876_vm0, 1, %v13664_v60  ;;  %v2973_v53 = vsel %vm2877_vm1, 1, %v13664_v60  ;;  %v14866_v58 = vld [vmem:[#allocation130_spill] sm:$0xff] }
 0x40a   :  { %vm3645_vm3 = vcmp.eq.s32.totalorder %v6259_v13, %v3549_v43  ;;  %v3736_v27 = vsel %vm3640_vm11, 1, %v13664_v60  ;;  %v3926_v36 = vcvt.s32.f32 %v3830_v39  ;;  %v3925_v9 = vcvt.s32.f32 %v3829_v17  ;;  %v14867_v17 = vld [vmem:[#allocation70_spill] sm:$0xff] }
 0x40b   :  { %v3927_v33 = vcvt.s32.f32 %v3831_v3  ;;  %v3739_v37 = vsel %vm3643_vm9, 1, %v13664_v60  ;;  %v3740_v5 = vsel %vm3644_vm12, 1, %v13664_v60  ;;  %v3930_v63 = vcvt.s32.f32 %v3834_v34 }
 0x40c   :  { %v3832_v46 = vadd.s32 %v3736_v27, %v3448_v56  ;;  %v3067_v40 = vadd.s32 %v2971_v11, %v12316_v26  ;;  %v3068_v10 = vadd.s32 %v2972_v6, %v12319_v22  ;;  %v3741_v32 = vsel %vm3645_vm3, 1, %v13664_v60  ;;  %4258 = vmatprep.mubr.f32.mxu0 %v3926_v36 }
 0x40d   :  { %5358 = vmatprep.mubr.msk.f32.mxu1 %vm3997_vm6, %v3927_v33  ;;  %v3929_v14 = vcvt.s32.f32 %v3833_v1  ;;  %v2592_v18 = vsel %vm2496_vm7, 1, %v13664_v60  ;;  %v3087_v43 = vadd.s32 %v12685_v28, %v12575_v44  ;;  %v12829_v15 = vadd.s32 %v12724_v45, %v12718_v47  ;;  %4259 = vmatmul.mubr.f32.gmra.mrb[40].mxu0 %v3925_v9  ;;  %v3165_v28 = vpop.permute.xlu1 %3164  ;;  %v12846_v45 = vpop.f32.mrb[6].mxu1 }
 0x40e   :  { %v3069_v26 = vadd.s32 %v2973_v53, %v12324_v30  ;;  %5359 = vmatmul.mubr.msk.f32.gmra.mrb[36].mxu1 %vm3997_vm6, %v3930_v63  ;;  %v12835_v22 = vadd.s32 %v12736_v54, %v12728_v52  ;;  %vm2511_vm13 = vcmp.eq.s32.totalorder %v6259_v13, %v14864_v48  ;;  %v3451_v31 = vadd.s32 %v3739_v37, %v3067_v40  ;;  %v4297_v42 = vpop.f32.mrb[7].mxu1  ;;  %v14868_v37 = vld [vmem:[#allocation47_spill] sm:$0xff]  ;;  %v14869_v63 = vld [vmem:[#allocation62_spill] sm:$0xff]  ;;  %v14870_v40 = vld [vmem:[#allocation124_spill] sm:$0xff] }
 0x40f   :  { %v3452_v8 = vadd.s32 %v3740_v5, %v3068_v10  ;;  %4263 = vmatprep.mubr.f32.mxu0 %v3929_v14  ;;  %vm2878_vm0 = vcmp.eq.s32.totalorder %v6246_v61, %v2784_v19  ;;  %vm2879_vm1 = vcmp.eq.s32.totalorder %v6255_v0, %v2784_v19  ;;  %v3928_v30 = vcvt.s32.f32 %v3832_v46  ;;  %v14871_v10 = vld [vmem:[#allocation33_spill] sm:$0xff] }
 0x410   :  { %v3453_v44 = vadd.s32 %v3741_v32, %v3069_v26  ;;  %vm2880_vm4 = vcmp.eq.s32.totalorder %v6259_v13, %v2784_v19  ;;  %vm3259_vm8 = vcmp.eq.s32.totalorder %v6246_v61, %v3165_v28  ;;  %vm3260_vm10 = vcmp.eq.s32.totalorder %v6255_v0, %v3165_v28 }
 0x411   :  { %vm3261_vm5 = vcmp.eq.s32.totalorder %v6259_v13, %v3165_v28  ;;  %v2607_v47 = vsel %vm2511_vm13, 1, %v13664_v60  ;;  %v3355_v52 = vsel %vm3259_vm8, 1, %v13664_v60  ;;  %v3356_v54 = vsel %vm3260_vm10, 1, %v13664_v60  ;;  %4264 = vmatmul.mubr.f32.gmra.mrb[42].mxu0 %v3928_v30  ;;  %v14872_v30 = vld [vmem:[#allocation59_spill] sm:$0xff] }
 0x412   :  { %v3357_v24 = vsel %vm3261_vm5, 1, %v13664_v60  ;;  %v2686_v12 = vadd.s32 %v12378_v51, %v14865_v59  ;;  %v3835_v20 = vadd.s32 %v3451_v31, %v3355_v52  ;;  %v3836_v56 = vadd.s32 %v3452_v8, %v3356_v54  ;;  %v3168_v51 = vpop.permute.xlu1 %3167  ;;  %v14873_v54 = vld [vmem:[#allocation97_spill] sm:$0xff] }
 0x413   :  { %v3837_v34 = vadd.s32 %v3453_v44, %v3357_v24  ;;  %v2687_v35 = vadd.s32 %v12381_v49, %v14866_v58  ;;  %v2974_v2 = vsel %vm2878_vm0, 1, %v13664_v60  ;;  %v2975_v3 = vsel %vm2879_vm1, 1, %v13664_v60 }
 0x414   :  { %v2976_v39 = vsel %vm2880_vm4, 1, %v13664_v60  ;;  %vm3262_vm7 = vcmp.eq.s32.totalorder %v6246_v61, %v3168_v51  ;;  %vm3263_vm11 = vcmp.eq.s32.totalorder %v6255_v0, %v3168_v51  ;;  %vm3264_vm9 = vcmp.eq.s32.totalorder %v6259_v13, %v3168_v51 }
 0x415   :  { %v3932_v49 = vcvt.s32.f32 %v3836_v56  ;;  %v2688_v1 = vadd.s32 %v2592_v18, %v14867_v17  ;;  %v3358_v11 = vsel %vm3262_vm7, 1, %v13664_v60  ;;  %v3359_v6 = vsel %vm3263_vm11, 1, %v13664_v60 }
 0x416   :  { %v3933_v53 = vcvt.s32.f32 %v3837_v34  ;;  %v3070_v27 = vadd.s32 %v2974_v2, %v2686_v12  ;;  %v3071_v33 = vadd.s32 %v2975_v3, %v2687_v35  ;;  %v3360_v19 = vsel %vm3264_vm9, 1, %v13664_v60  ;;  %v3552_v18 = vpop.permute.xlu1 %3551  ;;  %v12886_v48 = vpop.f32.mrb[8].mxu1  ;;  %v14874_v12 = vld [vmem:[#allocation136_spill] sm:$0xff]  ;;  %v14875_v35 = vld [vmem:[#allocation38_spill] sm:$0xff] }
 0x417   :  { %4268 = vmatprep.mubr.f32.mxu0 %v3932_v49  ;;  %v3931_v36 = vcvt.s32.f32 %v3835_v20  ;;  %v3471_v9 = vadd.s32 %v3087_v43, %v2607_v47  ;;  %v3084_v5 = vadd.s32 %v14868_v37, %v12457_v62  ;;  %vm3276_vm12 = vcmp.eq.s32.totalorder %v6259_v13, %v14869_v63  ;;  %v12880_v43 = vpop.f32.mrb[6].mxu0  ;;  %v4302_v47 = vpop.f32.mrb[9].mxu1  ;;  %v14877_v49 = vld [vmem:[#allocation27_spill] sm:$0xff]  ;;  %v14879_v37 = vld [vmem:[#allocation106_spill] sm:$0xff] }
 0x418   :  { %v3072_v46 = vadd.s32 %v2976_v39, %v2688_v1  ;;  %5361 = vmatprep.mubr.msk.f32.mxu1 %vm3997_vm6, %v3933_v53  ;;  %vm3660_vm14 = vcmp.eq.s32.totalorder %v6259_v13, %v14870_v40  ;;  %vm2514_vm2 = vcmp.eq.s32.totalorder %v6259_v13, %v14871_v10  ;;  %v3454_v32 = vadd.s32 %v3358_v11, %v3070_v27  ;;  %v4177_v31 = vpop.f32.mrb[7].mxu0  ;;  %v14876_v39 = vld [vmem:[#allocation93_spill] sm:$0xff]  ;;  %v14878_v11 = vld [vmem:[#allocation103_spill] sm:$0xff] }
 0x419   :  { %v3455_v14 = vadd.s32 %v3359_v6, %v3071_v33  ;;  %4269 = vmatmul.mubr.f32.gmra.mrb[44].mxu0 %v3931_v36  ;;  %vm3646_vm15 = vcmp.eq.s32.totalorder %v6246_v61, %v3552_v18  ;;  %vm3647_vm3 = vcmp.eq.s32.totalorder %v6255_v0, %v3552_v18  ;;  %vm3648_vm13 = vcmp.eq.s32.totalorder %v6259_v13, %v3552_v18 }
 0x41a   :  { %v3456_v26 = vadd.s32 %v3360_v19, %v3072_v46  ;;  %v3372_v62 = vsel %vm3276_vm12, 1, %v13664_v60  ;;  %v3742_v8 = vsel %vm3646_vm15, 1, %v13664_v60  ;;  %v3743_v44 = vsel %vm3647_vm3, 1, %v13664_v60 }
 0x41b   :  { %v3744_v28 = vsel %vm3648_vm13, 1, %v13664_v60  ;;  %vm2898_vm0 = vcmp.eq.s32.totalorder %v6259_v13, %v14872_v30  ;;  %v3839_v52 = vadd.s32 %v3743_v44, %v3455_v14  ;;  %v3838_v0 = vadd.s32 %v3742_v8, %v3454_v32 }
 0x41c   :  { %v3840_v61 = vadd.s32 %v3744_v28, %v3456_v26  ;;  %vm2895_vm1 = vcmp.eq.s32.totalorder %v6259_v13, %v14873_v54  ;;  %v3756_v24 = vsel %vm3660_vm14, 1, %v13664_v60  ;;  %v2610_v59 = vsel %vm2514_vm2, 1, %v13664_v60  ;;  %v4577_v54 = vld [vmem:[#allocation7 + $0x8] sm:$0xff] }
 0x41d   :  { %vm3282_vm4 = vcmp.eq.s32.totalorder %v6259_v13, %v14874_v12  ;;  %vm2520_vm8 = vcmp.eq.s32.totalorder %v6259_v13, %v11764_v25  ;;  %v3935_v20 = vcvt.s32.f32 %v3839_v52  ;;  %v3934_v56 = vcvt.s32.f32 %v3838_v0 }
 0x41e   :  { %v3936_v42 = vcvt.s32.f32 %v3840_v61  ;;  %v3468_v34 = vadd.s32 %v3372_v62, %v3084_v5  ;;  %v2994_v58 = vsel %vm2898_vm0, 1, %v13664_v60  ;;  %vm3285_vm10 = vcmp.eq.s32.totalorder %v6259_v13, %v14875_v35 }
 0x41f   :  { %v3939_v2 = vcvt.s32.f32 %v12600_v41  ;;  %v2991_v3 = vsel %vm2895_vm1, 1, %v13664_v60  ;;  %v2706_v51 = vadd.s32 %v2610_v59, %v14876_v39  ;;  %vm3666_vm5 = vcmp.eq.s32.totalorder %v6259_v13, %v14877_v49  ;;  %4273 = vmatprep.mubr.f32.mxu0 %v3935_v20 }
 0x420   :  { %vm2904_vm7 = vcmp.eq.s32.totalorder %v6259_v13, %v11882_v29  ;;  %5362 = vmatmul.mubr.msk.f32.gmra.mrb[38].mxu1 %vm3997_vm6, %v3936_v42  ;;  %v3852_v17 = vadd.s32 %v3756_v24, %v3468_v34  ;;  %v3378_v1 = vsel %vm3282_vm4, 1, %v13664_v60  ;;  %v2616_v41 = vsel %vm2520_vm8, 1, %v13664_v60  ;;  %4274 = vmatmul.mubr.f32.gmra.mrb[46].mxu0 %v3934_v56  ;;  %v4576_v24 = vld [vmem:[#allocation7] sm:$0xff]  ;;  %v4578_v56 = vld [vmem:[#allocation7 + $0x10] sm:$0xff] }
 0x421   :  { %vm3669_vm11 = vcmp.eq.s32.totalorder %v6259_v13, %v14878_v11  ;;  %5364 = vmatprep.mubr.msk.f32.mxu1 %vm3997_vm6, %v3939_v2  ;;  %v3090_v29 = vadd.s32 %v2994_v58, %v2706_v51  ;;  %v3381_v6 = vsel %vm3285_vm10, 1, %v13664_v60  ;;  %vm3288_vm9 = vcmp.eq.s32.totalorder %v6259_v13, %v11963_v7  ;;  %v4580_v11 = vld [vmem:[#allocation7 + $0x20] sm:$0xff] }
 0x422   :  { %v3942_v53 = vcvt.s32.f32 %v12611_v55  ;;  %v3855_v27 = vadd.s32 %v3471_v9, %v2991_v3  ;;  %v3762_v33 = vsel %vm3666_vm5, 1, %v13664_v60  ;;  %v3000_v25 = vsel %vm2904_vm7, 1, %v13664_v60 }
 0x423   :  { %v3945_v19 = vcvt.s32.f32 %v12829_v15  ;;  %v3474_v36 = vadd.s32 %v3378_v1, %v3090_v29  ;;  %v2712_v5 = vadd.s32 %v2616_v41, %v14879_v37  ;;  %v3765_v63 = vsel %vm3669_vm11, 1, %v13664_v60 }
 0x424   :  { %vm3672_vm12 = vcmp.eq.s32.totalorder %v6259_v13, %v11994_v21  ;;  %5365 = vmatmul.mubr.msk.f32.gmra.mrb[40].mxu1 %vm3997_vm6, %v3942_v53  ;;  %v3477_v7 = vadd.s32 %v3381_v6, %v12835_v22  ;;  %v3384_v55 = vsel %vm3288_vm9, 1, %v13664_v60  ;;  %v3948_v40 = vcvt.s32.f32 %v3852_v17  ;;  %v4579_v17 = vld [vmem:[#allocation7 + $0x18] sm:$0xff] }
 0x425   :  { %5367 = vmatprep.mubr.msk.f32.mxu1 %vm3997_vm6, %v3945_v19  ;;  %v3858_v9 = vadd.s32 %v3762_v33, %v3474_v36  ;;  %v3096_v46 = vadd.s32 %v3000_v25, %v2712_v5  ;;  %v3768_v10 = vsel %vm3672_vm12, 1, %v13664_v60  ;;  %v3951_v32 = vcvt.s32.f32 %v3855_v27  ;;  %v4581_v19 = vld [vmem:[#allocation7 + $0x28] sm:$0xff]  ;;  %v4582_v5 = vld [vmem:[#allocation7 + $0x30] sm:$0xff] }
 0x426   :  { %v3861_v15 = vadd.s32 %v3765_v63, %v3477_v7  ;;  %v5251_v42 = vclamps-f32 %v4577_v54, 1.0  ;;  %v5250_v20 = vclamps-f32 %v4576_v24, 1.0  ;;  %v5252_v51 = vclamps-f32 %v4578_v56, 1.0 }
 0x427   :  { %v3480_v14 = vadd.s32 %v3384_v55, %v3096_v46  ;;  %v3954_v21 = vcvt.s32.f32 %v3858_v9  ;;  %v5253_v33 = vclamps-f32 %v4579_v17, 1.0  ;;  %v5255_v7 = vclamps-f32 %v4581_v19, 1.0 }
 0x428   :  { %5368 = vmatmul.mubr.msk.f32.gmra.mrb[42].mxu1 %vm3997_vm6, %v3948_v40  ;;  %v3957_v18 = vcvt.s32.f32 %v3861_v15  ;;  %v4673_v35 = vmul.f32 0.25, %v5251_v42  ;;  %v4672_v39 = vmul.f32 0.25, %v5250_v20  ;;  %v4674_v25 = vmul.f32 0.25, %v5252_v51 }
 0x429   :  { %5370 = vmatprep.mubr.msk.f32.mxu1 %vm3997_vm6, %v3951_v32  ;;  %v3864_v13 = vadd.s32 %v3768_v10, %v3480_v14  ;;  %v4675_v9 = vmul.f32 0.25, %v5253_v33  ;;  %v4583_v32 = vld [vmem:[#allocation7 + $0x38] sm:$0xff]  ;;  %v5256_v14 = vclamps-f32 %v4582_v5, 1.0 }
 0x42a   :  { %v4180_v26 = vpop.f32.mrb[8].mxu0 }
 0x42b   :  { %v3960_v22 = vcvt.s32.f32 %v3864_v13  ;;  %v4182_v62 = vpop.f32.mrb[9].mxu0  ;;  %v4677_v13 = vmul.f32 0.25, %v5255_v7  ;;  %v4678_v54 = vmul.f32 0.25, %v5256_v14 }
 0x42c   :  { %5371 = vmatmul.mubr.msk.f32.gmra.mrb[44].mxu1 %vm3997_vm6, %v3954_v21 }
 0x42d   :  { %5373 = vmatprep.mubr.msk.f32.mxu1 %vm3997_vm6, %v3957_v18 }
 0x42e   :  { %v4185_v31 = vpop.f32.mrb[10].mxu0 }
 0x42f   :  { %v4187_v60 = vpop.f32.mrb[11].mxu0 }
 0x430   :  { %5374 = vmatmul.mubr.msk.f32.gmra.mrb[46].mxu1 %vm3997_vm6, %v3960_v22 }
 0x431   :  { %v12950_v8 = vpop.f32.mrb[10].mxu1 }
 0x432   :  { %v4307_v44 = vpop.f32.mrb[11].mxu1 }
 0x433   :  { %v5257_v44 = vclamps-f32 %v4583_v32, 1.0  ;;  %v4588_v32 = vld [vmem:[#allocation7 + $0x60] sm:$0xff] }
 0x435   :  { %v4679_v56 = vmul.f32 0.25, %v5257_v44 }
 0x449   :  { %v12952_v28 = vpop.f32.mrb[12].mxu1 }
 0x44a   :  { %v4312_v30 = vpop.f32.mrb[13].mxu1 }
 0x44d   :  { %v4190_v47 = vpop.f32.mrb[12].mxu0 }
 0x44e   :  { %v4192_v61 = vpop.f32.mrb[13].mxu0 }
 0x44f   :  { %v4585_v61 = vld [vmem:[#allocation7 + $0x48] sm:$0xff] }
 0x451   :  { %v4195_v52 = vpop.f32.mrb[14].mxu0 }
 0x452   :  { %v4197_v0 = vpop.f32.mrb[15].mxu0 }
 0x457   :  { %v12954_v59 = vpop.f32.mrb[14].mxu1 }
 0x458   :  { %v4317_v12 = vpop.f32.mrb[15].mxu1 }
 0x459   :  { %v5259_v12 = vclamps-f32 %v4585_v61, 1.0 }
 0x45b   :  { %v5330_v34 = vpop.f32.mrb[16].mxu1 }
 0x45c   :  { %v4391_v58 = vadd.f32 %v5330_v34, %v12608_v57  ;;  %v4385_v2 = vpop.f32.mrb[17].mxu1 }
 0x45d   :  { %v4386_v3 = vadd.f32 %v4385_v2, %v12487_v38  ;;  %v5254_v38 = vclamps-f32 %v4580_v11, 1.0 }
 0x45e   :  { %v4545_v49 = vmul.f32 0.5, %v4391_v58 }
 0x45f   :  { %v4544_v1 = vmul.f32 0.5, %v4386_v3  ;;  %v4676_v10 = vmul.f32 0.25, %v5254_v38 }
 0x460   :  { %v5333_v41 = vpop.f32.mrb[18].mxu1  ;;  %v12958_v29 = vadd.f32 %v4673_v35, %v4545_v49  ;;  %v4681_v35 = vmul.f32 0.25, %v5259_v12 }
 0x461   :  { %v4401_v6 = vadd.f32 %v5333_v41, %v12880_v43  ;;  %v4395_v53 = vpop.f32.mrb[19].mxu1  ;;  %v12961_v27 = vadd.f32 %v4672_v39, %v4544_v1 }
 0x462   :  { %v4396_v57 = vadd.f32 %v4395_v53, %v12661_v16  ;;  %4738 = vadd.xlane.f32.xlu1 %v12958_v29 }
 0x463   :  { %4736 = vadd.xlane.f32.xlu0 %v12961_v27  ;;  %v4547_v43 = vmul.f32 0.5, %v4401_v6 }
 0x464   :  { %v4546_v36 = vmul.f32 0.5, %v4396_v57  ;;  %v4200_v37 = vpop.f32.mrb[16].mxu0  ;;  %v4587_v57 = vld [vmem:[#allocation7 + $0x58] sm:$0xff] }
 0x465   :  { %v5336_v63 = vpop.f32.mrb[20].mxu1  ;;  %v4202_v55 = vpop.f32.mrb[17].mxu0  ;;  %v12969_v22 = vadd.f32 %v4675_v9, %v4547_v43  ;;  %v5261_v19 = vclamps-f32 %v4587_v57, 1.0 }
 0x466   :  { %v12966_v46 = vadd.f32 %v4674_v25, %v4546_v36  ;;  %v4411_v40 = vadd.f32 %v5336_v63, %v4185_v31  ;;  %v4405_v15 = vpop.f32.mrb[21].mxu1  ;;  %v4586_v25 = vld [vmem:[#allocation7 + $0x50] sm:$0xff] }
 0x467   :  { %v4406_v16 = vadd.f32 %v4405_v15, %v4180_v26  ;;  %v4584_v26 = vld [vmem:[#allocation7 + $0x40] sm:$0xff]  ;;  %v5260_v38 = vclamps-f32 %v4586_v25, 1.0  ;;  %v4683_v7 = vmul.f32 0.25, %v5261_v19 }
 0x468   :  { %4740 = vadd.xlane.f32.xlu0 %v12966_v46  ;;  %v4549_v62 = vmul.f32 0.5, %v4411_v40  ;;  %v5258_v34 = vclamps-f32 %v4584_v26, 1.0 }
 0x469   :  { %v4548_v21 = vmul.f32 0.5, %v4406_v16  ;;  %v5339_v18 = vpop.f32.mrb[22].mxu1  ;;  %v4682_v43 = vmul.f32 0.25, %v5260_v38 }
 0x46a   :  { %v4421_v60 = vadd.f32 %v5339_v18, %v4195_v52  ;;  %v4415_v30 = vpop.f32.mrb[23].mxu1  ;;  %v12975_v42 = vadd.f32 %v4677_v13, %v4549_v62  ;;  %v4680_v49 = vmul.f32 0.25, %v5258_v34  ;;  %v5262_v62 = vclamps-f32 %v4588_v32, 1.0 }
 0x46b   :  { %v12971_v0 = vadd.f32 %v4676_v10, %v4548_v21  ;;  %v4416_v31 = vadd.f32 %v4415_v30, %v4190_v47  ;;  %v4589_v10 = vld [vmem:[#allocation7 + $0x68] sm:$0xff] }
 0x46c   :  { %4742 = vadd.xlane.f32.xlu0 %v12969_v22  ;;  %v4551_v20 = vmul.f32 0.5, %v4421_v60  ;;  %v5263_v18 = vclamps-f32 %v4589_v10, 1.0  ;;  %v4684_v26 = vmul.f32 0.25, %v5262_v62 }
 0x46d   :  { %v4550_v24 = vmul.f32 0.5, %v4416_v31  ;;  %4744 = vadd.xlane.f32.xlu1 %v12971_v0 }
 0x46e   :  { %v12981_v3 = vadd.f32 %v4679_v56, %v4551_v20  ;;  %v4685_v31 = vmul.f32 0.25, %v5263_v18 }
 0x46f   :  { %v12977_v52 = vadd.f32 %v4678_v54, %v4550_v24 }
 0x470   :  { %4746 = vadd.xlane.f32.xlu0 %v12975_v42  ;;  %v5342_v58 = vpop.f32.mrb[24].mxu1 }
 0x471   :  { %4748 = vadd.xlane.f32.xlu1 %v12977_v52  ;;  %v4205_v47 = vpop.f32.mrb[18].mxu0  ;;  %v4425_v2 = vpop.f32.mrb[25].mxu1 }
 0x472   :  { %v4431_v39 = vadd.f32 %v5342_v58, %v4205_v47  ;;  %v4426_v51 = vadd.f32 %v4425_v2, %v4200_v37  ;;  %v4207_v17 = vpop.f32.mrb[19].mxu0  ;;  %v4591_v2 = vld [vmem:[#allocation7 + $0x78] sm:$0xff] }
 0x474   :  { %v4553_v1 = vmul.f32 0.5, %v4431_v39  ;;  %v4552_v41 = vmul.f32 0.5, %v4426_v51  ;;  %4750 = vadd.xlane.f32.xlu0 %v12981_v3  ;;  %v5265_v51 = vclamps-f32 %v4591_v2, 1.0 }
 0x476   :  { %v12984_v11 = vadd.f32 %v4681_v35, %v4553_v1  ;;  %v12986_v6 = vadd.f32 %v4680_v49, %v4552_v41  ;;  %v4590_v35 = vld [vmem:[#allocation7 + $0x70] sm:$0xff]  ;;  %v4687_v57 = vmul.f32 0.25, %v5265_v51 }
 0x477   :  { %v5264_v39 = vclamps-f32 %v4590_v35, 1.0 }
 0x478   :  { %4752 = vadd.xlane.f32.xlu1 %v12986_v6  ;;  %4754 = vadd.xlane.f32.xlu0 %v12984_v11 }
 0x47b   :  { %v4210_v53 = vpop.f32.mrb[20].mxu0 }
 0x47c   :  { %v4212_v33 = vpop.f32.mrb[21].mxu0 }
 0x484   :  { %v5345_v36 = vpop.f32.mrb[26].mxu1 }
 0x485   :  { %v4215_v37 = vpop.f32.mrb[22].mxu0  ;;  %v4435_v5 = vpop.f32.mrb[27].mxu1 }
 0x486   :  { %v4441_v63 = vadd.f32 %v5345_v36, %v4215_v37  ;;  %v4436_v55 = vadd.f32 %v4435_v5, %v4210_v53  ;;  %v4217_v9 = vpop.f32.mrb[23].mxu0  ;;  %v4686_v53 = vmul.f32 0.25, %v5264_v39  ;;  %v4592_v5 = vld [vmem:[#allocation7 + $0x80] sm:$0xff] }
 0x488   :  { %v4555_v40 = vmul.f32 0.5, %v4441_v63  ;;  %v4554_v15 = vmul.f32 0.5, %v4436_v55  ;;  %v5266_v63 = vclamps-f32 %v4592_v5, 1.0 }
 0x48a   :  { %v4220_v16 = vpop.f32.mrb[24].mxu0  ;;  %v12990_v14 = vadd.f32 %v4683_v7, %v4555_v40  ;;  %v12992_v13 = vadd.f32 %v4682_v43, %v4554_v15  ;;  %v4593_v7 = vld [vmem:[#allocation7 + $0x88] sm:$0xff]  ;;  %v4688_v10 = vmul.f32 0.25, %v5266_v63 }
 0x48b   :  { %v4222_v21 = vpop.f32.mrb[25].mxu0  ;;  %v5267_v15 = vclamps-f32 %v4593_v7, 1.0 }
 0x48c   :  { %4756 = vadd.xlane.f32.xlu1 %v12992_v13  ;;  %4758 = vadd.xlane.f32.xlu0 %v12990_v14 }
 0x48d   :  { %v4689_v62 = vmul.f32 0.25, %v5267_v15 }
 0x48f   :  { %v5348_v60 = vpop.f32.mrb[28].mxu1  ;;  %v4225_v44 = vpop.f32.mrb[26].mxu0 }
 0x490   :  { %v4445_v30 = vpop.f32.mrb[29].mxu1  ;;  %v4451_v61 = vadd.f32 %v5348_v60, %v4225_v44  ;;  %v4227_v24 = vpop.f32.mrb[27].mxu0 }
 0x491   :  { %v4446_v54 = vadd.f32 %v4445_v30, %v4220_v16 }
 0x492   :  { %v4557_v12 = vmul.f32 0.5, %v4451_v61 }
 0x493   :  { %v4556_v20 = vmul.f32 0.5, %v4446_v54 }
 0x494   :  { %v12996_v56 = vadd.f32 %v4685_v31, %v4557_v12  ;;  %v4594_v31 = vld [vmem:[#allocation7 + $0x90] sm:$0xff] }
 0x495   :  { %v12998_v34 = vadd.f32 %v4684_v26, %v4556_v20  ;;  %v5268_v54 = vclamps-f32 %v4594_v31, 1.0  ;;  %v4595_v26 = vld [vmem:[#allocation7 + $0x98] sm:$0xff] }
 0x496   :  { %4762 = vadd.xlane.f32.xlu0 %v12996_v56  ;;  %v4599_v31 = vld [vmem:[#allocation7 + $0xb8] sm:$0xff] }
 0x497   :  { %4760 = vadd.xlane.f32.xlu1 %v12998_v34  ;;  %v4690_v2 = vmul.f32 0.25, %v5268_v54  ;;  %v4598_v54 = vld [vmem:[#allocation7 + $0xb0] sm:$0xff] }
 0x4a0   :  { %v4230_v58 = vpop.f32.mrb[28].mxu0 }
 0x4a1   :  { %v4232_v47 = vpop.f32.mrb[29].mxu0 }
 0x4a2   :  { %v5269_v47 = vclamps-f32 %v4595_v26, 1.0  ;;  %v5273_v26 = vclamps-f32 %v4599_v31, 1.0  ;;  %v4604_v31 = vld [vmem:[#allocation7 + $0xe0] sm:$0xff] }
 0x4a6   :  { %v5351_v49 = vpop.f32.mrb[30].mxu1 }
 0x4a7   :  { %v4455_v17 = vpop.f32.mrb[31].mxu1 }
 0x4a8   :  { %v4235_v1 = vpop.f32.mrb[30].mxu0  ;;  %v4456_v41 = vadd.f32 %v4455_v17, %v4230_v58  ;;  %v4691_v17 = vmul.f32 0.25, %v5269_v47 }
 0x4a9   :  { %v4461_v33 = vadd.f32 %v5351_v49, %v4235_v1  ;;  %v4237_v25 = vpop.f32.mrb[31].mxu0 }
 0x4aa   :  { %v4558_v19 = vmul.f32 0.5, %v4456_v41 }
 0x4ab   :  { %v4559_v38 = vmul.f32 0.5, %v4461_v33 }
 0x4ac   :  { %v13002_v36 = vadd.f32 %v4686_v53, %v4558_v19  ;;  %v4597_v19 = vld [vmem:[#allocation7 + $0xa8] sm:$0xff] }
 0x4ad   :  { %v13004_v37 = vadd.f32 %v4687_v57, %v4559_v38  ;;  %v4596_v57 = vld [vmem:[#allocation7 + $0xa0] sm:$0xff] }
 0x4ae   :  { %4764 = vadd.xlane.f32.xlu1 %v13002_v36  ;;  %v5270_v25 = vclamps-f32 %v4596_v57, 1.0  ;;  %v4603_v57 = vld [vmem:[#allocation7 + $0xd8] sm:$0xff] }
 0x4af   :  { %4766 = vadd.xlane.f32.xlu0 %v13004_v37 }
 0x4b9   :  { %v4240_v55 = vpop.f32.mrb[32].mxu0  ;;  %v5354_v43 = vpop.f32.mrb[32].mxu1 }
 0x4ba   :  { %v4242_v9 = vpop.f32.mrb[33].mxu0  ;;  %v4465_v40 = vpop.f32.mrb[33].mxu1 }
 0x4bb   :  { %v4466_v16 = vadd.f32 %v4465_v40, %v4240_v55  ;;  %v5271_v55 = vclamps-f32 %v4597_v19, 1.0  ;;  %v4692_v9 = vmul.f32 0.25, %v5270_v25  ;;  %v4602_v19 = vld [vmem:[#allocation7 + $0xd0] sm:$0xff] }
 0x4bd   :  { %v4560_v32 = vmul.f32 0.5, %v4466_v16  ;;  %v4245_v21 = vpop.f32.mrb[34].mxu0 }
 0x4be   :  { %v4471_v18 = vadd.f32 %v5354_v43, %v4245_v21  ;;  %v4247_v60 = vpop.f32.mrb[35].mxu0 }
 0x4bf   :  { %v13008_v44 = vadd.f32 %v4688_v10, %v4560_v32  ;;  %v4693_v10 = vmul.f32 0.25, %v5271_v55 }
 0x4c0   :  { %v4561_v30 = vmul.f32 0.5, %v4471_v18 }
 0x4c1   :  { %4768 = vadd.xlane.f32.xlu1 %v13008_v44 }
 0x4c2   :  { %v13011_v61 = vadd.f32 %v4689_v62, %v4561_v30 }
 0x4c4   :  { %4770 = vadd.xlane.f32.xlu0 %v13011_v61 }
 0x4cd   :  { %v4250_v24 = vpop.f32.mrb[36].mxu0  ;;  %v5357_v12 = vpop.f32.mrb[34].mxu1 }
 0x4ce   :  { %v4252_v20 = vpop.f32.mrb[37].mxu0  ;;  %v4475_v58 = vpop.f32.mrb[35].mxu1 }
 0x4cf   :  { %v4476_v35 = vadd.f32 %v4475_v58, %v4250_v24  ;;  %v5272_v24 = vclamps-f32 %v4598_v54, 1.0  ;;  %v4600_v20 = vld [vmem:[#allocation7 + $0xc0] sm:$0xff] }
 0x4d1   :  { %v4562_v39 = vmul.f32 0.5, %v4476_v35  ;;  %v4255_v51 = vpop.f32.mrb[38].mxu0 }
 0x4d2   :  { %v4481_v49 = vadd.f32 %v5357_v12, %v4255_v51  ;;  %v4257_v1 = vpop.f32.mrb[39].mxu0  ;;  %v4601_v12 = vld [vmem:[#allocation7 + $0xc8] sm:$0xff] }
 0x4d3   :  { %v13014_v41 = vadd.f32 %v4690_v2, %v4562_v39  ;;  %v5275_v2 = vclamps-f32 %v4601_v12, 1.0  ;;  %v5274_v39 = vclamps-f32 %v4600_v20, 1.0  ;;  %v4694_v1 = vmul.f32 0.25, %v5272_v24 }
 0x4d4   :  { %v4563_v53 = vmul.f32 0.5, %v4481_v49  ;;  %v4695_v49 = vmul.f32 0.25, %v5273_v26 }
 0x4d5   :  { %4772 = vadd.xlane.f32.xlu1 %v13014_v41  ;;  %v4697_v55 = vmul.f32 0.25, %v5275_v2  ;;  %v5278_v2 = vclamps-f32 %v4604_v31, 1.0 }
 0x4d6   :  { %v13017_v33 = vadd.f32 %v4691_v17, %v4563_v53 }
 0x4d8   :  { %4774 = vadd.xlane.f32.xlu0 %v13017_v33 }
 0x4e0   :  { %v4260_v38 = vpop.f32.mrb[40].mxu0 }
 0x4e1   :  { %v5360_v5 = vpop.f32.mrb[36].mxu1  ;;  %v4262_v63 = vpop.f32.mrb[41].mxu0 }
 0x4e2   :  { %v4485_v7 = vpop.f32.mrb[37].mxu1 }
 0x4e3   :  { %v4486_v43 = vadd.f32 %v4485_v7, %v4260_v38 }
 0x4e4   :  { %v4265_v15 = vpop.f32.mrb[42].mxu0 }
 0x4e5   :  { %v4564_v40 = vmul.f32 0.5, %v4486_v43  ;;  %v4491_v16 = vadd.f32 %v5360_v5, %v4265_v15  ;;  %v4267_v32 = vpop.f32.mrb[43].mxu0 }
 0x4e6   :  { %v5276_v32 = vclamps-f32 %v4602_v19, 1.0 }
 0x4e7   :  { %v13020_v21 = vadd.f32 %v4692_v9, %v4564_v40  ;;  %v4565_v18 = vmul.f32 0.5, %v4491_v16  ;;  %v4696_v9 = vmul.f32 0.25, %v5274_v39  ;;  %v5277_v40 = vclamps-f32 %v4603_v57, 1.0  ;;  %v4607_v39 = vld [vmem:[#allocation7 + $0xf8] sm:$0xff] }
 0x4e9   :  { %4776 = vadd.xlane.f32.xlu1 %v13020_v21  ;;  %v13023_v62 = vadd.f32 %v4693_v10, %v4565_v18  ;;  %v4605_v18 = vld [vmem:[#allocation7 + $0xe8] sm:$0xff]  ;;  %v4699_v12 = vmul.f32 0.25, %v5277_v40 }
 0x4eb   :  { %4778 = vadd.xlane.f32.xlu0 %v13023_v62 }
 0x4ec   :  { %v4270_v60 = vpop.f32.mrb[44].mxu0 }
 0x4ed   :  { %v4272_v30 = vpop.f32.mrb[45].mxu0 }
 0x4f0   :  { %v4737_v25 = vpop.xlane.xlu0 %4736 }
 0x4f3   :  { %v5363_v58 = vpop.f32.mrb[38].mxu1  ;;  %v4275_v47 = vpop.f32.mrb[46].mxu0 }
 0x4f4   :  { %v4495_v35 = vpop.f32.mrb[39].mxu1  ;;  %v4501_v51 = vadd.f32 %v5363_v58, %v4275_v47  ;;  %v4277_v53 = vpop.f32.mrb[47].mxu0  ;;  %v5279_v58 = vclamps-f32 %v4605_v18, 1.0 }
 0x4f5   :  { %v4496_v17 = vadd.f32 %v4495_v35, %v4270_v60  ;;  %v4741_v30 = vpop.xlane.xlu0 %4740  ;;  %v4698_v35 = vmul.f32 0.25, %v5276_v32 }
 0x4f6   :  { %v4567_v38 = vmul.f32 0.5, %v4501_v51  ;;  %v4701_v19 = vmul.f32 0.25, %v5279_v58 }
 0x4f7   :  { %v4566_v5 = vmul.f32 0.5, %v4496_v17  ;;  %v5366_v63 = vpop.f32.mrb[40].mxu1 }
 0x4f8   :  { %v4511_v7 = vadd.f32 %v5366_v63, %v12552_v4  ;;  %v4505_v43 = vpop.f32.mrb[41].mxu1  ;;  %v13027_v15 = vadd.f32 %v4695_v49, %v4567_v38  ;;  %v4606_v49 = vld [vmem:[#allocation7 + $0xf0] sm:$0xff] }
 0x4f9   :  { %v13029_v16 = vadd.f32 %v4694_v1, %v4566_v5  ;;  %v4506_v10 = vadd.f32 %v4505_v43, %v12437_v50  ;;  %v5281_v5 = vclamps-f32 %v4607_v39, 1.0  ;;  %v5280_v43 = vclamps-f32 %v4606_v49, 1.0 }
 0x4fa   :  { %v4569_v60 = vmul.f32 0.5, %v4511_v7  ;;  %4782 = vadd.xlane.f32.xlu0 %v13027_v15 }
 0x4fb   :  { %v4568_v54 = vmul.f32 0.5, %v4506_v10  ;;  %v5369_v26 = vpop.f32.mrb[42].mxu1  ;;  %4780 = vadd.xlane.f32.xlu1 %v13029_v16 }
 0x4fc   :  { %v13034_v4 = vadd.f32 %v4697_v55, %v4569_v60  ;;  %v4521_v24 = vadd.f32 %v5369_v26, %v12846_v45  ;;  %v4515_v20 = vpop.f32.mrb[43].mxu1  ;;  %v4743_v45 = vpop.xlane.xlu0 %4742  ;;  %v4700_v55 = vmul.f32 0.25, %v5278_v2  ;;  %v4703_v60 = vmul.f32 0.25, %v5281_v5 }
 0x4fd   :  { %v13037_v47 = vadd.f32 %v4696_v9, %v4568_v54  ;;  %v4516_v50 = vadd.f32 %v4515_v20, %v12679_v23  ;;  %v4739_v23 = vpop.xlane.xlu1 %4738  ;;  %v4801_v54 = vmul.f32 0.0078125, %v4737_v25  ;;  %v4803_v2 = vmul.f32 0.0078125, %v4741_v30 }
 0x4fe   :  { %v4571_v51 = vmul.f32 0.5, %v4521_v24  ;;  %4786 = vadd.xlane.f32.xlu0 %v13034_v4  ;;  %v4802_v32 = vmul.f32 0.0078125, %v4739_v23  ;;  %v4702_v24 = vmul.f32 0.25, %v5280_v43  ;;  %v4804_v39 = vmul.f32 0.0078125, %v4743_v45 }
 0x4ff   :  { %v4570_v17 = vmul.f32 0.5, %v4516_v50  ;;  %v5372_v1 = vpop.f32.mrb[44].mxu1  ;;  %4784 = vadd.xlane.f32.xlu1 %v13037_v47  ;;  %v13064_v25 = vsub.f32 %v12961_v27, %v4801_v54 }
 0x500   :  { %v13042_v53 = vadd.f32 %v4699_v12, %v4571_v51  ;;  %v4531_v57 = vadd.f32 %v5372_v1, %v12950_v8  ;;  %v4525_v38 = vpop.f32.mrb[45].mxu1  ;;  %v4747_v12 = vpop.xlane.xlu0 %4746  ;;  %v13076_v1 = vsub.f32 %v12969_v22, %v4804_v39 }
 0x501   :  { %v13045_v63 = vadd.f32 %v4698_v35, %v4570_v17  ;;  %v4526_v7 = vadd.f32 %v4525_v38, %v12886_v48  ;;  %v4745_v58 = vpop.xlane.xlu1 %4744  ;;  %v13059_v35 = vsub.f32 %v12958_v29, %v4802_v32  ;;  %v13073_v29 = vsub.f32 %v12966_v46, %v4803_v2 }
 0x502   :  { %v4573_v9 = vmul.f32 0.5, %v4531_v57  ;;  %4790 = vadd.xlane.f32.xlu0 %v13042_v53  ;;  %v4805_v51 = vmul.f32 0.0078125, %v4745_v58  ;;  %v4806_v30 = vmul.f32 0.0078125, %v4747_v12  ;;  %v4865_v45 = vmul.f32 %v13064_v25, %v13064_v25 }
 0x503   :  { %v4572_v40 = vmul.f32 0.5, %v4526_v7  ;;  %v5375_v10 = vpop.f32.mrb[46].mxu1  ;;  %4788 = vadd.xlane.f32.xlu1 %v13045_v63  ;;  %v4866_v17 = vmul.f32 %v13059_v35, %v13059_v35  ;;  %v4867_v46 = vmul.f32 %v13073_v29, %v13073_v29  ;;  %v4868_v22 = vmul.f32 %v13076_v1, %v13076_v1 }
 0x504   :  { %v13050_v18 = vadd.f32 %v4701_v19, %v4573_v9  ;;  %v4541_v8 = vadd.f32 %v5375_v10, %v12954_v59  ;;  %v4535_v31 = vpop.f32.mrb[47].mxu1  ;;  %v4751_v49 = vpop.xlane.xlu0 %4750  ;;  %v13081_v57 = vsub.f32 %v12971_v0, %v4805_v51  ;;  %v13084_v38 = vsub.f32 %v12975_v42, %v4806_v30 }
 0x505   :  { %v13053_v26 = vadd.f32 %v4700_v55, %v4572_v40  ;;  %v4536_v48 = vadd.f32 %v4535_v31, %v12952_v28  ;;  %v4749_v27 = vpop.xlane.xlu1 %4748  ;;  %v4808_v5 = vmul.f32 0.0078125, %v4751_v49 }
 0x506   :  { %v4575_v20 = vmul.f32 0.5, %v4541_v8  ;;  %4794 = vadd.xlane.f32.xlu0 %v13050_v18  ;;  %v4807_v19 = vmul.f32 0.0078125, %v4749_v27  ;;  %v4869_v0 = vmul.f32 %v13081_v57, %v13081_v57  ;;  %v4870_v40 = vmul.f32 %v13084_v38, %v13084_v38 }
 0x507   :  { %v4574_v50 = vmul.f32 0.5, %v4536_v48  ;;  %4792 = vadd.xlane.f32.xlu1 %v13053_v26  ;;  %v13096_v42 = vsub.f32 %v12981_v3, %v4808_v5 }
 0x508   :  { %v13061_v59 = vadd.f32 %v4703_v60, %v4575_v20  ;;  %v4755_v7 = vpop.xlane.xlu0 %4754  ;;  %v13091_v55 = vsub.f32 %v12977_v52, %v4807_v19 }
 0x509   :  { %v13066_v28 = vadd.f32 %v4702_v24, %v4574_v50  ;;  %v4753_v23 = vpop.xlane.xlu1 %4752  ;;  %v4810_v9 = vmul.f32 0.0078125, %v4755_v7  ;;  %v4872_v3 = vmul.f32 %v13096_v42, %v13096_v42 }
 0x50a   :  { %4798 = vadd.xlane.f32.xlu0 %v13061_v59  ;;  %v4809_v43 = vmul.f32 0.0078125, %v4753_v23  ;;  %v4871_v52 = vmul.f32 %v13091_v55, %v13091_v55 }
 0x50b   :  { %4796 = vadd.xlane.f32.xlu1 %v13066_v28  ;;  %v13104_v32 = vsub.f32 %v12984_v11, %v4810_v9 }
 0x50c   :  { %v13101_v10 = vsub.f32 %v12986_v6, %v4809_v43 }
 0x50d   :  { %v4874_v6 = vmul.f32 %v13104_v32, %v13104_v32 }
 0x50e   :  { %4899 = vadd.xlane.f32.xlu0 %v4866_v17  ;;  %v4873_v31 = vmul.f32 %v13101_v10, %v13101_v10 }
 0x50f   :  { %4897 = vadd.xlane.f32.xlu1 %v4865_v45 }
 0x512   :  { %4903 = vadd.xlane.f32.xlu0 %v4868_v22 }
 0x513   :  { %4901 = vadd.xlane.f32.xlu1 %v4867_v46 }
 0x516   :  { %4907 = vadd.xlane.f32.xlu0 %v4870_v40 }
 0x517   :  { %4905 = vadd.xlane.f32.xlu1 %v4869_v0 }
 0x519   :  { %v4757_v8 = vpop.xlane.xlu1 %4756  ;;  %v4759_v60 = vpop.xlane.xlu0 %4758 }
 0x51a   :  { %4911 = vadd.xlane.f32.xlu0 %v4872_v3  ;;  %v4811_v54 = vmul.f32 0.0078125, %v4757_v8  ;;  %v4812_v48 = vmul.f32 0.0078125, %v4759_v60 }
 0x51b   :  { %4909 = vadd.xlane.f32.xlu1 %v4871_v52 }
 0x51c   :  { %v13115_v11 = vsub.f32 %v12992_v13, %v4811_v54  ;;  %v13118_v24 = vsub.f32 %v12990_v14, %v4812_v48 }
 0x51e   :  { %4915 = vadd.xlane.f32.xlu0 %v4874_v6  ;;  %v4875_v12 = vmul.f32 %v13115_v11, %v13115_v11  ;;  %v4876_v20 = vmul.f32 %v13118_v24, %v13118_v24 }
 0x51f   :  { %4913 = vadd.xlane.f32.xlu1 %v4873_v31 }
 0x522   :  { %4919 = vadd.xlane.f32.xlu0 %v4876_v20 }
 0x523   :  { %4917 = vadd.xlane.f32.xlu1 %v4875_v12  ;;  %v4763_v50 = vpop.xlane.xlu0 %4762 }
 0x524   :  { %v4761_v58 = vpop.xlane.xlu1 %4760  ;;  %v4814_v39 = vmul.f32 0.0078125, %v4763_v50 }
 0x525   :  { %v4813_v2 = vmul.f32 0.0078125, %v4761_v58 }
 0x526   :  { %v13128_v13 = vsub.f32 %v12996_v56, %v4814_v39 }
 0x527   :  { %v13125_v51 = vsub.f32 %v12998_v34, %v4813_v2 }
 0x528   :  { %v4878_v49 = vmul.f32 %v13128_v13, %v13128_v13 }
 0x529   :  { %v4877_v14 = vmul.f32 %v13125_v51, %v13125_v51 }
 0x52a   :  { %4923 = vadd.xlane.f32.xlu0 %v4878_v49 }
 0x52b   :  { %4921 = vadd.xlane.f32.xlu1 %v4877_v14 }
 0x53b   :  { %v4765_v17 = vpop.xlane.xlu1 %4764 }
 0x53c   :  { %v4815_v27 = vmul.f32 0.0078125, %v4765_v17  ;;  %v4767_v30 = vpop.xlane.xlu0 %4766 }
 0x53d   :  { %v4816_v45 = vmul.f32 0.0078125, %v4767_v30 }
 0x53e   :  { %v13135_v19 = vsub.f32 %v13002_v36, %v4815_v27 }
 0x53f   :  { %v13138_v34 = vsub.f32 %v13004_v37, %v4816_v45 }
 0x540   :  { %v4879_v56 = vmul.f32 %v13135_v19, %v13135_v19 }
 0x541   :  { %v4880_v5 = vmul.f32 %v13138_v34, %v13138_v34 }
 0x542   :  { %4925 = vadd.xlane.f32.xlu1 %v4879_v56 }
 0x543   :  { %4927 = vadd.xlane.f32.xlu0 %v4880_v5 }
 0x54e   :  { %v4769_v46 = vpop.xlane.xlu1 %4768 }
 0x54f   :  { %v4817_v22 = vmul.f32 0.0078125, %v4769_v46 }
 0x551   :  { %v13145_v23 = vsub.f32 %v13008_v44, %v4817_v22  ;;  %v4771_v7 = vpop.xlane.xlu0 %4770 }
 0x552   :  { %v4818_v0 = vmul.f32 0.0078125, %v4771_v7 }
 0x553   :  { %v4881_v36 = vmul.f32 %v13145_v23, %v13145_v23 }
 0x554   :  { %v13150_v37 = vsub.f32 %v13011_v61, %v4818_v0 }
 0x555   :  { %4929 = vadd.xlane.f32.xlu1 %v4881_v36 }
 0x556   :  { %v4882_v43 = vmul.f32 %v13150_v37, %v13150_v37 }
 0x558   :  { %4931 = vadd.xlane.f32.xlu0 %v4882_v43 }
 0x562   :  { %v4773_v9 = vpop.xlane.xlu1 %4772 }
 0x563   :  { %v4819_v40 = vmul.f32 0.0078125, %v4773_v9 }
 0x565   :  { %v13155_v52 = vsub.f32 %v13014_v41, %v4819_v40  ;;  %v4775_v44 = vpop.xlane.xlu0 %4774 }
 0x566   :  { %v4820_v3 = vmul.f32 0.0078125, %v4775_v44 }
 0x567   :  { %v4883_v8 = vmul.f32 %v13155_v52, %v13155_v52 }
 0x568   :  { %v13160_v60 = vsub.f32 %v13017_v33, %v4820_v3 }
 0x569   :  { %4933 = vadd.xlane.f32.xlu1 %v4883_v8 }
 0x56a   :  { %v4884_v61 = vmul.f32 %v13160_v60, %v13160_v60 }
 0x56c   :  { %4935 = vadd.xlane.f32.xlu0 %v4884_v61 }
 0x576   :  { %v4777_v31 = vpop.xlane.xlu1 %4776 }
 0x577   :  { %v4821_v6 = vmul.f32 0.0078125, %v4777_v31 }
 0x578   :  { %v4779_v41 = vpop.xlane.xlu0 %4778 }
 0x579   :  { %v13165_v54 = vsub.f32 %v13020_v21, %v4821_v6  ;;  %v4822_v48 = vmul.f32 0.0078125, %v4779_v41 }
 0x57b   :  { %v4885_v12 = vmul.f32 %v13165_v54, %v13165_v54  ;;  %v13170_v20 = vsub.f32 %v13023_v62, %v4822_v48 }
 0x57d   :  { %4937 = vadd.xlane.f32.xlu1 %v4885_v12  ;;  %v4886_v33 = vmul.f32 %v13170_v20, %v13170_v20 }
 0x57f   :  { %4939 = vadd.xlane.f32.xlu0 %v4886_v33 }
 0x587   :  { %v4783_v50 = vpop.xlane.xlu0 %4782 }
 0x588   :  { %v4781_v58 = vpop.xlane.xlu1 %4780  ;;  %v4824_v39 = vmul.f32 0.0078125, %v4783_v50 }
 0x589   :  { %v4823_v2 = vmul.f32 0.0078125, %v4781_v58 }
 0x58a   :  { %v13178_v14 = vsub.f32 %v13027_v15, %v4824_v39 }
 0x58b   :  { %v13175_v21 = vsub.f32 %v13029_v16, %v4823_v2  ;;  %v4787_v17 = vpop.xlane.xlu0 %4786 }
 0x58c   :  { %v4785_v49 = vpop.xlane.xlu1 %4784  ;;  %v4826_v62 = vmul.f32 0.0078125, %v4787_v17  ;;  %v4888_v45 = vmul.f32 %v13178_v14, %v13178_v14 }
 0x58d   :  { %v4825_v27 = vmul.f32 0.0078125, %v4785_v49  ;;  %v4887_v30 = vmul.f32 %v13175_v21, %v13175_v21 }
 0x58e   :  { %v13188_v5 = vsub.f32 %v13034_v4, %v4826_v62  ;;  %4943 = vadd.xlane.f32.xlu0 %v4888_v45 }
 0x58f   :  { %v13185_v56 = vsub.f32 %v13037_v47, %v4825_v27  ;;  %4941 = vadd.xlane.f32.xlu1 %v4887_v30  ;;  %v4791_v16 = vpop.xlane.xlu0 %4790 }
 0x590   :  { %v4789_v15 = vpop.xlane.xlu1 %4788  ;;  %v4828_v22 = vmul.f32 0.0078125, %v4791_v16  ;;  %v4890_v0 = vmul.f32 %v13188_v5, %v13188_v5 }
 0x591   :  { %v4827_v46 = vmul.f32 0.0078125, %v4789_v15  ;;  %v4889_v7 = vmul.f32 %v13185_v56, %v13185_v56 }
 0x592   :  { %v13198_v47 = vsub.f32 %v13042_v53, %v4828_v22  ;;  %4947 = vadd.xlane.f32.xlu0 %v4890_v0 }
 0x593   :  { %v13195_v36 = vsub.f32 %v13045_v63, %v4827_v46  ;;  %4945 = vadd.xlane.f32.xlu1 %v4889_v7  ;;  %v4795_v43 = vpop.xlane.xlu0 %4794 }
 0x594   :  { %v4793_v4 = vpop.xlane.xlu1 %4792  ;;  %v4830_v40 = vmul.f32 0.0078125, %v4795_v43  ;;  %v4892_v3 = vmul.f32 %v13198_v47, %v13198_v47 }
 0x595   :  { %v4829_v9 = vmul.f32 0.0078125, %v4793_v4  ;;  %v4891_v44 = vmul.f32 %v13195_v36, %v13195_v36 }
 0x596   :  { %v13208_v63 = vsub.f32 %v13050_v18, %v4830_v40  ;;  %4951 = vadd.xlane.f32.xlu0 %v4892_v3  ;;  %v13224_v3 = vld [vmem:[#allocation8] ss:$0 sm:$0xff] }
 0x597   :  { %v13205_v8 = vsub.f32 %v13053_v26, %v4829_v9  ;;  %4949 = vadd.xlane.f32.xlu1 %v4891_v44  ;;  %v4799_v61 = vpop.xlane.xlu0 %4798 }
 0x598   :  { %v4797_v53 = vpop.xlane.xlu1 %4796  ;;  %v4832_v6 = vmul.f32 0.0078125, %v4799_v61  ;;  %v4894_v48 = vmul.f32 %v13208_v63, %v13208_v63 }
 0x599   :  { %v4831_v31 = vmul.f32 0.0078125, %v4797_v53  ;;  %v4893_v41 = vmul.f32 %v13205_v8, %v13205_v8 }
 0x59a   :  { %v13218_v26 = vsub.f32 %v13061_v59, %v4832_v6  ;;  %4955 = vadd.xlane.f32.xlu0 %v4894_v48 }
 0x59b   :  { %v13215_v12 = vsub.f32 %v13066_v28, %v4831_v31  ;;  %4953 = vadd.xlane.f32.xlu1 %v4893_v41  ;;  %v4900_v33 = vpop.xlane.xlu0 %4899 }
 0x59c   :  { %v4898_v18 = vpop.xlane.xlu1 %4897  ;;  %v4962_v50 = vmul.f32 0.0078125, %v4900_v33  ;;  %v4896_v39 = vmul.f32 %v13218_v26, %v13218_v26 }
 0x59d   :  { %v4961_v58 = vmul.f32 0.0078125, %v4898_v18  ;;  %v4895_v2 = vmul.f32 %v13215_v12, %v13215_v12  ;;  %v13227_v18 = vld [vmem:[#allocation10] ss:$0 sm:$0xff] }
 0x59e   :  { %v4994_v17 = vadd.f32 1e-05, %v4962_v50  ;;  %4959 = vadd.xlane.f32.xlu0 %v4896_v39 }
 0x59f   :  { %v4993_v49 = vadd.f32 1e-05, %v4961_v58  ;;  %4957 = vadd.xlane.f32.xlu1 %v4895_v2  ;;  %v4904_v27 = vpop.xlane.xlu0 %4903 }
 0x5a0   :  { %v4902_v28 = vpop.xlane.xlu1 %4901  ;;  %v4964_v62 = vmul.f32 0.0078125, %v4904_v27 }
 0x5a1   :  { %5558 = vrsqrt.f32 %v4993_v49  ;;  %v4963_v59 = vmul.f32 0.0078125, %v4902_v28 }
 0x5a2   :  { %5560 = vrsqrt.f32 %v4994_v17  ;;  %v4996_v45 = vadd.f32 1e-05, %v4964_v62 }
 0x5a3   :  { %v4995_v30 = vadd.f32 1e-05, %v4963_v59  ;;  %v4908_v16 = vpop.xlane.xlu0 %4907 }
 0x5a4   :  { %v4906_v15 = vpop.xlane.xlu1 %4905  ;;  %v4966_v22 = vmul.f32 0.0078125, %v4908_v16 }
 0x5a5   :  { %5562 = vrsqrt.f32 %v4995_v30  ;;  %v4965_v46 = vmul.f32 0.0078125, %v4906_v15 }
 0x5a6   :  { %5564 = vrsqrt.f32 %v4996_v45  ;;  %v4998_v0 = vadd.f32 1e-05, %v4966_v22 }
 0x5a7   :  { %v4997_v7 = vadd.f32 1e-05, %v4965_v46  ;;  %v4912_v43 = vpop.xlane.xlu0 %4911 }
 0x5a8   :  { %v4910_v4 = vpop.xlane.xlu1 %4909  ;;  %v4968_v40 = vmul.f32 0.0078125, %v4912_v43 }
 0x5a9   :  { %5566 = vrsqrt.f32 %v4997_v7  ;;  %v4967_v9 = vmul.f32 0.0078125, %v4910_v4 }
 0x5aa   :  { %5568 = vrsqrt.f32 %v4998_v0  ;;  %v5000_v61 = vadd.f32 1e-05, %v4968_v40 }
 0x5ab   :  { %v5559_v44 = vpop.eup %5558  ;;  %v4999_v53 = vadd.f32 1e-05, %v4967_v9  ;;  %v4916_v48 = vpop.xlane.xlu0 %4915 }
 0x5ac   :  { %v5561_v31 = vpop.eup %5560  ;;  %v5057_v6 = vmul.f32 %v5559_v44, %v13064_v25  ;;  %v4914_v41 = vpop.xlane.xlu1 %4913  ;;  %v4970_v50 = vmul.f32 0.0078125, %v4916_v48 }
 0x5ad   :  { %v5058_v33 = vmul.f32 %v5561_v31, %v13059_v35  ;;  %5570 = vrsqrt.f32 %v4999_v53  ;;  %v4969_v58 = vmul.f32 0.0078125, %v4914_v41 }
 0x5ae   :  { %v5096_v2 = vmul.f32 %v13224_v3, %v5057_v6  ;;  %5572 = vrsqrt.f32 %v5000_v61  ;;  %v5002_v28 = vadd.f32 1e-05, %v4970_v50 }
 0x5af   :  { %v5563_v39 = vpop.eup %5562  ;;  %v5097_v49 = vmul.f32 %v13224_v3, %v5058_v33  ;;  %v5001_v17 = vadd.f32 1e-05, %v4969_v58  ;;  %v4920_v45 = vpop.xlane.xlu0 %4919 }
 0x5b0   :  { %v5565_v27 = vpop.eup %5564  ;;  %v5135_v25 = vadd.f32 %v13227_v18, %v5096_v2  ;;  %v5059_v59 = vmul.f32 %v5563_v39, %v13073_v29  ;;  %v4918_v30 = vpop.xlane.xlu1 %4917  ;;  %v4972_v46 = vmul.f32 0.0078125, %v4920_v45 }
 0x5b1   :  { %v5136_v62 = vadd.f32 %v13227_v18, %v5097_v49  ;;  %v5060_v35 = vmul.f32 %v5565_v27, %v13076_v1  ;;  %5574 = vrsqrt.f32 %v5001_v17  ;;  %v4971_v16 = vmul.f32 0.0078125, %v4918_v30 }
 0x5b2   :  { %5167 = vst [vmem:[#allocation11] sm:$0xff] %v5135_v25  ;;  %v5098_v15 = vmul.f32 %v13224_v3, %v5059_v59  ;;  %5576 = vrsqrt.f32 %v5002_v28  ;;  %v5004_v1 = vadd.f32 1e-05, %v4972_v46 }
 0x5b3   :  { %v5567_v22 = vpop.eup %5566  ;;  %5168 = vst [vmem:[#allocation11 + $0x8] sm:$0xff] %v5136_v62  ;;  %v5099_v7 = vmul.f32 %v13224_v3, %v5060_v35  ;;  %v5003_v43 = vadd.f32 1e-05, %v4971_v16 }
 0x5b4   :  { %v5569_v0 = vpop.eup %5568  ;;  %v5137_v29 = vadd.f32 %v13227_v18, %v5098_v15  ;;  %v5061_v4 = vmul.f32 %v5567_v22, %v13081_v57 }
 0x5b5   :  { %v5138_v9 = vadd.f32 %v13227_v18, %v5099_v7  ;;  %v5062_v40 = vmul.f32 %v5569_v0, %v13084_v38  ;;  %5578 = vrsqrt.f32 %v5003_v43 }
 0x5b6   :  { %5169 = vst [vmem:[#allocation11 + $0x10] sm:$0xff] %v5137_v29  ;;  %v5100_v44 = vmul.f32 %v13224_v3, %v5061_v4  ;;  %5580 = vrsqrt.f32 %v5004_v1 }
 0x5b7   :  { %v5571_v53 = vpop.eup %5570  ;;  %5170 = vst [vmem:[#allocation11 + $0x18] sm:$0xff] %v5138_v9  ;;  %v5101_v61 = vmul.f32 %v13224_v3, %v5062_v40  ;;  %v4924_v2 = vpop.xlane.xlu0 %4923 }
 0x5b8   :  { %v5573_v31 = vpop.eup %5572  ;;  %v5139_v6 = vadd.f32 %v13227_v18, %v5100_v44  ;;  %v5063_v57 = vmul.f32 %v5571_v53, %v13091_v55  ;;  %v4922_v50 = vpop.xlane.xlu1 %4921  ;;  %v4974_v55 = vmul.f32 0.0078125, %v4924_v2 }
 0x5b9   :  { %v5140_v41 = vadd.f32 %v13227_v18, %v5101_v61  ;;  %v5064_v48 = vmul.f32 %v5573_v31, %v13096_v42  ;;  %v4973_v28 = vmul.f32 0.0078125, %v4922_v50 }
 0x5ba   :  { %5171 = vst [vmem:[#allocation11 + $0x20] sm:$0xff] %v5139_v6  ;;  %v5102_v38 = vmul.f32 %v13224_v3, %v5063_v57  ;;  %v5006_v62 = vadd.f32 1e-05, %v4974_v55 }
 0x5bb   :  { %v5575_v33 = vpop.eup %5574  ;;  %5172 = vst [vmem:[#allocation11 + $0x28] sm:$0xff] %v5140_v41  ;;  %v5103_v58 = vmul.f32 %v13224_v3, %v5064_v48  ;;  %v5005_v59 = vadd.f32 1e-05, %v4973_v28 }
 0x5bc   :  { %v5577_v39 = vpop.eup %5576  ;;  %v5141_v49 = vadd.f32 %v13227_v18, %v5102_v38  ;;  %v5065_v17 = vmul.f32 %v5575_v33, %v13101_v10 }
 0x5bd   :  { %v5142_v27 = vadd.f32 %v13227_v18, %v5103_v58  ;;  %v5066_v42 = vmul.f32 %v5577_v39, %v13104_v32  ;;  %5582 = vrsqrt.f32 %v5005_v59 }
 0x5be   :  { %5173 = vst [vmem:[#allocation11 + $0x30] sm:$0xff] %v5141_v49  ;;  %v5104_v25 = vmul.f32 %v13224_v3, %v5065_v17  ;;  %5584 = vrsqrt.f32 %v5006_v62 }
 0x5bf   :  { %5174 = vst [vmem:[#allocation11 + $0x38] sm:$0xff] %v5142_v27  ;;  %v5105_v35 = vmul.f32 %v13224_v3, %v5066_v42  ;;  %v5579_v30 = vpop.eup %5578 }
 0x5c0   :  { %v5143_v45 = vadd.f32 %v13227_v18, %v5104_v25  ;;  %v5581_v15 = vpop.eup %5580  ;;  %v5067_v16 = vmul.f32 %v5579_v30, %v13115_v11 }
 0x5c1   :  { %v5144_v10 = vadd.f32 %v13227_v18, %v5105_v35  ;;  %v5068_v32 = vmul.f32 %v5581_v15, %v13118_v24 }
 0x5c2   :  { %5175 = vst [vmem:[#allocation11 + $0x40] sm:$0xff] %v5143_v45  ;;  %v5106_v46 = vmul.f32 %v13224_v3, %v5067_v16 }
 0x5c3   :  { %5176 = vst [vmem:[#allocation11 + $0x48] sm:$0xff] %v5144_v10  ;;  %v5107_v22 = vmul.f32 %v13224_v3, %v5068_v32 }
 0x5c4   :  { %v5145_v7 = vadd.f32 %v13227_v18, %v5106_v46 }
 0x5c5   :  { %v5146_v0 = vadd.f32 %v13227_v18, %v5107_v22 }
 0x5c6   :  { %5177 = vst [vmem:[#allocation11 + $0x50] sm:$0xff] %v5145_v7 }
 0x5c7   :  { %5178 = vst [vmem:[#allocation11 + $0x58] sm:$0xff] %v5146_v0  ;;  %v5583_v29 = vpop.eup %5582 }
 0x5c8   :  { %v5585_v4 = vpop.eup %5584  ;;  %v5069_v43 = vmul.f32 %v5583_v29, %v13125_v51 }
 0x5c9   :  { %v5070_v11 = vmul.f32 %v5585_v4, %v13128_v13 }
 0x5ca   :  { %v5108_v1 = vmul.f32 %v13224_v3, %v5069_v43 }
 0x5cb   :  { %v5109_v24 = vmul.f32 %v13224_v3, %v5070_v11 }
 0x5cc   :  { %v5147_v9 = vadd.f32 %v13227_v18, %v5108_v1 }
 0x5cd   :  { %v5148_v40 = vadd.f32 %v13227_v18, %v5109_v24 }
 0x5ce   :  { %5179 = vst [vmem:[#allocation11 + $0x60] sm:$0xff] %v5147_v9 }
 0x5cf   :  { %5180 = vst [vmem:[#allocation11 + $0x68] sm:$0xff] %v5148_v40  ;;  %v4926_v44 = vpop.xlane.xlu1 %4925 }
 0x5d0   :  { %v4975_v53 = vmul.f32 0.0078125, %v4926_v44  ;;  %v4928_v61 = vpop.xlane.xlu0 %4927 }
 0x5d1   :  { %v4976_v31 = vmul.f32 0.0078125, %v4928_v61 }
 0x5d2   :  { %v5007_v6 = vadd.f32 1e-05, %v4975_v53 }
 0x5d3   :  { %v5008_v57 = vadd.f32 1e-05, %v4976_v31 }
 0x5d4   :  { %5586 = vrsqrt.f32 %v5007_v6 }
 0x5d5   :  { %5588 = vrsqrt.f32 %v5008_v57 }
 0x5de   :  { %v5587_v51 = vpop.eup %5586 }
 0x5df   :  { %v5589_v13 = vpop.eup %5588  ;;  %v5071_v41 = vmul.f32 %v5587_v51, %v13135_v19 }
 0x5e0   :  { %v5072_v48 = vmul.f32 %v5589_v13, %v13138_v34 }
 0x5e1   :  { %v5110_v38 = vmul.f32 %v13224_v3, %v5071_v41 }
 0x5e2   :  { %v4930_v33 = vpop.xlane.xlu1 %4929  ;;  %v5111_v58 = vmul.f32 %v13224_v3, %v5072_v48 }
 0x5e3   :  { %v4977_v50 = vmul.f32 0.0078125, %v4930_v33  ;;  %v5149_v2 = vadd.f32 %v13227_v18, %v5110_v38 }
 0x5e4   :  { %v5150_v39 = vadd.f32 %v13227_v18, %v5111_v58 }
 0x5e5   :  { %v5009_v49 = vadd.f32 1e-05, %v4977_v50  ;;  %v4932_v17 = vpop.xlane.xlu0 %4931  ;;  %5181 = vst [vmem:[#allocation11 + $0x70] sm:$0xff] %v5149_v2 }
 0x5e6   :  { %v4978_v28 = vmul.f32 0.0078125, %v4932_v17  ;;  %5182 = vst [vmem:[#allocation11 + $0x78] sm:$0xff] %v5150_v39 }
 0x5e7   :  { %5590 = vrsqrt.f32 %v5009_v49 }
 0x5e8   :  { %v5010_v55 = vadd.f32 1e-05, %v4978_v28 }
 0x5ea   :  { %5592 = vrsqrt.f32 %v5010_v55 }
 0x5f1   :  { %v5591_v19 = vpop.eup %5590 }
 0x5f2   :  { %v5073_v34 = vmul.f32 %v5591_v19, %v13145_v23 }
 0x5f4   :  { %v5593_v27 = vpop.eup %5592  ;;  %v5112_v42 = vmul.f32 %v13224_v3, %v5073_v34 }
 0x5f5   :  { %v5074_v25 = vmul.f32 %v5593_v27, %v13150_v37 }
 0x5f6   :  { %v4934_v59 = vpop.xlane.xlu1 %4933  ;;  %v5151_v62 = vadd.f32 %v13227_v18, %v5112_v42 }
 0x5f7   :  { %v4979_v35 = vmul.f32 0.0078125, %v4934_v59  ;;  %v5113_v30 = vmul.f32 %v13224_v3, %v5074_v25 }
 0x5f8   :  { %5183 = vst [vmem:[#allocation11 + $0x80] sm:$0xff] %v5151_v62 }
 0x5f9   :  { %v5011_v45 = vadd.f32 1e-05, %v4979_v35  ;;  %v4936_v15 = vpop.xlane.xlu0 %4935  ;;  %v5152_v10 = vadd.f32 %v13227_v18, %v5113_v30 }
 0x5fa   :  { %v4980_v16 = vmul.f32 0.0078125, %v4936_v15 }
 0x5fb   :  { %5594 = vrsqrt.f32 %v5011_v45  ;;  %5184 = vst [vmem:[#allocation11 + $0x88] sm:$0xff] %v5152_v10 }
 0x5fc   :  { %v5012_v23 = vadd.f32 1e-05, %v4980_v16 }
 0x5fe   :  { %5596 = vrsqrt.f32 %v5012_v23 }
 0x605   :  { %v5595_v32 = vpop.eup %5594 }
 0x606   :  { %v5075_v46 = vmul.f32 %v5595_v32, %v13155_v52 }
 0x608   :  { %v5597_v37 = vpop.eup %5596  ;;  %v5114_v22 = vmul.f32 %v13224_v3, %v5075_v46 }
 0x609   :  { %v5076_v7 = vmul.f32 %v5597_v37, %v13160_v60 }
 0x60a   :  { %v4938_v0 = vpop.xlane.xlu1 %4937  ;;  %v5153_v29 = vadd.f32 %v13227_v18, %v5114_v22 }
 0x60b   :  { %v4981_v4 = vmul.f32 0.0078125, %v4938_v0  ;;  %v5115_v43 = vmul.f32 %v13224_v3, %v5076_v7 }
 0x60c   :  { %5185 = vst [vmem:[#allocation11 + $0x90] sm:$0xff] %v5153_v29  ;;  %v4940_v1 = vpop.xlane.xlu0 %4939 }
 0x60d   :  { %v5013_v11 = vadd.f32 1e-05, %v4981_v4  ;;  %v5154_v24 = vadd.f32 %v13227_v18, %v5115_v43  ;;  %v4982_v9 = vmul.f32 0.0078125, %v4940_v1 }
 0x60f   :  { %5598 = vrsqrt.f32 %v5013_v11  ;;  %5186 = vst [vmem:[#allocation11 + $0x98] sm:$0xff] %v5154_v24  ;;  %v5014_v52 = vadd.f32 1e-05, %v4982_v9 }
 0x611   :  { %5600 = vrsqrt.f32 %v5014_v52 }
 0x619   :  { %v5599_v40 = vpop.eup %5598 }
 0x61a   :  { %v5077_v44 = vmul.f32 %v5599_v40, %v13165_v54 }
 0x61b   :  { %v5601_v60 = vpop.eup %5600  ;;  %v4944_v31 = vpop.xlane.xlu0 %4943 }
 0x61c   :  { %v5116_v53 = vmul.f32 %v13224_v3, %v5077_v44  ;;  %v4942_v61 = vpop.xlane.xlu1 %4941  ;;  %v5078_v6 = vmul.f32 %v5601_v60, %v13170_v20  ;;  %v4984_v51 = vmul.f32 0.0078125, %v4944_v31 }
 0x61d   :  { %v4983_v57 = vmul.f32 0.0078125, %v4942_v61 }
 0x61e   :  { %v5155_v13 = vadd.f32 %v13227_v18, %v5116_v53  ;;  %v5117_v41 = vmul.f32 %v13224_v3, %v5078_v6  ;;  %v5016_v38 = vadd.f32 1e-05, %v4984_v51 }
 0x61f   :  { %v5015_v48 = vadd.f32 1e-05, %v4983_v57  ;;  %v4948_v58 = vpop.xlane.xlu0 %4947 }
 0x620   :  { %5187 = vst [vmem:[#allocation11 + $0xa0] sm:$0xff] %v5155_v13  ;;  %v4946_v33 = vpop.xlane.xlu1 %4945  ;;  %v5156_v54 = vadd.f32 %v13227_v18, %v5117_v41  ;;  %v4986_v2 = vmul.f32 0.0078125, %v4948_v58 }
 0x621   :  { %5602 = vrsqrt.f32 %v5015_v48  ;;  %v4985_v50 = vmul.f32 0.0078125, %v4946_v33 }
 0x622   :  { %5604 = vrsqrt.f32 %v5016_v38  ;;  %5188 = vst [vmem:[#allocation11 + $0xa8] sm:$0xff] %v5156_v54  ;;  %v5018_v20 = vadd.f32 1e-05, %v4986_v2 }
 0x623   :  { %v5017_v39 = vadd.f32 1e-05, %v4985_v50  ;;  %v4952_v17 = vpop.xlane.xlu0 %4951 }
 0x624   :  { %v4950_v49 = vpop.xlane.xlu1 %4949  ;;  %v4988_v55 = vmul.f32 0.0078125, %v4952_v17 }
 0x625   :  { %5606 = vrsqrt.f32 %v5017_v39  ;;  %v4987_v28 = vmul.f32 0.0078125, %v4950_v49 }
 0x626   :  { %5608 = vrsqrt.f32 %v5018_v20  ;;  %v5020_v34 = vadd.f32 1e-05, %v4988_v55 }
 0x627   :  { %v5019_v19 = vadd.f32 1e-05, %v4987_v28  ;;  %v4956_v42 = vpop.xlane.xlu0 %4955 }
 0x628   :  { %v4954_v27 = vpop.xlane.xlu1 %4953  ;;  %v4990_v59 = vmul.f32 0.0078125, %v4956_v42 }
 0x629   :  { %5610 = vrsqrt.f32 %v5019_v19  ;;  %v4989_v25 = vmul.f32 0.0078125, %v4954_v27 }
 0x62a   :  { %5612 = vrsqrt.f32 %v5020_v34  ;;  %v5022_v30 = vadd.f32 1e-05, %v4990_v59 }
 0x62b   :  { %v5603_v62 = vpop.eup %5602  ;;  %v5021_v35 = vadd.f32 1e-05, %v4989_v25  ;;  %v4960_v16 = vpop.xlane.xlu0 %4959 }
 0x62c   :  { %v5605_v45 = vpop.eup %5604  ;;  %v5079_v15 = vmul.f32 %v5603_v62, %v13175_v21  ;;  %v4958_v10 = vpop.xlane.xlu1 %4957  ;;  %v4992_v46 = vmul.f32 0.0078125, %v4960_v16 }
 0x62d   :  { %v5080_v23 = vmul.f32 %v5605_v45, %v13178_v14  ;;  %5614 = vrsqrt.f32 %v5021_v35  ;;  %v4991_v32 = vmul.f32 0.0078125, %v4958_v10 }
 0x62e   :  { %v5118_v37 = vmul.f32 %v13224_v3, %v5079_v15  ;;  %5616 = vrsqrt.f32 %v5022_v30  ;;  %v5024_v29 = vadd.f32 1e-05, %v4992_v46 }
 0x62f   :  { %v5607_v22 = vpop.eup %5606  ;;  %v5119_v7 = vmul.f32 %v13224_v3, %v5080_v23  ;;  %v5023_v0 = vadd.f32 1e-05, %v4991_v32 }
 0x630   :  { %v5609_v4 = vpop.eup %5608  ;;  %v5157_v43 = vadd.f32 %v13227_v18, %v5118_v37  ;;  %v5081_v21 = vmul.f32 %v5607_v22, %v13185_v56 }
 0x631   :  { %v5158_v11 = vadd.f32 %v13227_v18, %v5119_v7  ;;  %v5082_v14 = vmul.f32 %v5609_v4, %v13188_v5  ;;  %5618 = vrsqrt.f32 %v5023_v0 }
 0x632   :  { %5189 = vst [vmem:[#allocation11 + $0xb0] sm:$0xff] %v5157_v43  ;;  %v5120_v1 = vmul.f32 %v13224_v3, %v5081_v21  ;;  %5620 = vrsqrt.f32 %v5024_v29 }
 0x633   :  { %v5611_v24 = vpop.eup %5610  ;;  %5190 = vst [vmem:[#allocation11 + $0xb8] sm:$0xff] %v5158_v11  ;;  %v5121_v9 = vmul.f32 %v13224_v3, %v5082_v14 }
 0x634   :  { %v5613_v52 = vpop.eup %5612  ;;  %v5159_v40 = vadd.f32 %v13227_v18, %v5120_v1  ;;  %v5083_v44 = vmul.f32 %v5611_v24, %v13195_v36 }
 0x635   :  { %v5160_v56 = vadd.f32 %v13227_v18, %v5121_v9  ;;  %v5084_v60 = vmul.f32 %v5613_v52, %v13198_v47 }
 0x636   :  { %5191 = vst [vmem:[#allocation11 + $0xc0] sm:$0xff] %v5159_v40  ;;  %v5122_v5 = vmul.f32 %v13224_v3, %v5083_v44 }
 0x637   :  { %v5615_v53 = vpop.eup %5614  ;;  %5192 = vst [vmem:[#allocation11 + $0xc8] sm:$0xff] %v5160_v56  ;;  %v5123_v61 = vmul.f32 %v13224_v3, %v5084_v60 }
 0x638   :  { %v5617_v31 = vpop.eup %5616  ;;  %v5161_v6 = vadd.f32 %v13227_v18, %v5122_v5  ;;  %v5085_v57 = vmul.f32 %v5615_v53, %v13205_v8 }
 0x639   :  { %v5162_v51 = vadd.f32 %v13227_v18, %v5123_v61  ;;  %v5086_v36 = vmul.f32 %v5617_v31, %v13208_v63 }
 0x63a   :  { %5193 = vst [vmem:[#allocation11 + $0xd0] sm:$0xff] %v5161_v6  ;;  %v5124_v13 = vmul.f32 %v13224_v3, %v5085_v57 }
 0x63b   :  { %v5619_v47 = vpop.eup %5618  ;;  %5194 = vst [vmem:[#allocation11 + $0xd8] sm:$0xff] %v5162_v51  ;;  %v5125_v41 = vmul.f32 %v13224_v3, %v5086_v36 }
 0x63c   :  { %v5621_v48 = vpop.eup %5620  ;;  %v5163_v38 = vadd.f32 %v13227_v18, %v5124_v13  ;;  %v5087_v33 = vmul.f32 %v5619_v47, %v13215_v12 }
 0x63d   :  { %v5164_v58 = vadd.f32 %v13227_v18, %v5125_v41  ;;  %v5088_v8 = vmul.f32 %v5621_v48, %v13218_v26 }
 0x63e   :  { %5195 = vst [vmem:[#allocation11 + $0xe0] sm:$0xff] %v5163_v38  ;;  %v5126_v54 = vmul.f32 %v13224_v3, %v5087_v33 }
 0x63f   :  { %5196 = vst [vmem:[#allocation11 + $0xe8] sm:$0xff] %v5164_v58  ;;  %v5127_v63 = vmul.f32 %v13224_v3, %v5088_v8 }
 0x640   :  { %v5165_v50 = vadd.f32 %v13227_v18, %v5126_v54 }
 0x641   :  { %v5166_v2 = vadd.f32 %v13227_v18, %v5127_v63 }
 0x642   :  { %5197 = vst [vmem:[#allocation11 + $0xf0] sm:$0xff] %v5165_v50 }
 0x643   :  { %5198 = vst [vmem:[#allocation11 + $0xf8] sm:$0xff] %v5166_v2 }
 0x644   :  { %5828 = shalt.err (!%p5825_p2)
}
 0x645   :  { %s5829_s9 = scalar_lea.hbm %s13344_s5, 4096 }
 0x646   :  { %p5830_p3 = scmp.ne.s32.totalorder %s13344_s5, %s5829_s9  ;;  %p5833_p4 = scmp.lt.u32.totalorder %s5829_s9, %s13344_s5 }
 0x648   :  { %p5835_p5 = pnand %p5833_p4, %p5830_p3 }
 0x64a   :  { %5838 = shalt.err (!%p5835_p5)
}
 0x64b   :  { %5210 = dma.vmem_to_hbm [thread:$0]  %s5205_s7, 4096, %s13344_s5, [#allocation4], %s5849_s30, %s5849_s30, %s5850_s6  }
 0x64c   :  { %5845 = dma.done.wait [#allocation4], 4096  }
 0x64d   :  { %5846 = vsyncadd [#allocation4], 4294963200 }
 0x64e   :  { %5214 = vsyncpa [#allocation3], 1 }
 0x64f   :  { %5215 = vsyncpa [#allocation6], 1 }
 0x650   :  { %5216 = vsyncpa [#allocation9], 1 }
 0x651   :  { %5217 = vsyncpa [#allocation4], 1 }

</bundles_post_ra>
